<compile_context>
chip_gen: v7x
topology: tpu7x:2x2x1
jax: 0.10.0
libtpu: 0.0.40
codegen_flags: <defaults>
</compile_context>

<pallas_src>
import functools

import jax
import jax.numpy as jnp
from jax.experimental import pallas as pl
from jax.experimental.pallas import tpu as pltpu


# ----------------------------------------------------------------------------
# Pallas kernel: fused MHA forward for one batch element
# ----------------------------------------------------------------------------
def _mha_kernel(p_ref, x_ref, wqkv_ref, wo_ref, o_ref, *, num_heads, head_dim):
    eps = 1e-5  # PyTorch nn.LayerNorm default
    inner = num_heads * head_dim
    N = x_ref.shape[0]

    def layernorm(v, g, b):
        mu = jnp.mean(v, axis=-1, keepdims=True)
        vc = v - mu
        var = jnp.mean(vc * vc, axis=-1, keepdims=True)
        return vc * jax.lax.rsqrt(var + eps) * g + b

    # Unpack the packed (8, 128) parameter tile (rows: see wrapper).
    ng = p_ref[0:1, :]
    nb = p_ref[1:2, :]
    qg = p_ref[2:3, :]   # head_dim**-0.5 already folded into qg / qb
    qb = p_ref[3:4, :]
    kg = p_ref[4:5, :]
    kb = p_ref[5:6, :]
    bo = p_ref[6:7, :]

    x = x_ref[...].astype(jnp.float32)                        # (N, E)

    # self.norm (f32 VPU math)
    xn = layernorm(x, ng, nb)

    # self.to_qkv (no bias): bf16 MXU operands, f32 accumulation
    qkv = jnp.dot(xn.astype(jnp.bfloat16), wqkv_ref[...],
                  preferred_element_type=jnp.float32)         # (N, 3*inner)

    # normalize_qk=True (f32); q-scale is folded into qg/qb
    q = layernorm(qkv[:, :inner], qg, qb)
    k = layernorm(qkv[:, inner:2 * inner], kg, kb)
    v = qkv[:, 2 * inner:]

    # (N, inner) -> (H, N, D): one relayout per tensor, no per-head slices.
    def to_heads(t):
        t = t.astype(jnp.bfloat16).reshape(N, num_heads, head_dim)
        return jnp.transpose(t, (1, 0, 2))                    # (H, N, D)

    qh, kh, vh = to_heads(q), to_heads(k), to_heads(v)

    # Head-batched attention on the MXU (flash_attention=True path of SDPA).
    s = jnp.einsum('hnd,hmd->hnm', qh, kh,
                   preferred_element_type=jnp.float32)        # (H, N, N)
    s = s - jnp.max(s, axis=-1, keepdims=True)
    p = jnp.exp(s)
    p = p * pl.reciprocal(jnp.sum(p, axis=-1, keepdims=True), approx=True)

    oh = jnp.einsum('hnm,hmd->hnd', p.astype(jnp.bfloat16), vh,
                    preferred_element_type=jnp.float32)       # (H, N, D)
    att = jnp.transpose(oh, (1, 0, 2)).reshape(N, inner)      # (N, inner)

    # self.attn_out[0] (Linear inner -> emb) + bias
    out = jnp.dot(att.astype(jnp.bfloat16), wo_ref[...],
                  preferred_element_type=jnp.float32) + bo

    # TODO(synk): nn.Dropout(p=0.0) (after attention and in attn_out) is the
    # identity at inference and is omitted.
    o_ref[...] = out.astype(o_ref.dtype)


# ----------------------------------------------------------------------------
# Wrapper
# ----------------------------------------------------------------------------
def attention_forward(x, ng, nb, wqkv, qg, qb, kg, kb, wo, bo, *,
                      num_heads, head_dim):
    """x: (B, N, E) -> (B, N, E). Weights are module (f32) params."""
    B, N, E = x.shape
    inner = num_heads * head_dim
    assert wqkv.shape == (E, 3 * inner)
    assert wo.shape == (inner, E)
    # Packing the 7 small vectors into one (8, E) tile assumes emb == inner.
    assert E == inner, "parameter packing assumes emb_dim == inner_dim"

    scale = head_dim ** -0.5  # F.scaled_dot_product_attention default scale
    rows = jnp.concatenate(
        [ng.reshape(1, E), nb.reshape(1, E),
         (qg * scale).reshape(1, E), (qb * scale).reshape(1, E),
         kg.reshape(1, E), kb.reshape(1, E), bo.reshape(1, E)], axis=0)
    params = jnp.zeros((8, E), jnp.float32).at[:7].set(rows.astype(jnp.float32))

    # bf16 weights for the MXU (f32 accumulation inside the kernel).
    wqkv_bf = wqkv.astype(jnp.bfloat16)
    wo_bf = wo.astype(jnp.bfloat16)

    kernel = functools.partial(_mha_kernel, num_heads=num_heads,
                               head_dim=head_dim)

    return pl.pallas_call(
        kernel,
        out_shape=jax.ShapeDtypeStruct((B, N, E), x.dtype),
        grid_spec=pltpu.PrefetchScalarGridSpec(
            num_scalar_prefetch=0,
            grid=(B,),
            in_specs=[
                pl.BlockSpec((8, E), lambda b: (0, 0)),                    # packed params
                pl.BlockSpec((pl.Squeezed(), N, E), lambda b: (b, 0, 0)),  # inputs
                pl.BlockSpec((E, 3 * inner), lambda b: (0, 0)),            # W_qkv (bf16)
                pl.BlockSpec((inner, E), lambda b: (0, 0)),                # W_out (bf16)
            ],
            out_specs=pl.BlockSpec((pl.Squeezed(), N, E), lambda b: (b, 0, 0)),
        ),
        compiler_params=pltpu.CompilerParams(
            dimension_semantics=("parallel",)),   # B parallel steps (v7x: 2 TCs)
    )(params, x, wqkv_bf, wo_bf)


# ----------------------------------------------------------------------------
# Pure-JAX reference (module semantics, full f32)
# ----------------------------------------------------------------------------
def attention_reference(x, ng, nb, wqkv, qg, qb, kg, kb, wo, bo, num_heads):
    eps = 1e-5

    def layernorm(v, g, b):
        mu = jnp.mean(v, axis=-1, keepdims=True)
        var = jnp.mean((v - mu) ** 2, axis=-1, keepdims=True)
        return (v - mu) * jax.lax.rsqrt(var + eps) * g + b

    with jax.default_matmul_precision("highest"):
        B, N, E = x.shape
        inner = wqkv.shape[1] // 3
        D = inner // num_heads
        xn = layernorm(x.astype(jnp.float32), ng[0], nb[0])
        qkv = jnp.dot(xn, wqkv)
        q, k, v = qkv[..., :inner], qkv[..., inner:2 * inner], qkv[..., 2 * inner:]
        q = layernorm(q, qg[0], qb[0])
        k = layernorm(k, kg[0], kb[0])
        q = q * (D ** -0.5)
        qh = q.reshape(B, N, num_heads, D).transpose(0, 2, 1, 3)
        kh = k.reshape(B, N, num_heads, D).transpose(0, 2, 1, 3)
        vh = v.reshape(B, N, num_heads, D).transpose(0, 2, 1, 3)
        s = jnp.einsum("bhnd,bhmd->bhnm", qh, kh)
        p = jax.nn.softmax(s, axis=-1)
        o = jnp.einsum("bhnm,bhmd->bhnd", p, vh)
        o = o.transpose(0, 2, 1, 3).reshape(B, N, inner)
        return jnp.dot(o, wo) + bo[0]


# ----------------------------------------------------------------------------
# Main
# ----------------------------------------------------------------------------
if __name__ == "__main__":
    # Module configuration (small but MXU / lane friendly)
    B, N = 2, 128             # batch, sequence length
    EMB = 128                 # emb_dim
    HEADS = 4                 # num_heads
    HEAD_DIM = 32             # head_dim
    INNER = HEADS * HEAD_DIM  # inner_dim = 128

    key = jax.random.PRNGKey(0)
    ks = jax.random.split(key, 10)

    x = jax.random.normal(ks[0], (B, N, EMB), dtype=jnp.float32)

    # LayerNorm params (randomized so the check exercises them)
    ng = 1.0 + 0.1 * jax.random.normal(ks[1], (1, EMB), jnp.float32)
    nb = 0.1 * jax.random.normal(ks[2], (1, EMB), jnp.float32)
    qg = 1.0 + 0.1 * jax.random.normal(ks[3], (1, INNER), jnp.float32)
    qb = 0.1 * jax.random.normal(ks[4], (1, INNER), jnp.float32)
    kg = 1.0 + 0.1 * jax.random.normal(ks[5], (1, INNER), jnp.float32)
    kb = 0.1 * jax.random.normal(ks[6], (1, INNER), jnp.float32)

    # Linear weights stored pre-transposed for y = x @ W (+ b)
    wqkv = jax.random.normal(ks[7], (EMB, 3 * INNER), jnp.float32) * (EMB ** -0.5)
    wo = jax.random.normal(ks[8], (INNER, EMB), jnp.float32) * (INNER ** -0.5)
    bo = 0.01 * jax.random.normal(ks[9], (1, EMB), jnp.float32)

    # Pallas kernel
    out = attention_forward(x, ng, nb, wqkv, qg, qb, kg, kb, wo, bo,
                            num_heads=HEADS, head_dim=HEAD_DIM)
    out = jax.block_until_ready(out)

    # Correctness check vs. full-f32 reference. Tolerance is loosened relative
    # to the previous (f32-matmul) version because MXU operands are now bf16
    # (f32 accumulation) -- an accuracy/perf tradeoff, not a bug.
    ref = attention_reference(x, ng, nb, wqkv, qg, qb, kg, kb, wo, bo, HEADS)
    assert out.shape == (B, N, EMB)
    max_err = float(jnp.max(jnp.abs(out - ref)))
    assert jnp.allclose(out, ref, atol=5e-2, rtol=5e-2), \
        f"mismatch vs reference, max abs err = {max_err}"

    # TODO(synk): grad_checkpointing only changes the backward pass; the
    # non-flash path (scale = emb_dim**-0.5) is not implemented since
    # flash_attention=True is the module default.
    print("KERNEL_OK")
</pallas_src>

<mosaic_0001>
module attributes {stable_mosaic.version = 11 : i64} {
  func.func @_mha_kernel(%arg0: i32, %arg1: memref<8x128xf32, #tpu.memory_space<vmem>>, %arg2: memref<1x128x128xf32, #tpu.memory_space<vmem>>, %arg3: memref<128x384xbf16, #tpu.memory_space<vmem>>, %arg4: memref<128x128xbf16, #tpu.memory_space<vmem>>, %arg5: memref<1x128x128xf32, #tpu.memory_space<vmem>>) attributes {dimension_semantics = [#tpu.dimension_semantics<parallel>], iteration_bounds = array<i64: 2>, scalar_prefetch = 0 : i64, scratch_operands = 0 : i64, tpu.core_type = #tpu.core_type<tc>, window_params = [{pipeline_mode = #tpu.pipeline_mode<synchronous>, transform_indices = @transform_0, window_bounds = array<i64: 8, 128>}, {transform_indices = @transform_1, window_bounds = array<i64: 1, 128, 128>}, {pipeline_mode = #tpu.pipeline_mode<synchronous>, transform_indices = @transform_2, window_bounds = array<i64: 128, 384>}, {pipeline_mode = #tpu.pipeline_mode<synchronous>, transform_indices = @transform_3, window_bounds = array<i64: 128, 128>}, {transform_indices = @transform_4, window_bounds = array<i64: 1, 128, 128>}]} {
    %c0 = arith.constant 0 : index
    %c0_0 = arith.constant 0 : index
    %0 = vector.load %arg1[%c0, %c0_0] : memref<8x128xf32, #tpu.memory_space<vmem>>, vector<1x128xf32>
    %c1 = arith.constant 1 : index
    %c0_1 = arith.constant 0 : index
    %1 = vector.load %arg1[%c1, %c0_1] : memref<8x128xf32, #tpu.memory_space<vmem>>, vector<1x128xf32>
    %c2 = arith.constant 2 : index
    %c0_2 = arith.constant 0 : index
    %2 = vector.load %arg1[%c2, %c0_2] : memref<8x128xf32, #tpu.memory_space<vmem>>, vector<1x128xf32>
    %c3 = arith.constant 3 : index
    %c0_3 = arith.constant 0 : index
    %3 = vector.load %arg1[%c3, %c0_3] : memref<8x128xf32, #tpu.memory_space<vmem>>, vector<1x128xf32>
    %c4 = arith.constant 4 : index
    %c0_4 = arith.constant 0 : index
    %4 = vector.load %arg1[%c4, %c0_4] : memref<8x128xf32, #tpu.memory_space<vmem>>, vector<1x128xf32>
    %c5 = arith.constant 5 : index
    %c0_5 = arith.constant 0 : index
    %5 = vector.load %arg1[%c5, %c0_5] : memref<8x128xf32, #tpu.memory_space<vmem>>, vector<1x128xf32>
    %c6 = arith.constant 6 : index
    %c0_6 = arith.constant 0 : index
    %6 = vector.load %arg1[%c6, %c0_6] : memref<8x128xf32, #tpu.memory_space<vmem>>, vector<1x128xf32>
    %c0_7 = arith.constant 0 : index
    %c0_8 = arith.constant 0 : index
    %c0_9 = arith.constant 0 : index
    %7 = vector.load %arg2[%c0_7, %c0_8, %c0_9] : memref<1x128x128xf32, #tpu.memory_space<vmem>>, vector<1x128x128xf32>
    %8 = vector.shape_cast %7 : vector<1x128x128xf32> to vector<128x128xf32>
    %cst = arith.constant dense<0.000000e+00> : vector<128xf32>
    %9 = vector.multi_reduction <add>, %8, %cst [1] : vector<128x128xf32> to vector<128xf32>
    %10 = vector.shape_cast %9 : vector<128xf32> to vector<128x1xf32>
    %cst_10 = arith.constant 1.280000e+02 : f32
    %11 = vector.broadcast %cst_10 : f32 to vector<128x1xf32>
    %12 = arith.divf %10, %11 : vector<128x1xf32>
    %13 = vector.broadcast %12 : vector<128x1xf32> to vector<128x128xf32>
    %14 = arith.subf %8, %13 : vector<128x128xf32>
    %15 = arith.mulf %14, %14 : vector<128x128xf32>
    %cst_11 = arith.constant dense<0.000000e+00> : vector<128xf32>
    %16 = vector.multi_reduction <add>, %15, %cst_11 [1] : vector<128x128xf32> to vector<128xf32>
    %17 = vector.shape_cast %16 : vector<128xf32> to vector<128x1xf32>
    %cst_12 = arith.constant 1.280000e+02 : f32
    %18 = vector.broadcast %cst_12 : f32 to vector<128x1xf32>
    %19 = arith.divf %17, %18 : vector<128x1xf32>
    %cst_13 = arith.constant 9.99999974E-6 : f32
    %20 = vector.broadcast %cst_13 : f32 to vector<128x1xf32>
    %21 = arith.addf %19, %20 : vector<128x1xf32>
    %22 = math.rsqrt %21 : vector<128x1xf32>
    %23 = vector.broadcast %22 : vector<128x1xf32> to vector<128x128xf32>
    %24 = arith.mulf %14, %23 : vector<128x128xf32>
    %25 = vector.broadcast %0 : vector<1x128xf32> to vector<128x128xf32>
    %26 = arith.mulf %24, %25 : vector<128x128xf32>
    %27 = vector.broadcast %1 : vector<1x128xf32> to vector<128x128xf32>
    %28 = arith.addf %26, %27 : vector<128x128xf32>
    %29 = arith.truncf %28 : vector<128x128xf32> to vector<128x128xbf16>
    %c0_14 = arith.constant 0 : index
    %c0_15 = arith.constant 0 : index
    %30 = vector.load %arg3[%c0_14, %c0_15] : memref<128x384xbf16, #tpu.memory_space<vmem>>, vector<128x384xbf16>
    %cst_16 = arith.constant dense<0.000000e+00> : vector<128x384xf32>
    %31 = tpu.matmul %29, %30, %cst_16 {dimension_numbers = #tpu.dot_dimension_numbers<[1], [0], [0], [1], [0, 0, 1, 1], [], []>} : vector<128x128xbf16>, vector<128x384xbf16>, vector<128x384xf32> -> vector<128x384xf32>
    %32 = vector.extract_strided_slice %31 {offsets = [0, 0], sizes = [128, 128], strides = [1, 1]} : vector<128x384xf32> to vector<128x128xf32>
    %cst_17 = arith.constant dense<0.000000e+00> : vector<128xf32>
    %33 = vector.multi_reduction <add>, %32, %cst_17 [1] : vector<128x128xf32> to vector<128xf32>
    %34 = vector.shape_cast %33 : vector<128xf32> to vector<128x1xf32>
    %cst_18 = arith.constant 1.280000e+02 : f32
    %35 = vector.broadcast %cst_18 : f32 to vector<128x1xf32>
    %36 = arith.divf %34, %35 : vector<128x1xf32>
    %37 = vector.broadcast %36 : vector<128x1xf32> to vector<128x128xf32>
    %38 = arith.subf %32, %37 : vector<128x128xf32>
    %39 = arith.mulf %38, %38 : vector<128x128xf32>
    %cst_19 = arith.constant dense<0.000000e+00> : vector<128xf32>
    %40 = vector.multi_reduction <add>, %39, %cst_19 [1] : vector<128x128xf32> to vector<128xf32>
    %41 = vector.shape_cast %40 : vector<128xf32> to vector<128x1xf32>
    %cst_20 = arith.constant 1.280000e+02 : f32
    %42 = vector.broadcast %cst_20 : f32 to vector<128x1xf32>
    %43 = arith.divf %41, %42 : vector<128x1xf32>
    %cst_21 = arith.constant 9.99999974E-6 : f32
    %44 = vector.broadcast %cst_21 : f32 to vector<128x1xf32>
    %45 = arith.addf %43, %44 : vector<128x1xf32>
    %46 = math.rsqrt %45 : vector<128x1xf32>
    %47 = vector.broadcast %46 : vector<128x1xf32> to vector<128x128xf32>
    %48 = arith.mulf %38, %47 : vector<128x128xf32>
    %49 = vector.broadcast %2 : vector<1x128xf32> to vector<128x128xf32>
    %50 = arith.mulf %48, %49 : vector<128x128xf32>
    %51 = vector.broadcast %3 : vector<1x128xf32> to vector<128x128xf32>
    %52 = arith.addf %50, %51 : vector<128x128xf32>
    %53 = vector.extract_strided_slice %31 {offsets = [0, 128], sizes = [128, 128], strides = [1, 1]} : vector<128x384xf32> to vector<128x128xf32>
    %cst_22 = arith.constant dense<0.000000e+00> : vector<128xf32>
    %54 = vector.multi_reduction <add>, %53, %cst_22 [1] : vector<128x128xf32> to vector<128xf32>
    %55 = vector.shape_cast %54 : vector<128xf32> to vector<128x1xf32>
    %cst_23 = arith.constant 1.280000e+02 : f32
    %56 = vector.broadcast %cst_23 : f32 to vector<128x1xf32>
    %57 = arith.divf %55, %56 : vector<128x1xf32>
    %58 = vector.broadcast %57 : vector<128x1xf32> to vector<128x128xf32>
    %59 = arith.subf %53, %58 : vector<128x128xf32>
    %60 = arith.mulf %59, %59 : vector<128x128xf32>
    %cst_24 = arith.constant dense<0.000000e+00> : vector<128xf32>
    %61 = vector.multi_reduction <add>, %60, %cst_24 [1] : vector<128x128xf32> to vector<128xf32>
    %62 = vector.shape_cast %61 : vector<128xf32> to vector<128x1xf32>
    %cst_25 = arith.constant 1.280000e+02 : f32
    %63 = vector.broadcast %cst_25 : f32 to vector<128x1xf32>
    %64 = arith.divf %62, %63 : vector<128x1xf32>
    %cst_26 = arith.constant 9.99999974E-6 : f32
    %65 = vector.broadcast %cst_26 : f32 to vector<128x1xf32>
    %66 = arith.addf %64, %65 : vector<128x1xf32>
    %67 = math.rsqrt %66 : vector<128x1xf32>
    %68 = vector.broadcast %67 : vector<128x1xf32> to vector<128x128xf32>
    %69 = arith.mulf %59, %68 : vector<128x128xf32>
    %70 = vector.broadcast %4 : vector<1x128xf32> to vector<128x128xf32>
    %71 = arith.mulf %69, %70 : vector<128x128xf32>
    %72 = vector.broadcast %5 : vector<1x128xf32> to vector<128x128xf32>
    %73 = arith.addf %71, %72 : vector<128x128xf32>
    %74 = vector.extract_strided_slice %31 {offsets = [0, 256], sizes = [128, 128], strides = [1, 1]} : vector<128x384xf32> to vector<128x128xf32>
    %75 = arith.truncf %52 : vector<128x128xf32> to vector<128x128xbf16>
    %76 = vector.shape_cast %75 : vector<128x128xbf16> to vector<128x4x32xbf16>
    %77 = tpu.transpose %76, [1, 0, 2] : vector<128x4x32xbf16> -> vector<4x128x32xbf16>
    %78 = arith.truncf %73 : vector<128x128xf32> to vector<128x128xbf16>
    %79 = vector.shape_cast %78 : vector<128x128xbf16> to vector<128x4x32xbf16>
    %80 = tpu.transpose %79, [1, 0, 2] : vector<128x4x32xbf16> -> vector<4x128x32xbf16>
    %81 = arith.truncf %74 : vector<128x128xf32> to vector<128x128xbf16>
    %82 = vector.shape_cast %81 : vector<128x128xbf16> to vector<128x4x32xbf16>
    %83 = tpu.transpose %82, [1, 0, 2] : vector<128x4x32xbf16> -> vector<4x128x32xbf16>
    "tpu.trace_start"() <{level = 10 : i32, message = "hnd,hmd->hnm"}> : () -> ()
    %cst_27 = arith.constant dense<0.000000e+00> : vector<4x128x128xf32>
    %84 = tpu.matmul %77, %80, %cst_27 {dimension_numbers = #tpu.dot_dimension_numbers<[2], [2], [1], [1], [0, 0, 0, 1, 1, 1], [0], [0]>} : vector<4x128x32xbf16>, vector<4x128x32xbf16>, vector<4x128x128xf32> -> vector<4x128x128xf32>
    "tpu.trace_stop"() : () -> ()
    %cst_28 = arith.constant dense<0xFF800000> : vector<4x128xf32>
    %85 = vector.multi_reduction <maximumf>, %84, %cst_28 [2] : vector<4x128x128xf32> to vector<4x128xf32>
    %86 = vector.shape_cast %85 : vector<4x128xf32> to vector<4x128x1xf32>
    %87 = vector.broadcast %86 : vector<4x128x1xf32> to vector<4x128x128xf32>
    %88 = arith.subf %84, %87 : vector<4x128x128xf32>
    %89 = math.exp %88 : vector<4x128x128xf32>
    %cst_29 = arith.constant dense<0.000000e+00> : vector<4x128xf32>
    %90 = vector.multi_reduction <add>, %89, %cst_29 [2] : vector<4x128x128xf32> to vector<4x128xf32>
    %91 = vector.shape_cast %90 : vector<4x128xf32> to vector<4x128x1xf32>
    %92 = tpu.reciprocal %91 {approx = true} : vector<4x128x1xf32> -> vector<4x128x1xf32>
    %93 = vector.broadcast %92 : vector<4x128x1xf32> to vector<4x128x128xf32>
    %94 = arith.mulf %89, %93 : vector<4x128x128xf32>
    %95 = arith.truncf %94 : vector<4x128x128xf32> to vector<4x128x128xbf16>
    "tpu.trace_start"() <{level = 10 : i32, message = "hnm,hmd->hnd"}> : () -> ()
    %cst_30 = arith.constant dense<0.000000e+00> : vector<4x128x32xf32>
    %96 = tpu.matmul %95, %83, %cst_30 {dimension_numbers = #tpu.dot_dimension_numbers<[2], [1], [1], [2], [0, 0, 0, 1, 1, 2], [0], [0]>} : vector<4x128x128xbf16>, vector<4x128x32xbf16>, vector<4x128x32xf32> -> vector<4x128x32xf32>
    "tpu.trace_stop"() : () -> ()
    %97 = tpu.transpose %96, [1, 0, 2] : vector<4x128x32xf32> -> vector<128x4x32xf32>
    %98 = vector.shape_cast %97 : vector<128x4x32xf32> to vector<128x128xf32>
    %99 = arith.truncf %98 : vector<128x128xf32> to vector<128x128xbf16>
    %c0_31 = arith.constant 0 : index
    %c0_32 = arith.constant 0 : index
    %100 = vector.load %arg4[%c0_31, %c0_32] : memref<128x128xbf16, #tpu.memory_space<vmem>>, vector<128x128xbf16>
    %cst_33 = arith.constant dense<0.000000e+00> : vector<128x128xf32>
    %101 = tpu.matmul %99, %100, %cst_33 {dimension_numbers = #tpu.dot_dimension_numbers<[1], [0], [0], [1], [0, 0, 1, 1], [], []>} : vector<128x128xbf16>, vector<128x128xbf16>, vector<128x128xf32> -> vector<128x128xf32>
    %102 = vector.broadcast %6 : vector<1x128xf32> to vector<128x128xf32>
    %103 = arith.addf %101, %102 : vector<128x128xf32>
    %c0_34 = arith.constant 0 : index
    %c0_35 = arith.constant 0 : index
    %c0_36 = arith.constant 0 : index
    %104 = vector.load %arg5[%c0_34, %c0_35, %c0_36] : memref<1x128x128xf32, #tpu.memory_space<vmem>>, vector<1x128x128xf32>
    %105 = vector.shape_cast %104 : vector<1x128x128xf32> to vector<128x128xf32>
    %106 = vector.shape_cast %103 : vector<128x128xf32> to vector<1x128x128xf32>
    tpu.vector_store %arg5[%c0_34, %c0_35, %c0_36], %106 {strides = array<i32>} : memref<1x128x128xf32, #tpu.memory_space<vmem>>, vector<1x128x128xf32>,
    return
  }
  func.func @transform_0(%arg0: i32) -> (i32, i32) {
    %c0_i32 = arith.constant 0 : i32
    %c0_i32_0 = arith.constant 0 : i32
    %c0_i32_1 = arith.constant 0 : i32
    return %c0_i32, %c0_i32_0 : i32, i32
  }
  func.func @transform_1(%arg0: i32) -> (i32, i32, i32) {
    %c0_i32 = arith.constant 0 : i32
    %c0_i32_0 = arith.constant 0 : i32
    %c0_i32_1 = arith.constant 0 : i32
    return %arg0, %c0_i32, %c0_i32_0 : i32, i32, i32
  }
  func.func @transform_2(%arg0: i32) -> (i32, i32) {
    %c0_i32 = arith.constant 0 : i32
    %c0_i32_0 = arith.constant 0 : i32
    %c0_i32_1 = arith.constant 0 : i32
    return %c0_i32, %c0_i32_0 : i32, i32
  }
  func.func @transform_3(%arg0: i32) -> (i32, i32) {
    %c0_i32 = arith.constant 0 : i32
    %c0_i32_0 = arith.constant 0 : i32
    %c0_i32_1 = arith.constant 0 : i32
    return %c0_i32, %c0_i32_0 : i32, i32
  }
  func.func @transform_4(%arg0: i32) -> (i32, i32, i32) {
    %c0_i32 = arith.constant 0 : i32
    %c0_i32_0 = arith.constant 0 : i32
    %c0_i32_1 = arith.constant 0 : i32
    return %arg0, %c0_i32, %c0_i32_0 : i32, i32, i32
  }
}

</mosaic_0001>

<bundles_post_ra>
// kernel: tpu_custom_call.1
= control target key start
LH: loop header
LB: loop body
LE: loop exit
PB: predicated region body
PF: predicated region fallthrough
CT: control target
= control target key end

     0   :  { %s19026_s0 = inlined_call_operand.hbm [shape: f32[8,128], index: 0, kind: input, shape index: {}]   ;;  %s19027_s1 = inlined_call_operand.hbm [shape: f32[2,128,128], index: 1, kind: input, shape index: {}]   ;;  %s19028_s2 = inlined_call_operand.hbm [shape: bf16[128,384], index: 2, kind: input, shape index: {}]   ;;  %s19029_s3 = inlined_call_operand.hbm [shape: bf16[128,128], index: 3, kind: input, shape index: {}]   ;;  %s19030_s4 = inlined_call_operand.hbm [shape: f32[2,128,128], index: 4, kind: output, shape index: {}]  }
   0x1   :  { %19214 = sst [smem:[#allocation64_spill]] %s19026_s0 }
   0x2   :  { %9 = vsyncpa [#allocation3], 0 }
   0x3   :  { %10 = vsyncpa [#allocation6], 0 }
   0x4   :  { %12 = vsyncpa [#allocation6 + $0x1], 0 }
   0x5   :  { %13 = vsyncpa [#allocation9], 0 }
   0x6   :  { %14 = vsyncpa [#allocation4], 0 }
   0x7   :  { %16 = vsyncpa [#allocation4 + $0x1], 0  ;;  %s13673_s15 = smov 0   ;;  %s13675_s16 = smov 0  }
   0x8   :  { %s13677_s17 = smov 0   ;;  %s13679_s18 = smov 0  }
   0x9 LB: > { %s13694_s19 = sadd.s32 4294967295, %s13627_s18   ;;  %s12081_s20 = sadd.s32 4294967294, %s13627_s18   ;;  %s13627_s18 = sphi %s13679_s18, %s19704_s18   ;;  %s13623_s17 = sphi %s13677_s17, %s19703_s17   ;;  %s13619_s16 = sphi %s13675_s16, %s19702_s16   ;;  %s13615_s15 = sphi %s13673_s15, %s19701_s15  }
   0xa   : > { %s13698_s21 = sadd.s32 1, %s13627_s18   ;;  %s50_s22 = sadd.s32 1, %s13623_s17 }
   0xb   : > { %s47_s23 = ssub.s32 %s13627_s18, %s13698_s21  ;;  %p57_p0 = scmp.ne.s32.totalorder %s13623_s17, %s13619_s16 }
   0xc   : > { %p48_p1 = scmp.eq.s32.totalorder %s47_s23, 0  ;;  %p58_p2 = scmp.eq.s32.totalorder %s13627_s18, 0 }
   0xd   : > { %p63_p3 = scmp.ne.s32.totalorder %s13619_s16, %s13615_s15  ;;  %p19031_p4 = scmp.eq.s32.totalorder %s13694_s19, 0 }
   0xe   : > { %s13710_s24 = scalar_select %p48_p1, %s13623_s17, %s50_s22  }
   0xf   : > { %p13712_p5 = por %p58_p2, %p57_p0  ;;  %p13718_p6 = por %p19031_p4, %p63_p3 }
  0x10   : > { %p129_p7 = scmp.eq.s32.totalorder %s13694_s19, 1  ;;  %p135_p8 = scmp.eq.s32.totalorder %s12081_s20, 1 }
  0x11   : > { %s19215_s25 = scalar_select %p13712_p5, 1, 0 }
  0x12   : > { %s19216_s26 = scalar_select %p13718_p6, 1, 0 }
  0x13   : > { %p12082_p9 = scmp.ge.s32.totalorder %s13627_s18, 1  ;;  %p142_p10 = scmp.lt.s32.totalorder %s13627_s18, 3 }
  0x14   : > { %p13725_p11 = por %p129_p7, %p57_p0  ;;  %p13729_p12 = por %p135_p8, %p63_p3 }
  0x15   : > { %p13733_p13 = pnand %p12082_p9, %p142_p10  ;;  %s13629_s30 = smov [#allocation7]  }
  0x16   : > { %s19217_s27 = scalar_select %p13725_p11, 1, 0 }
  0x17   : > { %s19218_s28 = scalar_select %p13729_p12, 1, 0 }
  0x18   : > { %s19219_s29 = scalar_select %p13733_p13, 1, 0 }
  0x19   : > { %p12846_p1 = pneg %p13733_p13  ;;  %s165_s5 = sshll.u32 %s13629_s30, 4  ;;  %s166_s5 = int_to_ptr.vmem [resolvable:$true] %s165_s5 }
  0x1a   : > { %s13630_s7 = smov [#allocation2]   ;;  %s13435_s11 = scalar_lea.hbm %s19028_s2, 3072 }
  0x1b   : > { %p13741_p2 = pnand %p12846_p1, %p19031_p4  ;;  %s155_s8 = sshll.u32 %s13630_s7, 4  ;;  %s156_s8 = int_to_ptr.vmem [resolvable:$true] %s155_s8 }
  0x1c   : > { %p13436_p7 = scmp.ne.s32.totalorder %s19028_s2, %s13435_s11  ;;  %p13442_p1 = scmp.lt.u32.totalorder %s13435_s11, %s19028_s2 }
  0x1d   : > { %p13755_p8 = pneg %p13741_p2 }
  0x1f   : > { %p13438_p9 = pnand %p13755_p8, %p13436_p7 }
  0x21   : > { %p13439_p10 = pneg %p13438_p9 }
  0x23   : > { %p13444_p0 = pnand %p13442_p1, %p13439_p10 }
  0x25   : > { %13447 = shalt.err (!%p13444_p0)
}
  0x26   : > { %s13448_s23 = scalar_lea.vmem %s166_s5, 3072  ;;  %p13456_p11 = scmp.lt.s32.totalorder %s166_s5, %s166_s5 }
  0x27   : > { %p13449_p4 = scmp.ne.s32.totalorder %s166_s5, %s13448_s23  ;;  %p13457_p6 = scmp.lt.s32.totalorder %s13448_s23, %s13448_s23 }
  0x29   : > { %p13451_p3 = pnand %p13449_p4, %p13755_p8  ;;  %p13458_p13 = por %p13457_p6, %p13456_p11 }
  0x2b   : > { %p13452_p12 = pneg %p13451_p3 }
  0x2d   : > { %p13459_p5 = pnand %p13458_p13, %p13452_p12 }
  0x2f   : > { %13462 = shalt.err (!%p13459_p5)
}
  0x30   : > { %s13631_s30 = smov 192   ;;  %s13632_s7 = smov 12  }
  0x31   : > { %12852 = dma.hbm_to_vmem [thread:$0]  (!%p13741_p2), %s19028_s2, 3072, %s166_s5, [#allocation6], %s13631_s30, %s13631_s30, %s13632_s7  }
  0x32   : > { %p19222_p0 = scmp.ne.s32.totalorder %s19215_s25, 0  ;;  %p19223_p7 = scmp.lt.s32.totalorder %s13627_s18, 2 }
  0x33   : > { %s19225_s0 = sld [smem:[#allocation64_spill]] }
  0x34   : > { %p13775_p4 = pnand %p19223_p7, %p19222_p0 }
  0x36   : > { %s19224_s11 = scalar_select %p13775_p4, 1, 0 }
  0x39   : > { %s13463_s20 = scalar_lea.hbm %s19225_s0, 128 }
  0x3a   : > { %p13464_p5 = scmp.ne.s32.totalorder %s19225_s0, %s13463_s20  ;;  %p13470_p12 = scmp.lt.u32.totalorder %s13463_s20, %s19225_s0 }
  0x3c   : > { %p13466_p6 = pnand %p13464_p5, %p13755_p8 }
  0x3e   : > { %p13467_p11 = pneg %p13466_p6 }
  0x40   : > { %p13472_p13 = pnand %p13470_p12, %p13467_p11 }
  0x42   : > { %13475 = shalt.err (!%p13472_p13)
}
  0x43   : > { %s13476_s25 = scalar_lea.vmem %s156_s8, 128  ;;  %p13484_p1 = scmp.lt.s32.totalorder %s156_s8, %s156_s8 }
  0x44   : > { %p13477_p3 = scmp.ne.s32.totalorder %s156_s8, %s13476_s25  ;;  %p13485_p0 = scmp.lt.s32.totalorder %s13476_s25, %s13476_s25 }
  0x46   : > { %p13479_p9 = pnand %p13477_p3, %p13755_p8  ;;  %p13486_p7 = por %p13485_p0, %p13484_p1 }
  0x48   : > { %p13480_p10 = pneg %p13479_p9 }
  0x4a   : > { %p13487_p4 = pnand %p13486_p7, %p13480_p10 }
  0x4c   : > { %13490 = shalt.err (!%p13487_p4)
}
  0x4d   : > { %12849 = dma.hbm_to_vmem [thread:$0]  (!%p13741_p2), %s19225_s0, 128, %s156_s8, [#allocation3]  }
  0x4e   : > { %s13633_s10 = smov [#allocation8]   ;;  %s13491_s22 = scalar_lea.hbm %s19029_s3, 1024 }
  0x4f   : > { %s178_s12 = sshll.u32 %s13633_s10, 4  ;;  %p13492_p5 = scmp.ne.s32.totalorder %s19029_s3, %s13491_s22  ;;  %s179_s12 = int_to_ptr.vmem [resolvable:$true] %s178_s12 }
  0x50   : > { %p13498_p11 = scmp.lt.u32.totalorder %s13491_s22, %s19029_s3 }
  0x51   : > { %p13494_p4 = pnand %p13492_p5, %p13755_p8 }
  0x53   : > { %p13495_p6 = pneg %p13494_p4 }
  0x55   : > { %p13500_p12 = pnand %p13498_p11, %p13495_p6 }
  0x57   : > { %13503 = shalt.err (!%p13500_p12)
}
  0x58   : > { %s13504_s8 = scalar_lea.vmem %s179_s12, 1024  ;;  %p13512_p10 = scmp.lt.s32.totalorder %s179_s12, %s179_s12 }
  0x59   : > { %p13505_p13 = scmp.ne.s32.totalorder %s179_s12, %s13504_s8  ;;  %p13513_p1 = scmp.lt.s32.totalorder %s13504_s8, %s13504_s8 }
  0x5b   : > { %p13507_p3 = pnand %p13505_p13, %p13755_p8  ;;  %p13514_p0 = por %p13513_p1, %p13512_p10 }
  0x5d   : > { %p13508_p9 = pneg %p13507_p3 }
  0x5f   : > { %p13515_p7 = pnand %p13514_p0, %p13508_p9 }
  0x61   : > { %13518 = shalt.err (!%p13515_p7)
}
  0x62   : > { %s13634_s30 = smov 64   ;;  %s13635_s7 = smov 4  }
  0x63   : > { %12855 = dma.hbm_to_vmem [thread:$0]  (!%p13741_p2), %s19029_s3, 1024, %s179_s12, [#allocation9], %s13634_s30, %s13634_s30, %s13635_s7  }
  0x64   : > { %s192_s14 = sand.u32 1, %s13627_s18   ;;  %s194_s20 = sand.u32 1, %s13623_s17  }
  0x65   : > { %s12087_s22 = sshll.u32 %s194_s20, 7  ;;  %s12300_s23 = sshll.u32 %s13627_s18, 11 }
  0x66   : > { %s13821_s25 = scalar_lea.hbm %s19027_s1, %s12300_s23  ;;  %s196_s8 = scalar_lea.vmem [#allocation5], %s12087_s22 }
  0x67   : > { %s203_s0 = sshll.u32 %s196_s8, 4  ;;  %s13825_s6 = scalar_lea.sflag [#allocation6], %s192_s14  ;;  %s13823_s0 = int_to_ptr.vmem [resolvable:$true] %s203_s0 }
  0x68   : > { %s13519_s12 = scalar_lea.hbm %s13821_s25, 2048  ;;  %p19226_p8 = scmp.ne.s32.totalorder %s19224_s11, 0 }
  0x69   : > { %p13520_p2 = scmp.ne.s32.totalorder %s13821_s25, %s13519_s12  ;;  %s13524_s10 = scalar_lea.hbm %s19027_s1, 4096 }
  0x6a   : > { %p13521_p5 = pneg %p19226_p8  ;;  %p13525_p11 = scmp.lt.u32.totalorder %s13821_s25, %s19027_s1 }
  0x6b   : > { %p13526_p12 = scmp.lt.u32.totalorder %s13524_s10, %s13519_s12  ;;  %p13528_p3 = scmp.lt.u32.totalorder %s13519_s12, %s13821_s25 }
  0x6c   : > { %p13522_p4 = pnand %p13521_p5, %p13520_p2 }
  0x6d   : > { %p13527_p13 = por %p13526_p12, %p13525_p11 }
  0x6e   : > { %p13523_p6 = pneg %p13522_p4 }
  0x6f   : > { %p13529_p9 = por %p13528_p3, %p13527_p13 }
  0x71   : > { %p13530_p10 = pnand %p13529_p9, %p13523_p6 }
  0x73   : > { %13533 = shalt.err (!%p13530_p10)
}
  0x74   : > { %s13534_s14 = scalar_lea.vmem %s13823_s0, 2048  ;;  %s13636_s22 = smov [#allocation5]  }
  0x75   : > { %p13535_p1 = scmp.ne.s32.totalorder %s13823_s0, %s13534_s14  ;;  %s13539_s23 = sshll.u32 %s13636_s22, 4  ;;  %s13540_s23 = int_to_ptr.vmem [resolvable:$false] %s13539_s23 }
  0x76   : > { %s13541_s9 = scalar_lea.vmem %s13540_s23, 4096  ;;  %p13542_p2 = scmp.lt.s32.totalorder %s13823_s0, %s13540_s23 }
  0x77   : > { %p13537_p0 = pnand %p13535_p1, %p13521_p5  ;;  %p13543_p4 = scmp.lt.s32.totalorder %s13541_s9, %s13534_s14 }
  0x79   : > { %p13538_p7 = pneg %p13537_p0  ;;  %p13544_p11 = por %p13543_p4, %p13542_p2 }
  0x7b   : > { %p13545_p12 = pnand %p13544_p11, %p13538_p7 }
  0x7d   : > { %13548 = shalt.err (!%p13545_p12)
}
  0x7e   : > { %s13637_s5 = smov 128   ;;  %s13638_s8 = smov 8  }
  0x7f   : > { %12859 = dma.hbm_to_vmem [thread:$0]  (!%p19226_p8), %s13821_s25, 2048, %s13823_s0, %s13825_s6, %s13637_s5, %s13637_s5, %s13638_s8  }
  0x80   : > { %p19227_p5 = scmp.ne.s32.totalorder %s19219_s29, 0 }
  0x82   : > { %215 = sbr.rel (%p19227_p5) target bundleno = 2768 (0xad0), region = 36 }
  0x89   : > { %p19228_p6 = scmp.eq.s32.totalorder %s13694_s19, 0 }
  0x8b   : > { %13594 = dma.done.wait (%p19228_p6), [#allocation3], 128   ;;  %p19229_p13 = pmov %p19228_p6 }
  0x8c   : > { %s221_s12 = sand.u32 1, %s13694_s19   ;;  %s223_s30 = sand.u32 1, %s13619_s16  }
  0x8d   : > { %13596 = vsyncadd (%p19229_p13), [#allocation3], 4294967168  ;;  %s13863_s7 = sshll.u32 %s223_s30, 7  ;;  %s222_s0 = scalar_lea.sflag [#allocation6], %s221_s12 }
  0x8e   : > { %s13866_s11 = scalar_lea.vmem [#allocation5], %s13863_s7  ;;  %p19230_p8 = scmp.ne.s32.totalorder %s19216_s26, 0 }
  0x90   : > { %13598 = dma.done.wait (%p19230_p8), %s222_s0, 2048  }
  0x91   : > { %13600 = vsyncadd (%p19230_p8), %s222_s0, 4294965248  ;;  %p19231_p3 = pmov %p19228_p6 }
  0x93   : > { %13602 = dma.done.wait (%p19231_p3), [#allocation6], 3072   ;;  %p19232_p9 = pmov %p19231_p3 }
  0x94   : > { %p19233_p10 = pmov %p19231_p3 }
  0x95   : > { %13604 = vsyncadd (%p19232_p9), [#allocation6], 4294964224 }
  0x96   : > { %13606 = dma.done.wait (%p19233_p10), [#allocation9], 1024   ;;  %p19234_p1 = pmov %p19231_p3 }
  0x97   : > { %v266_v0 = vld [vmem:[%s13866_s11] sm:$0xff]  ;;  %v268_v1 = vld [vmem:[%s13866_s11 + $0x10] sm:$0xff]  ;;  %v267_v2 = vld [vmem:[%s13866_s11 + $0x8] sm:$0xff]  ;;  %s13640_s26 = smov 64   ;;  %s13641_s29 = smov 96   ;;  %vm7779_vm0 = vcmask 261120  }
  0x98   : > { %13608 = vsyncadd (%p19234_p1), [#allocation9], 4294966272  ;;  %282 = vadd.xlane.f32.xlu0 %v266_v0  ;;  %286 = vadd.xlane.f32.xlu1 %v268_v1  ;;  %v269_v3 = vld [vmem:[%s13866_s11 + $0x18] sm:$0xff]  ;;  %v270_v4 = vld [vmem:[%s13866_s11 + $0x20] sm:$0xff]  ;;  %s13642_s25 = smov 32   ;;  %vm11740_vm1 = vcmask 523264  }
  0x99   : > { %v271_v5 = vld [vmem:[%s13866_s11 + $0x28] sm:$0xff]  ;;  %v13887_v6 = vld [vmem:[%s13866_s11 + $0x30] sm:$0xff]  ;;  %v13890_v7 = vld [vmem:[%s13866_s11 + $0x38] sm:$0xff]  ;;  %vm11757_vm2 = vcmask 785408   ;;  %s18955_s6 = scalar_lea.vmem [#allocation10], %s13863_s7  ;;  %s12301_s10 = sshll.u32 %s13694_s19, 11 }
  0x9a   : > { %v13893_v8 = vld [vmem:[%s13866_s11 + $0x40] sm:$0xff]  ;;  %v13896_v9 = vld [vmem:[%s13866_s11 + $0x48] sm:$0xff]  ;;  %v13901_v10 = vld [vmem:[%s13866_s11 + $0x50] sm:$0xff]  ;;  %s11977_s13 = sshll.u32 %s18955_s6, 4  ;;  %s18975_s22 = scalar_lea.hbm %s19030_s4, %s12301_s10  ;;  %s18977_s13 = int_to_ptr.vmem [resolvable:$true] %s11977_s13 }
  0x9b   : > { %v13904_v11 = vld [vmem:[%s13866_s11 + $0x58] sm:$0xff]  ;;  %v13911_v12 = vld [vmem:[%s13866_s11 + $0x60] sm:$0xff]  ;;  %v13914_v13 = vld [vmem:[%s13866_s11 + $0x68] sm:$0xff]  ;;  %s18984_s19 = scalar_lea.sflag [#allocation4], %s223_s30  ;;  %s13549_s23 = scalar_lea.vmem %s18977_s13, 2048 }
  0x9c   : > { %284 = vadd.xlane.f32.xlu0 %v267_v2  ;;  %288 = vadd.xlane.f32.xlu1 %v269_v3  ;;  %v13919_v14 = vld [vmem:[%s13866_s11 + $0x70] sm:$0xff]  ;;  %v13922_v15 = vld [vmem:[%s13866_s11 + $0x78] sm:$0xff]  ;;  %v13043_v17 = vld [vmem:[#allocation7] ss:$12 sps:$4 sm:$0xff]   ;;  %p13550_p0 = scmp.ne.s32.totalorder %s18977_s13, %s13549_s23  ;;  %p19698_p7 = scmp.ne.s32.totalorder %s19217_s27, 0 }
  0x9d   : > { %v13041_v16 = vld [vmem:[#allocation7 + $0x4] ss:$12 sps:$4 sm:$0xff]   ;;  %v13044_v18 = vld [vmem:[#allocation7 + $0x1c] ss:$12 sps:$4 sm:$0xff]   ;;  %s13645_s9 = smov [#allocation10]  }
  0x9e   : > { %v13046_v19 = vld [vmem:[#allocation7 + $0x8] ss:$12 sps:$4 sm:$0xff]   ;;  %667 = vmatprep.subr.bf16.mxu0 %v13041_v16  ;;  %v13047_v58 = vld [vmem:[#allocation7 + $0x18] ss:$12 sps:$4 sm:$0xff]   ;;  %p13551_p2 = pnand %p13550_p0, %p19698_p7  ;;  %s13553_s5 = sshll.u32 %s13645_s9, 4  ;;  %s13554_s5 = int_to_ptr.vmem [resolvable:$false] %s13553_s5 }
  0x9f   : > { %668 = vmatpush1.bf16.msra.mxu0 %v13043_v17  ;;  %12462 = vmatprep.subr.bf16.mxu1 %v13046_v19  ;;  %s13555_s8 = scalar_lea.vmem %s13554_s5, 4096  ;;  %p13556_p11 = scmp.lt.s32.totalorder %s18977_s13, %s13554_s5 }
  0xa0   : > { %290 = vadd.xlane.f32.xlu0 %v270_v4  ;;  %292 = vadd.xlane.f32.xlu1 %v271_v5  ;;  %p13552_p4 = pneg %p13551_p2  ;;  %p13557_p12 = scmp.lt.s32.totalorder %s13555_s8, %s13549_s23 }
  0xa1   : > { %669 = vmatprep.subr.bf16.mxu0 %v13044_v18  ;;  %12463 = vmatpush3.bf16.msra.mxu1 %v13046_v19  ;;  %v13052_v18 = vld [vmem:[#allocation7 + $0x4c] ss:$12 sps:$4 sm:$0xff]  }
  0xa2   : > { %v13054_v19 = vld [vmem:[#allocation7 + $0x38] ss:$12 sps:$4 sm:$0xff]   ;;  %p13558_p5 = por %p13557_p12, %p13556_p11 }
  0xa3   : > { %670 = vmatpush1.bf16.msra.mxu0 %v13047_v58 }
  0xa4   : > { %294 = vadd.xlane.f32.xlu0 %v13887_v6  ;;  %296 = vadd.xlane.f32.xlu1 %v13890_v7  ;;  %p13559_p6 = pnand %p13558_p5, %p13552_p4 }
  0xa8   : > { %298 = vadd.xlane.f32.xlu0 %v13893_v8  ;;  %300 = vadd.xlane.f32.xlu1 %v13896_v9 }
  0xac   : > { %302 = vadd.xlane.f32.xlu0 %v13901_v10  ;;  %304 = vadd.xlane.f32.xlu1 %v13904_v11 }
  0xb0   : > { %306 = vadd.xlane.f32.xlu0 %v13911_v12  ;;  %308 = vadd.xlane.f32.xlu1 %v13914_v13 }
  0xb4   : > { %310 = vadd.xlane.f32.xlu0 %v13919_v14  ;;  %312 = vadd.xlane.f32.xlu1 %v13922_v15 }
 0x125   : > { %v283_v20 = vpop.xlane.xlu0 %282  ;;  %v287_v21 = vpop.xlane.xlu1 %286 }
 0x126   : > { %v315_v22 = vmul.f32 0.0078125, %v283_v20  ;;  %v317_v23 = vmul.f32 0.0078125, %v287_v21 }
 0x128   : > { %v13926_v24 = vsub.f32 %v266_v0, %v315_v22  ;;  %v13928_v25 = vsub.f32 %v268_v1, %v317_v23  ;;  %v13048_v0 = vld [vmem:[#allocation7 + $0x34] ss:$12 sps:$4 sm:$0xff]  }
 0x129   : > { %v285_v26 = vpop.xlane.xlu0 %284  ;;  %v289_v27 = vpop.xlane.xlu1 %288  ;;  %v13050_v1 = vld [vmem:[#allocation7 + $0x20] ss:$12 sps:$4 sm:$0xff]   ;;  %671 = vmatprep.subr.bf16.mxu0 %v13048_v0  ;;  %v13055_v22 = vld [vmem:[#allocation7 + $0x48] ss:$12 sps:$4 sm:$0xff]  }
 0x12a   : > { %v316_v28 = vmul.f32 0.0078125, %v285_v26  ;;  %v347_v29 = vmul.f32 %v13926_v24, %v13926_v24  ;;  %v318_v30 = vmul.f32 0.0078125, %v289_v27  ;;  %v349_v31 = vmul.f32 %v13928_v25, %v13928_v25  ;;  %12464 = vmatprep.subr.bf16.mxu1 %v13050_v1 }
 0x12b   : > { %12465 = vmatpush3.bf16.msra.mxu1 %v13050_v1 }
 0x12c   : > { %363 = vadd.xlane.f32.xlu0 %v347_v29  ;;  %v13934_v32 = vsub.f32 %v267_v2, %v316_v28  ;;  %v13936_v33 = vsub.f32 %v269_v3, %v318_v30  ;;  %12466 = vmatprep.subr.bf16.mxu1 %v13054_v19  ;;  %v13056_v29 = vld [vmem:[#allocation7 + $0x64] ss:$12 sps:$4 sm:$0xff]  }
 0x12d   : > { %v291_v34 = vpop.xlane.xlu0 %290  ;;  %v293_v35 = vpop.xlane.xlu1 %292  ;;  %v13058_v30 = vld [vmem:[#allocation7 + $0x50] ss:$12 sps:$4 sm:$0xff]  }
 0x12e   : > { %v319_v36 = vmul.f32 0.0078125, %v291_v34  ;;  %v348_v37 = vmul.f32 %v13934_v32, %v13934_v32  ;;  %v320_v38 = vmul.f32 0.0078125, %v293_v35  ;;  %v350_v39 = vmul.f32 %v13936_v33, %v13936_v33 }
 0x12f   : > { %12467 = vmatpush3.bf16.msra.mxu1 %v13054_v19 }
 0x130   : > { %367 = vadd.xlane.f32.xlu0 %v349_v31  ;;  %365 = vadd.xlane.f32.xlu1 %v348_v37  ;;  %v13942_v40 = vsub.f32 %v270_v4, %v319_v36  ;;  %v13944_v41 = vsub.f32 %v271_v5, %v320_v38  ;;  %v13059_v31 = vld [vmem:[#allocation7 + $0x60] ss:$12 sps:$4 sm:$0xff]   ;;  %v13062_v36 = vld [vmem:[#allocation7 + $0x68] ss:$12 sps:$4 sm:$0xff]   ;;  %v13063_v37 = vld [vmem:[#allocation7 + $0x78] ss:$12 sps:$4 sm:$0xff]  }
 0x131   : > { %v295_v42 = vpop.xlane.xlu0 %294  ;;  %v297_v43 = vpop.xlane.xlu1 %296  ;;  %12468 = vmatprep.subr.bf16.mxu1 %v13058_v30  ;;  %v13066_v38 = vld [vmem:[#allocation7 + $0x80] ss:$12 sps:$4 sm:$0xff]  }
 0x132   : > { %v321_v44 = vmul.f32 0.0078125, %v295_v42  ;;  %v351_v45 = vmul.f32 %v13942_v40, %v13942_v40  ;;  %v322_v46 = vmul.f32 0.0078125, %v297_v43  ;;  %v352_v47 = vmul.f32 %v13944_v41, %v13944_v41  ;;  %v13068_v42 = vld [vmem:[#allocation7 + $0xac] ss:$12 sps:$4 sm:$0xff]  }
 0x133   : > { %12469 = vmatpush3.bf16.msra.mxu1 %v13058_v30  ;;  %v13070_v43 = vld [vmem:[#allocation7 + $0x98] ss:$12 sps:$4 sm:$0xff]  }
 0x134   : > { %369 = vadd.xlane.f32.xlu1 %v350_v39  ;;  %371 = vadd.xlane.f32.xlu0 %v351_v45  ;;  %v13951_v48 = vsub.f32 %v13887_v6, %v321_v44  ;;  %v13954_v49 = vsub.f32 %v13890_v7, %v322_v46  ;;  %v13051_v7 = vld [vmem:[#allocation7 + $0x30] ss:$12 sps:$4 sm:$0xff]   ;;  %v13071_v44 = vld [vmem:[#allocation7 + $0xa8] ss:$12 sps:$4 sm:$0xff]   ;;  %v19036_v46 = vmov 0  }
 0x135   : > { %v299_v50 = vpop.xlane.xlu0 %298  ;;  %v301_v51 = vpop.xlane.xlu1 %300  ;;  %672 = vmatpush1.bf16.msra.mxu0 %v13051_v7  ;;  %12470 = vmatprep.subr.bf16.mxu1 %v13062_v36  ;;  %v13067_v39 = vld [vmem:[#allocation7 + $0x90] ss:$12 sps:$4 sm:$0xff]  }
 0x136   : > { %v323_v52 = vmul.f32 0.0078125, %v299_v50  ;;  %v353_v53 = vmul.f32 %v13951_v48, %v13951_v48  ;;  %v324_v54 = vmul.f32 0.0078125, %v301_v51  ;;  %v354_v55 = vmul.f32 %v13954_v49, %v13954_v49  ;;  %673 = vmatprep.subr.bf16.mxu0 %v13052_v18  ;;  %v13072_v45 = vld [vmem:[#allocation7 + $0xb0] ss:$12 sps:$4 sm:$0xff]   ;;  %699 = vmatprep.mubr.bf16.mxu0 %v19036_v46 }
 0x137   : > { %12471 = vmatpush3.bf16.msra.mxu1 %v13062_v36 }
 0x138   : > { %373 = vadd.xlane.f32.xlu1 %v352_v47  ;;  %375 = vadd.xlane.f32.xlu0 %v353_v53  ;;  %v13961_v56 = vsub.f32 %v13893_v8, %v323_v52  ;;  %v13964_v57 = vsub.f32 %v13896_v9, %v324_v54 }
 0x139   : > { %v303_v59 = vpop.xlane.xlu0 %302  ;;  %v305_v60 = vpop.xlane.xlu1 %304  ;;  %674 = vmatpush1.bf16.msra.mxu0 %v13055_v22  ;;  %12472 = vmatprep.subr.bf16.mxu1 %v13066_v38  ;;  %v14002_v22 = vld [vmem:[#allocation2] ss:$0 sm:$0xff] }
 0x13a   : > { %v325_v61 = vmul.f32 0.0078125, %v303_v59  ;;  %v355_v62 = vmul.f32 %v13961_v56, %v13961_v56  ;;  %v326_v63 = vmul.f32 0.0078125, %v305_v60  ;;  %v356_v2 = vmul.f32 %v13964_v57, %v13964_v57  ;;  %675 = vmatprep.subr.bf16.mxu0 %v13056_v29 }
 0x13b   : > { %12473 = vmatpush3.bf16.msra.mxu1 %v13066_v38 }
 0x13c   : > { %377 = vadd.xlane.f32.xlu1 %v354_v55  ;;  %379 = vadd.xlane.f32.xlu0 %v355_v62  ;;  %v13971_v3 = vsub.f32 %v13901_v10, %v325_v61  ;;  %v13974_v4 = vsub.f32 %v13904_v11, %v326_v63 }
 0x13d   : > { %v307_v5 = vpop.xlane.xlu0 %306  ;;  %v309_v6 = vpop.xlane.xlu1 %308  ;;  %676 = vmatpush1.bf16.msra.mxu0 %v13059_v31  ;;  %12474 = vmatprep.subr.bf16.mxu1 %v13070_v43 }
 0x13e   : > { %v327_v8 = vmul.f32 0.0078125, %v307_v5  ;;  %v357_v9 = vmul.f32 %v13971_v3, %v13971_v3  ;;  %v328_v16 = vmul.f32 0.0078125, %v309_v6  ;;  %v358_v10 = vmul.f32 %v13974_v4, %v13974_v4 }
 0x13f   : > { %12475 = vmatpush3.bf16.msra.mxu1 %v13070_v43 }
 0x140   : > { %381 = vadd.xlane.f32.xlu1 %v356_v2  ;;  %383 = vadd.xlane.f32.xlu0 %v357_v9  ;;  %v13981_v11 = vsub.f32 %v13911_v12, %v327_v8  ;;  %v13984_v17 = vsub.f32 %v13914_v13, %v328_v16 }
 0x141   : > { %v311_v20 = vpop.xlane.xlu0 %310  ;;  %v313_v21 = vpop.xlane.xlu1 %312  ;;  %12476 = vmatprep.subr.bf16.mxu1 %v13072_v45 }
 0x142   : > { %v329_v23 = vmul.f32 0.0078125, %v311_v20  ;;  %v359_v26 = vmul.f32 %v13981_v11, %v13981_v11  ;;  %v330_v27 = vmul.f32 0.0078125, %v313_v21  ;;  %v360_v12 = vmul.f32 %v13984_v17, %v13984_v17 }
 0x143   : > { %12477 = vmatpush3.bf16.msra.mxu1 %v13072_v45 }
 0x144   : > { %385 = vadd.xlane.f32.xlu1 %v358_v10  ;;  %387 = vadd.xlane.f32.xlu0 %v359_v26  ;;  %v13991_v13 = vsub.f32 %v13919_v14, %v329_v23  ;;  %v13994_v28 = vsub.f32 %v13922_v15, %v330_v27  ;;  %v13060_v14 = vld [vmem:[#allocation7 + $0x7c] ss:$12 sps:$4 sm:$0xff]   ;;  %v13064_v15 = vld [vmem:[#allocation7 + $0x94] ss:$12 sps:$4 sm:$0xff]  }
 0x145   : > { %677 = vmatprep.subr.bf16.mxu0 %v13060_v14 }
 0x146   : > { %v361_v34 = vmul.f32 %v13991_v13, %v13991_v13  ;;  %v362_v35 = vmul.f32 %v13994_v28, %v13994_v28  ;;  %678 = vmatpush1.bf16.msra.mxu0 %v13063_v37 }
 0x147   : > { %679 = vmatprep.subr.bf16.mxu0 %v13064_v15 }
 0x148   : > { %389 = vadd.xlane.f32.xlu1 %v360_v12  ;;  %391 = vadd.xlane.f32.xlu0 %v361_v34 }
 0x14a   : > { %680 = vmatpush1.bf16.msra.mxu0 %v13067_v39 }
 0x14b   : > { %681 = vmatprep.subr.bf16.mxu0 %v13068_v42 }
 0x14c   : > { %393 = vadd.xlane.f32.xlu1 %v362_v35 }
 0x14e   : > { %682 = vmatpush1.bf16.msra.mxu0 %v13071_v44 }
 0x1b9   : > { %v364_v47 = vpop.xlane.xlu0 %363 }
 0x1ba   : > { %v395_v50 = vmul.f32 0.0078125, %v364_v47 }
 0x1bc   : > { %v411_v51 = vadd.f32 1e-05, %v395_v50 }
 0x1bd   : > { %v366_v52 = vpop.xlane.xlu1 %365  ;;  %v368_v53 = vpop.xlane.xlu0 %367 }
 0x1be   : > { %13081 = vrsqrt.f32 %v411_v51  ;;  %v396_v54 = vmul.f32 0.0078125, %v366_v52  ;;  %v397_v55 = vmul.f32 0.0078125, %v368_v53 }
 0x1c0   : > { %v412_v58 = vadd.f32 1e-05, %v396_v54  ;;  %v413_v59 = vadd.f32 1e-05, %v397_v55 }
 0x1c1   : > { %v370_v60 = vpop.xlane.xlu1 %369  ;;  %v372_v61 = vpop.xlane.xlu0 %371 }
 0x1c2   : > { %13083 = vrsqrt.f32 %v412_v58  ;;  %v398_v62 = vmul.f32 0.0078125, %v370_v60  ;;  %v399_v63 = vmul.f32 0.0078125, %v372_v61 }
 0x1c3   : > { %13085 = vrsqrt.f32 %v413_v59 }
 0x1c4   : > { %v414_v0 = vadd.f32 1e-05, %v398_v62  ;;  %v415_v1 = vadd.f32 1e-05, %v399_v63 }
 0x1c5   : > { %v374_v2 = vpop.xlane.xlu1 %373  ;;  %v376_v5 = vpop.xlane.xlu0 %375 }
 0x1c6   : > { %13087 = vrsqrt.f32 %v414_v0  ;;  %v400_v6 = vmul.f32 0.0078125, %v374_v2  ;;  %v401_v7 = vmul.f32 0.0078125, %v376_v5 }
 0x1c7   : > { %13089 = vrsqrt.f32 %v415_v1 }
 0x1c8   : > { %v13082_v8 = vpop.eup %13081  ;;  %v416_v9 = vadd.f32 1e-05, %v400_v6  ;;  %v417_v16 = vadd.f32 1e-05, %v401_v7 }
 0x1c9   : > { %v378_v10 = vpop.xlane.xlu1 %377  ;;  %v380_v18 = vpop.xlane.xlu0 %379  ;;  %v443_v19 = vmul.f32 %v13082_v8, %v13926_v24  ;;  %v14006_v24 = vld [vmem:[#allocation2 + $0x1] ss:$0 sm:$0xff] }
 0x1ca   : > { %13091 = vrsqrt.f32 %v416_v9  ;;  %v402_v20 = vmul.f32 0.0078125, %v378_v10  ;;  %v403_v21 = vmul.f32 0.0078125, %v380_v18 }
 0x1cb   : > { %13093 = vrsqrt.f32 %v417_v16  ;;  %v463_v34 = vmul.f32 %v14002_v22, %v443_v19 }
 0x1cc   : > { %v13084_v23 = vpop.eup %13083  ;;  %v418_v26 = vadd.f32 1e-05, %v402_v20  ;;  %v419_v27 = vadd.f32 1e-05, %v403_v21 }
 0x1cd   : > { %v13086_v12 = vpop.eup %13085  ;;  %v382_v29 = vpop.xlane.xlu1 %381  ;;  %v444_v31 = vmul.f32 %v13084_v23, %v13934_v32  ;;  %v483_v45 = vadd.f32 %v14006_v24, %v463_v34 }
 0x1ce   : > { %v384_v30 = vpop.xlane.xlu0 %383  ;;  %13095 = vrsqrt.f32 %v418_v26  ;;  %v404_v35 = vmul.f32 0.0078125, %v382_v29  ;;  %v445_v36 = vmul.f32 %v13086_v12, %v13928_v25 }
 0x1cf   : > { %v405_v14 = vmul.f32 0.0078125, %v384_v30  ;;  %13097 = vrsqrt.f32 %v419_v27  ;;  %v464_v37 = vmul.f32 %v14002_v22, %v444_v31 }
 0x1d0   : > { %v13088_v15 = vpop.eup %13087  ;;  %v420_v38 = vadd.f32 1e-05, %v404_v35  ;;  %v465_v42 = vmul.f32 %v14002_v22, %v445_v36 }
 0x1d1   : > { %v421_v39 = vadd.f32 1e-05, %v405_v14  ;;  %v13090_v43 = vpop.eup %13089  ;;  %v386_v44 = vpop.xlane.xlu1 %385  ;;  %v484_v47 = vadd.f32 %v14006_v24, %v464_v37  ;;  %v446_v50 = vmul.f32 %v13088_v15, %v13936_v33 }
 0x1d2   : > { %v388_v32 = vpop.xlane.xlu0 %387  ;;  %13099 = vrsqrt.f32 %v420_v38  ;;  %v406_v51 = vmul.f32 0.0078125, %v386_v44  ;;  %v447_v54 = vmul.f32 %v13090_v43, %v13942_v40  ;;  %v485_v60 = vadd.f32 %v14006_v24, %v465_v42 }
 0x1d3   : > { %v407_v25 = vmul.f32 0.0078125, %v388_v32  ;;  %13101 = vrsqrt.f32 %v421_v39  ;;  %v499_v52 = vpack.c.bf16 %v484_v47, %v483_v45  ;;  %v466_v53 = vmul.f32 %v14002_v22, %v446_v50 }
 0x1d4   : > { %v13092_v55 = vpop.eup %13091  ;;  %v422_v58 = vadd.f32 1e-05, %v406_v51  ;;  %v467_v1 = vmul.f32 %v14002_v22, %v447_v54 }
 0x1d5   : > { %v423_v59 = vadd.f32 1e-05, %v407_v25  ;;  %v13094_v61 = vpop.eup %13093  ;;  %v390_v62 = vpop.xlane.xlu1 %389  ;;  %700 = vmatmul.mubr.bf16.vlgmr.msra.gmra.mrb[0].mxu0 %v499_v52  ;;  %12478 = vmatprep.mubr.bf16.mxu1 %v499_v52  ;;  %v486_v33 = vadd.f32 %v14006_v24, %v466_v53  ;;  %v448_v0 = vmul.f32 %v13092_v55, %v13944_v41 }
 0x1d6   : > { %v392_v63 = vpop.xlane.xlu0 %391  ;;  %13103 = vrsqrt.f32 %v422_v58  ;;  %v408_v2 = vmul.f32 0.0078125, %v390_v62  ;;  %709 = vmatprep.mubr.bf16.mxu0 %v19036_v46  ;;  %v449_v40 = vmul.f32 %v13094_v61, %v13951_v48  ;;  %v487_v19 = vadd.f32 %v14006_v24, %v467_v1 }
 0x1d7   : > { %v409_v5 = vmul.f32 0.0078125, %v392_v63  ;;  %13105 = vrsqrt.f32 %v423_v59  ;;  %v500_v6 = vpack.c.bf16 %v486_v33, %v485_v60  ;;  %v468_v7 = vmul.f32 %v14002_v22, %v448_v0 }
 0x1d8   : > { %v13096_v8 = vpop.eup %13095  ;;  %v424_v9 = vadd.f32 1e-05, %v408_v2  ;;  %v469_v10 = vmul.f32 %v14002_v22, %v449_v40 }
 0x1d9   : > { %v425_v16 = vadd.f32 1e-05, %v409_v5  ;;  %v13098_v18 = vpop.eup %13097  ;;  %v394_v41 = vpop.xlane.xlu1 %393  ;;  %12479 = vmatmul.mubr.bf16.vlgmr.msra.gmra.mrb[0].mxu1 %v500_v6  ;;  %v488_v20 = vadd.f32 %v14006_v24, %v468_v7  ;;  %v450_v21 = vmul.f32 %v13096_v8, %v13954_v49 }
 0x1da   : > { %13107 = vrsqrt.f32 %v424_v9  ;;  %v410_v48 = vmul.f32 0.0078125, %v394_v41  ;;  %v451_v23 = vmul.f32 %v13098_v18, %v13961_v56  ;;  %v489_v30 = vadd.f32 %v14006_v24, %v469_v10 }
 0x1db   : > { %13109 = vrsqrt.f32 %v425_v16  ;;  %v501_v26 = vpack.c.bf16 %v488_v20, %v487_v19  ;;  %v470_v27 = vmul.f32 %v14002_v22, %v450_v21 }
 0x1dc   : > { %v13100_v12 = vpop.eup %13099  ;;  %v426_v29 = vadd.f32 1e-05, %v410_v48  ;;  %v471_v49 = vmul.f32 %v14002_v22, %v451_v23 }
 0x1dd   : > { %v13102_v31 = vpop.eup %13101  ;;  %710 = vmatmul.mubr.bf16.gmra.mrb[4].mxu0 %v500_v6  ;;  %12482 = vmatprep.mubr.bf16.mxu1 %v501_v26  ;;  %v490_v34 = vadd.f32 %v14006_v24, %v470_v27  ;;  %v452_v35 = vmul.f32 %v13100_v12, %v13964_v57 }
 0x1de   : > { %13111 = vrsqrt.f32 %v426_v29  ;;  %719 = vmatprep.mubr.bf16.mxu0 %v19036_v46  ;;  %v453_v56 = vmul.f32 %v13102_v31, %v13971_v3  ;;  %v491_v39 = vadd.f32 %v14006_v24, %v471_v49 }
 0x1df   : > { %v502_v14 = vpack.c.bf16 %v490_v34, %v489_v30  ;;  %v472_v36 = vmul.f32 %v14002_v22, %v452_v35 }
 0x1e0   : > { %v13104_v37 = vpop.eup %13103  ;;  %v473_v15 = vmul.f32 %v14002_v22, %v453_v56 }
 0x1e1   : > { %v13106_v38 = vpop.eup %13105  ;;  %12483 = vmatmul.mubr.bf16.gmra.mrb[4].mxu1 %v502_v14  ;;  %v492_v42 = vadd.f32 %v14006_v24, %v472_v36  ;;  %v454_v57 = vmul.f32 %v13104_v37, %v13974_v4 }
 0x1e2   : > { %v455_v43 = vmul.f32 %v13106_v38, %v13981_v11  ;;  %v493_v45 = vadd.f32 %v14006_v24, %v473_v15 }
 0x1e3   : > { %v503_v44 = vpack.c.bf16 %v492_v42, %v491_v39  ;;  %v474_v32 = vmul.f32 %v14002_v22, %v454_v57 }
 0x1e4   : > { %v13108_v3 = vpop.eup %13107  ;;  %v475_v25 = vmul.f32 %v14002_v22, %v455_v43 }
 0x1e5   : > { %v13110_v47 = vpop.eup %13109  ;;  %720 = vmatmul.mubr.bf16.gmra.mrb[8].mxu0 %v501_v26  ;;  %12486 = vmatprep.mubr.bf16.mxu1 %v503_v44  ;;  %v494_v50 = vadd.f32 %v14006_v24, %v474_v32  ;;  %v456_v51 = vmul.f32 %v13108_v3, %v13984_v17 }
 0x1e6   : > { %729 = vmatprep.mubr.bf16.mxu0 %v19036_v46  ;;  %v457_v4 = vmul.f32 %v13110_v47, %v13991_v13  ;;  %v495_v54 = vadd.f32 %v14006_v24, %v475_v25 }
 0x1e7   : > { %v504_v11 = vpack.c.bf16 %v494_v50, %v493_v45  ;;  %v476_v52 = vmul.f32 %v14002_v22, %v456_v51 }
 0x1e8   : > { %v13112_v53 = vpop.eup %13111  ;;  %v477_v59 = vmul.f32 %v14002_v22, %v457_v4 }
 0x1e9   : > { %12487 = vmatmul.mubr.bf16.gmra.mrb[8].mxu1 %v504_v11  ;;  %v496_v55 = vadd.f32 %v14006_v24, %v476_v52  ;;  %v458_v58 = vmul.f32 %v13112_v53, %v13994_v28 }
 0x1ea   : > { %v497_v13 = vadd.f32 %v14006_v24, %v477_v59 }
 0x1eb   : > { %v505_v17 = vpack.c.bf16 %v496_v55, %v495_v54  ;;  %v478_v60 = vmul.f32 %v14002_v22, %v458_v58 }
 0x1ed   : > { %730 = vmatmul.mubr.bf16.gmra.mrb[12].mxu0 %v502_v14  ;;  %12490 = vmatprep.mubr.bf16.mxu1 %v505_v17  ;;  %v498_v61 = vadd.f32 %v14006_v24, %v478_v60 }
 0x1ee   : > { %739 = vmatprep.mubr.bf16.mxu0 %v19036_v46 }
 0x1ef   : > { %v506_v62 = vpack.c.bf16 %v498_v61, %v497_v13 }
 0x1f1   : > { %12491 = vmatmul.mubr.bf16.gmra.mrb[12].mxu1 %v506_v62 }
 0x1f5   : > { %740 = vmatmul.mubr.bf16.gmra.mrb[16].mxu0 %v503_v44 }
 0x1f6   : > { %749 = vmatprep.mubr.bf16.mxu0 %v19036_v46 }
 0x1fd   : > { %750 = vmatmul.mubr.bf16.gmra.mrb[20].mxu0 %v504_v11 }
 0x1fe   : > { %759 = vmatprep.mubr.bf16.mxu0 %v19036_v46 }
 0x205   : > { %760 = vmatmul.mubr.bf16.gmra.mrb[24].mxu0 %v505_v17 }
 0x206   : > { %769 = vmatprep.mubr.bf16.mxu0 %v19036_v46 }
 0x20d   : > { %770 = vmatmul.mubr.bf16.gmra.mrb[28].mxu0 %v506_v62 }
 0x2a8   : > { %v14060_v28 = vpop.f32.mrb[0].mxu0 }
 0x2a9   : > { %v14062_v22 = vpop.f32.mrb[1].mxu0 }
 0x2aa   : > { %1093 = vadd.xlane.f32.xlu0 %v14062_v22  ;;  %v14065_v24 = vpop.f32.mrb[2].mxu0 }
 0x2ab   : > { %v14067_v63 = vpop.f32.mrb[3].mxu0 }
 0x2ac   : > { %v12480_v33 = vpop.f32.mrb[0].mxu1  ;;  %1095 = vadd.xlane.f32.xlu1 %v14067_v63 }
 0x2ad   : > { %v814_v0 = vpop.f32.mrb[1].mxu1 }
 0x2ae   : > { %v12481_v1 = vpop.f32.mrb[2].mxu1 }
 0x2af   : > { %v14070_v2 = vpack.c.bf16 %v12481_v1, %v12480_v33  ;;  %v817_v5 = vpop.f32.mrb[3].mxu1 }
 0x2b0   : > { %v14072_v40 = vpack.c.bf16 %v817_v5, %v814_v0  ;;  %v14074_v6 = vpop.f32.mrb[4].mxu0 }
 0x2b1   : > { %19235 = vst [vmem:[#allocation16_spill] sm:$0xff] %v14070_v2  ;;  %v14076_v7 = vpop.f32.mrb[5].mxu0 }
 0x2b2   : > { %19236 = vst [vmem:[#allocation17_spill] sm:$0xff] %v14072_v40  ;;  %1097 = vadd.xlane.f32.xlu0 %v14076_v7  ;;  %v14079_v8 = vpop.f32.mrb[6].mxu0 }
 0x2b3   : > { %v14081_v9 = vpop.f32.mrb[7].mxu0 }
 0x2b4   : > { %v12484_v16 = vpop.f32.mrb[4].mxu1  ;;  %1099 = vadd.xlane.f32.xlu1 %v14081_v9 }
 0x2b5   : > { %v830_v10 = vpop.f32.mrb[5].mxu1 }
 0x2b6   : > { %v12485_v18 = vpop.f32.mrb[6].mxu1 }
 0x2b7   : > { %v14084_v41 = vpack.c.bf16 %v12485_v18, %v12484_v16  ;;  %v833_v19 = vpop.f32.mrb[7].mxu1 }
 0x2b8   : > { %v14086_v20 = vpack.c.bf16 %v833_v19, %v830_v10  ;;  %v14088_v21 = vpop.f32.mrb[8].mxu0 }
 0x2b9   : > { %19237 = vst [vmem:[#allocation18_spill] sm:$0xff] %v14084_v41  ;;  %v14090_v48 = vpop.f32.mrb[9].mxu0 }
 0x2ba   : > { %19238 = vst [vmem:[#allocation19_spill] sm:$0xff] %v14086_v20  ;;  %1101 = vadd.xlane.f32.xlu0 %v14090_v48  ;;  %v14093_v23 = vpop.f32.mrb[10].mxu0 }
 0x2bb   : > { %v14095_v26 = vpop.f32.mrb[11].mxu0 }
 0x2bc   : > { %v12488_v27 = vpop.f32.mrb[8].mxu1  ;;  %1103 = vadd.xlane.f32.xlu1 %v14095_v26 }
 0x2bd   : > { %v846_v12 = vpop.f32.mrb[9].mxu1 }
 0x2be   : > { %v12489_v29 = vpop.f32.mrb[10].mxu1 }
 0x2bf   : > { %v14098_v30 = vpack.c.bf16 %v12489_v29, %v12488_v27  ;;  %v849_v31 = vpop.f32.mrb[11].mxu1 }
 0x2c0   : > { %v14100_v34 = vpack.c.bf16 %v849_v31, %v846_v12  ;;  %v14102_v35 = vpop.f32.mrb[12].mxu0 }
 0x2c1   : > { %19239 = vst [vmem:[#allocation20_spill] sm:$0xff] %v14098_v30  ;;  %v14104_v49 = vpop.f32.mrb[13].mxu0 }
 0x2c2   : > { %19240 = vst [vmem:[#allocation21_spill] sm:$0xff] %v14100_v34  ;;  %1105 = vadd.xlane.f32.xlu0 %v14104_v49  ;;  %v14107_v56 = vpop.f32.mrb[14].mxu0 }
 0x2c3   : > { %v14109_v14 = vpop.f32.mrb[15].mxu0 }
 0x2c4   : > { %v12492_v36 = vpop.f32.mrb[12].mxu1  ;;  %1107 = vadd.xlane.f32.xlu1 %v14109_v14 }
 0x2c5   : > { %v862_v37 = vpop.f32.mrb[13].mxu1 }
 0x2c6   : > { %v12493_v15 = vpop.f32.mrb[14].mxu1 }
 0x2c7   : > { %v14112_v38 = vpack.c.bf16 %v12493_v15, %v12492_v36  ;;  %v865_v39 = vpop.f32.mrb[15].mxu1 }
 0x2c8   : > { %v14114_v42 = vpack.c.bf16 %v865_v39, %v862_v37  ;;  %v14116_v57 = vpop.f32.mrb[16].mxu0 }
 0x2c9   : > { %19241 = vst [vmem:[#allocation22_spill] sm:$0xff] %v14112_v38  ;;  %v14118_v43 = vpop.f32.mrb[17].mxu0 }
 0x2ca   : > { %19242 = vst [vmem:[#allocation23_spill] sm:$0xff] %v14114_v42  ;;  %1109 = vadd.xlane.f32.xlu0 %v14118_v43  ;;  %v14121_v44 = vpop.f32.mrb[18].mxu0 }
 0x2cb   : > { %v14123_v32 = vpop.f32.mrb[19].mxu0 }
 0x2cc   : > { %1111 = vadd.xlane.f32.xlu1 %v14123_v32 }
 0x2ce   : > { %877 = vadd.xlane.f32.xlu0 %v14060_v28 }
 0x2d0   : > { %v14127_v3 = vpop.f32.mrb[20].mxu0 }
 0x2d1   : > { %v14129_v45 = vpop.f32.mrb[21].mxu0 }
 0x2d2   : > { %1113 = vadd.xlane.f32.xlu0 %v14129_v45  ;;  %v14132_v47 = vpop.f32.mrb[22].mxu0 }
 0x2d3   : > { %v14134_v50 = vpop.f32.mrb[23].mxu0 }
 0x2d4   : > { %1115 = vadd.xlane.f32.xlu1 %v14134_v50 }
 0x2d6   : > { %881 = vadd.xlane.f32.xlu0 %v14074_v6 }
 0x2d8   : > { %879 = vadd.xlane.f32.xlu1 %v14065_v24  ;;  %v14139_v51 = vpop.f32.mrb[24].mxu0 }
 0x2d9   : > { %v14141_v25 = vpop.f32.mrb[25].mxu0 }
 0x2da   : > { %1117 = vadd.xlane.f32.xlu0 %v14141_v25  ;;  %v14144_v4 = vpop.f32.mrb[26].mxu0 }
 0x2db   : > { %v14146_v11 = vpop.f32.mrb[27].mxu0 }
 0x2dc   : > { %1119 = vadd.xlane.f32.xlu1 %v14146_v11 }
 0x2de   : > { %885 = vadd.xlane.f32.xlu0 %v14088_v21 }
 0x2e0   : > { %883 = vadd.xlane.f32.xlu1 %v14079_v8  ;;  %v14151_v52 = vpop.f32.mrb[28].mxu0 }
 0x2e1   : > { %v14153_v53 = vpop.f32.mrb[29].mxu0 }
 0x2e2   : > { %1121 = vadd.xlane.f32.xlu0 %v14153_v53  ;;  %v14156_v54 = vpop.f32.mrb[30].mxu0 }
 0x2e3   : > { %v14158_v55 = vpop.f32.mrb[31].mxu0 }
 0x2e4   : > { %1123 = vadd.xlane.f32.xlu1 %v14158_v55 }
 0x2e6   : > { %889 = vadd.xlane.f32.xlu0 %v14102_v35 }
 0x2e8   : > { %887 = vadd.xlane.f32.xlu1 %v14093_v23 }
 0x2ea   : > { %893 = vadd.xlane.f32.xlu0 %v14116_v57 }
 0x2ec   : > { %891 = vadd.xlane.f32.xlu1 %v14107_v56 }
 0x2ee   : > { %897 = vadd.xlane.f32.xlu0 %v14127_v3 }
 0x2f0   : > { %895 = vadd.xlane.f32.xlu1 %v14121_v44 }
 0x2f2   : > { %901 = vadd.xlane.f32.xlu0 %v14139_v51 }
 0x2f4   : > { %899 = vadd.xlane.f32.xlu1 %v14132_v47 }
 0x2f6   : > { %905 = vadd.xlane.f32.xlu0 %v14151_v52 }
 0x2f8   : > { %903 = vadd.xlane.f32.xlu1 %v14144_v4 }
 0x337   : > { %v1094_v58 = vpop.xlane.xlu0 %1093 }
 0x338   : > { %v1125_v59 = vmul.f32 0.0078125, %v1094_v58 }
 0x339   : > { %v1096_v17 = vpop.xlane.xlu1 %1095 }
 0x33a   : > { %v1126_v60 = vmul.f32 0.0078125, %v1096_v17  ;;  %v14172_v13 = vsub.f32 %v14062_v22, %v1125_v59 }
 0x33c   : > { %v1157_v61 = vmul.f32 %v14172_v13, %v14172_v13  ;;  %v14177_v62 = vsub.f32 %v14067_v63, %v1126_v60 }
 0x33e   : > { %1173 = vadd.xlane.f32.xlu0 %v1157_v61  ;;  %v1158_v33 = vmul.f32 %v14177_v62, %v14177_v62 }
 0x33f   : > { %v1098_v16 = vpop.xlane.xlu0 %1097 }
 0x340   : > { %1175 = vadd.xlane.f32.xlu1 %v1158_v33  ;;  %v1127_v29 = vmul.f32 0.0078125, %v1098_v16 }
 0x341   : > { %v1100_v0 = vpop.xlane.xlu1 %1099 }
 0x342   : > { %v1128_v1 = vmul.f32 0.0078125, %v1100_v0  ;;  %v14195_v39 = vsub.f32 %v14076_v7, %v1127_v29 }
 0x344   : > { %907 = vadd.xlane.f32.xlu1 %v14156_v54  ;;  %v14183_v5 = vsub.f32 %v14081_v9, %v1128_v1  ;;  %v1159_v61 = vmul.f32 %v14195_v39, %v14195_v39 }
 0x346   : > { %v1160_v22 = vmul.f32 %v14183_v5, %v14183_v5 }
 0x347   : > { %v1102_v10 = vpop.xlane.xlu0 %1101 }
 0x348   : > { %1179 = vadd.xlane.f32.xlu1 %v1160_v22  ;;  %v1129_v17 = vmul.f32 0.0078125, %v1102_v10 }
 0x349   : > { %v1104_v18 = vpop.xlane.xlu1 %1103 }
 0x34a   : > { %v1130_v0 = vmul.f32 0.0078125, %v1104_v18  ;;  %v14210_v10 = vsub.f32 %v14090_v48, %v1129_v17 }
 0x34f   : > { %v1106_v63 = vpop.xlane.xlu0 %1105 }
 0x350   : > { %v1131_v16 = vmul.f32 0.0078125, %v1106_v63  ;;  %v1161_v63 = vmul.f32 %v14210_v10, %v14210_v10 }
 0x351   : > { %v1108_v27 = vpop.xlane.xlu1 %1107 }
 0x357   : > { %v1110_v19 = vpop.xlane.xlu0 %1109 }
 0x359   : > { %v1112_v36 = vpop.xlane.xlu1 %1111 }
 0x35b   : > { %v878_v12 = vpop.xlane.xlu0 %877 }
 0x35c   : > { %v909_v31 = vmul.f32 0.0078125, %v878_v12 }
 0x35e   : > { %v14188_v37 = vsub.f32 %v14060_v28, %v909_v31 }
 0x35f   : > { %v14190_v15 = vpop.xlane.xlu0 %1113 }
 0x360   : > { %v941_v9 = vmul.f32 %v14188_v37, %v14188_v37 }
 0x361   : > { %v1116_v58 = vpop.xlane.xlu1 %1115 }
 0x362   : > { %957 = vadd.xlane.f32.xlu0 %v941_v9  ;;  %v14220_v9 = vsub.f32 %v14104_v49, %v1131_v16  ;;  %v1134_v16 = vmul.f32 0.0078125, %v1112_v36 }
 0x363   : > { %v882_v59 = vpop.xlane.xlu0 %881 }
 0x364   : > { %v911_v60 = vmul.f32 0.0078125, %v882_v59  ;;  %v1132_v59 = vmul.f32 0.0078125, %v1108_v27 }
 0x365   : > { %v880_v33 = vpop.xlane.xlu1 %879 }
 0x366   : > { %v910_v28 = vmul.f32 0.0078125, %v880_v33  ;;  %1177 = vadd.xlane.f32.xlu0 %v1159_v61  ;;  %v14200_v1 = vsub.f32 %v14074_v6, %v911_v60  ;;  %v14215_v6 = vsub.f32 %v14095_v26, %v1130_v0  ;;  %v1163_v26 = vmul.f32 %v14220_v9, %v14220_v9 }
 0x367   : > { %v14202_v22 = vpop.xlane.xlu0 %1117  ;;  %v14236_v0 = vsub.f32 %v14109_v14, %v1132_v59  ;;  %v14247_v59 = vsub.f32 %v14123_v32, %v1134_v16 }
 0x368   : > { %v943_v7 = vmul.f32 %v14200_v1, %v14200_v1  ;;  %v14207_v12 = vsub.f32 %v14065_v24, %v910_v28  ;;  %v1162_v17 = vmul.f32 %v14215_v6, %v14215_v6 }
 0x369   : > { %v1120_v29 = vpop.xlane.xlu1 %1119  ;;  %v1166_v32 = vmul.f32 %v14247_v59, %v14247_v59 }
 0x36a   : > { %961 = vadd.xlane.f32.xlu0 %v943_v7  ;;  %v942_v18 = vmul.f32 %v14207_v12, %v14207_v12 }
 0x36b   : > { %v886_v31 = vpop.xlane.xlu0 %885 }
 0x36c   : > { %959 = vadd.xlane.f32.xlu1 %v942_v18  ;;  %v913_v49 = vmul.f32 0.0078125, %v886_v31 }
 0x36d   : > { %v884_v24 = vpop.xlane.xlu1 %883 }
 0x36e   : > { %v912_v48 = vmul.f32 0.0078125, %v884_v24  ;;  %1181 = vadd.xlane.f32.xlu0 %v1161_v63  ;;  %v14241_v24 = vsub.f32 %v14088_v21, %v913_v49 }
 0x36f   : > { %v14224_v60 = vpop.xlane.xlu0 %1121 }
 0x370   : > { %1183 = vadd.xlane.f32.xlu1 %v1162_v17  ;;  %v14229_v61 = vsub.f32 %v14079_v8, %v912_v48  ;;  %v1164_v8 = vmul.f32 %v14236_v0, %v14236_v0  ;;  %v1133_v17 = vmul.f32 0.0078125, %v1110_v19 }
 0x371   : > { %v14231_v33 = vpop.xlane.xlu1 %1123 }
 0x372   : > { %1185 = vadd.xlane.f32.xlu0 %v1163_v26  ;;  %v944_v27 = vmul.f32 %v14229_v61, %v14229_v61  ;;  %v945_v26 = vmul.f32 %v14241_v24, %v14241_v24  ;;  %v14257_v19 = vsub.f32 %v14118_v43, %v1133_v17 }
 0x373   : > { %v890_v28 = vpop.xlane.xlu0 %889 }
 0x374   : > { %963 = vadd.xlane.f32.xlu1 %v944_v27  ;;  %v915_v18 = vmul.f32 0.0078125, %v890_v28 }
 0x375   : > { %v888_v7 = vpop.xlane.xlu1 %887 }
 0x376   : > { %v914_v63 = vmul.f32 0.0078125, %v888_v7  ;;  %v14254_v21 = vsub.f32 %v14102_v35, %v915_v18 }
 0x377   : > { %v894_v31 = vpop.xlane.xlu0 %893 }
 0x378   : > { %1187 = vadd.xlane.f32.xlu1 %v1164_v8  ;;  %v14244_v48 = vsub.f32 %v14093_v23, %v914_v63  ;;  %v1136_v23 = vmul.f32 0.0078125, %v1116_v58  ;;  %v917_v28 = vmul.f32 0.0078125, %v894_v31  ;;  %v947_v16 = vmul.f32 %v14254_v21, %v14254_v21 }
 0x379   : > { %v892_v14 = vpop.xlane.xlu1 %891  ;;  %v1165_v58 = vmul.f32 %v14257_v19, %v14257_v19 }
 0x37a   : > { %v916_v36 = vmul.f32 0.0078125, %v892_v14  ;;  %v946_v27 = vmul.f32 %v14244_v48, %v14244_v48  ;;  %v14269_v43 = vsub.f32 %v14134_v50, %v1136_v23  ;;  %v14274_v17 = vsub.f32 %v14116_v57, %v917_v28 }
 0x37b   : > { %v898_v49 = vpop.xlane.xlu0 %897  ;;  %v1138_v14 = vmul.f32 0.0078125, %v1120_v29 }
 0x37c   : > { %965 = vadd.xlane.f32.xlu1 %v945_v26  ;;  %967 = vadd.xlane.f32.xlu0 %v946_v27  ;;  %v14264_v7 = vsub.f32 %v14107_v56, %v916_v36  ;;  %v919_v18 = vmul.f32 0.0078125, %v898_v49  ;;  %v1135_v56 = vmul.f32 0.0078125, %v14190_v15  ;;  %v949_v36 = vmul.f32 %v14274_v17, %v14274_v17 }
 0x37d   : > { %v896_v63 = vpop.xlane.xlu1 %895  ;;  %v1168_v50 = vmul.f32 %v14269_v43, %v14269_v43  ;;  %v14288_v23 = vsub.f32 %v14146_v11, %v1138_v14 }
 0x37e   : > { %v918_v8 = vmul.f32 0.0078125, %v896_v63  ;;  %v948_v31 = vmul.f32 %v14264_v7, %v14264_v7  ;;  %v14282_v26 = vsub.f32 %v14127_v3, %v919_v18  ;;  %v14291_v15 = vsub.f32 %v14129_v45, %v1135_v56 }
 0x37f   : > { %v902_v35 = vpop.xlane.xlu0 %901  ;;  %v1137_v18 = vmul.f32 0.0078125, %v14202_v22 }
 0x380   : > { %1191 = vadd.xlane.f32.xlu1 %v1166_v32  ;;  %969 = vadd.xlane.f32.xlu0 %v947_v16  ;;  %v14285_v27 = vsub.f32 %v14121_v44, %v918_v8  ;;  %v951_v32 = vmul.f32 %v14282_v26, %v14282_v26  ;;  %v1170_v44 = vmul.f32 %v14288_v23, %v14288_v23  ;;  %v1140_v16 = vmul.f32 0.0078125, %v14231_v33 }
 0x381   : > { %v900_v49 = vpop.xlane.xlu1 %899  ;;  %v1167_v11 = vmul.f32 %v14291_v15, %v14291_v15  ;;  %v921_v45 = vmul.f32 0.0078125, %v902_v35  ;;  %v14324_v14 = vsub.f32 %v14141_v25, %v1137_v18  ;;  %v14344_v18 = vld [vmem:[#allocation2 + $0x5] ss:$0 sm:$0xff] }
 0x382   : > { %v920_v29 = vmul.f32 0.0078125, %v900_v49  ;;  %v950_v3 = vmul.f32 %v14285_v27, %v14285_v27  ;;  %v14314_v56 = vsub.f32 %v14158_v55, %v1140_v16  ;;  %v1139_v55 = vmul.f32 0.0078125, %v14224_v60 }
 0x383   : > { %v906_v57 = vpop.xlane.xlu0 %905  ;;  %v14317_v33 = vsub.f32 %v14139_v51, %v921_v45  ;;  %v1169_v51 = vmul.f32 %v14324_v14, %v14324_v14 }
 0x384   : > { %1189 = vadd.xlane.f32.xlu0 %v1165_v58  ;;  %971 = vadd.xlane.f32.xlu1 %v948_v31  ;;  %v923_v28 = vmul.f32 0.0078125, %v906_v57  ;;  %v14306_v58 = vsub.f32 %v14132_v47, %v920_v29  ;;  %v1172_v35 = vmul.f32 %v14314_v56, %v14314_v56  ;;  %v14335_v49 = vsub.f32 %v14153_v53, %v1139_v55 }
 0x385   : > { %v953_v22 = vmul.f32 %v14317_v33, %v14317_v33 }
 0x386   : > { %v14303_v63 = vsub.f32 %v14151_v52, %v923_v28  ;;  %v952_v31 = vmul.f32 %v14306_v58, %v14306_v58  ;;  %v904_v52 = vpop.xlane.xlu1 %903  ;;  %v1171_v25 = vmul.f32 %v14335_v49, %v14335_v49 }
 0x387   : > { %v922_v47 = vmul.f32 0.0078125, %v904_v52 }
 0x388   : > { %973 = vadd.xlane.f32.xlu0 %v949_v36  ;;  %1195 = vadd.xlane.f32.xlu1 %v1168_v50  ;;  %v955_v8 = vmul.f32 %v14303_v63, %v14303_v63 }
 0x389   : > { %v14330_v36 = vsub.f32 %v14144_v4, %v922_v47 }
 0x38b   : > { %v954_v50 = vmul.f32 %v14330_v36, %v14330_v36 }
 0x38c   : > { %977 = vadd.xlane.f32.xlu1 %v951_v32  ;;  %975 = vadd.xlane.f32.xlu0 %v950_v3 }
 0x390   : > { %1199 = vadd.xlane.f32.xlu1 %v1170_v44  ;;  %1193 = vadd.xlane.f32.xlu0 %v1167_v11  ;;  %v14339_v44 = vld [vmem:[#allocation2 + $0x4] ss:$0 sm:$0xff] }
 0x394   : > { %985 = vadd.xlane.f32.xlu1 %v955_v8  ;;  %979 = vadd.xlane.f32.xlu0 %v952_v31 }
 0x398   : > { %1203 = vadd.xlane.f32.xlu1 %v1172_v35  ;;  %981 = vadd.xlane.f32.xlu0 %v953_v22 }
 0x39c   : > { %1197 = vadd.xlane.f32.xlu0 %v1169_v51 }
 0x3a0   : > { %983 = vadd.xlane.f32.xlu0 %v954_v50 }
 0x3a4   : > { %1201 = vadd.xlane.f32.xlu0 %v1171_v25 }
 0x3cb   : > { %v1174_v57 = vpop.xlane.xlu0 %1173 }
 0x3cc   : > { %v1205_v60 = vmul.f32 0.0078125, %v1174_v57 }
 0x3cd   : > { %v1176_v29 = vpop.xlane.xlu1 %1175 }
 0x3ce   : > { %v1221_v28 = vadd.f32 1e-05, %v1205_v60  ;;  %v1206_v32 = vmul.f32 0.0078125, %v1176_v29 }
 0x3d0   : > { %13113 = vrsqrt.f32 %v1221_v28  ;;  %v1222_v4 = vadd.f32 1e-05, %v1206_v32 }
 0x3d1   : > { %v14347_v31 = vpop.xlane.xlu1 %907 }
 0x3d2   : > { %13115 = vrsqrt.f32 %v1222_v4 }
 0x3da   : > { %v13114_v3 = vpop.eup %13113 }
 0x3db   : > { %v1253_v11 = vmul.f32 %v13114_v3, %v14172_v13  ;;  %v1180_v13 = vpop.xlane.xlu1 %1179 }
 0x3dc   : > { %v13116_v53 = vpop.eup %13115 }
 0x3dd   : > { %v1273_v16 = vmul.f32 %v14339_v44, %v1253_v11  ;;  %v1254_v45 = vmul.f32 %v13116_v53, %v14177_v62  ;;  %v1208_v62 = vmul.f32 0.0078125, %v1180_v13 }
 0x3df   : > { %v1274_v8 = vmul.f32 %v14339_v44, %v1254_v45  ;;  %v1293_v52 = vadd.f32 %v14344_v18, %v1273_v16  ;;  %v1224_v22 = vadd.f32 1e-05, %v1208_v62 }
 0x3e1   : > { %v1294_v47 = vadd.f32 %v14344_v18, %v1274_v8  ;;  %13117 = vrsqrt.f32 %v1224_v22 }
 0x3e3   : > { %v14351_v35 = vpack.c.bf16 %v1294_v47, %v1293_v52 }
 0x3e5   : > { %3491 = vrot.lane.b32.xlu1 %v14351_v35, %s13640_s26  ;;  %3475 = vrot.lane.b32.xlu0 %v14351_v35, %s13641_s29 }
 0x3e9   : > { %3507 = vrot.lane.b32.xlu1 %v14351_v35, %s13642_s25 }
 0x3eb   : > { %v13118_v28 = vpop.eup %13117 }
 0x3ec   : > { %v1256_v53 = vmul.f32 %v13118_v28, %v14183_v5 }
 0x3ee   : > { %v1276_v62 = vmul.f32 %v14339_v44, %v1256_v53 }
 0x3ef   : > { %v14359_v55 = vpop.xlane.xlu0 %957 }
 0x3f3   : > { %v1178_v51 = vpop.xlane.xlu0 %1177 }
 0x3f4   : > { %v1207_v50 = vmul.f32 0.0078125, %v1178_v51 }
 0x3f6   : > { %v1223_v25 = vadd.f32 1e-05, %v1207_v50 }
 0x3f7   : > { %v14361_v57 = vpop.xlane.xlu0 %961 }
 0x3f8   : > { %13119 = vrsqrt.f32 %v1223_v25 }
 0x3f9   : > { %v14363_v60 = vpop.xlane.xlu1 %959 }
 0x3fa   : > { %v990_v42 = vmul.f32 0.0078125, %v14363_v60 }
 0x3fb   : > { %v1182_v29 = vpop.xlane.xlu0 %1181 }
 0x3fc   : > { %v1209_v32 = vmul.f32 0.0078125, %v1182_v29  ;;  %v1296_v29 = vadd.f32 %v14344_v18, %v1276_v62 }
 0x3fd   : > { %v1184_v4 = vpop.xlane.xlu1 %1183 }
 0x3fe   : > { %v1225_v3 = vadd.f32 1e-05, %v1209_v32  ;;  %v1210_v11 = vmul.f32 0.0078125, %v1184_v4 }
 0x3ff   : > { %v1186_v16 = vpop.xlane.xlu0 %1185 }
 0x400   : > { %13121 = vrsqrt.f32 %v1225_v3  ;;  %v1226_v45 = vadd.f32 1e-05, %v1210_v11  ;;  %v1211_v8 = vmul.f32 0.0078125, %v1186_v16 }
 0x401   : > { %v14366_v52 = vpop.xlane.xlu1 %963 }
 0x402   : > { %v13120_v47 = vpop.eup %13119  ;;  %13123 = vrsqrt.f32 %v1226_v45  ;;  %v1227_v13 = vadd.f32 1e-05, %v1211_v8 }
 0x403   : > { %v1255_v22 = vmul.f32 %v13120_v47, %v14195_v39 }
 0x404   : > { %13125 = vrsqrt.f32 %v1227_v13 }
 0x405   : > { %v1275_v51 = vmul.f32 %v14339_v44, %v1255_v22  ;;  %v1188_v50 = vpop.xlane.xlu1 %1187 }
 0x406   : > { %v1212_v25 = vmul.f32 0.0078125, %v1188_v50 }
 0x407   : > { %v1295_v5 = vadd.f32 %v14344_v18, %v1275_v51 }
 0x408   : > { %v1228_v28 = vadd.f32 1e-05, %v1212_v25 }
 0x409   : > { %v14373_v32 = vpop.xlane.xlu0 %967  ;;  %v14375_v4 = vpop.xlane.xlu1 %965  ;;  %v14377_v3 = vpack.c.bf16 %v1296_v29, %v1295_v5 }
 0x40a   : > { %v13122_v11 = vpop.eup %13121  ;;  %13127 = vrsqrt.f32 %v1228_v28 }
 0x40b   : > { %v1257_v39 = vmul.f32 %v13122_v11, %v14210_v10  ;;  %3493 = vrot.lane.b32.xlu1 %v14377_v3, %s13640_s26  ;;  %3477 = vrot.lane.b32.xlu0 %v14377_v3, %s13641_s29 }
 0x40c   : > { %v13124_v53 = vpop.eup %13123 }
 0x40d   : > { %v1277_v16 = vmul.f32 %v14339_v44, %v1257_v39  ;;  %v1258_v45 = vmul.f32 %v13124_v53, %v14215_v6  ;;  %v14386_v8 = vpop.xlane.xlu0 %969  ;;  %v1192_v47 = vpop.xlane.xlu1 %1191 }
 0x40e   : > { %v13126_v13 = vpop.eup %13125  ;;  %v1214_v62 = vmul.f32 0.0078125, %v1192_v47 }
 0x40f   : > { %v1278_v22 = vmul.f32 %v14339_v44, %v1258_v45  ;;  %3509 = vrot.lane.b32.xlu1 %v14377_v3, %s13642_s25  ;;  %v1259_v51 = vmul.f32 %v13126_v13, %v14220_v9  ;;  %v1297_v5 = vadd.f32 %v14344_v18, %v1277_v16 }
 0x410   : > { %v1230_v10 = vadd.f32 1e-05, %v1214_v62 }
 0x411   : > { %v1190_v50 = vpop.xlane.xlu0 %1189  ;;  %v14392_v25 = vpop.xlane.xlu1 %971  ;;  %v1298_v6 = vadd.f32 %v14344_v18, %v1278_v22  ;;  %v1279_v53 = vmul.f32 %v14339_v44, %v1259_v51 }
 0x412   : > { %v1213_v29 = vmul.f32 0.0078125, %v1190_v50  ;;  %13129 = vrsqrt.f32 %v1230_v10 }
 0x413   : > { %v14396_v28 = vpack.c.bf16 %v1298_v6, %v1297_v5  ;;  %v1299_v10 = vadd.f32 %v14344_v18, %v1279_v53 }
 0x414   : > { %v13128_v11 = vpop.eup %13127  ;;  %v1229_v39 = vadd.f32 1e-05, %v1213_v29 }
 0x415   : > { %v1260_v45 = vmul.f32 %v13128_v11, %v14236_v0  ;;  %v14400_v47 = vpop.xlane.xlu0 %973  ;;  %3495 = vrot.lane.b32.xlu1 %v14396_v28, %s13640_s26  ;;  %3479 = vrot.lane.b32.xlu0 %v14396_v28, %s13641_s29  ;;  %v1196_v9 = vpop.xlane.xlu1 %1195 }
 0x416   : > { %13131 = vrsqrt.f32 %v1229_v39  ;;  %v1216_v16 = vmul.f32 0.0078125, %v1196_v9 }
 0x417   : > { %v1280_v13 = vmul.f32 %v14339_v44, %v1260_v45 }
 0x418   : > { %v1232_v62 = vadd.f32 1e-05, %v1216_v16 }
 0x419   : > { %v14407_v22 = vpop.xlane.xlu0 %975  ;;  %3511 = vrot.lane.b32.xlu1 %v14396_v28, %s13642_s25  ;;  %v14411_v0 = vpop.xlane.xlu1 %977  ;;  %v1300_v51 = vadd.f32 %v14344_v18, %v1280_v13 }
 0x41a   : > { %13133 = vrsqrt.f32 %v1232_v62 }
 0x41b   : > { %v14415_v50 = vpack.c.bf16 %v1300_v51, %v1299_v10 }
 0x41c   : > { %v13130_v5 = vpop.eup %13129 }
 0x41d   : > { %v1194_v6 = vpop.xlane.xlu0 %1193  ;;  %3497 = vrot.lane.b32.xlu0 %v14415_v50, %s13640_s26  ;;  %3481 = vrot.lane.b32.xlu1 %v14415_v50, %s13641_s29  ;;  %v1200_v29 = vpop.xlane.xlu1 %1199  ;;  %v1262_v11 = vmul.f32 %v13130_v5, %v14247_v59 }
 0x41e   : > { %v1215_v39 = vmul.f32 0.0078125, %v1194_v6  ;;  %v1218_v53 = vmul.f32 0.0078125, %v1200_v29 }
 0x41f   : > { %v1282_v16 = vmul.f32 %v14339_v44, %v1262_v11 }
 0x420   : > { %v13132_v45 = vpop.eup %13131  ;;  %v1231_v9 = vadd.f32 1e-05, %v1215_v39  ;;  %v1234_v46 = vadd.f32 1e-05, %v1218_v53 }
 0x421   : > { %v1261_v13 = vmul.f32 %v13132_v45, %v14257_v19  ;;  %v14424_v62 = vpop.xlane.xlu0 %979  ;;  %3513 = vrot.lane.b32.xlu1 %v14415_v50, %s13642_s25  ;;  %v14428_v10 = vpop.xlane.xlu1 %985  ;;  %v1302_v29 = vadd.f32 %v14344_v18, %v1282_v16 }
 0x422   : > { %13135 = vrsqrt.f32 %v1231_v9 }
 0x423   : > { %v1281_v51 = vmul.f32 %v14339_v44, %v1261_v13  ;;  %13137 = vrsqrt.f32 %v1234_v46  ;;  %v989_v46 = vmul.f32 0.0078125, %v14359_v55 }
 0x424   : > { %v13134_v11 = vpop.eup %13133 }
 0x425   : > { %v14431_v59 = vpop.xlane.xlu0 %981  ;;  %v1204_v5 = vpop.xlane.xlu1 %1203  ;;  %v1301_v6 = vadd.f32 %v14344_v18, %v1281_v51  ;;  %v1264_v45 = vmul.f32 %v13134_v11, %v14269_v43 }
 0x426   : > { %v1220_v39 = vmul.f32 0.0078125, %v1204_v5 }
 0x427   : > { %v14435_v19 = vpack.c.bf16 %v1302_v29, %v1301_v6  ;;  %v1284_v51 = vmul.f32 %v14339_v44, %v1264_v45 }
 0x428   : > { %v1236_v13 = vadd.f32 1e-05, %v1220_v39  ;;  %v992_v39 = vmul.f32 0.0078125, %v14366_v52 }
 0x429   : > { %v1198_v38 = vpop.xlane.xlu0 %1197  ;;  %3499 = vrot.lane.b32.xlu1 %v14435_v19, %s13640_s26  ;;  %v1304_v60 = vadd.f32 %v14344_v18, %v1284_v51 }
 0x42a   : > { %v1217_v9 = vmul.f32 0.0078125, %v1198_v38  ;;  %v1006_v38 = vadd.f32 1e-05, %v990_v42  ;;  %v1008_v51 = vadd.f32 1e-05, %v992_v39 }
 0x42c   : > { %v13136_v53 = vpop.eup %13135  ;;  %v1233_v30 = vadd.f32 1e-05, %v1217_v9  ;;  %v1005_v9 = vadd.f32 1e-05, %v989_v46  ;;  %v993_v46 = vmul.f32 0.0078125, %v14375_v4  ;;  %v995_v4 = vmul.f32 0.0078125, %v14386_v8 }
 0x42d   : > { %v1263_v16 = vmul.f32 %v13136_v53, %v14291_v15  ;;  %v14443_v6 = vpop.xlane.xlu0 %983  ;;  %3515 = vrot.lane.b32.xlu1 %v14435_v19, %s13642_s25  ;;  %v13138_v11 = vpop.eup %13137  ;;  %v924_v15 = vmul.f32 0.0078125, %v14347_v31  ;;  %v994_v31 = vmul.f32 0.0078125, %v14373_v32  ;;  %v999_v8 = vmul.f32 0.0078125, %v14411_v0 }
 0x42e   : > { %13139 = vrsqrt.f32 %v1233_v30  ;;  %v991_v30 = vmul.f32 0.0078125, %v14361_v57  ;;  %v1266_v42 = vmul.f32 %v13138_v11, %v14288_v23  ;;  %v1009_v32 = vadd.f32 1e-05, %v993_v46 }
 0x42f   : > { %v1283_v43 = vmul.f32 %v14339_v44, %v1263_v16  ;;  %13141 = vrsqrt.f32 %v1236_v13  ;;  %v14460_v13 = vsub.f32 %v14156_v54, %v924_v15  ;;  %v998_v15 = vmul.f32 0.0078125, %v14407_v22 }
 0x430   : > { %13143 = vrsqrt.f32 %v1006_v38  ;;  %v1007_v16 = vadd.f32 1e-05, %v991_v30  ;;  %v1286_v57 = vmul.f32 %v14339_v44, %v1266_v42  ;;  %v1010_v38 = vadd.f32 1e-05, %v994_v31 }
 0x431   : > { %v1202_v5 = vpop.xlane.xlu0 %1201  ;;  %v1303_v29 = vadd.f32 %v14344_v18, %v1283_v43  ;;  %v956_v54 = vmul.f32 %v14460_v13, %v14460_v13  ;;  %v1011_v42 = vadd.f32 1e-05, %v995_v4  ;;  %v1014_v22 = vadd.f32 1e-05, %v998_v15 }
 0x432   : > { %v1219_v45 = vmul.f32 0.0078125, %v1202_v5  ;;  %v1306_v11 = vadd.f32 %v14344_v18, %v1286_v57  ;;  %v1000_v31 = vmul.f32 0.0078125, %v14424_v62  ;;  %v1015_v0 = vadd.f32 1e-05, %v999_v8 }
 0x433   : > { %v14453_v53 = vpack.c.bf16 %v1304_v60, %v1303_v29  ;;  %v996_v29 = vmul.f32 0.0078125, %v14392_v25  ;;  %v997_v25 = vmul.f32 0.0078125, %v14400_v47 }
 0x434   : > { %v1235_v55 = vadd.f32 1e-05, %v1219_v45  ;;  %v1016_v62 = vadd.f32 1e-05, %v1000_v31 }
 0x435   : > { %3485 = vrot.lane.b32.xlu1 %v14453_v53, %s13641_s29  ;;  %v1012_v30 = vadd.f32 1e-05, %v996_v29  ;;  %v1013_v57 = vadd.f32 1e-05, %v997_v25  ;;  %v14501_v29 = vld [vmem:[#allocation2 + $0x3] ss:$0 sm:$0xff] }
 0x436   : > { %13145 = vrsqrt.f32 %v1235_v55 }
 0x437   : > { %13147 = vrsqrt.f32 %v1005_v9 }
 0x438   : > { %v13140_v52 = vpop.eup %13139  ;;  %13149 = vrsqrt.f32 %v1008_v51 }
 0x439   : > { %v1265_v43 = vmul.f32 %v13140_v52, %v14324_v14  ;;  %3517 = vrot.lane.b32.xlu1 %v14453_v53, %s13642_s25  ;;  %v13142_v23 = vpop.eup %13141  ;;  %13151 = vrsqrt.f32 %v1007_v16 }
 0x43a   : > { %v1268_v14 = vmul.f32 %v13142_v23, %v14314_v56  ;;  %v13144_v39 = vpop.eup %13143  ;;  %13153 = vrsqrt.f32 %v1010_v38 }
 0x43b   : > { %v1285_v5 = vmul.f32 %v14339_v44, %v1265_v43  ;;  %13155 = vrsqrt.f32 %v1009_v32  ;;  %v1038_v52 = vmul.f32 %v13144_v39, %v14207_v12 }
 0x43c   : > { %987 = vadd.xlane.f32.xlu0 %v956_v54  ;;  %v1288_v56 = vmul.f32 %v14339_v44, %v1268_v14  ;;  %13157 = vrsqrt.f32 %v1012_v30  ;;  %v14491_v54 = vld [vmem:[#allocation2 + $0x2] ss:$0 sm:$0xff]  ;;  %v1002_v14 = vmul.f32 0.0078125, %v14443_v6  ;;  %v13643_v6 = vmov 1983009808  }
 0x43d   : > { %v1305_v60 = vadd.f32 %v14344_v18, %v1285_v5  ;;  %13159 = vrsqrt.f32 %v1011_v42  ;;  %v1058_v12 = vmul.f32 %v14491_v54, %v1038_v52  ;;  %v1509_v8 = vunpack.c.l.s4 %v13643_v6 }
 0x43e   : > { %13161 = vrsqrt.f32 %v1014_v22  ;;  %v1018_v42 = vadd.f32 1e-05, %v1002_v14  ;;  %v1511_v22 = vlaneseq }
 0x43f   : > { %v14477_v45 = vpack.c.bf16 %v1306_v11, %v1305_v60  ;;  %13163 = vrsqrt.f32 %v1013_v57 }
 0x440   : > { %v13146_v9 = vpop.eup %13145  ;;  %13165 = vrsqrt.f32 %v1015_v0  ;;  %v13644_v0 = vmov 1934713408  }
 0x441   : > { %v13148_v55 = vpop.eup %13147  ;;  %v1267_v51 = vmul.f32 %v13146_v9, %v14335_v49  ;;  %3503 = vrot.lane.b32.xlu1 %v14477_v45, %s13640_s26  ;;  %v1308_v49 = vadd.f32 %v14344_v18, %v1288_v56  ;;  %13167 = vrsqrt.f32 %v1016_v62  ;;  %v1512_v62 = vshrl.u32 %v1511_v22, 7 }
 0x442   : > { %v13150_v46 = vpop.eup %13149  ;;  %v1037_v47 = vmul.f32 %v13148_v55, %v14188_v37  ;;  %13169 = vrsqrt.f32 %v1018_v42 }
 0x443   : > { %v1287_v16 = vmul.f32 %v14339_v44, %v1267_v51  ;;  %v13152_v23 = vpop.eup %13151  ;;  %v1040_v44 = vmul.f32 %v13150_v46, %v14229_v61  ;;  %v1078_v61 = vadd.f32 %v14501_v29, %v1058_v12 }
 0x444   : > { %v13154_v37 = vpop.eup %13153  ;;  %v1057_v5 = vmul.f32 %v14491_v54, %v1037_v47  ;;  %v1039_v32 = vmul.f32 %v13152_v23, %v14200_v1 }
 0x445   : > { %v1307_v43 = vadd.f32 %v14344_v18, %v1287_v16  ;;  %v13156_v18 = vpop.eup %13155  ;;  %v1060_v4 = vmul.f32 %v14491_v54, %v1040_v44  ;;  %v1042_v15 = vmul.f32 %v13154_v37, %v14244_v48 }
 0x446   : > { %v1059_v60 = vmul.f32 %v14491_v54, %v1039_v32  ;;  %v1077_v1 = vadd.f32 %v14501_v29, %v1057_v5  ;;  %v13158_v11 = vpop.eup %13157  ;;  %v1041_v39 = vmul.f32 %v13156_v18, %v14241_v24 }
 0x447   : > { %v14495_v38 = vpack.c.bf16 %v1308_v49, %v1307_v43  ;;  %v13160_v9 = vpop.eup %13159  ;;  %v1080_v25 = vadd.f32 %v14501_v29, %v1060_v4  ;;  %v1044_v56 = vmul.f32 %v13158_v11, %v14264_v7  ;;  %v1062_v24 = vmul.f32 %v14491_v54, %v1042_v15 }
 0x448   : > { %v14512_v30 = vpack.c.bf16 %v1078_v61, %v1077_v1  ;;  %v13162_v55 = vpop.eup %13161  ;;  %v1079_v51 = vadd.f32 %v14501_v29, %v1059_v60  ;;  %v1061_v31 = vmul.f32 %v14491_v54, %v1041_v39  ;;  %v1043_v52 = vmul.f32 %v13160_v9, %v14254_v21 }
 0x449   : > { %3489 = vrot.lane.b32.xlu1 %v14495_v38, %s13641_s29  ;;  %v13164_v48 = vpop.eup %13163  ;;  %v1046_v46 = vmul.f32 %v13162_v55, %v14285_v27  ;;  %v1001_v7 = vmul.f32 0.0078125, %v14431_v59  ;;  %v1540_v43 = vunpack.c.l.s4 %v13644_v0  ;;  %v1064_v49 = vmul.f32 %v14491_v54, %v1044_v56 }
 0x44a   : > { %v13166_v16 = vpop.eup %13165  ;;  %v14526_v47 = vpack.c.bf16 %v1080_v25, %v1079_v51  ;;  %v1045_v23 = vmul.f32 %v13164_v48, %v14274_v17  ;;  %v1510_v21 = vunpack.c.0.s8 %v1509_v8  ;;  %v1063_v12 = vmul.f32 %v14491_v54, %v1043_v52 }
 0x44b   : > { %v13168_v57 = vpop.eup %13167  ;;  %v1047_v27 = vmul.f32 %v13166_v16, %v14282_v26  ;;  %v1081_v59 = vadd.f32 %v14501_v29, %v1061_v31  ;;  %v1082_v44 = vadd.f32 %v14501_v29, %v1062_v24  ;;  %v1066_v37 = vmul.f32 %v14491_v54, %v1046_v46 }
 0x44c   : > { %v1048_v17 = vmul.f32 %v13168_v57, %v14306_v58  ;;  %v1017_v5 = vadd.f32 1e-05, %v1001_v7  ;;  %v19243_v4 = vmov 0   ;;  %v1541_v60 = vunpack.c.0.s8 %v1540_v43  ;;  %v13170_v52 = vpop.eup %13169 }
 0x44d   : > { %3521 = vrot.lane.b32.xlu1 %v14495_v38, %s13642_s25  ;;  %v14542_v61 = vpack.i.b16 %v19243_v4, %v19243_v4  ;;  %v1065_v1 = vmul.f32 %v14491_v54, %v1045_v23  ;;  %v3527_v11 = vshrl.u32 %v14351_v35, 16  ;;  %v1084_v58 = vadd.f32 %v14501_v29, %v1064_v49 }
 0x44e   : > { %v1067_v15 = vmul.f32 %v14491_v54, %v1047_v27  ;;  %v14551_v39 = vsub.s32 %v1510_v21, %v1512_v62  ;;  %v14555_v9 = vpack.c.bf16 %v1082_v44, %v1081_v59  ;;  %v1083_v25 = vadd.f32 %v14501_v29, %v1063_v12 }
 0x44f   : > { %v1068_v55 = vmul.f32 %v14491_v54, %v1048_v17  ;;  %13171 = vrsqrt.f32 %v1017_v5  ;;  %v1086_v6 = vadd.f32 %v14501_v29, %v1066_v37  ;;  %v14561_v56 = vsub.s32 %v1541_v60, %v1512_v62 }
 0x450   : > { %19244 = vst [vmem:[#allocation24_spill] sm:$0xff] %v14551_v39  ;;  %v14565_v24 = vpack.c.bf16 %v1084_v58, %v1083_v25  ;;  %v1085_v31 = vadd.f32 %v14501_v29, %v1065_v1  ;;  %v1087_v57 = vadd.f32 %v14501_v29, %v1067_v15  ;;  %v1050_v59 = vmul.f32 %v13170_v52, %v14330_v36 }
 0x451   : > { %1341 = vrot.lane.b32.xlu1 %v14512_v30, %s13640_s26  ;;  %19245 = vst [vmem:[#allocation25_spill] sm:$0xff] %v14561_v56  ;;  %v1088_v23 = vadd.f32 %v14501_v29, %v1068_v55 }
 0x452   : > { %3483 = vrot.lane.b32.xlu0 %v14435_v19, %s13641_s29  ;;  %v14575_v49 = vpack.c.bf16 %v1086_v6, %v1085_v31 }
 0x454   : > { %19246 = vst [vmem:[#allocation26_spill] sm:$0xff] %v14575_v49 }
 0x455   : > { %1327 = vrot.lane.b32.xlu1 %v14526_v47, %s13641_s29 }
 0x456   : > { %3501 = vrot.lane.b32.xlu0 %v14453_v53, %s13640_s26 }
 0x457   : > { %v3476_v32 = vpop.permute.xlu0 %3475  ;;  %v3492_v18 = vpop.permute.xlu1 %3491 }
 0x458   : > { %v3525_v26 = vpack.i.b16 %v3476_v32, %v14351_v35  ;;  %v3528_v14 = vshrl.u32 %v3476_v32, 16  ;;  %v3535_v22 = vshrl.u32 %v3492_v18, 16 }
 0x459   : > { %1359 = vrot.lane.b32.xlu1 %v14526_v47, %s13642_s25  ;;  %v13172_v25 = vpop.eup %13171 }
 0x45a   : > { %3487 = vrot.lane.b32.xlu0 %v14477_v45, %s13641_s29  ;;  %v3529_v35 = vpack.i.b16 %v3528_v14, %v3527_v11  ;;  %v3651_v8 = vcombine.high %v3525_v26, %v14542_v61  ;;  %v3658_v16 = vrot.slane %v3525_v26, %v14551_v39 }
 0x45b   : > { %v3508_v42 = vpop.permute.xlu1 %3507 }
 0x45c   : > { %v3533_v51 = vpack.i.b16 %v3508_v42, %v3492_v18  ;;  %v3536_v48 = vshrl.u32 %v3508_v42, 16  ;;  %v3717_v0 = vcombine.high %v3529_v35, %v14542_v61  ;;  %v3665_v21 = vrot.slane %v3651_v8, %v14551_v39 }
 0x45d   : > { %1345 = vrot.lane.b32.xlu1 %v14555_v9, %s13640_s26  ;;  %v3724_v44 = vrot.slane %v3529_v35, %v14551_v39 }
 0x45e   : > { %v3666_v46 = vcombine.high %v3533_v51, %v14542_v61  ;;  %v3673_v7 = vrot.slane %v3533_v51, %v14551_v39  ;;  %3519 = vrot.lane.b32.xlu0 %v14477_v45, %s13642_s25  ;;  %v3537_v43 = vpack.i.b16 %v3536_v48, %v3535_v22  ;;  %v3731_v36 = vrot.slane %v3717_v0, %v14551_v39 }
 0x460   : > { %v3680_v62 = vrot.slane %v3666_v46, %v14551_v39  ;;  %v3681_v12 = vcombine.low %v3658_v16, %v3673_v7  ;;  %v3682_v27 = vcombine.high %v3658_v16, %v3673_v7  ;;  %v3732_v37 = vcombine.high %v3537_v43, %v14542_v61 }
 0x461   : > { %v3739_v17 = vrot.slane %v3537_v43, %v14551_v39  ;;  %1331 = vrot.lane.b32.xlu1 %v14565_v24, %s13641_s29  ;;  %v1049_v7 = vmul.f32 %v13172_v25, %v14317_v33 }
 0x462   : > { %v3689_v5 = vrot.slane %v3681_v12, %v14561_v56  ;;  %v3696_v32 = vrot.slane %v3682_v27, %v14561_v56  ;;  %v3697_v18 = vcombine.low %v3665_v21, %v3680_v62  ;;  %v3698_v4 = vcombine.high %v3665_v21, %v3680_v62  ;;  %3505 = vrot.lane.b32.xlu0 %v14495_v38, %s13640_s26 }
 0x463   : > { %v3746_v26 = vrot.slane %v3732_v37, %v14551_v39  ;;  %v3747_v14 = vcombine.low %v3724_v44, %v3739_v17  ;;  %v3748_v60 = vcombine.high %v3724_v44, %v3739_v17  ;;  %v1070_v37 = vmul.f32 %v14491_v54, %v1050_v59 }
 0x464   : > { %v3705_v1 = vrot.slane %v3697_v18, %v14561_v56  ;;  %v3712_v11 = vrot.slane %v3698_v4, %v14561_v56  ;;  %v4707_v58 = vcombine.low %v3689_v5, %v3696_v32  ;;  %v12158_v15 = vcombine.high %v3689_v5, %v3696_v32 }
 0x465   : > { %v3755_v55 = vrot.slane %v3747_v14, %v14561_v56  ;;  %v3762_v35 = vrot.slane %v3748_v60, %v14561_v56  ;;  %v3763_v42 = vcombine.low %v3731_v36, %v3746_v26  ;;  %v3764_v6 = vcombine.high %v3731_v36, %v3746_v26  ;;  %1363 = vrot.lane.b32.xlu1 %v14565_v24, %s13642_s25 }
 0x466   : > { %v4714_v8 = vrot.slane %v4707_v58, %v14551_v39  ;;  %v4722_v51 = vrot.slane %v12158_v15, %v14551_v39  ;;  %v4723_v22 = vcombine.low %v3705_v1, %v3712_v11  ;;  %v12159_v48 = vcombine.high %v3705_v1, %v3712_v11  ;;  %1325 = vrot.lane.b32.xlu0 %v14512_v30, %s13641_s29 }
 0x467   : > { %v3771_v31 = vrot.slane %v3763_v42, %v14561_v56  ;;  %v3778_v52 = vrot.slane %v3764_v6, %v14561_v56  ;;  %v4757_v16 = vcombine.low %v3755_v55, %v3762_v35  ;;  %v12160_v46 = vcombine.high %v3755_v55, %v3762_v35 }
 0x468   : > { %v4730_v0 = vrot.slane %v4723_v22, %v14551_v39  ;;  %v4738_v43 = vrot.slane %v12159_v48, %v14551_v39  ;;  %v4739_v21 = vcombine.low %v4714_v8, %v4722_v51  ;;  %v14614_v17 = vpack.c.bf16 %v1088_v23, %v1087_v57 }
 0x469   : > { %v4773_v62 = vcombine.low %v3771_v31, %v3778_v52  ;;  %v12161_v12 = vcombine.high %v3771_v31, %v3778_v52  ;;  %1349 = vrot.lane.b32.xlu1 %v14575_v49, %s13640_s26  ;;  %v4764_v27 = vrot.slane %v4757_v16, %v14551_v39  ;;  %v4772_v44 = vrot.slane %v12160_v46, %v14551_v39 }
 0x46a   : > { %1357 = vrot.lane.b32.xlu0 %v14512_v30, %s13642_s25  ;;  %v4747_v33 = vcombine.low %v4730_v0, %v4738_v43  ;;  %v1069_v4 = vmul.f32 %v14491_v54, %v1049_v7  ;;  %v4746_v36 = vrot.slane %v4739_v21, %v14561_v56  ;;  %v1090_v23 = vadd.f32 %v14501_v29, %v1070_v37 }
 0x46b   : > { %v4780_v5 = vrot.slane %v4773_v62, %v14551_v39  ;;  %v4788_v32 = vrot.slane %v12161_v12, %v14551_v39  ;;  %v4789_v18 = vcombine.low %v4764_v27, %v4772_v44  ;;  %v3543_v62 = vshrl.u32 %v14377_v3, 16 }
 0x46c   : > { %v4754_v26 = vrot.slane %v4747_v33, %v14561_v56  ;;  %v1089_v11 = vadd.f32 %v14501_v29, %v1069_v4 }
 0x46d   : > { %1335 = vrot.lane.b32.xlu1 %v14614_v17, %s13641_s29  ;;  %v4797_v59 = vcombine.low %v4780_v5, %v4788_v32  ;;  %v4796_v60 = vrot.slane %v4789_v18, %v14561_v56  ;;  %v1003_v32 = vmul.f32 0.0078125, %v14428_v10 }
 0x46e   : > { %1343 = vrot.lane.b32.xlu0 %v14526_v47, %s13640_s26  ;;  %v4755_v57 = vcombine.low %v4746_v36, %v4754_v26  ;;  %v4756_v14 = vcombine.high %v4746_v36, %v4754_v26  ;;  %v14633_v25 = vpack.c.bf16 %v1090_v23, %v1089_v11 }
 0x46f   : > { %v4804_v1 = vrot.slane %v4797_v59, %v14561_v56 }
 0x470   : > { %19247 = vst [vmem:[#allocation27_spill] sm:$0xff] %v14633_v25  ;;  %v5510_v55 = vshrl.u32 %v4755_v57, 16  ;;  %v5516_v35 = vshrl.u32 %v4756_v14, 16 }
 0x471   : > { %1367 = vrot.lane.b32.xlu1 %v14614_v17, %s13642_s25  ;;  %v4805_v58 = vcombine.low %v4796_v60, %v4804_v1  ;;  %v4806_v15 = vcombine.high %v4796_v60, %v4804_v1 }
 0x472   : > { %1329 = vrot.lane.b32.xlu0 %v14555_v9, %s13641_s29 }
 0x473   : > { %v5509_v42 = vpack.i.b16 %v4805_v58, %v4755_v57  ;;  %v5511_v6 = vshrl.u32 %v4805_v58, 16  ;;  %v14635_v8 = vpack.i.b16 %v4806_v15, %v4756_v14  ;;  %v5517_v51 = vshrl.u32 %v4806_v15, 16 }
 0x474   : > { %v1019_v14 = vadd.f32 1e-05, %v1003_v32 }
 0x475   : > { %19248 = vst [vmem:[#allocation28_spill] sm:$0xff] %v14635_v8  ;;  %12798 = vmatprep.subr.msk.bf16.mxu0 %vm7779_vm0, %v5509_v42  ;;  %1353 = vrot.lane.b32.xlu1 %v14633_v25, %s13640_s26  ;;  %v7805_v22 = vsel %vm7779_vm0, %v5509_v42, 0  ;;  %v5512_v48 = vpack.i.b16 %v5511_v6, %v5510_v55  ;;  %v14641_v31 = vpack.i.b16 %v5517_v51, %v5516_v35 }
 0x476   : > { %12495 = vmatpush3.bf16.xpose.msra.mxu0 %v7805_v22  ;;  %1361 = vrot.lane.b32.xlu0 %v14555_v9, %s13642_s25  ;;  %v3559_v22 = vshrl.u32 %v14396_v28, 16  ;;  %13173 = vrsqrt.f32 %v1019_v14 }
 0x477   : > { %19249 = vst [vmem:[#allocation29_spill] sm:$0xff] %v14641_v31  ;;  %12806 = vmatprep.subr.msk.bf16.mxu1 %vm7779_vm0, %v5512_v48  ;;  %v7950_v52 = vsel %vm7779_vm0, %v5512_v48, 0  ;;  %v3575_v48 = vshrl.u32 %v14415_v50, 16 }
 0x478   : > { %12527 = vmatpush3.bf16.xpose.msra.mxu1 %v7950_v52 }
 0x47a   : > { %1347 = vrot.lane.b32.xlu0 %v14565_v24, %s13640_s26 }
 0x47d   : > { %v3478_v16 = vpop.permute.xlu0 %3477  ;;  %v3494_v46 = vpop.permute.xlu1 %3493 }
 0x47e   : > { %1333 = vrot.lane.b32.xlu0 %v14575_v49, %s13641_s29  ;;  %v3541_v7 = vpack.i.b16 %v3478_v16, %v14377_v3  ;;  %v3544_v0 = vshrl.u32 %v3478_v16, 16  ;;  %v3551_v12 = vshrl.u32 %v3494_v46, 16 }
 0x480   : > { %v3783_v44 = vcombine.high %v3541_v7, %v14542_v61  ;;  %v3790_v37 = vrot.slane %v3541_v7, %v14551_v39  ;;  %v3545_v18 = vpack.i.b16 %v3544_v0, %v3543_v62 }
 0x481   : > { %v3510_v43 = vpop.permute.xlu1 %3509 }
 0x482   : > { %v3549_v21 = vpack.i.b16 %v3510_v43, %v3494_v46  ;;  %1365 = vrot.lane.b32.xlu0 %v14575_v49, %s13642_s25  ;;  %v3552_v27 = vshrl.u32 %v3510_v43, 16  ;;  %v3797_v57 = vrot.slane %v3783_v44, %v14551_v39  ;;  %v3849_v60 = vcombine.high %v3545_v18, %v14542_v61 }
 0x483   : > { %v3856_v35 = vrot.slane %v3545_v18, %v14551_v39 }
 0x484   : > { %v3798_v33 = vcombine.high %v3549_v21, %v14542_v61  ;;  %v3805_v5 = vrot.slane %v3549_v21, %v14551_v39  ;;  %v3553_v4 = vpack.i.b16 %v3552_v27, %v3551_v12  ;;  %v3863_v52 = vrot.slane %v3849_v60, %v14551_v39 }
 0x486   : > { %v3812_v36 = vrot.slane %v3798_v33, %v14551_v39  ;;  %v3813_v26 = vcombine.low %v3790_v37, %v3805_v5  ;;  %v3814_v59 = vcombine.high %v3790_v37, %v3805_v5  ;;  %1351 = vrot.lane.b32.xlu0 %v14614_v17, %s13640_s26  ;;  %v3864_v23 = vcombine.high %v3553_v4, %v14542_v61 }
 0x487   : > { %v3496_v3 = vpop.permute.xlu1 %3495  ;;  %v3871_v1 = vrot.slane %v3553_v4, %v14551_v39  ;;  %v3480_v10 = vpop.permute.xlu0 %3479 }
 0x488   : > { %v3821_v11 = vrot.slane %v3813_v26, %v14561_v56  ;;  %v3828_v58 = vrot.slane %v3814_v59, %v14561_v56  ;;  %v3829_v15 = vcombine.low %v3797_v57, %v3812_v36  ;;  %v3830_v55 = vcombine.high %v3797_v57, %v3812_v36 }
 0x489   : > { %v3878_v6 = vrot.slane %v3864_v23, %v14551_v39  ;;  %v3557_v51 = vpack.i.b16 %v3480_v10, %v14396_v28  ;;  %v3879_v16 = vcombine.low %v3856_v35, %v3871_v1  ;;  %v3880_v46 = vcombine.high %v3856_v35, %v3871_v1 }
 0x48a   : > { %1337 = vrot.lane.b32.xlu0 %v14633_v25, %s13641_s29  ;;  %v14678_v7 = vrot.slane %v3829_v15, %v14561_v56  ;;  %v14681_v0 = vrot.slane %v3830_v55, %v14561_v56  ;;  %v4807_v43 = vcombine.low %v3821_v11, %v3828_v58  ;;  %v3560_v21 = vshrl.u32 %v3480_v10, 16 }
 0x48b   : > { %v3512_v42 = vpop.permute.xlu1 %3511  ;;  %v12162_v62 = vcombine.high %v3821_v11, %v3828_v58  ;;  %v3567_v28 = vshrl.u32 %v3496_v3, 16  ;;  %v3895_v37 = vcombine.low %v3863_v52, %v3878_v6  ;;  %v3896_v33 = vcombine.high %v3863_v52, %v3878_v6 }
 0x48c   : > { %v3565_v12 = vpack.i.b16 %v3512_v42, %v3496_v3  ;;  %v3568_v27 = vshrl.u32 %v3512_v42, 16  ;;  %v3915_v5 = vcombine.high %v3557_v51, %v14542_v61  ;;  %v3922_v32 = vrot.slane %v3557_v51, %v14551_v39 }
 0x48d   : > { %v3561_v18 = vpack.i.b16 %v3560_v21, %v3559_v22  ;;  %v14690_v59 = vrot.slane %v3879_v16, %v14561_v56  ;;  %v14693_v57 = vrot.slane %v3880_v46, %v14561_v56  ;;  %v14696_v3 = vrot.slane %v4807_v43, %v14551_v39  ;;  %v14720_v43 = vpop.eup %13173 }
 0x48e   : > { %1369 = vrot.lane.b32.xlu0 %v14633_v25, %s13642_s25  ;;  %v3569_v4 = vpack.i.b16 %v3568_v27, %v3567_v28  ;;  %v3930_v36 = vcombine.high %v3565_v12, %v14542_v61  ;;  %v3937_v26 = vrot.slane %v3565_v12, %v14551_v39  ;;  %v14700_v14 = vrot.slane %v12162_v62, %v14551_v39 }
 0x48f   : > { %v3482_v44 = vpop.permute.xlu1 %3481  ;;  %v14704_v11 = vrot.slane %v3895_v37, %v14561_v56  ;;  %v14707_v58 = vrot.slane %v3896_v33, %v14561_v56  ;;  %v4823_v15 = vcombine.low %v14678_v7, %v14681_v0  ;;  %v3929_v35 = vrot.slane %v3915_v5, %v14551_v39  ;;  %v3498_v16 = vpop.permute.xlu0 %3497 }
 0x490   : > { %v3573_v23 = vpack.i.b16 %v3482_v44, %v14415_v50  ;;  %v3944_v60 = vrot.slane %v3930_v36, %v14551_v39  ;;  %v3945_v1 = vcombine.low %v3922_v32, %v3937_v26  ;;  %v3946_v10 = vcombine.high %v3922_v32, %v3937_v26 }
 0x491   : > { %v3996_v55 = vcombine.high %v3569_v4, %v14542_v61  ;;  %v12163_v50 = vcombine.high %v14678_v7, %v14681_v0  ;;  %v3981_v42 = vcombine.high %v3561_v18, %v14542_v61  ;;  %v3576_v6 = vshrl.u32 %v3482_v44, 16 }
 0x492   : > { %v3953_v51 = vrot.slane %v3945_v1, %v14561_v56  ;;  %v3960_v22 = vrot.slane %v3946_v10, %v14561_v56  ;;  %v4003_v52 = vrot.slane %v3569_v4, %v14551_v39  ;;  %v4047_v46 = vcombine.high %v3573_v23, %v14542_v61 }
 0x493   : > { %v4857_v21 = vcombine.low %v14690_v59, %v14693_v57  ;;  %v12164_v7 = vcombine.high %v14690_v59, %v14693_v57  ;;  %v3961_v0 = vcombine.low %v3929_v35, %v3944_v60  ;;  %v3962_v62 = vcombine.high %v3929_v35, %v3944_v60  ;;  %v3514_v37 = vpop.permute.xlu1 %3513 }
 0x494   : > { %v4873_v28 = vcombine.low %v14704_v11, %v14707_v58  ;;  %v12165_v12 = vcombine.high %v14704_v11, %v14707_v58  ;;  %v3988_v27 = vrot.slane %v3561_v18, %v14551_v39  ;;  %v4010_v44 = vrot.slane %v3996_v55, %v14551_v39 }
 0x495   : > { %v3995_v33 = vrot.slane %v3981_v42, %v14551_v39  ;;  %v3583_v5 = vshrl.u32 %v3498_v16, 16  ;;  %v3577_v32 = vpack.i.b16 %v3576_v6, %v3575_v48  ;;  %v4054_v4 = vrot.slane %v3573_v23, %v14551_v39 }
 0x496   : > { %v4011_v36 = vcombine.low %v3988_v27, %v4003_v52  ;;  %v4012_v26 = vcombine.high %v3988_v27, %v4003_v52  ;;  %v4907_v59 = vcombine.low %v3953_v51, %v3960_v22  ;;  %v4061_v57 = vrot.slane %v4047_v46, %v14551_v39 }
 0x497   : > { %v3969_v60 = vrot.slane %v3961_v0, %v14561_v56  ;;  %v3976_v1 = vrot.slane %v3962_v62, %v14561_v56  ;;  %v3581_v10 = vpack.i.b16 %v3514_v37, %v3498_v16  ;;  %v3584_v18 = vshrl.u32 %v3514_v37, 16 }
 0x498   : > { %v4027_v11 = vcombine.low %v3995_v33, %v4010_v44  ;;  %v12166_v58 = vcombine.high %v3953_v51, %v3960_v22  ;;  %v4830_v55 = vrot.slane %v4823_v15, %v14551_v39  ;;  %v4838_v35 = vrot.slane %v12163_v50, %v14551_v39 }
 0x499   : > { %v4028_v48 = vcombine.high %v3995_v33, %v4010_v44  ;;  %v3585_v42 = vpack.i.b16 %v3584_v18, %v3583_v5  ;;  %v4062_v23 = vcombine.high %v3581_v10, %v14542_v61  ;;  %v4069_v6 = vrot.slane %v3581_v10, %v14551_v39 }
 0x49a   : > { %v4019_v52 = vrot.slane %v4011_v36, %v14561_v56  ;;  %v4026_v46 = vrot.slane %v4012_v26, %v14561_v56  ;;  %v14744_v0 = vrot.slane %v4907_v59, %v14551_v39  ;;  %v4113_v16 = vcombine.high %v3577_v32, %v14542_v61 }
 0x49b   : > { %v4076_v51 = vrot.slane %v4062_v23, %v14551_v39  ;;  %v4077_v15 = vcombine.low %v4054_v4, %v4069_v6  ;;  %v4078_v22 = vcombine.high %v4054_v4, %v4069_v6  ;;  %v4847_v50 = vcombine.low %v4830_v55, %v4838_v35  ;;  %v14766_v55 = vpop.permute.xlu1 %3499 }
 0x49c   : > { %v14749_v62 = vrot.slane %v12166_v58, %v14551_v39  ;;  %v4923_v27 = vcombine.low %v3969_v60, %v3976_v1  ;;  %v12167_v44 = vcombine.high %v3969_v60, %v3976_v1  ;;  %v4128_v37 = vcombine.high %v3585_v42, %v14542_v61 }
 0x49d   : > { %v4035_v33 = vrot.slane %v4027_v11, %v14561_v56  ;;  %v4042_v5 = vrot.slane %v4028_v48, %v14561_v56  ;;  %v4839_v36 = vcombine.low %v14696_v3, %v14700_v14  ;;  %v4864_v26 = vrot.slane %v4857_v21, %v14551_v39 }
 0x49e   : > { %v4085_v59 = vrot.slane %v4077_v15, %v14561_v56  ;;  %v4092_v4 = vrot.slane %v4078_v22, %v14561_v56  ;;  %v4135_v10 = vrot.slane %v3585_v42, %v14551_v39  ;;  %v4872_v18 = vrot.slane %v12164_v7, %v14551_v39 }
 0x49f   : > { %v4093_v60 = vcombine.low %v4061_v57, %v4076_v51  ;;  %v14762_v1 = vrot.slane %v4847_v50, %v14561_v56  ;;  %v4880_v11 = vrot.slane %v4873_v28, %v14551_v39  ;;  %v4888_v58 = vrot.slane %v12165_v12, %v14551_v39 }
 0x4a0   : > { %v4957_v3 = vcombine.low %v4019_v52, %v4026_v46  ;;  %v4120_v14 = vrot.slane %v3577_v32, %v14551_v39  ;;  %v4094_v21 = vcombine.high %v4061_v57, %v4076_v51  ;;  %v4142_v35 = vrot.slane %v4128_v37, %v14551_v39 }
 0x4a1   : > { %v12168_v48 = vcombine.high %v4019_v52, %v4026_v46  ;;  %v4973_v42 = vcombine.low %v4035_v33, %v4042_v5  ;;  %v4127_v7 = vrot.slane %v4113_v16, %v14551_v39  ;;  %v14772_v23 = vrot.slane %v4839_v36, %v14561_v56 }
 0x4a2   : > { %v12169_v6 = vcombine.high %v4035_v33, %v4042_v5  ;;  %v4143_v15 = vcombine.low %v4120_v14, %v4135_v10  ;;  %v4144_v28 = vcombine.high %v4120_v14, %v4135_v10  ;;  %v5007_v22 = vcombine.low %v4085_v59, %v4092_v4  ;;  %v14784_v5 = vpop.permute.xlu1 %3515 }
 0x4a3   : > { %v4101_v12 = vrot.slane %v4093_v60, %v14561_v56  ;;  %v4855_v50 = vcombine.low %v14772_v23, %v14762_v1  ;;  %v4889_v32 = vcombine.low %v4864_v26, %v4872_v18  ;;  %v4897_v57 = vcombine.low %v4880_v11, %v4888_v58 }
 0x4a4   : > { %v4108_v51 = vrot.slane %v4094_v21, %v14561_v56  ;;  %v4159_v52 = vcombine.low %v4127_v7, %v4142_v35  ;;  %v4160_v46 = vcombine.high %v4127_v7, %v4142_v35  ;;  %v12170_v37 = vcombine.high %v4085_v59, %v4092_v4 }
 0x4a5   : > { %v14779_v16 = vrot.slane %v4889_v32, %v14561_v56  ;;  %v14782_v33 = vrot.slane %v4897_v57, %v14561_v56  ;;  %v4930_v36 = vrot.slane %v4923_v27, %v14551_v39  ;;  %v4938_v10 = vrot.slane %v12167_v44, %v14551_v39 }
 0x4a6   : > { %v4151_v26 = vrot.slane %v4143_v15, %v14561_v56  ;;  %v4158_v18 = vrot.slane %v4144_v28, %v14561_v56  ;;  %v5014_v60 = vrot.slane %v5007_v22, %v14551_v39  ;;  %v4939_v59 = vcombine.low %v14744_v0, %v14749_v62 }
 0x4a7   : > { %v4905_v4 = vcombine.low %v14779_v16, %v14782_v33  ;;  %v4947_v11 = vcombine.low %v4930_v36, %v4938_v10  ;;  %v4964_v58 = vrot.slane %v4957_v3, %v14551_v39  ;;  %v4972_v14 = vrot.slane %v12168_v48, %v14551_v39  ;;  %v14802_v62 = vpop.permute.xlu1 %3485 }
 0x4a8   : > { %v4167_v27 = vrot.slane %v4159_v52, %v14561_v56  ;;  %v4174_v44 = vrot.slane %v4160_v46, %v14561_v56  ;;  %v5022_v21 = vrot.slane %v12170_v37, %v14551_v39  ;;  %v5522_v35 = vshrl.u32 %v4855_v50, 16 }
 0x4a9   : > { %v5521_v7 = vpack.i.b16 %v4905_v4, %v4855_v50  ;;  %v5523_v15 = vshrl.u32 %v4905_v4, 16  ;;  %v4954_v28 = vrot.slane %v4947_v11, %v14561_v56  ;;  %v4980_v0 = vrot.slane %v4973_v42, %v14551_v39 }
 0x4aa   : > { %v5023_v22 = vcombine.low %v4101_v12, %v4108_v51  ;;  %v12171_v32 = vcombine.high %v4101_v12, %v4108_v51  ;;  %v4988_v3 = vrot.slane %v12169_v6, %v14551_v39  ;;  %v4989_v48 = vcombine.low %v4964_v58, %v4972_v14 }
 0x4ab   : > { %v5057_v57 = vcombine.low %v4151_v26, %v4158_v18  ;;  %12799 = vmatprep.subr.msk.bf16.mxu0 %vm7779_vm0, %v5521_v7  ;;  %v7808_v52 = vsel %vm7779_vm0, %v5521_v7, 0  ;;  %v5524_v46 = vpack.i.b16 %v5523_v15, %v5522_v35  ;;  %v4946_v50 = vrot.slane %v4939_v59, %v14561_v56  ;;  %v14814_v59 = vpop.permute.xlu1 %3517 }
 0x4ac   : > { %v12172_v37 = vcombine.high %v4151_v26, %v4158_v18  ;;  %v5073_v36 = vcombine.low %v4167_v27, %v4174_v44  ;;  %12497 = vmatpush3.bf16.xpose.msra.mxu0 %v7808_v52  ;;  %v4997_v10 = vcombine.low %v4980_v0, %v4988_v3  ;;  %v12173_v42 = vcombine.high %v4167_v27, %v4174_v44 }
 0x4ad   : > { %12807 = vmatprep.subr.msk.bf16.mxu1 %vm7779_vm0, %v5524_v46  ;;  %v7953_v12 = vsel %vm7779_vm0, %v5524_v46, 0  ;;  %v4955_v51 = vcombine.low %v4946_v50, %v4954_v28  ;;  %v4996_v6 = vrot.slane %v4989_v48, %v14561_v56  ;;  %v5030_v11 = vrot.slane %v5023_v22, %v14551_v39 }
 0x4ae   : > { %12529 = vmatpush3.bf16.xpose.msra.mxu1 %v7953_v12  ;;  %v5004_v4 = vrot.slane %v4997_v10, %v14561_v56  ;;  %v5038_v58 = vrot.slane %v12171_v32, %v14551_v39  ;;  %v5039_v26 = vcombine.low %v5014_v60, %v5022_v21  ;;  %v5064_v18 = vrot.slane %v5057_v57, %v14551_v39 }
 0x4af   : > { %v5072_v7 = vrot.slane %v12172_v37, %v14551_v39  ;;  %v5080_v15 = vrot.slane %v5073_v36, %v14551_v39  ;;  %v5534_v0 = vshrl.u32 %v4955_v51, 16  ;;  %v5088_v32 = vrot.slane %v12173_v42, %v14551_v39 }
 0x4b0   : > { %v5005_v44 = vcombine.low %v4996_v6, %v5004_v4  ;;  %v5047_v35 = vcombine.low %v5030_v11, %v5038_v58  ;;  %v5046_v22 = vrot.slane %v5039_v26, %v14561_v56  ;;  %v4856_v37 = vcombine.high %v14772_v23, %v14762_v1 }
 0x4b1   : > { %v5089_v57 = vcombine.low %v5064_v18, %v5072_v7  ;;  %v5097_v52 = vcombine.low %v5080_v15, %v5088_v32  ;;  %v4906_v36 = vcombine.high %v14779_v16, %v14782_v33  ;;  %v4956_v10 = vcombine.high %v4946_v50, %v4954_v28 }
 0x4b2   : > { %v5533_v60 = vpack.i.b16 %v5005_v44, %v4955_v51  ;;  %v5535_v21 = vshrl.u32 %v5005_v44, 16  ;;  %v5054_v48 = vrot.slane %v5047_v35, %v14561_v56  ;;  %v5528_v18 = vshrl.u32 %v4856_v37, 16 }
 0x4b3   : > { %v14825_v46 = vpop.permute.xlu1 %3503  ;;  %v5096_v11 = vrot.slane %v5089_v57, %v14561_v56  ;;  %v5104_v58 = vrot.slane %v5097_v52, %v14561_v56  ;;  %v14835_v26 = vpack.i.b16 %v4906_v36, %v4856_v37  ;;  %v5529_v44 = vshrl.u32 %v4906_v36, 16 }
 0x4b4   : > { %12800 = vmatprep.subr.msk.bf16.mxu0 %vm7779_vm0, %v5533_v60  ;;  %v7811_v42 = vsel %vm7779_vm0, %v5533_v60, 0  ;;  %v5536_v12 = vpack.i.b16 %v5535_v21, %v5534_v0  ;;  %v5055_v51 = vcombine.low %v5046_v22, %v5054_v48  ;;  %v5006_v23 = vcombine.high %v4996_v6, %v5004_v4 }
 0x4b5   : > { %12499 = vmatpush3.bf16.xpose.msra.mxu0 %v7811_v42  ;;  %19250 = vst [vmem:[#allocation30_spill] sm:$0xff] %v14835_v26  ;;  %v1051_v28 = vmul.f32 %v14720_v43, %v14303_v63  ;;  %v5105_v50 = vcombine.low %v5096_v11, %v5104_v58  ;;  %v14843_v7 = vpack.i.b16 %v5529_v44, %v5528_v18  ;;  %v3600_v0 = vshrl.u32 %v14784_v5, 16 }
 0x4b6   : > { %12808 = vmatprep.subr.msk.bf16.mxu1 %vm7779_vm0, %v5536_v12  ;;  %v7956_v1 = vsel %vm7779_vm0, %v5536_v12, 0  ;;  %v5056_v15 = vcombine.high %v5046_v22, %v5054_v48  ;;  %v14846_v32 = vpack.i.b16 %v5006_v23, %v4956_v10  ;;  %v5540_v60 = vshrl.u32 %v4956_v10, 16 }
 0x4b7   : > { %12531 = vmatpush3.bf16.xpose.msra.mxu1 %v7956_v1  ;;  %19251 = vst [vmem:[#allocation31_spill] sm:$0xff] %v14843_v7  ;;  %v5541_v21 = vshrl.u32 %v5006_v23, 16  ;;  %v5545_v6 = vpack.i.b16 %v5105_v50, %v5055_v51  ;;  %v5546_v4 = vshrl.u32 %v5055_v51, 16  ;;  %v5547_v57 = vshrl.u32 %v5105_v50, 16 }
 0x4b8   : > { %19252 = vst [vmem:[#allocation32_spill] sm:$0xff] %v14846_v32  ;;  %v5106_v52 = vcombine.high %v5096_v11, %v5104_v58  ;;  %v3599_v37 = vshrl.u32 %v14766_v55, 16  ;;  %v3608_v22 = vshrl.u32 %v14802_v62, 16  ;;  %v1071_v11 = vmul.f32 %v14491_v54, %v1051_v28 }
 0x4b9   : > { %v14849_v36 = vpack.i.b16 %v5541_v21, %v5540_v60  ;;  %12801 = vmatprep.subr.msk.bf16.mxu0 %vm7779_vm0, %v5545_v6  ;;  %v7814_v48 = vsel %vm7779_vm0, %v5545_v6, 0  ;;  %v5548_v10 = vpack.i.b16 %v5547_v57, %v5546_v4  ;;  %v3597_v58 = vpack.i.b16 %v14784_v5, %v14766_v55 }
 0x4ba   : > { %v14858_v51 = vpack.i.b16 %v5106_v52, %v5056_v15  ;;  %v3601_v44 = vpack.i.b16 %v3600_v0, %v3599_v37  ;;  %v3607_v50 = vshrl.u32 %v14453_v53, 16  ;;  %v5552_v21 = vshrl.u32 %v5056_v15, 16 }
 0x4bb   : > { %v3490_v35 = vpop.permute.xlu1 %3489  ;;  %19253 = vst [vmem:[#allocation33_spill] sm:$0xff] %v14849_v36  ;;  %12809 = vmatprep.subr.msk.bf16.mxu1 %vm7779_vm0, %v5548_v10  ;;  %v7959_v60 = vsel %vm7779_vm0, %v5548_v10, 0  ;;  %v5553_v6 = vshrl.u32 %v5106_v52, 16  ;;  %v3605_v4 = vpack.i.b16 %v14802_v62, %v14453_v53  ;;  %v1399_v54 = vshrl.u32 %v14526_v47, 16 }
 0x4bc   : > { %19256 = vst [vmem:[#allocation34_spill] sm:$0xff] %v14858_v51  ;;  %v3609_v5 = vpack.i.b16 %v3608_v22, %v3607_v50  ;;  %v3640_v0 = vshrl.u32 %v3490_v35, 16  ;;  %v3591_v37 = vshrl.u32 %v14435_v19, 16  ;;  %v4194_v15 = vcombine.high %v3597_v58, %v14542_v61 }
 0x4bd   : > { %12501 = vmatpush3.bf16.xpose.msra.mxu0 %v7814_v48  ;;  %v14875_v48 = vpack.i.b16 %v5553_v6, %v5552_v21  ;;  %v4260_v52 = vcombine.high %v3601_v44, %v14542_v61  ;;  %v3639_v10 = vshrl.u32 %v14495_v38, 16  ;;  %v3637_v22 = vpack.i.b16 %v3490_v35, %v14495_v38 }
 0x4be   : > { %v4311_v21 = vcombine.high %v3605_v4, %v14542_v61  ;;  %v14892_v12 = vsel %vm7779_vm0, %v14635_v8, 0  ;;  %v4201_v43 = vrot.slane %v3597_v58, %v14551_v39  ;;  %v4377_v3 = vcombine.high %v3609_v5, %v14542_v61 }
 0x4bf   : > { %v14856_v18 = vpop.permute.xlu1 %3521  ;;  %12533 = vmatpush3.bf16.xpose.msra.mxu1 %v7959_v60  ;;  %19258 = vst [vmem:[#allocation35_spill] sm:$0xff] %v14875_v48  ;;  %v14885_v60 = vadd.f32 %v14501_v29, %v1071_v11  ;;  %19259 = vst [vmem:[#allocation36_spill] sm:$0xff] %v14892_v12  ;;  %v3641_v38 = vpack.i.b16 %v3640_v0, %v3639_v10  ;;  %v14898_v29 = vsel %vm7779_vm0, %v14641_v31, 0  ;;  %v3616_v0 = vshrl.u32 %v14814_v59, 16 }
 0x4c0   : > { %19260 = vst [vmem:[#allocation37_spill] sm:$0xff] %v14898_v29  ;;  %v14901_v11 = vrot.slane %v4194_v15, %v14551_v39  ;;  %v14904_v33 = vrot.slane %v3601_v44, %v14551_v39  ;;  %v14907_v27 = vrot.slane %v4260_v52, %v14551_v39  ;;  %v14910_v58 = vrot.slane %v3605_v4, %v14551_v39 }
 0x4c1   : > { %v4575_v10 = vcombine.high %v3637_v22, %v14542_v61  ;;  %v14916_v15 = vrot.slane %v4311_v21, %v14551_v39  ;;  %v14919_v44 = vrot.slane %v3609_v5, %v14551_v39  ;;  %v14922_v55 = vrot.slane %v4377_v3, %v14551_v39 }
 0x4c2   : > { %v4641_v28 = vcombine.high %v3641_v38, %v14542_v61  ;;  %v14933_v21 = vrot.slane %v3637_v22, %v14551_v39  ;;  %v14941_v3 = vsel %vm7779_vm0, %v14846_v32, 0 }
 0x4c3   : > { %v14872_v57 = vpop.permute.xlu1 %1341  ;;  %19263 = vst [vmem:[#allocation40_spill] sm:$0xff] %v14941_v3  ;;  %v14963_v3 = vsel %vm7779_vm0, %v14858_v51, 0 }
 0x4c4   : > { %19265 = vst [vmem:[#allocation42_spill] sm:$0xff] %v14963_v3 }
 0x4c7   : > { %v1328_v35 = vpop.permute.xlu1 %1327 }
 0x4c8   : > { %v1400_v16 = vshrl.u32 %v1328_v35, 16  ;;  %v1397_v14 = vpack.i.b16 %v1328_v35, %v14526_v47  ;;  %v14930_v47 = vsel %vm7779_vm0, %v14835_v26, 0 }
 0x4c9   : > { %v988_v23 = vpop.xlane.xlu0 %987  ;;  %19261 = vst [vmem:[#allocation38_spill] sm:$0xff] %v14930_v47 }
 0x4ca   : > { %v1401_v62 = vpack.i.b16 %v1400_v16, %v1399_v54  ;;  %v1004_v52 = vmul.f32 0.0078125, %v988_v23  ;;  %v14937_v16 = vsel %vm7779_vm0, %v14843_v7, 0  ;;  %v14944_v23 = vrot.slane %v4575_v10, %v14551_v39 }
 0x4cb   : > { %v14926_v50 = vpop.permute.xlu1 %1359  ;;  %19262 = vst [vmem:[#allocation39_spill] sm:$0xff] %v14937_v16  ;;  %v14947_v54 = vrot.slane %v3641_v38, %v14551_v39  ;;  %v1639_v35 = vcombine.high %v1397_v14, %v14542_v61  ;;  %v14954_v16 = vrot.slane %v4641_v28, %v14551_v39  ;;  %v14959_v38 = vsel %vm7779_vm0, %v14849_v36, 0 }
 0x4cc   : > { %v1020_v5 = vadd.f32 1e-05, %v1004_v52  ;;  %v1705_v22 = vcombine.high %v1401_v62, %v14542_v61  ;;  %19264 = vst [vmem:[#allocation41_spill] sm:$0xff] %v14959_v38  ;;  %v14966_v32 = vrot.slane %v1397_v14, %v14551_v39  ;;  %v14976_v52 = vrot.slane %v1401_v62, %v14551_v39 }
 0x4cd   : > { %v3484_v4 = vpop.permute.xlu0 %3483  ;;  %v14973_v10 = vrot.slane %v1639_v35, %v14551_v39 }
 0x4ce   : > { %13175 = vrsqrt.f32 %v1020_v5  ;;  %v3589_v6 = vpack.i.b16 %v3484_v4, %v14435_v19  ;;  %v3592_v53 = vshrl.u32 %v3484_v4, 16  ;;  %v14979_v38 = vrot.slane %v1705_v22, %v14551_v39 }
 0x4cf   : > { %v14970_v28 = vpop.permute.xlu1 %1345 }
 0x4d0   : > { %v3593_v5 = vpack.i.b16 %v3592_v53, %v3591_v37  ;;  %v4179_v19 = vcombine.high %v3589_v6, %v14542_v61  ;;  %v4186_v4 = vrot.slane %v3589_v6, %v14551_v39 }
 0x4d1   : > { %v3502_v14 = vpop.permute.xlu0 %3501 }
 0x4d2   : > { %v4193_v37 = vrot.slane %v4179_v19, %v14551_v39  ;;  %v4209_v53 = vcombine.low %v4186_v4, %v4201_v43  ;;  %v4210_v51 = vcombine.high %v4186_v4, %v4201_v43  ;;  %v4245_v6 = vcombine.high %v3593_v5, %v14542_v61 }
 0x4d3   : > { %v4252_v36 = vrot.slane %v3593_v5, %v14551_v39  ;;  %v3613_v47 = vpack.i.b16 %v14814_v59, %v3502_v14  ;;  %v3615_v62 = vshrl.u32 %v3502_v14, 16 }
 0x4d4   : > { %v4217_v7 = vrot.slane %v4209_v53, %v14561_v56  ;;  %v4224_v22 = vrot.slane %v4210_v51, %v14561_v56  ;;  %v4225_v3 = vcombine.low %v4193_v37, %v14901_v11  ;;  %v4226_v29 = vcombine.high %v4193_v37, %v14901_v11 }
 0x4d5   : > { %v4259_v19 = vrot.slane %v4245_v6, %v14551_v39  ;;  %v4275_v43 = vcombine.low %v4252_v36, %v14904_v33  ;;  %v4276_v4 = vcombine.high %v4252_v36, %v14904_v33  ;;  %v3617_v5 = vpack.i.b16 %v3616_v0, %v3615_v62 }
 0x4d6   : > { %v14995_v35 = vrot.slane %v4225_v3, %v14561_v56  ;;  %v14998_v59 = vrot.slane %v4226_v29, %v14561_v56  ;;  %v5107_v14 = vcombine.low %v4217_v7, %v4224_v22  ;;  %v12174_v53 = vcombine.high %v4217_v7, %v4224_v22  ;;  %v1332_v3 = vpop.permute.xlu1 %1331  ;;  %v3488_v29 = vpop.permute.xlu0 %3487 }
 0x4d7   : > { %v15001_v51 = vrot.slane %v4275_v43, %v14561_v56  ;;  %v15004_v11 = vrot.slane %v4276_v4, %v14561_v56  ;;  %v4291_v37 = vcombine.low %v4259_v19, %v14907_v27  ;;  %v4292_v6 = vcombine.high %v4259_v19, %v14907_v27 }
 0x4d8   : > { %v13176_v33 = vpop.eup %13175  ;;  %v15009_v36 = vrot.slane %v5107_v14, %v14551_v39  ;;  %v15012_v0 = vrot.slane %v12174_v53, %v14551_v39  ;;  %v4326_v4 = vcombine.high %v3613_v47, %v14542_v61  ;;  %v4333_v14 = vrot.slane %v3613_v47, %v14551_v39 }
 0x4d9   : > { %v1052_v62 = vmul.f32 %v13176_v33, %v14460_v13  ;;  %v15020_v22 = vrot.slane %v4291_v37, %v14561_v56  ;;  %v15023_v27 = vrot.slane %v4292_v6, %v14561_v56  ;;  %v4392_v53 = vcombine.high %v3617_v5, %v14542_v61  ;;  %v13433_v13 = vld [vmem:[#allocation2 + $0x2] ss:$0 sm:$0xff] }
 0x4da   : > { %v4399_v19 = vrot.slane %v3617_v5, %v14551_v39  ;;  %v4340_v43 = vrot.slane %v4326_v4, %v14551_v39  ;;  %v4341_v7 = vcombine.low %v14910_v58, %v4333_v14  ;;  %v4342_v47 = vcombine.high %v14910_v58, %v4333_v14  ;;  %v15050_v31 = vpop.permute.xlu1 %1363 }
 0x4db   : > { %v15032_v33 = vmul.f32 %v13433_v13, %v1052_v62  ;;  %v4406_v48 = vrot.slane %v4392_v53, %v14551_v39  ;;  %v1429_v13 = vpack.i.b16 %v1332_v3, %v14565_v24  ;;  %v1432_v37 = vshrl.u32 %v1332_v3, 16  ;;  %19266 = vst [vmem:[#allocation43_spill] sm:$0xff] %v15050_v31 }
 0x4dc   : > { %v4407_v26 = vcombine.low %v14919_v44, %v4399_v19  ;;  %v4408_v62 = vcombine.high %v14919_v44, %v4399_v19  ;;  %v4349_v12 = vrot.slane %v4341_v7, %v14561_v56  ;;  %v4356_v6 = vrot.slane %v4342_v47, %v14561_v56 }
 0x4dd   : > { %v4357_v5 = vcombine.low %v14916_v15, %v4340_v43  ;;  %v4358_v4 = vcombine.high %v14916_v15, %v4340_v43  ;;  %v4423_v44 = vcombine.low %v14922_v55, %v4406_v48  ;;  %v4424_v3 = vcombine.high %v14922_v55, %v4406_v48  ;;  %v3520_v43 = vpop.permute.xlu0 %3519 }
 0x4de   : > { %v15053_v58 = vrot.slane %v4407_v26, %v14561_v56  ;;  %v15056_v14 = vrot.slane %v4408_v62, %v14561_v56  ;;  %v5207_v53 = vcombine.low %v4349_v12, %v4356_v6  ;;  %v12178_v15 = vcombine.high %v4349_v12, %v4356_v6  ;;  %v15098_v6 = vpop.permute.xlu1 %1349 }
 0x4df   : > { %v15061_v7 = vrot.slane %v4357_v5, %v14561_v56  ;;  %v15064_v19 = vrot.slane %v4358_v4, %v14561_v56  ;;  %v15067_v47 = vrot.slane %v4423_v44, %v14561_v56  ;;  %v15070_v26 = vrot.slane %v4424_v3, %v14561_v56  ;;  %19269 = vst [vmem:[#allocation45_spill] sm:$0xff] %v15098_v6 }
 0x4e0   : > { %v15077_v48 = vrot.slane %v5207_v53, %v14551_v39  ;;  %v15080_v5 = vrot.slane %v12178_v15, %v14551_v39  ;;  %v19267_v3 = vshrl.u32 %v14565_v24, 16  ;;  %v1903_v53 = vcombine.high %v1429_v13, %v14542_v61 }
 0x4e1   : > { %v15094_v15 = vrot.slane %v1429_v13, %v14551_v39  ;;  %v3621_v62 = vpack.i.b16 %v3488_v29, %v14477_v45  ;;  %v3624_v12 = vshrl.u32 %v3488_v29, 16  ;;  %v19272_v13 = vshrl.u32 %v14477_v45, 16  ;;  %v3506_v49 = vpop.permute.xlu0 %3505 }
 0x4e2   : > { %v1433_v55 = vpack.i.b16 %v1432_v37, %v19267_v3  ;;  %v15101_v4 = vrot.slane %v1903_v53, %v14551_v39  ;;  %v3629_v37 = vpack.i.b16 %v3520_v43, %v14825_v46  ;;  %v3632_v25 = vshrl.u32 %v3520_v43, 16 }
 0x4e3   : > { %19268 = vst [vmem:[#allocation44_spill] sm:$0xff] %v15094_v15  ;;  %v3625_v3 = vpack.i.b16 %v3624_v12, %v19272_v13  ;;  %v4443_v8 = vcombine.high %v3621_v62, %v14542_v61  ;;  %v4450_v29 = vrot.slane %v3621_v62, %v14551_v39  ;;  %v19274_v13 = vshrl.u32 %v14825_v46, 16 }
 0x4e4   : > { %19270 = vst [vmem:[#allocation46_spill] sm:$0xff] %v15101_v4  ;;  %v1969_v44 = vcombine.high %v1433_v55, %v14542_v61  ;;  %v15105_v24 = vrot.slane %v1433_v55, %v14551_v39  ;;  %v4458_v53 = vcombine.high %v3629_v37, %v14542_v61  ;;  %v4465_v4 = vrot.slane %v3629_v37, %v14551_v39 }
 0x4e5   : > { %v4509_v45 = vcombine.high %v3625_v3, %v14542_v61  ;;  %v4516_v12 = vrot.slane %v3625_v3, %v14551_v39  ;;  %v3633_v62 = vpack.i.b16 %v3632_v25, %v19274_v13 }
 0x4e6   : > { %19271 = vst [vmem:[#allocation47_spill] sm:$0xff] %v15105_v24  ;;  %v15113_v15 = vrot.slane %v1969_v44, %v14551_v39  ;;  %v4457_v24 = vrot.slane %v4443_v8, %v14551_v39  ;;  %v4472_v43 = vrot.slane %v4458_v53, %v14551_v39  ;;  %v4473_v1 = vcombine.low %v4450_v29, %v4465_v4 }
 0x4e7   : > { %v4474_v44 = vcombine.high %v4450_v29, %v4465_v4  ;;  %v4523_v31 = vrot.slane %v4509_v45, %v14551_v39  ;;  %v4524_v37 = vcombine.high %v3633_v62, %v14542_v61  ;;  %v4531_v55 = vrot.slane %v3633_v62, %v14551_v39 }
 0x4e8   : > { %19273 = vst [vmem:[#allocation48_spill] sm:$0xff] %v15113_v15  ;;  %v3645_v15 = vpack.i.b16 %v14856_v18, %v3506_v49  ;;  %v3647_v8 = vshrl.u32 %v3506_v49, 16  ;;  %v4481_v6 = vrot.slane %v4473_v1, %v14561_v56  ;;  %v4489_v63 = vcombine.low %v4457_v24, %v4472_v43 }
 0x4e9   : > { %v4488_v3 = vrot.slane %v4474_v44, %v14561_v56  ;;  %v4490_v46 = vcombine.high %v4457_v24, %v4472_v43  ;;  %v4538_v25 = vrot.slane %v4524_v37, %v14551_v39  ;;  %v4539_v53 = vcombine.low %v4516_v12, %v4531_v55 }
 0x4ea   : > { %v4540_v13 = vcombine.high %v4516_v12, %v4531_v55  ;;  %v19275_v4 = vshrl.u32 %v14856_v18, 16  ;;  %v15134_v45 = vrot.slane %v4489_v63, %v14561_v56  ;;  %v1336_v12 = vpop.permute.xlu1 %1335 }
 0x4eb   : > { %v15137_v42 = vrot.slane %v4490_v46, %v14561_v56  ;;  %v5307_v49 = vcombine.low %v4481_v6, %v4488_v3  ;;  %v12182_v62 = vcombine.high %v4481_v6, %v4488_v3  ;;  %v15140_v1 = vrot.slane %v4539_v53, %v14561_v56  ;;  %v1326_v6 = vpop.permute.xlu0 %1325 }
 0x4ec   : > { %v3649_v29 = vpack.i.b16 %v19275_v4, %v3647_v8  ;;  %v15143_v24 = vrot.slane %v4540_v13, %v14561_v56  ;;  %v4555_v43 = vcombine.low %v4523_v31, %v4538_v25  ;;  %v4556_v44 = vcombine.high %v4523_v31, %v4538_v25 }
 0x4ed   : > { %v15146_v55 = vrot.slane %v5307_v49, %v14551_v39  ;;  %v15149_v18 = vrot.slane %v12182_v62, %v14551_v39  ;;  %v4590_v46 = vcombine.high %v3645_v15, %v14542_v61  ;;  %v4597_v25 = vrot.slane %v3645_v15, %v14551_v39 }
 0x4ee   : > { %19276 = vst [vmem:[#allocation49_spill] sm:$0xff] %v15143_v24  ;;  %v15156_v37 = vrot.slane %v4555_v43, %v14561_v56  ;;  %v15159_v8 = vrot.slane %v4556_v44, %v14561_v56  ;;  %v4656_v53 = vcombine.high %v3649_v29, %v14542_v61  ;;  %v4663_v13 = vrot.slane %v3649_v29, %v14551_v39 }
 0x4ef   : > { %v1461_v62 = vpack.i.b16 %v1336_v12, %v14614_v17  ;;  %v1464_v43 = vshrl.u32 %v1336_v12, 16  ;;  %v4604_v44 = vrot.slane %v4590_v46, %v14551_v39  ;;  %v4605_v3 = vcombine.low %v14933_v21, %v4597_v25 }
 0x4f0   : > { %19277 = vst [vmem:[#allocation50_spill] sm:$0xff] %v15159_v8  ;;  %v4606_v31 = vcombine.high %v14933_v21, %v4597_v25  ;;  %v4670_v15 = vrot.slane %v4656_v53, %v14551_v39  ;;  %v4671_v29 = vcombine.low %v14947_v54, %v4663_v13  ;;  %v4672_v63 = vcombine.high %v14947_v54, %v4663_v13  ;;  %v15195_v13 = vpop.permute.xlu1 %1367 }
 0x4f1   : > { %v19278_v4 = vshrl.u32 %v14614_v17, 16  ;;  %v2167_v49 = vcombine.high %v1461_v62, %v14542_v61  ;;  %v4613_v12 = vrot.slane %v4605_v3, %v14561_v56  ;;  %v4621_v8 = vcombine.low %v14944_v23, %v4604_v44  ;;  %19280 = vst [vmem:[#allocation52_spill] sm:$0xff] %v15195_v13 }
 0x4f2   : > { %v4620_v46 = vrot.slane %v4606_v31, %v14561_v56  ;;  %v4622_v21 = vcombine.high %v14944_v23, %v4604_v44  ;;  %v15188_v25 = vrot.slane %v4671_v29, %v14561_v56  ;;  %v15191_v53 = vrot.slane %v4672_v63, %v14561_v56  ;;  %v13434_v44 = vld [vmem:[#allocation2 + $0x3] ss:$0 sm:$0xff] }
 0x4f3   : > { %v1465_v24 = vpack.i.b16 %v1464_v43, %v19278_v4  ;;  %v4687_v54 = vcombine.low %v14954_v16, %v4670_v15  ;;  %v4688_v17 = vcombine.high %v14954_v16, %v4670_v15  ;;  %v15198_v3 = vrot.slane %v4621_v8, %v14561_v56 }
 0x4f4   : > { %19279 = vst [vmem:[#allocation51_spill] sm:$0xff] %v15191_v53  ;;  %v15201_v31 = vrot.slane %v4622_v21, %v14561_v56  ;;  %v5407_v4 = vcombine.low %v4613_v12, %v4620_v46  ;;  %v12186_v23 = vcombine.high %v4613_v12, %v4620_v46  ;;  %v1358_v46 = vpop.permute.xlu0 %1357  ;;  %v1092_v12 = vadd.f32 %v13434_v44, %v15032_v33 }
 0x4f5   : > { %v15204_v43 = vrot.slane %v4687_v54, %v14561_v56  ;;  %v15207_v63 = vrot.slane %v4688_v17, %v14561_v56  ;;  %v15228_v17 = vrot.slane %v1461_v62, %v14551_v39  ;;  %v15235_v16 = vrot.slane %v1465_v24, %v14551_v39 }
 0x4f6   : > { %v15214_v8 = vrot.slane %v5407_v4, %v14551_v39  ;;  %v15217_v15 = vrot.slane %v12186_v23, %v14551_v39  ;;  %v15231_v4 = vrot.slane %v2167_v49, %v14551_v39  ;;  %v2233_v23 = vcombine.high %v1465_v24, %v14542_v61 }
 0x4f7   : > { %19281 = vst [vmem:[#allocation53_spill] sm:$0xff] %v15228_v17  ;;  %19283 = vst [vmem:[#allocation55_spill] sm:$0xff] %v15235_v16  ;;  %v1375_v29 = vpack.i.b16 %v1326_v6, %v14512_v30  ;;  %v1378_v21 = vshrl.u32 %v1326_v6, 16  ;;  %v1383_v54 = vpack.i.b16 %v1358_v46, %v14872_v57  ;;  %v1386_v62 = vshrl.u32 %v1358_v46, 16  ;;  %v15241_v17 = vpop.permute.xlu1 %1353 }
 0x4f8   : > { %19282 = vst [vmem:[#allocation54_spill] sm:$0xff] %v15231_v4  ;;  %v15244_v49 = vrot.slane %v2233_v23, %v14551_v39  ;;  %v15247_v4 = vpack.c.bf16 %v1092_v12, %v14885_v60  ;;  %v19285_v44 = vshrl.u32 %v14512_v30, 16  ;;  %v19286_v53 = vshrl.u32 %v14872_v57, 16 }
 0x4f9   : > { %v1507_v24 = vcombine.high %v1375_v29, %v14542_v61  ;;  %v1514_v33 = vrot.slane %v1375_v29, %v14551_v39  ;;  %v1522_v46 = vcombine.high %v1383_v54, %v14542_v61  ;;  %v1529_v13 = vrot.slane %v1383_v54, %v14551_v39 }
 0x4fa   : > { %19284 = vst [vmem:[#allocation56_spill] sm:$0xff] %v15244_v49  ;;  %v1379_v6 = vpack.i.b16 %v1378_v21, %v19285_v44  ;;  %v1387_v16 = vpack.i.b16 %v1386_v62, %v19286_v53  ;;  %1355 = vrot.lane.b32.xlu0 %v15247_v4, %s13640_s26  ;;  %1339 = vrot.lane.b32.xlu1 %v15247_v4, %s13641_s29 }
 0x4fb   : > { %v1521_v60 = vrot.slane %v1507_v24, %v14551_v39  ;;  %v19287_v30 = vcombine.low %v14995_v35, %v14998_v59  ;;  %v19288_v57 = vcombine.high %v14995_v35, %v14998_v59  ;;  %v1536_v23 = vrot.slane %v1522_v46, %v14551_v39 }
 0x4fc   : > { %v1573_v21 = vcombine.high %v1379_v6, %v14542_v61  ;;  %v1580_v54 = vrot.slane %v1379_v6, %v14551_v39  ;;  %v1537_v62 = vcombine.low %v1514_v33, %v1529_v13  ;;  %v1538_v24 = vcombine.high %v1514_v33, %v1529_v13 }
 0x4fd   : > { %v5130_v29 = vrot.slane %v19287_v30, %v14551_v39  ;;  %v5138_v53 = vrot.slane %v19288_v57, %v14551_v39  ;;  %v1588_v44 = vcombine.high %v1387_v16, %v14542_v61  ;;  %v1595_v49 = vrot.slane %v1387_v16, %v14551_v39 }
 0x4fe   : > { %v5139_v30 = vcombine.low %v15009_v36, %v15012_v0  ;;  %v1587_v35 = vrot.slane %v1573_v21, %v14551_v39  ;;  %v1545_v59 = vrot.slane %v1537_v62, %v14561_v56  ;;  %v1553_v57 = vcombine.low %v1521_v60, %v1536_v23  ;;  %5619 = vrot.lane.b32.xlu0 %v14072_v40, %s13641_s29 }
 0x4ff   : > { %v1554_v12 = vcombine.high %v1521_v60, %v1536_v23  ;;  %v1552_v6 = vrot.slane %v1538_v24, %v14561_v56  ;;  %v1602_v13 = vrot.slane %v1588_v44, %v14551_v39  ;;  %v1603_v33 = vcombine.low %v1580_v54, %v1595_v49  ;;  %1371 = vrot.lane.b32.xlu1 %v15247_v4, %s13642_s25 }
 0x500   : > { %v1604_v46 = vcombine.high %v1580_v54, %v1595_v49  ;;  %v15285_v16 = vrot.slane %v1553_v57, %v14561_v56  ;;  %v15293_v0 = vrot.slane %v5139_v30, %v14561_v56  ;;  %v5147_v60 = vcombine.low %v5130_v29, %v5138_v53 }
 0x501   : > { %v15288_v36 = vrot.slane %v1554_v12, %v14561_v56  ;;  %v15296_v21 = vrot.slane %v1603_v33, %v14561_v56  ;;  %v1619_v49 = vcombine.low %v1587_v35, %v1602_v13  ;;  %v1620_v54 = vcombine.high %v1587_v35, %v1602_v13 }
 0x502   : > { %19289 = vst [vmem:[#allocation57_spill] sm:$0xff] %v15293_v0  ;;  %v15299_v23 = vrot.slane %v1604_v46, %v14561_v56  ;;  %v2563_v62 = vcombine.low %v1545_v59, %v1552_v6  ;;  %v12126_v24 = vcombine.high %v1545_v59, %v1552_v6  ;;  %5637 = vrot.lane.b32.xlu0 %v14070_v2, %s13640_s26  ;;  %v1344_v59 = vpop.permute.xlu0 %1343 }
 0x503   : > { %v15306_v30 = vrot.slane %v1619_v49, %v14561_v56  ;;  %v15309_v29 = vrot.slane %v1620_v54, %v14561_v56  ;;  %v15324_v13 = vrot.slane %v5147_v60, %v14561_v56  ;;  %v19290_v33 = vcombine.low %v15001_v51, %v15004_v11  ;;  %5635 = vrot.lane.b32.xlu1 %v14072_v40, %s13640_s26 }
 0x504   : > { %v15318_v57 = vrot.slane %v2563_v62, %v14551_v39  ;;  %v15321_v6 = vrot.slane %v12126_v24, %v14551_v39  ;;  %v19291_v62 = vcombine.high %v15001_v51, %v15004_v11  ;;  %v19292_v24 = vcombine.low %v15020_v22, %v15023_v27 }
 0x505   : > { %v5164_v46 = vrot.slane %v19290_v33, %v14551_v39  ;;  %v5155_v33 = vcombine.low %v15293_v0, %v15324_v13  ;;  %v19293_v49 = vcombine.high %v15020_v22, %v15023_v27  ;;  %v1405_v54 = vpack.i.b16 %v14926_v50, %v1344_v59 }
 0x506   : > { %v5172_v60 = vrot.slane %v19291_v62, %v14551_v39  ;;  %v5180_v35 = vrot.slane %v19292_v24, %v14551_v39  ;;  %v1407_v44 = vshrl.u32 %v1344_v59, 16  ;;  %v19294_v51 = vcombine.low %v15061_v7, %v15064_v19  ;;  %5623 = vrot.lane.b32.xlu0 %v14086_v20, %s13641_s29 }
 0x507   : > { %v5188_v53 = vrot.slane %v19293_v49, %v14551_v39  ;;  %v19295_v62 = vcombine.high %v15061_v7, %v15064_v19  ;;  %v5239_v0 = vcombine.low %v15077_v48, %v15080_v5  ;;  %v5558_v27 = vshrl.u32 %v5155_v33, 16  ;;  %5651 = vrot.lane.b32.xlu1 %v14072_v40, %s13642_s25 }
 0x508   : > { %v5189_v12 = vcombine.low %v5164_v46, %v5172_v60  ;;  %v5230_v11 = vrot.slane %v19294_v51, %v14551_v39  ;;  %v19296_v59 = vshrl.u32 %v14926_v50, 16  ;;  %v1654_v49 = vcombine.high %v1405_v54, %v14542_v61 }
 0x509   : > { %v5238_v24 = vrot.slane %v19295_v62, %v14551_v39  ;;  %v5197_v22 = vcombine.low %v5180_v35, %v5188_v53  ;;  %v1661_v7 = vrot.slane %v1405_v54, %v14551_v39  ;;  %v15373_v19 = vrot.slane %v5239_v0, %v14561_v56 }
 0x50a   : > { %v1409_v46 = vpack.i.b16 %v19296_v59, %v1407_v44  ;;  %v15369_v60 = vrot.slane %v5189_v12, %v14561_v56  ;;  %v1668_v50 = vrot.slane %v1654_v49, %v14551_v39  ;;  %v19297_v0 = vcombine.low %v15053_v58, %v15056_v14  ;;  %5655 = vrot.lane.b32.xlu0 %v14086_v20, %s13642_s25 }
 0x50b   : > { %v5247_v48 = vcombine.low %v5230_v11, %v5238_v24  ;;  %v15376_v5 = vrot.slane %v5197_v22, %v14561_v56  ;;  %v1669_v35 = vcombine.low %v14966_v32, %v1661_v7  ;;  %v1670_v12 = vcombine.high %v14966_v32, %v1661_v7  ;;  %5621 = vrot.lane.b32.xlu1 %v14070_v2, %s13641_s29 }
 0x50c   : > { %v1720_v44 = vcombine.high %v1409_v46, %v14542_v61  ;;  %v1727_v53 = vrot.slane %v1409_v46, %v14551_v39  ;;  %v15390_v54 = vrot.slane %v19297_v0, %v14551_v39  ;;  %v1685_v62 = vcombine.low %v14973_v10, %v1668_v50 }
 0x50d   : > { %v15384_v51 = vrot.slane %v5247_v48, %v14561_v56  ;;  %v5205_v11 = vcombine.low %v15369_v60, %v15376_v5  ;;  %v1686_v24 = vcombine.high %v14973_v10, %v1668_v50  ;;  %v1677_v22 = vrot.slane %v1669_v35, %v14561_v56 }
 0x50e   : > { %v1734_v32 = vrot.slane %v1720_v44, %v14551_v39  ;;  %v1684_v59 = vrot.slane %v1670_v12, %v14561_v56  ;;  %v1735_v46 = vcombine.low %v14976_v52, %v1727_v53  ;;  %v1736_v49 = vcombine.high %v14976_v52, %v1727_v53  ;;  %5641 = vrot.lane.b32.xlu0 %v14084_v41, %s13640_s26 }
 0x50f   : > { %v5557_v7 = vpack.i.b16 %v5205_v11, %v5155_v33  ;;  %v5559_v48 = vshrl.u32 %v5205_v11, 16  ;;  %v1693_v0 = vrot.slane %v1685_v62, %v14561_v56  ;;  %v1700_v40 = vrot.slane %v1686_v24, %v14561_v56  ;;  %v1330_v11 = vpop.permute.xlu0 %1329  ;;  %5653 = vrot.lane.b32.xlu1 %v14070_v2, %s13642_s25 }
 0x510   : > { %v1743_v10 = vrot.slane %v1735_v46, %v14561_v56  ;;  %v1750_v50 = vrot.slane %v1736_v49, %v14561_v56  ;;  %v1751_v44 = vcombine.low %v14979_v38, %v1734_v32  ;;  %v1752_v35 = vcombine.high %v14979_v38, %v1734_v32 }
 0x511   : > { %12802 = vmatprep.subr.msk.bf16.mxu0 %vm7779_vm0, %v5557_v7  ;;  %v7817_v52 = vsel %vm7779_vm0, %v5557_v7, 0  ;;  %v5560_v33 = vpack.i.b16 %v5559_v48, %v5558_v27  ;;  %v2663_v53 = vcombine.low %v1677_v22, %v1684_v59  ;;  %v12130_v12 = vcombine.high %v1677_v22, %v1684_v59 }
 0x512   : > { %12503 = vmatpush3.bf16.xpose.msra.mxu0 %v7817_v52  ;;  %v1759_v62 = vrot.slane %v1751_v44, %v14561_v56  ;;  %v1766_v24 = vrot.slane %v1752_v35, %v14561_v56  ;;  %v2679_v38 = vcombine.low %v1693_v0, %v1700_v40  ;;  %v12131_v32 = vcombine.high %v1693_v0, %v1700_v40 }
 0x513   : > { %12810 = vmatprep.subr.msk.bf16.mxu1 %vm7779_vm0, %v5560_v33  ;;  %v2670_v46 = vrot.slane %v2663_v53, %v14551_v39  ;;  %v2678_v49 = vrot.slane %v12130_v12, %v14551_v39  ;;  %v2713_v27 = vcombine.low %v1743_v10, %v1750_v50  ;;  %v12132_v7 = vcombine.high %v1743_v10, %v1750_v50 }
 0x514   : > { %v2686_v22 = vrot.slane %v2679_v38, %v14551_v39  ;;  %v2694_v59 = vrot.slane %v12131_v32, %v14551_v39  ;;  %v2729_v48 = vcombine.low %v1759_v62, %v1766_v24  ;;  %v12133_v52 = vcombine.high %v1759_v62, %v1766_v24  ;;  %5627 = vrot.lane.b32.xlu0 %v14100_v34, %s13641_s29 }
 0x515   : > { %v2695_v44 = vcombine.low %v2670_v46, %v2678_v49  ;;  %v2720_v40 = vrot.slane %v2713_v27, %v14551_v39  ;;  %v2728_v0 = vrot.slane %v12132_v7, %v14551_v39  ;;  %v7962_v35 = vsel %vm7779_vm0, %v5560_v33, 0  ;;  %5639 = vrot.lane.b32.xlu1 %v14086_v20, %s13640_s26  ;;  %v1362_v49 = vpop.permute.xlu0 %1361 }
 0x516   : > { %v2703_v10 = vcombine.low %v2686_v22, %v2694_v59  ;;  %v15432_v50 = vrot.slane %v2729_v48, %v14551_v39  ;;  %v15435_v53 = vrot.slane %v12133_v52, %v14551_v39  ;;  %12535 = vmatpush3.bf16.xpose.msra.mxu1 %v7962_v35  ;;  %v5255_v12 = vcombine.low %v15373_v19, %v15384_v51 }
 0x517   : > { %v15440_v62 = vrot.slane %v2695_v44, %v14561_v56  ;;  %v2745_v24 = vcombine.low %v2720_v40, %v2728_v0  ;;  %v19299_v33 = vcombine.high %v15053_v58, %v15056_v14  ;;  %v19300_v32 = vcombine.low %v15067_v47, %v15070_v26 }
 0x518   : > { %v15451_v27 = vrot.slane %v2703_v10, %v14561_v56  ;;  %v19301_v22 = vcombine.high %v15067_v47, %v15070_v26  ;;  %v5570_v48 = vshrl.u32 %v5255_v12, 16  ;;  %5659 = vrot.lane.b32.xlu0 %v14100_v34, %s13642_s25  ;;  %v1413_v52 = vpack.i.b16 %v1330_v11, %v14555_v9 }
 0x519   : > { %19298 = vst [vmem:[#allocation58_spill] sm:$0xff] %v15440_v62  ;;  %v5272_v38 = vrot.slane %v19299_v33, %v14551_v39  ;;  %v5280_v46 = vrot.slane %v19300_v32, %v14551_v39  ;;  %v15462_v58 = vrot.slane %v2745_v24, %v14561_v56  ;;  %v1416_v44 = vshrl.u32 %v1330_v11, 16  ;;  %5625 = vrot.lane.b32.xlu1 %v14084_v41, %s13641_s29 }
 0x51a   : > { %v5288_v59 = vrot.slane %v19301_v22, %v14551_v39  ;;  %v1421_v0 = vpack.i.b16 %v1362_v49, %v14970_v28  ;;  %v1424_v47 = vshrl.u32 %v1362_v49, 16  ;;  %v19303_v26 = vcombine.low %v15134_v45, %v15137_v42 }
 0x51b   : > { %19302 = vst [vmem:[#allocation59_spill] sm:$0xff] %v15462_v58  ;;  %v5289_v14 = vcombine.low %v15390_v54, %v5272_v38  ;;  %v19305_v54 = vshrl.u32 %v14555_v9, 16  ;;  %v1771_v11 = vcombine.high %v1413_v52, %v14542_v61  ;;  %v1778_v33 = vrot.slane %v1413_v52, %v14551_v39 }
 0x51c   : > { %v5297_v40 = vcombine.low %v5280_v46, %v5288_v59  ;;  %v15473_v35 = vrot.slane %v19303_v26, %v14551_v39  ;;  %v19307_v32 = vshrl.u32 %v14970_v28, 16  ;;  %v1786_v49 = vcombine.high %v1421_v0, %v14542_v61  ;;  %v19308_v59 = vld [vmem:[#allocation20_spill] sm:$0xff] }
 0x51d   : > { %v15476_v10 = vrot.slane %v5289_v14, %v14561_v56  ;;  %v1417_v24 = vpack.i.b16 %v1416_v44, %v19305_v54  ;;  %v1793_v22 = vrot.slane %v1421_v0, %v14551_v39  ;;  %5645 = vrot.lane.b32.xlu0 %v19308_v59, %s13640_s26  ;;  %v1785_v9 = vrot.slane %v1771_v11, %v14551_v39 }
 0x51e   : > { %v15483_v38 = vrot.slane %v5297_v40, %v14561_v56  ;;  %v1425_v46 = vpack.i.b16 %v1424_v47, %v19307_v32  ;;  %v19309_v52 = vcombine.high %v15134_v45, %v15137_v42  ;;  %5657 = vrot.lane.b32.xlu1 %v14084_v41, %s13642_s25  ;;  %v1800_v0 = vrot.slane %v1786_v49, %v14551_v39  ;;  %v19310_v41 = vld [vmem:[#allocation23_spill] sm:$0xff] }
 0x51f   : > { %19304 = vst [vmem:[#allocation60_spill] sm:$0xff] %v15476_v10  ;;  %v1837_v14 = vcombine.high %v1417_v24, %v14542_v61  ;;  %v1844_v44 = vrot.slane %v1417_v24, %v14551_v39  ;;  %v1801_v47 = vcombine.low %v1778_v33, %v1793_v22  ;;  %v1802_v26 = vcombine.high %v1778_v33, %v1793_v22 }
 0x520   : > { %19306 = vst [vmem:[#allocation61_spill] sm:$0xff] %v15483_v38  ;;  %v5338_v40 = vrot.slane %v19309_v52, %v14551_v39  ;;  %v5305_v28 = vcombine.low %v15476_v10, %v15483_v38  ;;  %v1852_v11 = vcombine.high %v1425_v46, %v14542_v61  ;;  %v1859_v24 = vrot.slane %v1425_v46, %v14551_v39 }
 0x521   : > { %v1851_v54 = vrot.slane %v1837_v14, %v14551_v39  ;;  %v5339_v42 = vcombine.low %v15146_v55, %v15149_v18  ;;  %v1809_v52 = vrot.slane %v1801_v47, %v14561_v56  ;;  %v1816_v7 = vrot.slane %v1802_v26, %v14561_v56  ;;  %5631 = vrot.lane.b32.xlu0 %v19310_v41, %s13641_s29 }
 0x522   : > { %v5569_v45 = vpack.i.b16 %v5305_v28, %v5255_v12  ;;  %v5571_v32 = vshrl.u32 %v5305_v28, 16  ;;  %v1817_v49 = vcombine.low %v1785_v9, %v1800_v0  ;;  %v1818_v33 = vcombine.high %v1785_v9, %v1800_v0  ;;  %5643 = vrot.lane.b32.xlu1 %v14100_v34, %s13640_s26 }
 0x523   : > { %v1866_v22 = vrot.slane %v1852_v11, %v14551_v39  ;;  %v1867_v14 = vcombine.low %v1844_v44, %v1859_v24  ;;  %v1868_v12 = vcombine.high %v1844_v44, %v1859_v24  ;;  %v2763_v46 = vcombine.low %v1809_v52, %v1816_v7 }
 0x524   : > { %12803 = vmatprep.subr.msk.bf16.mxu0 %vm7779_vm0, %v5569_v45  ;;  %v5572_v55 = vpack.i.b16 %v5571_v32, %v5570_v48  ;;  %v7820_v18 = vsel %vm7779_vm0, %v5569_v45, 0  ;;  %v15518_v28 = vrot.slane %v1817_v49, %v14561_v56  ;;  %v15521_v47 = vrot.slane %v1818_v33, %v14561_v56  ;;  %v19320_v32 = vld [vmem:[#allocation22_spill] sm:$0xff] }
 0x525   : > { %12505 = vmatpush3.bf16.xpose.msra.mxu0 %v7820_v18  ;;  %v15524_v9 = vrot.slane %v1867_v14, %v14561_v56  ;;  %v1883_v0 = vcombine.low %v1851_v54, %v1866_v22  ;;  %v15528_v26 = vrot.slane %v1868_v12, %v14561_v56  ;;  %v1884_v48 = vcombine.high %v1851_v54, %v1866_v22  ;;  %v1348_v22 = vpop.permute.xlu0 %1347  ;;  %v19312_v18 = vld [vmem:[#allocation49_spill] sm:$0xff] }
 0x526   : > { %12811 = vmatprep.subr.msk.bf16.mxu1 %vm7779_vm0, %v5572_v55  ;;  %v15531_v44 = vrot.slane %v2763_v46, %v14551_v39  ;;  %v12134_v11 = vcombine.high %v1809_v52, %v1816_v7  ;;  %v7965_v49 = vsel %vm7779_vm0, %v5572_v55, 0  ;;  %5663 = vrot.lane.b32.xlu0 %v19310_v41, %s13642_s25  ;;  %v15556_v14 = vrot.slane %v5339_v42, %v14561_v56  ;;  %v19315_v42 = vld [vmem:[#allocation50_spill] sm:$0xff] }
 0x527   : > { %v15534_v24 = vrot.slane %v1883_v0, %v14561_v56  ;;  %5629 = vrot.lane.b32.xlu1 %v19308_v59, %s13641_s29  ;;  %v15546_v54 = vrot.slane %v1884_v48, %v14561_v56  ;;  %12537 = vmatpush3.bf16.xpose.msra.mxu1 %v7965_v49  ;;  %v5347_v55 = vcombine.low %v15473_v35, %v5338_v40 }
 0x528   : > { %v15549_v7 = vrot.slane %v12134_v11, %v14551_v39  ;;  %19311 = vst [vmem:[#allocation62_spill] sm:$0xff] %v15556_v14  ;;  %v19313_v12 = vcombine.low %v15140_v1, %v19312_v18  ;;  %v19314_v0 = vcombine.high %v15140_v1, %v19312_v18  ;;  %v19316_v35 = vcombine.low %v15156_v37, %v19315_v42  ;;  %v19319_v18 = vld [vmem:[#allocation43_spill] sm:$0xff] }
 0x529   : > { %v15580_v52 = vrot.slane %v5347_v55, %v14561_v56  ;;  %v1439_v11 = vshrl.u32 %v1348_v22, 16  ;;  %v19322_v55 = vcombine.high %v15198_v3, %v15201_v31  ;;  %v1334_v34 = vpop.permute.xlu0 %1333 }
 0x52a   : > { %v5364_v46 = vrot.slane %v19313_v12, %v14551_v39  ;;  %v5372_v48 = vrot.slane %v19314_v0, %v14551_v39  ;;  %v5380_v40 = vrot.slane %v19316_v35, %v14551_v39  ;;  %v19317_v12 = vcombine.high %v15156_v37, %v19315_v42  ;;  %5649 = vrot.lane.b32.xlu0 %v19320_v32, %s13640_s26 }
 0x52b   : > { %19318 = vst [vmem:[#allocation49_spill] sm:$0xff] %v15580_v52  ;;  %v1437_v0 = vpack.i.b16 %v19319_v18, %v1348_v22  ;;  %5661 = vrot.lane.b32.xlu1 %v19308_v59, %s13642_s25  ;;  %v19321_v35 = vcombine.low %v15198_v3, %v15201_v31  ;;  %v5439_v22 = vcombine.low %v15214_v8, %v15217_v15 }
 0x52c   : > { %v5388_v33 = vrot.slane %v19317_v12, %v14551_v39  ;;  %v5389_v1 = vcombine.low %v5364_v46, %v5372_v48  ;;  %v5438_v46 = vrot.slane %v19322_v55, %v14551_v39  ;;  %v5355_v48 = vcombine.low %v15556_v14, %v15580_v52 }
 0x52d   : > { %v5430_v37 = vrot.slane %v19321_v35, %v14551_v39  ;;  %v1918_v12 = vcombine.high %v1437_v0, %v14542_v61  ;;  %v1925_v3 = vrot.slane %v1437_v0, %v14551_v39  ;;  %v15610_v31 = vrot.slane %v5439_v22, %v14561_v56 }
 0x52e   : > { %v5397_v49 = vcombine.low %v5380_v40, %v5388_v33  ;;  %v15600_v42 = vrot.slane %v5389_v1, %v14561_v56  ;;  %v19324_v33 = vshrl.u32 %v19319_v18, 16  ;;  %v5582_v15 = vshrl.u32 %v5355_v48, 16 }
 0x52f   : > { %19326 = vst [vmem:[#allocation63_spill] sm:$0xff] %v15610_v31  ;;  %v5447_v8 = vcombine.low %v5430_v37, %v5438_v46  ;;  %v1932_v55 = vrot.slane %v1918_v12, %v14551_v39  ;;  %5647 = vrot.lane.b32.xlu1 %v19310_v41, %s13640_s26  ;;  %v19329_v37 = vld [vmem:[#allocation46_spill] sm:$0xff] }
 0x530   : > { %19323 = vst [vmem:[#allocation50_spill] sm:$0xff] %v15600_v42  ;;  %v1441_v40 = vpack.i.b16 %v19324_v33, %v1439_v11  ;;  %v15606_v35 = vrot.slane %v5397_v49, %v14561_v56  ;;  %v19327_v49 = vld [vmem:[#allocation44_spill] sm:$0xff] }
 0x531   : > { %v1933_v18 = vcombine.low %v19327_v49, %v1925_v3  ;;  %v1934_v0 = vcombine.high %v19327_v49, %v1925_v3  ;;  %v15622_v22 = vrot.slane %v5447_v8, %v14561_v56  ;;  %v1949_v46 = vcombine.low %v19329_v37, %v1932_v55 }
 0x532   : > { %19325 = vst [vmem:[#allocation43_spill] sm:$0xff] %v15606_v35  ;;  %v1984_v1 = vcombine.high %v1441_v40, %v14542_v61  ;;  %v1991_v45 = vrot.slane %v1441_v40, %v14551_v39  ;;  %v5405_v11 = vcombine.low %v15600_v42, %v15606_v35  ;;  %v1950_v33 = vcombine.high %v19329_v37, %v1932_v55  ;;  %v19330_v40 = vld [vmem:[#allocation47_spill] sm:$0xff] }
 0x533   : > { %19328 = vst [vmem:[#allocation44_spill] sm:$0xff] %v15622_v22  ;;  %v1941_v20 = vrot.slane %v1933_v18, %v14561_v56  ;;  %v1948_v42 = vrot.slane %v1934_v0, %v14561_v56  ;;  %v15631_v3 = vrot.slane %v1949_v46, %v14561_v56  ;;  %5633 = vrot.lane.b32.xlu1 %v19320_v32, %s13641_s29 }
 0x534   : > { %v1998_v12 = vrot.slane %v1984_v1, %v14551_v39  ;;  %v1999_v59 = vcombine.low %v19330_v40, %v1991_v45  ;;  %v5581_v41 = vpack.i.b16 %v5405_v11, %v5355_v48  ;;  %v5583_v2 = vshrl.u32 %v5405_v11, 16  ;;  %v19331_v1 = vld [vmem:[#allocation48_spill] sm:$0xff] }
 0x535   : > { %v15634_v8 = vrot.slane %v1950_v33, %v14561_v56  ;;  %v2000_v49 = vcombine.high %v19330_v40, %v1991_v45  ;;  %v2863_v0 = vcombine.low %v1941_v20, %v1948_v42  ;;  %v12138_v46 = vcombine.high %v1941_v20, %v1948_v42  ;;  %v19337_v45 = vld [vmem:[#allocation26_spill] sm:$0xff] }
 0x536   : > { %v15638_v55 = vrot.slane %v1999_v59, %v14561_v56  ;;  %12804 = vmatprep.subr.msk.bf16.mxu0 %vm7779_vm0, %v5581_v41  ;;  %v5584_v48 = vpack.i.b16 %v5583_v2, %v5582_v15  ;;  %v2015_v11 = vcombine.low %v19331_v1, %v1998_v12  ;;  %v2016_v18 = vcombine.high %v19331_v1, %v1998_v12  ;;  %v1366_v1 = vpop.permute.xlu0 %1365 }
 0x537   : > { %v15646_v37 = vrot.slane %v2000_v49, %v14561_v56  ;;  %v15660_v15 = vrot.slane %v2863_v0, %v14551_v39  ;;  %v7823_v12 = vsel %vm7779_vm0, %v5581_v41, 0  ;;  %v15664_v20 = vrot.slane %v12138_v46, %v14551_v39  ;;  %5665 = vrot.lane.b32.xlu1 %v19320_v32, %s13642_s25 }
 0x538   : > { %12812 = vmatprep.subr.msk.bf16.mxu1 %vm7779_vm0, %v5584_v48  ;;  %v15654_v33 = vrot.slane %v2015_v11, %v14561_v56  ;;  %v15657_v2 = vrot.slane %v2016_v18, %v14561_v56  ;;  %12507 = vmatpush3.bf16.xpose.msra.mxu0 %v7823_v12  ;;  %v5455_v49 = vcombine.low %v15610_v31, %v15622_v22  ;;  %v19332_v18 = vld [vmem:[#allocation51_spill] sm:$0xff]  ;;  %v1448_v31 = vshrl.u32 %v1334_v34, 16 }
 0x539   : > { %v19333_v0 = vcombine.low %v15188_v25, %v19332_v18  ;;  %v19334_v40 = vcombine.high %v15188_v25, %v19332_v18  ;;  %v19335_v11 = vcombine.low %v15204_v43, %v15207_v63  ;;  %v19336_v41 = vcombine.high %v15204_v43, %v15207_v63  ;;  %v19338_v18 = vld [vmem:[#allocation45_spill] sm:$0xff] }
 0x53a   : > { %v7968_v25 = vsel %vm7779_vm0, %v5584_v48, 0  ;;  %v1453_v35 = vpack.i.b16 %v1366_v1, %v19338_v18  ;;  %v19339_v14 = vshrl.u32 %v19337_v45, 16  ;;  %v1456_v63 = vshrl.u32 %v1366_v1, 16 }
 0x53b   : > { %v5464_v46 = vrot.slane %v19333_v0, %v14551_v39  ;;  %v5472_v12 = vrot.slane %v19334_v40, %v14551_v39  ;;  %v5480_v42 = vrot.slane %v19335_v11, %v14551_v39  ;;  %v5488_v59 = vrot.slane %v19336_v41, %v14551_v39  ;;  %12539 = vmatpush3.bf16.xpose.msra.mxu1 %v7968_v25 }
 0x53c   : > { %v1445_v0 = vpack.i.b16 %v1334_v34, %v19337_v45  ;;  %v5594_v40 = vshrl.u32 %v5455_v49, 16  ;;  %v1449_v52 = vpack.i.b16 %v1448_v31, %v19339_v14  ;;  %v2050_v34 = vcombine.high %v1453_v35, %v14542_v61 }
 0x53d   : > { %v5489_v22 = vcombine.low %v5464_v46, %v5472_v12  ;;  %v5497_v32 = vcombine.low %v5480_v42, %v5488_v59  ;;  %v2057_v48 = vrot.slane %v1453_v35, %v14551_v39  ;;  %v19342_v45 = vshrl.u32 %v19338_v18, 16 }
 0x53e   : > { %v2035_v11 = vcombine.high %v1445_v0, %v14542_v61  ;;  %v2042_v10 = vrot.slane %v1445_v0, %v14551_v39  ;;  %v2101_v14 = vcombine.high %v1449_v52, %v14542_v61  ;;  %v2108_v31 = vrot.slane %v1449_v52, %v14551_v39 }
 0x53f   : > { %v15702_v43 = vrot.slane %v5489_v22, %v14561_v56  ;;  %v15707_v41 = vrot.slane %v5497_v32, %v14561_v56  ;;  %v1457_v42 = vpack.i.b16 %v1456_v63, %v19342_v45  ;;  %v2064_v22 = vrot.slane %v2050_v34, %v14551_v39 }
 0x540   : > { %v2049_v59 = vrot.slane %v2035_v11, %v14551_v39  ;;  %v2065_v46 = vcombine.low %v2042_v10, %v2057_v48  ;;  %v2066_v1 = vcombine.high %v2042_v10, %v2057_v48  ;;  %v2115_v35 = vrot.slane %v2101_v14, %v14551_v39 }
 0x541   : > { %19340 = vst [vmem:[#allocation46_spill] sm:$0xff] %v15702_v43  ;;  %19341 = vst [vmem:[#allocation47_spill] sm:$0xff] %v15707_v41  ;;  %v5505_v12 = vcombine.low %v15702_v43, %v15707_v41  ;;  %v19343_v32 = vcombine.low %v15285_v16, %v15288_v36  ;;  %v19344_v52 = vcombine.high %v15285_v16, %v15288_v36  ;;  %v19361_v41 = vld [vmem:[#allocation55_spill] sm:$0xff] }
 0x542   : > { %v2073_v18 = vrot.slane %v2065_v46, %v14561_v56  ;;  %v2080_v11 = vrot.slane %v2066_v1, %v14561_v56  ;;  %v2081_v10 = vcombine.low %v2049_v59, %v2064_v22  ;;  %v2082_v63 = vcombine.high %v2049_v59, %v2064_v22 }
 0x543   : > { %v2586_v0 = vrot.slane %v19343_v32, %v14551_v39  ;;  %v2594_v25 = vrot.slane %v19344_v52, %v14551_v39  ;;  %v5593_v34 = vpack.i.b16 %v5505_v12, %v5455_v49  ;;  %v5595_v48 = vshrl.u32 %v5505_v12, 16  ;;  %v1352_v52 = vpop.permute.xlu0 %1351 }
 0x544   : > { %v2116_v14 = vcombine.high %v1457_v42, %v14542_v61  ;;  %v2123_v45 = vrot.slane %v1457_v42, %v14551_v39  ;;  %v15731_v43 = vrot.slane %v2081_v10, %v14561_v56  ;;  %v15734_v32 = vrot.slane %v2082_v63, %v14561_v56 }
 0x545   : > { %v2963_v16 = vcombine.low %v2073_v18, %v2080_v11  ;;  %v12142_v36 = vcombine.high %v2073_v18, %v2080_v11  ;;  %12805 = vmatprep.subr.msk.bf16.mxu0 %vm7779_vm0, %v5593_v34  ;;  %v5596_v46 = vpack.i.b16 %v5595_v48, %v5594_v40  ;;  %v2595_v63 = vcombine.low %v15318_v57, %v15321_v6 }
 0x546   : > { %v2130_v59 = vrot.slane %v2116_v14, %v14551_v39  ;;  %v2131_v49 = vcombine.low %v2108_v31, %v2123_v45  ;;  %v2132_v22 = vcombine.high %v2108_v31, %v2123_v45  ;;  %v2603_v48 = vcombine.low %v2586_v0, %v2594_v25 }
 0x547   : > { %v15739_v1 = vrot.slane %v2963_v16, %v14551_v39  ;;  %v15742_v42 = vrot.slane %v12142_v36, %v14551_v39  ;;  %12813 = vmatprep.subr.msk.bf16.mxu1 %vm7779_vm0, %v5596_v46  ;;  %v19345_v14 = vcombine.low %v15296_v21, %v15299_v23  ;;  %v19346_v16 = vcombine.high %v15296_v21, %v15299_v23 }
 0x548   : > { %v15750_v40 = vrot.slane %v2131_v49, %v14561_v56  ;;  %v15753_v11 = vrot.slane %v2132_v22, %v14561_v56  ;;  %v2147_v31 = vcombine.low %v2115_v35, %v2130_v59  ;;  %v2148_v10 = vcombine.high %v2115_v35, %v2130_v59 }
 0x549   : > { %v2620_v45 = vrot.slane %v19345_v14, %v14551_v39  ;;  %v2628_v36 = vrot.slane %v19346_v16, %v14551_v39  ;;  %v15776_v35 = vrot.slane %v2595_v63, %v14561_v56  ;;  %v15779_v0 = vrot.slane %v2603_v48, %v14561_v56  ;;  %v19354_v63 = vld [vmem:[#allocation27_spill] sm:$0xff] }
 0x54a   : > { %v15766_v49 = vrot.slane %v2147_v31, %v14561_v56  ;;  %v15769_v22 = vrot.slane %v2148_v10, %v14561_v56  ;;  %v19349_v21 = vcombine.low %v15306_v30, %v15309_v29  ;;  %v19350_v25 = vcombine.high %v15306_v30, %v15309_v29  ;;  %v1338_v31 = vpop.permute.xlu0 %1337  ;;  %v19353_v29 = vld [vmem:[#allocation28_spill] sm:$0xff] }
 0x54b   : > { %19347 = vst [vmem:[#allocation48_spill] sm:$0xff] %v15776_v35  ;;  %19348 = vst [vmem:[#allocation51_spill] sm:$0xff] %v15779_v0  ;;  %v2645_v14 = vcombine.low %v2620_v45, %v2628_v36  ;;  %v7826_v48 = vsel %vm7779_vm0, %v5593_v34, 0  ;;  %v2611_v16 = vcombine.low %v15776_v35, %v15779_v0  ;;  %v1471_v18 = vshrl.u32 %v1352_v52, 16  ;;  %v19360_v35 = vld [vmem:[#allocation54_spill] sm:$0xff] }
 0x54c   : > { %v2636_v23 = vrot.slane %v19349_v21, %v14551_v39  ;;  %v2644_v59 = vrot.slane %v19350_v25, %v14551_v39  ;;  %12509 = vmatpush3.bf16.xpose.msra.mxu0 %v7826_v48  ;;  %v19351_v21 = vld [vmem:[#allocation52_spill] sm:$0xff]  ;;  %v7971_v25 = vsel %vm7779_vm0, %v5596_v46, 0  ;;  %v1477_v45 = vpack.i.b16 %v1338_v31, %v19354_v63  ;;  %v19357_v48 = vld [vmem:[#allocation29_spill] sm:$0xff] }
 0x54d   : > { %v1469_v57 = vpack.i.b16 %v19351_v21, %v1352_v52  ;;  %v15798_v30 = vrot.slane %v2645_v14, %v14561_v56  ;;  %12814 = vmatprep.subr.msk.bf16.mxu0 %vm7779_vm0, %v19353_v29  ;;  %v1480_v36 = vshrl.u32 %v1338_v31, 16  ;;  %v3366_v10 = vshrl.u32 %v2611_v16, 16  ;;  %12541 = vmatpush3.bf16.xpose.msra.mxu1 %v7971_v25 }
 0x54e   : > { %v2653_v6 = vcombine.low %v2636_v23, %v2644_v59  ;;  %v19356_v23 = vshrl.u32 %v19351_v21, 16  ;;  %12822 = vmatprep.subr.msk.bf16.mxu1 %vm7779_vm0, %v19357_v48  ;;  %v19358_v46 = vshrl.u32 %v19354_v63, 16  ;;  %v2299_v31 = vcombine.high %v1477_v45, %v14542_v61 }
 0x54f   : > { %19352 = vst [vmem:[#allocation26_spill] sm:$0xff] %v15798_v30  ;;  %v2182_v52 = vcombine.high %v1469_v57, %v14542_v61  ;;  %v2189_v14 = vrot.slane %v1469_v57, %v14551_v39 }
 0x550   : > { %v15805_v34 = vrot.slane %v2653_v6, %v14561_v56  ;;  %v1473_v59 = vpack.i.b16 %v19356_v23, %v1471_v18  ;;  %v1481_v29 = vpack.i.b16 %v1480_v36, %v19358_v46  ;;  %v15817_v6 = vrot.slane %v1477_v45, %v14551_v39  ;;  %v19359_v23 = vld [vmem:[#allocation53_spill] sm:$0xff] }
 0x551   : > { %v2196_v18 = vrot.slane %v2182_v52, %v14551_v39  ;;  %v2197_v12 = vcombine.low %v19359_v23, %v2189_v14  ;;  %v2198_v48 = vcombine.high %v19359_v23, %v2189_v14  ;;  %v15827_v63 = vrot.slane %v2299_v31, %v14551_v39 }
 0x552   : > { %19355 = vst [vmem:[#allocation45_spill] sm:$0xff] %v15805_v34  ;;  %v2661_v21 = vcombine.low %v15798_v30, %v15805_v34  ;;  %v2248_v25 = vcombine.high %v1473_v59, %v14542_v61  ;;  %v2255_v57 = vrot.slane %v1473_v59, %v14551_v39  ;;  %v2365_v36 = vcombine.high %v1481_v29, %v14542_v61 }
 0x553   : > { %v2213_v0 = vcombine.low %v19360_v35, %v2196_v18  ;;  %v2214_v30 = vcombine.high %v19360_v35, %v2196_v18  ;;  %v2205_v52 = vrot.slane %v2197_v12, %v14561_v56  ;;  %v2212_v34 = vrot.slane %v2198_v48, %v14561_v56  ;;  %v19362_v12 = vld [vmem:[#allocation56_spill] sm:$0xff] }
 0x554   : > { %v3365_v45 = vpack.i.b16 %v2661_v21, %v2611_v16  ;;  %v3367_v46 = vshrl.u32 %v2661_v21, 16  ;;  %v2262_v59 = vrot.slane %v2248_v25, %v14551_v39  ;;  %v2263_v38 = vcombine.low %v19361_v41, %v2255_v57 }
 0x555   : > { %v15838_v31 = vrot.slane %v2213_v0, %v14561_v56  ;;  %v15841_v16 = vrot.slane %v2214_v30, %v14561_v56  ;;  %v2264_v21 = vcombine.high %v19361_v41, %v2255_v57  ;;  %v3063_v23 = vcombine.low %v2205_v52, %v2212_v34 }
 0x556   : > { %12510 = vmatprep.mubr.msk.bf16.mxu0 %vm7779_vm0, %v3365_v45  ;;  %v3368_v14 = vpack.i.b16 %v3367_v46, %v3366_v10  ;;  %v15845_v35 = vrot.slane %v2263_v38, %v14561_v56  ;;  %v2279_v18 = vcombine.low %v19362_v12, %v2262_v59  ;;  %v2280_v25 = vcombine.high %v19362_v12, %v2262_v59  ;;  %v1370_v46 = vpop.permute.xlu0 %1369 }
 0x557   : > { %v15851_v10 = vrot.slane %v2264_v21, %v14561_v56  ;;  %v12146_v0 = vcombine.high %v2205_v52, %v2212_v34  ;;  %v15864_v48 = vrot.slane %v3063_v23, %v14551_v39  ;;  %v2372_v45 = vrot.slane %v1481_v29, %v14551_v39 }
 0x558   : > { %12542 = vmatprep.mubr.msk.bf16.mxu1 %vm7779_vm0, %v3368_v14  ;;  %v15858_v38 = vrot.slane %v2279_v18, %v14561_v56  ;;  %v15861_v57 = vrot.slane %v2280_v25, %v14561_v56  ;;  %v2379_v14 = vrot.slane %v2365_v36, %v14551_v39  ;;  %v2711_v29 = vcombine.low %v15440_v62, %v15451_v27 }
 0x559   : > { %v15868_v34 = vrot.slane %v12146_v0, %v14551_v39  ;;  %v19363_v18 = vcombine.low %v15432_v50, %v15435_v53  ;;  %v1485_v23 = vpack.i.b16 %v1370_v46, %v15241_v17  ;;  %v1488_v0 = vshrl.u32 %v1370_v46, 16 }
 0x55a   : > { %v19364_v36 = vcombine.low %v15518_v28, %v15521_v47  ;;  %v19365_v12 = vcombine.high %v15518_v28, %v15521_v47  ;;  %v3378_v41 = vshrl.u32 %v2711_v29, 16  ;;  %v2795_v50 = vcombine.low %v15531_v44, %v15549_v7 }
 0x55b   : > { %v15885_v25 = vrot.slane %v19363_v18, %v14561_v56  ;;  %v19366_v53 = vcombine.low %v15524_v9, %v15528_v26  ;;  %v19367_v18 = vshrl.u32 %v15241_v17, 16  ;;  %v2314_v30 = vcombine.high %v1485_v23, %v14542_v61 }
 0x55c   : > { %v2786_v21 = vrot.slane %v19364_v36, %v14551_v39  ;;  %v2794_v59 = vrot.slane %v19365_v12, %v14551_v39  ;;  %v2321_v28 = vrot.slane %v1485_v23, %v14551_v39  ;;  %v19368_v44 = vcombine.high %v15524_v9, %v15528_v26 }
 0x55d   : > { %v2761_v52 = vcombine.low %v15462_v58, %v15885_v25  ;;  %v2820_v46 = vrot.slane %v19366_v53, %v14551_v39  ;;  %v1489_v36 = vpack.i.b16 %v1488_v0, %v19367_v18  ;;  %v15909_v58 = vrot.slane %v2795_v50, %v14561_v56 }
 0x55e   : > { %v2803_v47 = vcombine.low %v2786_v21, %v2794_v59  ;;  %v2828_v7 = vrot.slane %v19368_v44, %v14551_v39  ;;  %v2328_v53 = vrot.slane %v2314_v30, %v14551_v39  ;;  %v2329_v17 = vcombine.low %v15817_v6, %v2321_v28  ;;  %v19370_v30 = vld [vmem:[#allocation36_spill] sm:$0xff] }
 0x55f   : > { %v3377_v12 = vpack.i.b16 %v2761_v52, %v2711_v29  ;;  %v3379_v62 = vshrl.u32 %v2761_v52, 16  ;;  %v2330_v0 = vcombine.high %v15817_v6, %v2321_v28  ;;  %v2380_v18 = vcombine.high %v1489_v36, %v14542_v61 }
 0x560   : > { %v2387_v52 = vrot.slane %v1489_v36, %v14551_v39  ;;  %v15922_v21 = vrot.slane %v2803_v47, %v14561_v56  ;;  %v19369_v9 = vcombine.low %v15534_v24, %v15546_v54  ;;  %v2337_v29 = vrot.slane %v2329_v17, %v14561_v56  ;;  %v19372_v47 = vld [vmem:[#allocation35_spill] sm:$0xff] }
 0x561   : > { %12511 = vmatmul.mubr.msk.bf16.vlgmr.msra.gmra.mrb[32].mxu0 %vm7779_vm0, %v3377_v12  ;;  %v3380_v59 = vpack.i.b16 %v3379_v62, %v3378_v41  ;;  %v2344_v6 = vrot.slane %v2330_v0, %v14561_v56  ;;  %v2345_v23 = vcombine.low %v15827_v63, %v2328_v53  ;;  %v2346_v62 = vcombine.high %v15827_v63, %v2328_v53  ;;  %v19371_v41 = vld [vmem:[#allocation30_spill] sm:$0xff]  ;;  %v19373_v0 = vld [vmem:[#allocation37_spill] sm:$0xff] }
 0x562   : > { %v2836_v26 = vrot.slane %v19369_v9, %v14551_v39  ;;  %12559 = vmatpush3.bf16.xpose.msra.mxu0 %v19370_v30  ;;  %v2394_v50 = vrot.slane %v2380_v18, %v14551_v39  ;;  %v2395_v36 = vcombine.low %v2372_v45, %v2387_v52  ;;  %v2396_v28 = vcombine.high %v2372_v45, %v2387_v52  ;;  %v19374_v9 = vld [vmem:[#allocation31_spill] sm:$0xff] }
 0x563   : > { %12543 = vmatmul.mubr.msk.bf16.vlgmr.msra.gmra.mrb[16].mxu1 %vm7779_vm0, %v3380_v59  ;;  %12815 = vmatprep.subr.msk.bf16.mxu0 %vm7779_vm0, %v19371_v41  ;;  %v15939_v12 = vsel %vm7779_vm0, %v19372_v47, 0  ;;  %v15942_v44 = vrot.slane %v2345_v23, %v14561_v56  ;;  %v15945_v17 = vrot.slane %v2346_v62, %v14561_v56  ;;  %v3163_v63 = vcombine.low %v2337_v29, %v2344_v6 }
 0x564   : > { %v12150_v53 = vcombine.high %v2337_v29, %v2344_v6  ;;  %12591 = vmatpush3.bf16.xpose.msra.mxu1 %v19373_v0  ;;  %v15949_v59 = vrot.slane %v2395_v36, %v14561_v56  ;;  %v15952_v18 = vrot.slane %v2396_v28, %v14561_v56  ;;  %v2411_v45 = vcombine.low %v2379_v14, %v2394_v50 }
 0x565   : > { %v2412_v52 = vcombine.high %v2379_v14, %v2394_v50  ;;  %12823 = vmatprep.subr.msk.bf16.mxu1 %vm7779_vm0, %v19374_v9  ;;  %v15957_v30 = vrot.slane %v3163_v63, %v14551_v39  ;;  %v3179_v29 = vcombine.low %v15942_v44, %v15945_v17  ;;  %v12151_v14 = vcombine.high %v15942_v44, %v15945_v17 }
 0x566   : > { %v15960_v23 = vrot.slane %v12150_v53, %v14551_v39  ;;  %v15966_v62 = vrot.slane %v2411_v45, %v14561_v56  ;;  %v2811_v36 = vcombine.low %v15909_v58, %v15922_v21  ;;  %v19375_v28 = vcombine.high %v15534_v24, %v15546_v54 }
 0x567   : > { %v15969_v41 = vrot.slane %v2412_v52, %v14561_v56  ;;  %v2845_v53 = vcombine.low %v2820_v46, %v2828_v7  ;;  %v19376_v0 = vcombine.low %v15631_v3, %v15634_v8  ;;  %v19377_v6 = vcombine.high %v15631_v3, %v15634_v8  ;;  %v19379_v52 = vld [vmem:[#allocation38_spill] sm:$0xff] }
 0x568   : > { %v2844_v63 = vrot.slane %v19375_v28, %v14551_v39  ;;  %v2895_v24 = vcombine.low %v15660_v15, %v15664_v20  ;;  %v3390_v7 = vshrl.u32 %v2811_v36, 16  ;;  %v19378_v28 = vcombine.low %v15638_v55, %v15646_v37 }
 0x569   : > { %v2886_v45 = vrot.slane %v19376_v0, %v14551_v39  ;;  %v2894_v50 = vrot.slane %v19377_v6, %v14551_v39  ;;  %v15996_v54 = vrot.slane %v2845_v53, %v14561_v56  ;;  %v19380_v8 = vcombine.high %v15638_v55, %v15646_v37  ;;  %v19382_v6 = vld [vmem:[#allocation32_spill] sm:$0xff] }
 0x56a   : > { %v2853_v46 = vcombine.low %v2836_v26, %v2844_v63  ;;  %v2920_v0 = vrot.slane %v19378_v28, %v14551_v39  ;;  %12561 = vmatpush3.bf16.xpose.msra.mxu0 %v19379_v52  ;;  %v16004_v9 = vrot.slane %v2895_v24, %v14561_v56  ;;  %v19381_v20 = vcombine.low %v15654_v33, %v15657_v2 }
 0x56b   : > { %v2903_v3 = vcombine.low %v2886_v45, %v2894_v50  ;;  %v2928_v15 = vrot.slane %v19380_v8, %v14551_v39  ;;  %12816 = vmatprep.subr.msk.bf16.mxu0 %vm7779_vm0, %v19382_v6  ;;  %v19383_v50 = vcombine.high %v15654_v33, %v15657_v2  ;;  %v19384_v45 = vld [vmem:[#allocation39_spill] sm:$0xff]  ;;  %v19385_v55 = vcombine.low %v15731_v43, %v15734_v32  ;;  %v19387_v8 = vld [vmem:[#allocation33_spill] sm:$0xff] }
 0x56c   : > { %v2936_v26 = vrot.slane %v19381_v20, %v14551_v39  ;;  %v16017_v63 = vrot.slane %v2853_v46, %v14561_v56  ;;  %12593 = vmatpush3.bf16.xpose.msra.mxu1 %v19384_v45  ;;  %v19386_v52 = vcombine.high %v15731_v43, %v15734_v32  ;;  %v2995_v33 = vcombine.low %v15739_v1, %v15742_v42 }
 0x56d   : > { %v2944_v53 = vrot.slane %v19383_v50, %v14551_v39  ;;  %v2986_v37 = vrot.slane %v19385_v55, %v14551_v39  ;;  %v16033_v46 = vrot.slane %v2903_v3, %v14561_v56  ;;  %v2945_v28 = vcombine.low %v2920_v0, %v2928_v15  ;;  %12824 = vmatprep.subr.msk.bf16.mxu1 %vm7779_vm0, %v19387_v8 }
 0x56e   : > { %v2994_v24 = vrot.slane %v19386_v52, %v14551_v39  ;;  %v19388_v2 = vcombine.low %v15750_v40, %v15753_v11  ;;  %v2861_v6 = vcombine.low %v15996_v54, %v16017_v63  ;;  %v19389_v0 = vcombine.high %v15750_v40, %v15753_v11 }
 0x56f   : > { %v2953_v43 = vcombine.low %v2936_v26, %v2944_v53  ;;  %v2911_v15 = vcombine.low %v16004_v9, %v16033_v46  ;;  %v16052_v1 = vrot.slane %v2945_v28, %v14561_v56  ;;  %v16055_v42 = vrot.slane %v2995_v33, %v14561_v56 }
 0x570   : > { %v3020_v20 = vrot.slane %v19388_v2, %v14551_v39  ;;  %v3003_v32 = vcombine.low %v2986_v37, %v2994_v24  ;;  %v3028_v3 = vrot.slane %v19389_v0, %v14551_v39  ;;  %v19391_v50 = vcombine.low %v15766_v49, %v15769_v22 }
 0x571   : > { %19390 = vst [vmem:[#allocation52_spill] sm:$0xff] %v16055_v42  ;;  %v3389_v53 = vpack.i.b16 %v2861_v6, %v2811_v36  ;;  %v3391_v45 = vshrl.u32 %v2861_v6, 16  ;;  %v16062_v55 = vrot.slane %v2953_v43, %v14561_v56  ;;  %v12153_v11 = vcombine.high %v15966_v62, %v15969_v41  ;;  %v19395_v43 = vld [vmem:[#allocation40_spill] sm:$0xff] }
 0x572   : > { %v3036_v26 = vrot.slane %v19391_v50, %v14551_v39  ;;  %v16065_v40 = vrot.slane %v3003_v32, %v14561_v56  ;;  %v19393_v37 = vcombine.high %v15766_v49, %v15769_v22  ;;  %v3045_v24 = vcombine.low %v3020_v20, %v3028_v3  ;;  %12563 = vmatpush3.bf16.xpose.msra.mxu0 %v19395_v43  ;;  %v19397_v20 = vld [vmem:[#allocation34_spill] sm:$0xff] }
 0x573   : > { %v19394_v36 = vcombine.low %v15838_v31, %v15841_v16  ;;  %12514 = vmatprep.mubr.msk.bf16.mxu0 %vm7779_vm0, %v3389_v53  ;;  %v3392_v8 = vpack.i.b16 %v3391_v45, %v3390_v7  ;;  %v2961_v33 = vcombine.low %v16052_v1, %v16062_v55  ;;  %v3402_v2 = vshrl.u32 %v2911_v15, 16  ;;  %12817 = vmatprep.subr.msk.bf16.mxu0 %vm7779_vm0, %v19397_v20  ;;  %v19399_v45 = vld [vmem:[#allocation41_spill] sm:$0xff] }
 0x574   : > { %19392 = vst [vmem:[#allocation28_spill] sm:$0xff] %v16065_v40  ;;  %v3044_v52 = vrot.slane %v19393_v37, %v14551_v39  ;;  %v3011_v6 = vcombine.low %v16055_v42, %v16065_v40  ;;  %v16084_v49 = vrot.slane %v3045_v24, %v14561_v56  ;;  %v19398_v7 = vcombine.high %v15838_v31, %v15841_v16 }
 0x575   : > { %v3086_v28 = vrot.slane %v19394_v36, %v14551_v39  ;;  %v3095_v0 = vcombine.low %v15864_v48, %v15868_v34  ;;  %12546 = vmatprep.mubr.msk.bf16.mxu1 %vm7779_vm0, %v3392_v8  ;;  %v3401_v3 = vpack.i.b16 %v2961_v33, %v2911_v15  ;;  %v3403_v50 = vshrl.u32 %v2961_v33, 16  ;;  %12595 = vmatpush3.bf16.xpose.msra.mxu1 %v19399_v45  ;;  %v19406_v33 = vld [vmem:[#allocation57_spill] sm:$0xff] }
 0x576   : > { %19396 = vst [vmem:[#allocation27_spill] sm:$0xff] %v16084_v49  ;;  %v3053_v22 = vcombine.low %v3036_v26, %v3044_v52  ;;  %v3094_v32 = vrot.slane %v19398_v7, %v14551_v39  ;;  %v3414_v53 = vshrl.u32 %v3011_v6, 16  ;;  %v19400_v26 = vcombine.low %v15845_v35, %v15851_v10  ;;  %12825 = vmatprep.subr.msk.bf16.mxu1 %vm7779_vm0, %v19372_v47 }
 0x577   : > { %v16104_v31 = vrot.slane %v3095_v0, %v14561_v56  ;;  %v19403_v48 = vcombine.high %v15845_v35, %v15851_v10  ;;  %12515 = vmatmul.mubr.msk.bf16.gmra.mrb[36].mxu0 %vm7779_vm0, %v3401_v3  ;;  %v3404_v15 = vpack.i.b16 %v3403_v50, %v3402_v2  ;;  %v19404_v24 = vcombine.low %v15858_v38, %v15861_v57  ;;  %v16148_v0 = vpop.permute.xlu1 %1339  ;;  %v19410_v3 = vld [vmem:[#allocation42_spill] sm:$0xff] }
 0x578   : > { %v3120_v37 = vrot.slane %v19400_v26, %v14551_v39  ;;  %v16101_v52 = vrot.slane %v3053_v22, %v14561_v56  ;;  %v3103_v16 = vcombine.low %v3086_v28, %v3094_v32  ;;  %v19405_v28 = vcombine.high %v15858_v38, %v15861_v57  ;;  %v16130_v22 = vpop.permute.xlu0 %1355 }
 0x579   : > { %19402 = vst [vmem:[#allocation53_spill] sm:$0xff] %v16104_v31  ;;  %v3128_v34 = vrot.slane %v19403_v48, %v14551_v39  ;;  %v3136_v36 = vrot.slane %v19404_v24, %v14551_v39  ;;  %v5156_v35 = vcombine.high %v19406_v33, %v15324_v13  ;;  %v5206_v43 = vcombine.high %v15369_v60, %v15376_v5 }
 0x57a   : > { %19401 = vst [vmem:[#allocation29_spill] sm:$0xff] %v16101_v52  ;;  %v3144_v8 = vrot.slane %v19405_v28, %v14551_v39  ;;  %v3061_v10 = vcombine.low %v16084_v49, %v16101_v52  ;;  %v16126_v47 = vrot.slane %v3103_v16, %v14561_v56  ;;  %12547 = vmatmul.mubr.msk.bf16.gmra.mrb[20].mxu1 %vm7779_vm0, %v3404_v15 }
 0x57b   : > { %v3145_v2 = vcombine.low %v3120_v37, %v3128_v34  ;;  %v3186_v13 = vrot.slane %v3179_v29, %v14551_v39  ;;  %v3194_v38 = vrot.slane %v12151_v14, %v14551_v39  ;;  %v3195_v57 = vcombine.low %v15957_v30, %v15960_v23  ;;  %12565 = vmatpush3.bf16.xpose.msra.mxu0 %v19410_v3 }
 0x57c   : > { %19407 = vst [vmem:[#allocation54_spill] sm:$0xff] %v16126_v47  ;;  %v3153_v20 = vcombine.low %v3136_v36, %v3144_v8  ;;  %v3413_v7 = vpack.i.b16 %v3061_v10, %v3011_v6  ;;  %v3415_v60 = vshrl.u32 %v3061_v10, 16  ;;  %v3111_v5 = vcombine.low %v16104_v31, %v16126_v47  ;;  %v16183_v24 = vpop.permute.xlu0 %5619 }
 0x57d   : > { %v16146_v32 = vrot.slane %v3145_v2, %v14561_v56  ;;  %v5563_v44 = vpack.i.b16 %v5206_v43, %v5156_v35  ;;  %v16155_v17 = vrot.slane %v3195_v57, %v14561_v56  ;;  %v3203_v30 = vcombine.low %v3186_v13, %v3194_v38  ;;  %12597 = vmatpush3.bf16.xpose.msra.mxu1 %v15939_v12  ;;  %v19419_v57 = vld [vmem:[#allocation49_spill] sm:$0xff] }
 0x57e   : > { %v16151_v29 = vrot.slane %v3153_v20, %v14561_v56  ;;  %12518 = vmatprep.mubr.msk.bf16.mxu0 %vm7779_vm0, %v3413_v7  ;;  %v3416_v23 = vpack.i.b16 %v3415_v60, %v3414_v53  ;;  %v3426_v14 = vshrl.u32 %v3111_v5, 16  ;;  %v19412_v6 = vcombine.low %v15949_v59, %v15952_v18  ;;  %v19420_v7 = vld [vmem:[#allocation62_spill] sm:$0xff] }
 0x57f   : > { %19408 = vst [vmem:[#allocation55_spill] sm:$0xff] %v16146_v32  ;;  %19411 = vst [vmem:[#allocation36_spill] sm:$0xff] %v16155_v17  ;;  %v19413_v45 = vcombine.high %v15949_v59, %v15952_v18  ;;  %12818 = vmatprep.subr.msk.bf16.mxu0 %vm7779_vm0, %v5563_v44  ;;  %v16171_v53 = vrot.slane %v3203_v30, %v14561_v56  ;;  %v19415_v16 = vcombine.low %v15966_v62, %v15969_v41  ;;  %v19417_v41 = vld [vmem:[#allocation61_spill] sm:$0xff]  ;;  %v19423_v30 = vld [vmem:[#allocation50_spill] sm:$0xff] }
 0x580   : > { %19409 = vst [vmem:[#allocation56_spill] sm:$0xff] %v16151_v29  ;;  %v3220_v50 = vrot.slane %v19412_v6, %v14551_v39  ;;  %v3161_v37 = vcombine.low %v16146_v32, %v16151_v29  ;;  %v5564_v34 = vshrl.u32 %v5156_v35, 16  ;;  %12550 = vmatprep.mubr.msk.bf16.mxu1 %vm7779_vm0, %v3416_v23  ;;  %v3244_v59 = vrot.slane %v12153_v11, %v14551_v39  ;;  %v19418_v11 = vld [vmem:[#allocation60_spill] sm:$0xff] }
 0x581   : > { %v3228_v26 = vrot.slane %v19413_v45, %v14551_v39  ;;  %19414 = vst [vmem:[#allocation30_spill] sm:$0xff] %v16171_v53  ;;  %v3236_v48 = vrot.slane %v19415_v16, %v14551_v39  ;;  %v5565_v15 = vshrl.u32 %v5206_v43, 16  ;;  %v8107_v12 = vsel %vm7779_vm0, %v5563_v44, 0  ;;  %v16194_v43 = vpop.permute.xlu1 %1371  ;;  %v19422_v44 = vld [vmem:[#allocation43_spill] sm:$0xff]  ;;  %v19424_v6 = vld [vmem:[#allocation44_spill] sm:$0xff] }
 0x582   : > { %v3425_v36 = vpack.i.b16 %v3161_v37, %v3111_v5  ;;  %v3427_v28 = vshrl.u32 %v3161_v37, 16  ;;  %v3211_v8 = vcombine.low %v16155_v17, %v16171_v53  ;;  %v5256_v33 = vcombine.high %v15373_v19, %v15384_v51  ;;  %v19427_v37 = vld [vmem:[#allocation46_spill] sm:$0xff]  ;;  %v19436_v17 = vld [vmem:[#allocation21_spill] sm:$0xff] }
 0x583   : > { %v3245_v18 = vcombine.low %v3220_v50, %v3228_v26  ;;  %v3253_v10 = vcombine.low %v3236_v48, %v3244_v59  ;;  %v5566_v62 = vpack.i.b16 %v5565_v15, %v5564_v34  ;;  %v5306_v2 = vcombine.high %v19418_v11, %v19417_v41  ;;  %12567 = vmatpush3.bf16.xpose.msra.mxu0 %v8107_v12  ;;  %v19425_v50 = vld [vmem:[#allocation63_spill] sm:$0xff]  ;;  %v16216_v15 = vpop.permute.xlu0 %5637 }
 0x584   : > { %12519 = vmatmul.mubr.msk.bf16.gmra.mrb[40].mxu0 %vm7779_vm0, %v3425_v36  ;;  %v3428_v20 = vpack.i.b16 %v3427_v28, %v3426_v14  ;;  %v3438_v13 = vshrl.u32 %v3211_v8, 16  ;;  %v5576_v38 = vshrl.u32 %v5256_v33, 16  ;;  %v5356_v60 = vcombine.high %v19420_v7, %v19419_v57  ;;  %v19426_v26 = vld [vmem:[#allocation47_spill] sm:$0xff] }
 0x585   : > { %v16190_v35 = vrot.slane %v3245_v18, %v14561_v56  ;;  %v16200_v19 = vrot.slane %v3253_v10, %v14561_v56  ;;  %12826 = vmatprep.subr.msk.bf16.mxu1 %vm7779_vm0, %v5566_v62  ;;  %v5575_v51 = vpack.i.b16 %v5306_v2, %v5256_v33  ;;  %v8252_v5 = vsel %vm7779_vm0, %v5566_v62, 0 }
 0x586   : > { %v5577_v3 = vshrl.u32 %v5306_v2, 16  ;;  %12551 = vmatmul.mubr.msk.bf16.gmra.mrb[24].mxu1 %vm7779_vm0, %v3428_v20  ;;  %v5406_v23 = vcombine.high %v19423_v30, %v19422_v44  ;;  %v5588_v14 = vshrl.u32 %v5356_v60, 16  ;;  %v5456_v45 = vcombine.high %v19425_v50, %v19424_v6  ;;  %v16222_v2 = vpop.permute.xlu1 %5635 }
 0x587   : > { %19416 = vst [vmem:[#allocation35_spill] sm:$0xff] %v16190_v35  ;;  %19421 = vst [vmem:[#allocation37_spill] sm:$0xff] %v16200_v19  ;;  %v5506_v16 = vcombine.high %v19427_v37, %v19426_v26  ;;  %v3261_v48 = vcombine.low %v16190_v35, %v16200_v19  ;;  %12819 = vmatprep.subr.msk.bf16.mxu0 %vm7779_vm0, %v5575_v51  ;;  %v8110_v59 = vsel %vm7779_vm0, %v5575_v51, 0  ;;  %v1503_v18 = vshrl.u32 %v16130_v22, 16  ;;  %v5624_v26 = vpop.permute.xlu0 %5623 }
 0x588   : > { %v5578_v34 = vpack.i.b16 %v5577_v3, %v5576_v38  ;;  %12599 = vmatpush3.bf16.xpose.msra.mxu1 %v8252_v5  ;;  %v5587_v12 = vpack.i.b16 %v5406_v23, %v5356_v60  ;;  %v5589_v36 = vshrl.u32 %v5406_v23, 16  ;;  %v5600_v33 = vshrl.u32 %v5456_v45, 16  ;;  %v19428_v5 = vld [vmem:[#allocation17_spill] sm:$0xff] }
 0x589   : > { %v16218_v28 = vpack.i.b16 %v5506_v16, %v5456_v45  ;;  %v3437_v10 = vpack.i.b16 %v3261_v48, %v3211_v8  ;;  %v3439_v62 = vshrl.u32 %v3261_v48, 16  ;;  %v5601_v11 = vshrl.u32 %v5506_v16, 16 }
 0x58a   : > { %12827 = vmatprep.subr.msk.bf16.mxu1 %vm7779_vm0, %v5578_v34  ;;  %v8255_v41 = vsel %vm7779_vm0, %v5578_v34, 0  ;;  %v5590_v20 = vpack.i.b16 %v5589_v36, %v5588_v14  ;;  %v8113_v38 = vsel %vm7779_vm0, %v5587_v12, 0  ;;  %v1493_v7 = vpack.i.b16 %v16148_v0, %v15247_v4 }
 0x58b   : > { %v16227_v57 = vsel %vm7779_vm0, %v16218_v28, 0  ;;  %12522 = vmatprep.mubr.msk.bf16.mxu0 %vm7779_vm0, %v3437_v10  ;;  %v3440_v8 = vpack.i.b16 %v3439_v62, %v3438_v13  ;;  %v16232_v60 = vpack.i.b16 %v5601_v11, %v5600_v33  ;;  %v1496_v51 = vshrl.u32 %v16148_v0, 16  ;;  %12569 = vmatpush3.bf16.xpose.msra.mxu0 %v8110_v59  ;;  %v16265_v10 = vpop.permute.xlu1 %5651 }
 0x58c   : > { %v5669_v3 = vpack.i.b16 %v16183_v24, %v19428_v5  ;;  %v8258_v44 = vsel %vm7779_vm0, %v5590_v20, 0  ;;  %v2431_v30 = vcombine.high %v1493_v7, %v14542_v61  ;;  %v2438_v23 = vrot.slane %v1493_v7, %v14551_v39  ;;  %12820 = vmatprep.subr.msk.bf16.mxu0 %vm7779_vm0, %v5587_v12 }
 0x58d   : > { %v5672_v14 = vshrl.u32 %v16183_v24, 16  ;;  %12554 = vmatprep.mubr.msk.bf16.mxu1 %vm7779_vm0, %v3440_v8  ;;  %v16244_v13 = vsel %vm7779_vm0, %v16232_v60, 0  ;;  %v19429_v6 = vshrl.u32 %v15247_v4, 16  ;;  %v19430_v24 = vshrl.u32 %v19428_v5, 16 }
 0x58e   : > { %v5795_v50 = vcombine.high %v5669_v3, %v14542_v61  ;;  %v16250_v45 = vrot.slane %v5669_v3, %v14551_v39  ;;  %v2445_v37 = vrot.slane %v2431_v30, %v14551_v39  ;;  %v1501_v48 = vpack.i.b16 %v16194_v43, %v16130_v22 }
 0x58f   : > { %v1497_v0 = vpack.i.b16 %v1496_v51, %v19429_v6  ;;  %v5673_v16 = vpack.i.b16 %v5672_v14, %v19430_v24  ;;  %v1504_v34 = vshrl.u32 %v16194_v43, 16  ;;  %v5679_v8 = vshrl.u32 %v16222_v2, 16  ;;  %v19431_v51 = vld [vmem:[#allocation19_spill] sm:$0xff]  ;;  %v5622_v35 = vpop.permute.xlu1 %5621 }
 0x590   : > { %v16262_v33 = vrot.slane %v5795_v50, %v14551_v39  ;;  %12601 = vmatpush3.bf16.xpose.msra.mxu1 %v8255_v41  ;;  %v2446_v12 = vcombine.high %v1501_v48, %v14542_v61  ;;  %v2453_v7 = vrot.slane %v1501_v48, %v14551_v39  ;;  %v5701_v5 = vpack.i.b16 %v5624_v26, %v19431_v51  ;;  %v16284_v50 = vpop.permute.xlu0 %5655 }
 0x591   : > { %v2497_v4 = vcombine.high %v1497_v0, %v14542_v61  ;;  %v2504_v36 = vrot.slane %v1497_v0, %v14551_v39  ;;  %v5861_v62 = vcombine.high %v5673_v16, %v14542_v61  ;;  %v16269_v22 = vrot.slane %v5673_v16, %v14551_v39  ;;  %12828 = vmatprep.subr.msk.bf16.mxu1 %vm7779_vm0, %v5590_v20 }
 0x592   : > { %v1505_v43 = vpack.i.b16 %v1504_v34, %v1503_v18  ;;  %v2460_v3 = vrot.slane %v2446_v12, %v14551_v39  ;;  %v2461_v14 = vcombine.low %v2438_v23, %v2453_v7  ;;  %v2462_v6 = vcombine.high %v2438_v23, %v2453_v7 }
 0x593   : > { %v2511_v11 = vrot.slane %v2497_v4, %v14551_v39  ;;  %v16278_v41 = vrot.slane %v5861_v62, %v14551_v39  ;;  %v5704_v20 = vshrl.u32 %v5624_v26, 16  ;;  %v6059_v0 = vcombine.high %v5701_v5, %v14542_v61  ;;  %12571 = vmatpush3.bf16.xpose.msra.mxu0 %v8113_v38 }
 0x594   : > { %v2512_v30 = vcombine.high %v1505_v43, %v14542_v61  ;;  %v2519_v18 = vrot.slane %v1505_v43, %v14551_v39  ;;  %v2477_v24 = vcombine.low %v2445_v37, %v2460_v3  ;;  %v2478_v16 = vcombine.high %v2445_v37, %v2460_v3  ;;  %12821 = vmatprep.subr.msk.bf16.mxu0 %vm7779_vm0, %v16218_v28 }
 0x595   : > { %v2469_v4 = vrot.slane %v2461_v14, %v14561_v56  ;;  %v2476_v62 = vrot.slane %v2462_v6, %v14561_v56  ;;  %v19432_v59 = vshrl.u32 %v19431_v51, 16  ;;  %v16313_v14 = vrot.slane %v5701_v5, %v14551_v39 }
 0x596   : > { %v2526_v48 = vrot.slane %v2512_v30, %v14551_v39  ;;  %v2527_v34 = vcombine.low %v2504_v36, %v2519_v18  ;;  %v2528_v12 = vcombine.high %v2504_v36, %v2519_v18  ;;  %v16292_v23 = vrot.slane %v2477_v24, %v14561_v56 }
 0x597   : > { %v5705_v43 = vpack.i.b16 %v5704_v20, %v19432_v59  ;;  %v16295_v26 = vrot.slane %v2478_v16, %v14561_v56  ;;  %v3263_v59 = vcombine.low %v2469_v4, %v2476_v62  ;;  %v12154_v3 = vcombine.high %v2469_v4, %v2476_v62  ;;  %v16328_v20 = vpop.permute.xlu0 %5641 }
 0x598   : > { %v16298_v37 = vrot.slane %v2527_v34, %v14561_v56  ;;  %v2543_v7 = vcombine.low %v2511_v11, %v2526_v48  ;;  %v16303_v36 = vrot.slane %v2528_v12, %v14561_v56  ;;  %v2544_v51 = vcombine.high %v2511_v11, %v2526_v48  ;;  %12603 = vmatpush3.bf16.xpose.msra.mxu1 %v8258_v44  ;;  %v5654_v12 = vpop.permute.xlu1 %5653 }
 0x599   : > { %12829 = vmatprep.subr.msk.bf16.mxu1 %vm7779_vm0, %v16232_v60  ;;  %v16321_v44 = vrot.slane %v3263_v59, %v14551_v39  ;;  %v16324_v11 = vrot.slane %v12154_v3, %v14551_v39  ;;  %v16333_v24 = vrot.slane %v6059_v0, %v14551_v39  ;;  %v6125_v60 = vcombine.high %v5705_v43, %v14542_v61 }
 0x59a   : > { %v16306_v38 = vrot.slane %v2543_v7, %v14561_v56  ;;  %v16318_v28 = vrot.slane %v2544_v51, %v14561_v56  ;;  %v16337_v16 = vrot.slane %v5705_v43, %v14551_v39  ;;  %v5677_v4 = vpack.i.b16 %v16265_v10, %v16222_v2  ;;  %v19433_v51 = vld [vmem:[#allocation16_spill] sm:$0xff] }
 0x59b   : > { %v5680_v62 = vshrl.u32 %v16265_v10, 16  ;;  %v16347_v0 = vrot.slane %v6125_v60, %v14551_v39  ;;  %v5685_v43 = vpack.i.b16 %v5622_v35, %v19433_v51  ;;  %v5688_v59 = vshrl.u32 %v5622_v35, 16  ;;  %12573 = vmatpush3.bf16.xpose.msra.mxu0 %v16227_v57  ;;  %v5628_v34 = vpop.permute.xlu0 %5627 }
 0x59c   : > { %v5810_v48 = vcombine.high %v5677_v4, %v14542_v61  ;;  %v5817_v5 = vrot.slane %v5677_v4, %v14551_v39  ;;  %v19434_v2 = vshrl.u32 %v19433_v51, 16  ;;  %v5693_v18 = vpack.i.b16 %v5654_v12, %v16216_v15 }
 0x59d   : > { %v5681_v3 = vpack.i.b16 %v5680_v62, %v5679_v8  ;;  %v5927_v60 = vcombine.high %v5685_v43, %v14542_v61  ;;  %v5934_v6 = vrot.slane %v5685_v43, %v14551_v39  ;;  %v5733_v53 = vpack.i.b16 %v5628_v34, %v19436_v17 }
 0x59e   : > { %v5689_v10 = vpack.i.b16 %v5688_v59, %v19434_v2  ;;  %v5824_v35 = vrot.slane %v5810_v48, %v14551_v39  ;;  %v5825_v8 = vcombine.low %v16250_v45, %v5817_v5  ;;  %v5826_v62 = vcombine.high %v16250_v45, %v5817_v5 }
 0x59f   : > { %v5876_v4 = vcombine.high %v5681_v3, %v14542_v61  ;;  %v5883_v57 = vrot.slane %v5681_v3, %v14551_v39  ;;  %v5941_v51 = vrot.slane %v5927_v60, %v14551_v39  ;;  %v16404_v7 = vpop.permute.xlu0 %5659 }
 0x5a0   : > { %12605 = vmatpush3.bf16.xpose.msra.mxu1 %v16244_v13  ;;  %v5993_v59 = vcombine.high %v5689_v10, %v14542_v61  ;;  %v6000_v43 = vrot.slane %v5689_v10, %v14551_v39  ;;  %v16370_v2 = vrot.slane %v5825_v8, %v14561_v56  ;;  %v16373_v48 = vrot.slane %v5826_v62, %v14561_v56 }
 0x5a1   : > { %v5841_v45 = vcombine.low %v16262_v33, %v5824_v35  ;;  %v5842_v5 = vcombine.high %v16262_v33, %v5824_v35  ;;  %v5890_v13 = vrot.slane %v5876_v4, %v14551_v39  ;;  %v5891_v3 = vcombine.low %v16269_v22, %v5883_v57  ;;  %v5640_v33 = vpop.permute.xlu1 %5639 }
 0x5a2   : > { %v5892_v60 = vcombine.high %v16269_v22, %v5883_v57  ;;  %v6007_v30 = vrot.slane %v5993_v59, %v14551_v39  ;;  %v5942_v62 = vcombine.high %v5693_v18, %v14542_v61  ;;  %v5949_v59 = vrot.slane %v5693_v18, %v14551_v39 }
 0x5a3   : > { %v16382_v10 = vrot.slane %v5841_v45, %v14561_v56  ;;  %v16385_v8 = vrot.slane %v5842_v5, %v14561_v56  ;;  %v16392_v35 = vrot.slane %v5891_v3, %v14561_v56  ;;  %v5907_v22 = vcombine.low %v16278_v41, %v5890_v13 }
 0x5a4   : > { %v16395_v4 = vrot.slane %v5892_v60, %v14561_v56  ;;  %v5908_v57 = vcombine.high %v16278_v41, %v5890_v13  ;;  %v5696_v5 = vshrl.u32 %v5654_v12, 16  ;;  %v19435_v45 = vshrl.u32 %v16216_v15, 16 }
 0x5a5   : > { %v16407_v3 = vrot.slane %v5907_v22, %v14561_v56  ;;  %v5956_v19 = vrot.slane %v5942_v62, %v14551_v39  ;;  %v5736_v22 = vshrl.u32 %v5628_v34, 16  ;;  %v5709_v32 = vpack.i.b16 %v16284_v50, %v5640_v33 }
 0x5a6   : > { %v16410_v60 = vrot.slane %v5908_v57, %v14561_v56  ;;  %v5697_v12 = vpack.i.b16 %v5696_v5, %v19435_v45  ;;  %v5711_v57 = vshrl.u32 %v5640_v33, 16  ;;  %v5957_v31 = vcombine.low %v5934_v6, %v5949_v59 }
 0x5a7   : > { %v5958_v41 = vcombine.high %v5934_v6, %v5949_v59  ;;  %v5973_v47 = vcombine.low %v5941_v51, %v5956_v19  ;;  %v5974_v49 = vcombine.high %v5941_v51, %v5956_v19  ;;  %v19437_v18 = vshrl.u32 %v19436_v17, 16 }
 0x5a8   : > { %v6008_v13 = vcombine.high %v5697_v12, %v14542_v61  ;;  %v6015_v15 = vrot.slane %v5697_v12, %v14551_v39  ;;  %v6323_v62 = vcombine.high %v5733_v53, %v14542_v61  ;;  %v16429_v34 = vrot.slane %v5957_v31, %v14561_v56 }
 0x5a9   : > { %v5737_v45 = vpack.i.b16 %v5736_v22, %v19437_v18  ;;  %v16432_v33 = vrot.slane %v5958_v41, %v14561_v56  ;;  %v16435_v5 = vrot.slane %v5973_v47, %v14561_v56  ;;  %v16438_v19 = vrot.slane %v5974_v49, %v14561_v56  ;;  %v5626_v49 = vpop.permute.xlu1 %5625 }
 0x5aa   : > { %v6022_v6 = vrot.slane %v6008_v13, %v14551_v39  ;;  %v6023_v51 = vcombine.low %v6000_v43, %v6015_v15  ;;  %v6024_v59 = vcombine.high %v6000_v43, %v6015_v15  ;;  %v16442_v17 = vrot.slane %v5733_v53, %v14551_v39 }
 0x5ab   : > { %v16459_v22 = vrot.slane %v6323_v62, %v14551_v39  ;;  %v6389_v15 = vcombine.high %v5737_v45, %v14542_v61  ;;  %v16463_v18 = vrot.slane %v5737_v45, %v14551_v39  ;;  %v19438_v47 = vshrl.u32 %v16284_v50, 16 }
 0x5ac   : > { %v16453_v12 = vrot.slane %v6023_v51, %v14561_v56  ;;  %v16456_v43 = vrot.slane %v6024_v59, %v14561_v56  ;;  %v6039_v53 = vcombine.low %v6007_v30, %v6022_v6  ;;  %v6040_v13 = vcombine.high %v6007_v30, %v6022_v6 }
 0x5ad   : > { %v5713_v41 = vpack.i.b16 %v19438_v47, %v5711_v57  ;;  %v16478_v6 = vrot.slane %v6389_v15, %v14551_v39  ;;  %v6074_v45 = vcombine.high %v5709_v32, %v14542_v61  ;;  %v6081_v50 = vrot.slane %v5709_v32, %v14551_v39 }
 0x5ae   : > { %v16468_v51 = vrot.slane %v6039_v53, %v14561_v56  ;;  %v16471_v59 = vrot.slane %v6040_v13, %v14561_v56  ;;  %v19441_v53 = vld [vmem:[#allocation18_spill] sm:$0xff]  ;;  %v5720_v31 = vshrl.u32 %v5626_v49, 16  ;;  %v19442_v30 = vcombine.low %v16292_v23, %v16295_v26 }
 0x5af   : > { %v6140_v57 = vcombine.high %v5713_v41, %v14542_v61  ;;  %v6147_v47 = vrot.slane %v5713_v41, %v14551_v39  ;;  %v5717_v13 = vpack.i.b16 %v5626_v49, %v19441_v53  ;;  %v6088_v62 = vrot.slane %v6074_v45, %v14551_v39 }
 0x5b0   : > { %19439 = vst [vmem:[#allocation31_spill] sm:$0xff] %v16468_v51  ;;  %19440 = vst [vmem:[#allocation38_spill] sm:$0xff] %v16471_v59  ;;  %v3286_v29 = vrot.slane %v19442_v30, %v14551_v39  ;;  %v6089_v15 = vcombine.low %v16313_v14, %v6081_v50  ;;  %v6090_v52 = vcombine.high %v16313_v14, %v6081_v50  ;;  %v19443_v40 = vshrl.u32 %v19441_v53, 16 }
 0x5b1   : > { %v6154_v32 = vrot.slane %v6140_v57, %v14551_v39  ;;  %v6155_v42 = vcombine.low %v16337_v16, %v6147_v47  ;;  %v6156_v41 = vcombine.high %v16337_v16, %v6147_v47  ;;  %v6191_v51 = vcombine.high %v5717_v13, %v14542_v61 }
 0x5b2   : > { %v5721_v49 = vpack.i.b16 %v5720_v31, %v19443_v40  ;;  %v16499_v59 = vrot.slane %v6089_v15, %v14561_v56  ;;  %v16502_v30 = vrot.slane %v6090_v52, %v14561_v56  ;;  %v6105_v45 = vcombine.low %v16333_v24, %v6088_v62  ;;  %v16534_v15 = vpop.permute.xlu0 %5645 }
 0x5b3   : > { %v6106_v14 = vcombine.high %v16333_v24, %v6088_v62  ;;  %v16507_v50 = vrot.slane %v6155_v42, %v14561_v56  ;;  %v16510_v16 = vrot.slane %v6156_v41, %v14561_v56  ;;  %v6171_v40 = vcombine.low %v16347_v0, %v6154_v32 }
 0x5b4   : > { %v6172_v31 = vcombine.high %v16347_v0, %v6154_v32  ;;  %v16515_v57 = vrot.slane %v6105_v45, %v14561_v56  ;;  %v6198_v45 = vrot.slane %v5717_v13, %v14551_v39  ;;  %v19450_v53 = vcombine.high %v16292_v23, %v16295_v26 }
 0x5b5   : > { %19444 = vst [vmem:[#allocation32_spill] sm:$0xff] %v16507_v50  ;;  %19445 = vst [vmem:[#allocation39_spill] sm:$0xff] %v16510_v16  ;;  %v16518_v52 = vrot.slane %v6106_v14, %v14561_v56  ;;  %v16525_v24 = vrot.slane %v6171_v40, %v14561_v56  ;;  %v6205_v14 = vrot.slane %v6191_v51, %v14551_v39  ;;  %v19458_v16 = vld [vmem:[#allocation45_spill] sm:$0xff]  ;;  %v19459_v50 = vld [vmem:[#allocation26_spill] sm:$0xff] }
 0x5b6   : > { %19446 = vst [vmem:[#allocation33_spill] sm:$0xff] %v16515_v57  ;;  %v16528_v62 = vrot.slane %v6172_v31, %v14561_v56  ;;  %v6257_v40 = vcombine.high %v5721_v49, %v14542_v61  ;;  %v6264_v31 = vrot.slane %v5721_v49, %v14551_v39  ;;  %v3294_v0 = vrot.slane %v19450_v53, %v14551_v39 }
 0x5b7   : > { %19447 = vst [vmem:[#allocation40_spill] sm:$0xff] %v16518_v52  ;;  %19448 = vst [vmem:[#allocation34_spill] sm:$0xff] %v16525_v24  ;;  %v3295_v42 = vcombine.low %v16321_v44, %v16324_v11  ;;  %v19451_v41 = vcombine.low %v16298_v37, %v16303_v36  ;;  %v19452_v51 = vcombine.high %v16298_v37, %v16303_v36  ;;  %v5658_v44 = vpop.permute.xlu1 %5657  ;;  %v19456_v24 = vld [vmem:[#allocation51_spill] sm:$0xff]  ;;  %v19457_v37 = vld [vmem:[#allocation48_spill] sm:$0xff] }
 0x5b8   : > { %19449 = vst [vmem:[#allocation41_spill] sm:$0xff] %v16528_v62  ;;  %v19453_v49 = vcombine.low %v16306_v38, %v16318_v28  ;;  %v19454_v23 = vcombine.high %v16306_v38, %v16318_v28  ;;  %v6271_v11 = vrot.slane %v6257_v40, %v14551_v39  ;;  %v2612_v36 = vcombine.high %v19457_v37, %v19456_v24  ;;  %v19462_v37 = vld [vmem:[#allocation23_spill] sm:$0xff] }
 0x5b9   : > { %v3320_v32 = vrot.slane %v19451_v41, %v14551_v39  ;;  %v3328_v13 = vrot.slane %v19452_v51, %v14551_v39  ;;  %v16568_v53 = vrot.slane %v3295_v42, %v14561_v56  ;;  %v3303_v41 = vcombine.low %v3286_v29, %v3294_v0  ;;  %v5632_v42 = vpop.permute.xlu0 %5631 }
 0x5ba   : > { %v3336_v47 = vrot.slane %v19453_v49, %v14551_v39  ;;  %v3344_v26 = vrot.slane %v19454_v23, %v14551_v39  ;;  %v2662_v49 = vcombine.high %v19459_v50, %v19458_v16  ;;  %v3372_v28 = vshrl.u32 %v2612_v36, 16 }
 0x5bb   : > { %19455 = vst [vmem:[#allocation57_spill] sm:$0xff] %v16568_v53  ;;  %v3345_v51 = vcombine.low %v3320_v32, %v3328_v13  ;;  %v16576_v38 = vrot.slane %v3303_v41, %v14561_v56  ;;  %v5725_v40 = vpack.i.b16 %v5658_v44, %v16328_v20  ;;  %v5728_v23 = vshrl.u32 %v5658_v44, 16 }
 0x5bc   : > { %v3353_v62 = vcombine.low %v3336_v47, %v3344_v26  ;;  %v3371_v47 = vpack.i.b16 %v2662_v49, %v2612_v36  ;;  %v3373_v0 = vshrl.u32 %v2662_v49, 16  ;;  %v19461_v16 = vshrl.u32 %v16328_v20, 16 }
 0x5bd   : > { %19460 = vst [vmem:[#allocation42_spill] sm:$0xff] %v16576_v38  ;;  %v16580_v29 = vrot.slane %v3345_v51, %v14561_v56  ;;  %v3311_v50 = vcombine.low %v16568_v53, %v16576_v38  ;;  %v6206_v13 = vcombine.high %v5725_v40, %v14542_v61  ;;  %v6213_v26 = vrot.slane %v5725_v40, %v14551_v39 }
 0x5be   : > { %v16583_v24 = vrot.slane %v3353_v62, %v14561_v56  ;;  %v5729_v32 = vpack.i.b16 %v5728_v23, %v19461_v16  ;;  %v3374_v41 = vpack.i.b16 %v3373_v0, %v3372_v28  ;;  %v5765_v51 = vpack.i.b16 %v5632_v42, %v19462_v37 }
 0x5bf   : > { %v5768_v62 = vshrl.u32 %v5632_v42, 16  ;;  %v3450_v52 = vshrl.u32 %v3311_v50, 16  ;;  %v6220_v36 = vrot.slane %v6206_v13, %v14551_v39  ;;  %v6221_v49 = vcombine.low %v6198_v45, %v6213_v26 }
 0x5c0   : > { %v3361_v44 = vcombine.low %v16580_v29, %v16583_v24  ;;  %v6222_v57 = vcombine.high %v6198_v45, %v6213_v26  ;;  %v6272_v20 = vcombine.high %v5729_v32, %v14542_v61  ;;  %v6279_v23 = vrot.slane %v5729_v32, %v14551_v39 }
 0x5c1   : > { %v16598_v40 = vrot.slane %v6221_v49, %v14561_v56  ;;  %v6237_v28 = vcombine.low %v6205_v14, %v6220_v36  ;;  %v6238_v0 = vcombine.high %v6205_v14, %v6220_v36  ;;  %v19463_v36 = vshrl.u32 %v19462_v37, 16 }
 0x5c2   : > { %v3449_v53 = vpack.i.b16 %v3361_v44, %v3311_v50  ;;  %v3451_v38 = vshrl.u32 %v3361_v44, 16  ;;  %v16601_v16 = vrot.slane %v6222_v57, %v14561_v56  ;;  %v6286_v13 = vrot.slane %v6272_v20, %v14551_v39 }
 0x5c3   : > { %v6287_v45 = vcombine.low %v6264_v31, %v6279_v23  ;;  %v6288_v50 = vcombine.high %v6264_v31, %v6279_v23  ;;  %v16607_v26 = vrot.slane %v6237_v28, %v14561_v56  ;;  %v16610_v32 = vrot.slane %v6238_v0, %v14561_v56  ;;  %v5644_v23 = vpop.permute.xlu1 %5643 }
 0x5c4   : > { %12523 = vmatmul.mubr.msk.bf16.gmra.mrb[44].mxu0 %vm7779_vm0, %v3449_v53  ;;  %v3452_v42 = vpack.i.b16 %v3451_v38, %v3450_v52  ;;  %v6303_v53 = vcombine.low %v6271_v11, %v6286_v13  ;;  %v6304_v38 = vcombine.high %v6271_v11, %v6286_v13  ;;  %v5769_v49 = vpack.i.b16 %v5768_v62, %v19463_v36  ;;  %v19465_v36 = vld [vmem:[#allocation59_spill] sm:$0xff] }
 0x5c5   : > { %12574 = vmatprep.mubr.msk.bf16.mxu0 %vm7779_vm0, %v3371_v47  ;;  %v16618_v52 = vrot.slane %v6287_v45, %v14561_v56  ;;  %v16621_v31 = vrot.slane %v6288_v50, %v14561_v56  ;;  %v6587_v20 = vcombine.high %v5765_v51, %v14542_v61  ;;  %v5741_v45 = vpack.i.b16 %v16404_v7, %v5644_v23 }
 0x5c6   : > { %12555 = vmatmul.mubr.msk.bf16.gmra.mrb[28].mxu1 %vm7779_vm0, %v3452_v42  ;;  %v16632_v28 = vrot.slane %v6303_v53, %v14561_v56  ;;  %v16635_v0 = vrot.slane %v6304_v38, %v14561_v56  ;;  %v16642_v42 = vrot.slane %v5765_v51, %v14551_v39  ;;  %v6653_v62 = vcombine.high %v5769_v49, %v14542_v61  ;;  %v19464_v53 = vld [vmem:[#allocation58_spill] sm:$0xff] }
 0x5c7   : > { %12606 = vmatprep.mubr.msk.bf16.mxu1 %vm7779_vm0, %v3374_v41  ;;  %v16645_v37 = vrot.slane %v6587_v20, %v14551_v39  ;;  %v16649_v13 = vrot.slane %v5769_v49, %v14551_v39  ;;  %v5743_v50 = vshrl.u32 %v5644_v23, 16  ;;  %v16654_v38 = vcombine.high %v19464_v53, %v15451_v27 }
 0x5c8   : > { %v16658_v41 = vcombine.high %v19465_v36, %v15885_v25  ;;  %v16661_v51 = vrot.slane %v6653_v62, %v14551_v39  ;;  %v19466_v20 = vcombine.low %v16370_v2, %v16373_v48  ;;  %v19467_v23 = vcombine.high %v16370_v2, %v16373_v48 }
 0x5c9   : > { %v19468_v27 = vcombine.low %v16382_v10, %v16385_v8  ;;  %v19469_v25 = vshrl.u32 %v16404_v7, 16  ;;  %v6338_v62 = vcombine.high %v5741_v45, %v14542_v61  ;;  %v6345_v44 = vrot.slane %v5741_v45, %v14551_v39 }
 0x5ca   : > { %v6858_v49 = vrot.slane %v19466_v20, %v14551_v39  ;;  %v6866_v11 = vrot.slane %v19467_v23, %v14551_v39  ;;  %v3383_v20 = vpack.i.b16 %v16658_v41, %v16654_v38  ;;  %v19470_v2 = vcombine.high %v16382_v10, %v16385_v8 }
 0x5cb   : > { %v6874_v53 = vrot.slane %v19468_v27, %v14551_v39  ;;  %v5745_v36 = vpack.i.b16 %v19469_v25, %v5743_v50  ;;  %v19471_v27 = vcombine.low %v16392_v35, %v16395_v4  ;;  %v19472_v7 = vcombine.high %v16392_v35, %v16395_v4 }
 0x5cc   : > { %v6882_v48 = vrot.slane %v19470_v2, %v14551_v39  ;;  %v6883_v23 = vcombine.low %v6858_v49, %v6866_v11  ;;  %v6352_v45 = vrot.slane %v6338_v62, %v14551_v39  ;;  %v6353_v25 = vcombine.low %v16442_v17, %v6345_v44  ;;  %12575 = vmatmul.mubr.msk.bf16.vlgmr.msra.gmra.mrb[48].mxu0 %vm7779_vm0, %v3383_v20 }
 0x5cd   : > { %v6908_v47 = vrot.slane %v19471_v27, %v14551_v39  ;;  %v6916_v50 = vrot.slane %v19472_v7, %v14551_v39  ;;  %v6354_v14 = vcombine.high %v16442_v17, %v6345_v44  ;;  %v6404_v10 = vcombine.high %v5745_v36, %v14542_v61 }
 0x5ce   : > { %v6411_v8 = vrot.slane %v5745_v36, %v14551_v39  ;;  %v16700_v11 = vrot.slane %v6883_v23, %v14561_v56  ;;  %v6891_v49 = vcombine.low %v6874_v53, %v6882_v48  ;;  %v6917_v35 = vcombine.low %v16407_v3, %v16410_v60  ;;  %v16718_v48 = vpop.permute.xlu0 %5663  ;;  %v5630_v23 = vpop.permute.xlu1 %5629 }
 0x5cf   : > { %v16705_v4 = vrot.slane %v6353_v25, %v14561_v56  ;;  %v16708_v62 = vrot.slane %v6354_v14, %v14561_v56  ;;  %v6369_v17 = vcombine.low %v16459_v22, %v6352_v45  ;;  %v6370_v44 = vcombine.high %v16459_v22, %v6352_v45 }
 0x5d0   : > { %19473 = vst [vmem:[#allocation61_spill] sm:$0xff] %v16700_v11  ;;  %v6418_v20 = vrot.slane %v6404_v10, %v14551_v39  ;;  %v6419_v36 = vcombine.low %v16463_v18, %v6411_v8  ;;  %v6420_v2 = vcombine.high %v16463_v18, %v6411_v8  ;;  %v16716_v53 = vrot.slane %v6891_v49, %v14561_v56 }
 0x5d1   : > { %v16721_v27 = vrot.slane %v6369_v17, %v14561_v56  ;;  %v16724_v14 = vrot.slane %v6370_v44, %v14561_v56  ;;  %v6924_v44 = vrot.slane %v6917_v35, %v14551_v39  ;;  %v12193_v49 = vcombine.high %v16407_v3, %v16410_v60 }
 0x5d2   : > { %19474 = vst [vmem:[#allocation60_spill] sm:$0xff] %v16716_v53  ;;  %v16731_v18 = vrot.slane %v6419_v36, %v14561_v56  ;;  %v16734_v45 = vrot.slane %v6420_v2, %v14561_v56  ;;  %v6435_v25 = vcombine.low %v16478_v6, %v6418_v20  ;;  %v6436_v10 = vcombine.high %v16478_v6, %v6418_v20  ;;  %v16764_v57 = vpop.permute.xlu0 %5649  ;;  %v5662_v20 = vpop.permute.xlu1 %5661 }
 0x5d3   : > { %v6899_v17 = vcombine.low %v16700_v11, %v16716_v53  ;;  %v6933_v8 = vcombine.low %v6908_v47, %v6916_v50  ;;  %v2812_v7 = vcombine.high %v15909_v58, %v15922_v21  ;;  %v2862_v35 = vcombine.high %v15996_v54, %v16017_v63  ;;  %v19477_v54 = vld [vmem:[#allocation20_spill] sm:$0xff] }
 0x5d4   : > { %v16746_v36 = vrot.slane %v6435_v25, %v14561_v56  ;;  %v16749_v2 = vrot.slane %v6436_v10, %v14561_v56  ;;  %v3384_v25 = vshrl.u32 %v16654_v38, 16  ;;  %v3385_v10 = vshrl.u32 %v16658_v41, 16  ;;  %v19516_v41 = vld [vmem:[#allocation55_spill] sm:$0xff] }
 0x5d5   : > { %v7655_v22 = vshrl.u32 %v6899_v17, 16  ;;  %v6932_v11 = vrot.slane %v12193_v49, %v14551_v39  ;;  %v16768_v3 = vrot.slane %v6933_v8, %v14561_v56  ;;  %v3395_v60 = vpack.i.b16 %v2862_v35, %v2812_v7 }
 0x5d6   : > { %19475 = vst [vmem:[#allocation49_spill] sm:$0xff] %v16746_v36  ;;  %v3396_v58 = vshrl.u32 %v2812_v7, 16  ;;  %v3386_v21 = vpack.i.b16 %v3385_v10, %v3384_v25  ;;  %v3397_v47 = vshrl.u32 %v2862_v35, 16  ;;  %v5749_v63 = vpack.i.b16 %v5630_v23, %v19477_v54 }
 0x5d7   : > { %19476 = vst [vmem:[#allocation62_spill] sm:$0xff] %v16768_v3  ;;  %v5752_v38 = vshrl.u32 %v5630_v23, 16  ;;  %v6941_v50 = vcombine.low %v6924_v44, %v6932_v11  ;;  %12578 = vmatprep.mubr.msk.bf16.mxu0 %vm7779_vm0, %v3395_v60  ;;  %v5757_v6 = vpack.i.b16 %v5662_v20, %v16534_v15  ;;  %v5760_v53 = vshrl.u32 %v5662_v20, 16 }
 0x5d8   : > { %12607 = vmatmul.mubr.msk.bf16.vlgmr.msra.gmra.mrb[32].mxu1 %vm7779_vm0, %v3386_v21  ;;  %v3398_v49 = vpack.i.b16 %v3397_v47, %v3396_v58  ;;  %v19478_v8 = vshrl.u32 %v19477_v54, 16  ;;  %v6455_v7 = vcombine.high %v5749_v63, %v14542_v61  ;;  %v6462_v35 = vrot.slane %v5749_v63, %v14551_v39 }
 0x5d9   : > { %v16780_v23 = vrot.slane %v6941_v50, %v14561_v56  ;;  %v19480_v11 = vshrl.u32 %v16534_v15, 16  ;;  %v6470_v25 = vcombine.high %v5757_v6, %v14542_v61  ;;  %v6477_v20 = vrot.slane %v5757_v6, %v14551_v39 }
 0x5da   : > { %v5753_v36 = vpack.i.b16 %v5752_v38, %v19478_v8  ;;  %12610 = vmatprep.mubr.msk.bf16.mxu1 %vm7779_vm0, %v3398_v49  ;;  %v6469_v10 = vrot.slane %v6455_v7, %v14551_v39  ;;  %v16792_v21 = vcombine.high %v16004_v9, %v16033_v46 }
 0x5db   : > { %19479 = vst [vmem:[#allocation43_spill] sm:$0xff] %v16780_v23  ;;  %v5761_v44 = vpack.i.b16 %v5760_v53, %v19480_v11  ;;  %v6949_v15 = vcombine.low %v16768_v3, %v16780_v23  ;;  %v6484_v53 = vrot.slane %v6470_v25, %v14551_v39  ;;  %v6485_v47 = vcombine.low %v6462_v35, %v6477_v20 }
 0x5dc   : > { %v6521_v60 = vcombine.high %v5753_v36, %v14542_v61  ;;  %v6528_v58 = vrot.slane %v5753_v36, %v14551_v39  ;;  %v6486_v54 = vcombine.high %v6462_v35, %v6477_v20  ;;  %v2962_v36 = vcombine.high %v16052_v1, %v16062_v55 }
 0x5dd   : > { %v6536_v63 = vcombine.high %v5761_v44, %v14542_v61  ;;  %v6543_v38 = vrot.slane %v5761_v44, %v14551_v39  ;;  %v7653_v50 = vpack.i.b16 %v6949_v15, %v6899_v17  ;;  %v7656_v49 = vshrl.u32 %v6949_v15, 16 }
 0x5de   : > { %v6535_v6 = vrot.slane %v6521_v60, %v14551_v39  ;;  %v16803_v9 = vrot.slane %v6485_v47, %v14561_v56  ;;  %v16806_v46 = vrot.slane %v6486_v54, %v14561_v56  ;;  %v6501_v8 = vcombine.low %v6469_v10, %v6484_v53 }
 0x5df   : > { %v6502_v7 = vcombine.high %v6469_v10, %v6484_v53  ;;  %v6550_v35 = vrot.slane %v6536_v63, %v14551_v39  ;;  %v6551_v11 = vcombine.low %v6528_v58, %v6543_v38  ;;  %12622 = vmatprep.subr.bf16.mxu0 %v7653_v50  ;;  %v7657_v25 = vpack.i.b16 %v7656_v49, %v7655_v22 }
 0x5e0   : > { %v6552_v20 = vcombine.high %v6528_v58, %v6543_v38  ;;  %12623 = vmatpush3.bf16.msra.mxu0 %v7653_v50  ;;  %v16814_v55 = vrot.slane %v6501_v8, %v14561_v56  ;;  %v3407_v15 = vpack.i.b16 %v2962_v36, %v16792_v21  ;;  %v19481_v53 = vcombine.low %v16429_v34, %v16432_v33  ;;  %v19489_v8 = vld [vmem:[#allocation28_spill] sm:$0xff] }
 0x5e1   : > { %v16817_v17 = vrot.slane %v6502_v7, %v14561_v56  ;;  %v16820_v10 = vrot.slane %v6551_v11, %v14561_v56  ;;  %v6567_v60 = vcombine.low %v6535_v6, %v6550_v35  ;;  %12654 = vmatprep.subr.bf16.mxu1 %v7657_v25  ;;  %v6568_v58 = vcombine.high %v6535_v6, %v6550_v35 }
 0x5e2   : > { %v16823_v22 = vrot.slane %v6552_v20, %v14561_v56  ;;  %v6958_v47 = vrot.slane %v19481_v53, %v14551_v39  ;;  %12655 = vmatpush3.bf16.msra.mxu1 %v7657_v25  ;;  %v19482_v6 = vcombine.high %v16429_v34, %v16432_v33  ;;  %12579 = vmatmul.mubr.msk.bf16.gmra.mrb[52].mxu0 %vm7779_vm0, %v3407_v15  ;;  %v19487_v53 = vld [vmem:[#allocation38_spill] sm:$0xff] }
 0x5e3   : > { %v16831_v54 = vrot.slane %v6567_v60, %v14561_v56  ;;  %v16842_v49 = vrot.slane %v6568_v58, %v14561_v56  ;;  %v19483_v35 = vcombine.low %v16435_v5, %v16438_v19  ;;  %v19484_v34 = vcombine.high %v16435_v5, %v16438_v19  ;;  %v19490_v5 = vld [vmem:[#allocation52_spill] sm:$0xff] }
 0x5e4   : > { %v6966_v50 = vrot.slane %v19482_v6, %v14551_v39  ;;  %v19485_v20 = vcombine.low %v16453_v12, %v16456_v43  ;;  %v19486_v58 = vcombine.high %v16453_v12, %v16456_v43  ;;  %v19488_v6 = vld [vmem:[#allocation31_spill] sm:$0xff]  ;;  %v3012_v19 = vcombine.high %v19490_v5, %v19489_v8  ;;  %v5648_v43 = vpop.permute.xlu1 %5647 }
 0x5e5   : > { %v6974_v11 = vrot.slane %v19483_v35, %v14551_v39  ;;  %v6982_v33 = vrot.slane %v19484_v34, %v14551_v39  ;;  %v7017_v7 = vcombine.low %v19488_v6, %v19487_v53  ;;  %v12197_v35 = vcombine.high %v19488_v6, %v19487_v53 }
 0x5e6   : > { %v6983_v25 = vcombine.low %v6958_v47, %v6966_v50  ;;  %v7008_v60 = vrot.slane %v19485_v20, %v14551_v39  ;;  %v7016_v15 = vrot.slane %v19486_v58, %v14551_v39  ;;  %v19491_v47 = vld [vmem:[#allocation29_spill] sm:$0xff]  ;;  %v19492_v50 = vld [vmem:[#allocation27_spill] sm:$0xff]  ;;  %v3408_v12 = vshrl.u32 %v16792_v21, 16 }
 0x5e7   : > { %v3062_v34 = vcombine.high %v19492_v50, %v19491_v47  ;;  %v6991_v20 = vcombine.low %v6974_v11, %v6982_v33  ;;  %v7024_v58 = vrot.slane %v7017_v7, %v14551_v39  ;;  %v7032_v1 = vrot.slane %v12197_v35, %v14551_v39 }
 0x5e8   : > { %v16874_v38 = vrot.slane %v6983_v25, %v14561_v56  ;;  %v7033_v63 = vcombine.low %v7008_v60, %v7016_v15  ;;  %v3409_v53 = vshrl.u32 %v2962_v36, 16  ;;  %v3420_v5 = vshrl.u32 %v3012_v19, 16 }
 0x5e9   : > { %v3419_v44 = vpack.i.b16 %v3062_v34, %v3012_v19  ;;  %v16880_v6 = vrot.slane %v6991_v20, %v14561_v56  ;;  %v3421_v25 = vshrl.u32 %v3062_v34, 16  ;;  %v7041_v47 = vcombine.low %v7024_v58, %v7032_v1 }
 0x5ea   : > { %19493 = vst [vmem:[#allocation50_spill] sm:$0xff] %v16874_v38  ;;  %v16883_v8 = vrot.slane %v7033_v63, %v14561_v56  ;;  %v3410_v11 = vpack.i.b16 %v3409_v53, %v3408_v12  ;;  %v5773_v21 = vpack.i.b16 %v16718_v48, %v5648_v43  ;;  %v5775_v33 = vshrl.u32 %v5648_v43, 16  ;;  %v19500_v12 = vld [vmem:[#allocation33_spill] sm:$0xff]  ;;  %v19501_v43 = vld [vmem:[#allocation40_spill] sm:$0xff] }
 0x5eb   : > { %19494 = vst [vmem:[#allocation44_spill] sm:$0xff] %v16880_v6  ;;  %12582 = vmatprep.mubr.msk.bf16.mxu0 %vm7779_vm0, %v3419_v44  ;;  %v6999_v7 = vcombine.low %v16874_v38, %v16880_v6  ;;  %v3422_v60 = vpack.i.b16 %v3421_v25, %v3420_v5  ;;  %v19496_v36 = vcombine.low %v16499_v59, %v16502_v30  ;;  %v19499_v35 = vshrl.u32 %v16718_v48, 16 }
 0x5ec   : > { %19495 = vst [vmem:[#allocation63_spill] sm:$0xff] %v16883_v8  ;;  %v19497_v63 = vcombine.high %v16499_v59, %v16502_v30  ;;  %v16898_v44 = vrot.slane %v7041_v47, %v14561_v56  ;;  %12611 = vmatmul.mubr.msk.bf16.gmra.mrb[36].mxu1 %vm7779_vm0, %v3410_v11  ;;  %v6602_v50 = vcombine.high %v5773_v21, %v14542_v61 }
 0x5ed   : > { %v7058_v15 = vrot.slane %v19496_v36, %v14551_v39  ;;  %v5777_v19 = vpack.i.b16 %v19499_v35, %v5775_v33  ;;  %v6609_v34 = vrot.slane %v5773_v21, %v14551_v39  ;;  %v7671_v20 = vshrl.u32 %v6999_v7, 16  ;;  %12614 = vmatprep.mubr.msk.bf16.mxu1 %vm7779_vm0, %v3422_v60 }
 0x5ee   : > { %v7066_v1 = vrot.slane %v19497_v63, %v14551_v39  ;;  %19498 = vst [vmem:[#allocation47_spill] sm:$0xff] %v16898_v44  ;;  %v19502_v59 = vcombine.low %v19500_v12, %v19501_v43  ;;  %v19503_v58 = vcombine.high %v19500_v12, %v19501_v43  ;;  %v7049_v48 = vcombine.low %v16883_v8, %v16898_v44  ;;  %v19518_v44 = vld [vmem:[#allocation30_spill] sm:$0xff] }
 0x5ef   : > { %v6616_v25 = vrot.slane %v6602_v50, %v14551_v39  ;;  %v6617_v47 = vcombine.low %v16642_v42, %v6609_v34  ;;  %v6618_v11 = vcombine.high %v16642_v42, %v6609_v34  ;;  %v6668_v21 = vcombine.high %v5777_v19, %v14542_v61 }
 0x5f0   : > { %v7074_v30 = vrot.slane %v19502_v59, %v14551_v39  ;;  %v7082_v53 = vrot.slane %v19503_v58, %v14551_v39  ;;  %v7083_v5 = vcombine.low %v7058_v15, %v7066_v1  ;;  %v6675_v33 = vrot.slane %v5777_v19, %v14551_v39  ;;  %v19514_v59 = vld [vmem:[#allocation53_spill] sm:$0xff] }
 0x5f1   : > { %v7669_v63 = vpack.i.b16 %v7049_v48, %v6999_v7  ;;  %v7672_v35 = vshrl.u32 %v7049_v48, 16  ;;  %v16925_v15 = vrot.slane %v6617_v47, %v14561_v56  ;;  %v16928_v1 = vrot.slane %v6618_v11, %v14561_v56  ;;  %v19506_v48 = vld [vmem:[#allocation32_spill] sm:$0xff] }
 0x5f2   : > { %v16922_v60 = vrot.slane %v7083_v5, %v14561_v56  ;;  %v7091_v36 = vcombine.low %v7074_v30, %v7082_v53  ;;  %v6633_v50 = vcombine.low %v16645_v37, %v6616_v25  ;;  %v6634_v42 = vcombine.high %v16645_v37, %v6616_v25  ;;  %v19507_v25 = vld [vmem:[#allocation39_spill] sm:$0xff]  ;;  %v19515_v7 = vld [vmem:[#allocation56_spill] sm:$0xff] }
 0x5f3   : > { %v6682_v34 = vrot.slane %v6668_v21, %v14551_v39  ;;  %v6683_v19 = vcombine.low %v16649_v13, %v6675_v33  ;;  %12624 = vmatprep.subr.bf16.mxu0 %v7669_v63  ;;  %v7673_v12 = vpack.i.b16 %v7672_v35, %v7671_v20  ;;  %v6684_v43 = vcombine.high %v16649_v13, %v6675_v33  ;;  %v5634_v21 = vpop.permute.xlu1 %5633 }
 0x5f4   : > { %19504 = vst [vmem:[#allocation46_spill] sm:$0xff] %v16922_v60  ;;  %12625 = vmatpush3.bf16.msra.mxu0 %v7669_v63  ;;  %v16940_v30 = vrot.slane %v6633_v50, %v14561_v56  ;;  %v16943_v37 = vrot.slane %v6634_v42, %v14561_v56  ;;  %v16954_v5 = vrot.slane %v7091_v36, %v14561_v56  ;;  %v5784_v35 = vshrl.u32 %v5634_v21, 16  ;;  %v19513_v63 = vld [vmem:[#allocation54_spill] sm:$0xff] }
 0x5f5   : > { %v16946_v58 = vrot.slane %v6683_v19, %v14561_v56  ;;  %v6699_v20 = vcombine.low %v16661_v51, %v6682_v34  ;;  %12656 = vmatprep.subr.bf16.mxu1 %v7673_v12  ;;  %v16950_v13 = vrot.slane %v6684_v43, %v14561_v56  ;;  %v6700_v53 = vcombine.high %v16661_v51, %v6682_v34  ;;  %v19511_v43 = vld [vmem:[#allocation34_spill] sm:$0xff] }
 0x5f6   : > { %19505 = vst [vmem:[#allocation17_spill] sm:$0xff] %v16954_v5  ;;  %v19508_v47 = vcombine.low %v19506_v48, %v19507_v25  ;;  %12657 = vmatpush3.bf16.msra.mxu1 %v7673_v12  ;;  %v19509_v51 = vcombine.high %v19506_v48, %v19507_v25  ;;  %v7099_v19 = vcombine.low %v16922_v60, %v16954_v5  ;;  %v19510_v12 = vld [vmem:[#allocation41_spill] sm:$0xff]  ;;  %v19512_v25 = vld [vmem:[#allocation22_spill] sm:$0xff] }
 0x5f7   : > { %v16961_v33 = vrot.slane %v6699_v20, %v14561_v56  ;;  %v16972_v50 = vrot.slane %v6700_v53, %v14561_v56  ;;  %v7117_v20 = vcombine.low %v19511_v43, %v19510_v12  ;;  %v3112_v42 = vcombine.high %v19514_v59, %v19513_v63  ;;  %v19519_v59 = vld [vmem:[#allocation36_spill] sm:$0xff]  ;;  %v5666_v38 = vpop.permute.xlu1 %5665 }
 0x5f8   : > { %v7108_v11 = vrot.slane %v19508_v47, %v14551_v39  ;;  %v7116_v36 = vrot.slane %v19509_v51, %v14551_v39  ;;  %v12201_v47 = vcombine.high %v19511_v43, %v19510_v12  ;;  %v5781_v51 = vpack.i.b16 %v5634_v21, %v19512_v25 }
 0x5f9   : > { %v7687_v53 = vshrl.u32 %v7099_v19, 16  ;;  %v3162_v34 = vcombine.high %v19516_v41, %v19515_v7  ;;  %v7124_v8 = vrot.slane %v7117_v20, %v14551_v39  ;;  %v3212_v63 = vcombine.high %v19519_v59, %v19518_v44  ;;  %v19520_v20 = vld [vmem:[#allocation37_spill] sm:$0xff] }
 0x5fa   : > { %v7133_v48 = vcombine.low %v7108_v11, %v7116_v36  ;;  %v7132_v60 = vrot.slane %v12201_v47, %v14551_v39  ;;  %v6719_v12 = vcombine.high %v5781_v51, %v14542_v61  ;;  %v19517_v11 = vshrl.u32 %v19512_v25, 16  ;;  %v19521_v47 = vld [vmem:[#allocation35_spill] sm:$0xff] }
 0x5fb   : > { %v6726_v21 = vrot.slane %v5781_v51, %v14551_v39  ;;  %v3431_v43 = vpack.i.b16 %v3162_v34, %v3112_v42  ;;  %v3262_v6 = vcombine.high %v19521_v47, %v19520_v20  ;;  %v3444_v25 = vshrl.u32 %v3212_v63, 16 }
 0x5fc   : > { %v16992_v5 = vrot.slane %v7133_v48, %v14561_v56  ;;  %v5785_v36 = vpack.i.b16 %v5784_v35, %v19517_v11  ;;  %v7141_v41 = vcombine.low %v7124_v8, %v7132_v60  ;;  %v6733_v7 = vrot.slane %v6719_v12, %v14551_v39 }
 0x5fd   : > { %v3432_v48 = vshrl.u32 %v3112_v42, 16  ;;  %12583 = vmatmul.mubr.msk.bf16.gmra.mrb[56].mxu0 %vm7779_vm0, %v3431_v43  ;;  %v3433_v35 = vshrl.u32 %v3162_v34, 16  ;;  %v3443_v44 = vpack.i.b16 %v3262_v6, %v3212_v63  ;;  %v3445_v11 = vshrl.u32 %v3262_v6, 16 }
 0x5fe   : > { %v6785_v3 = vcombine.high %v5785_v36, %v14542_v61  ;;  %v6792_v23 = vrot.slane %v5785_v36, %v14551_v39  ;;  %v17007_v51 = vrot.slane %v7141_v41, %v14561_v56  ;;  %v5789_v8 = vpack.i.b16 %v5666_v38, %v16764_v57 }
 0x5ff   : > { %v3434_v12 = vpack.i.b16 %v3433_v35, %v3432_v48  ;;  %v5792_v59 = vshrl.u32 %v5666_v38, 16  ;;  %v19522_v42 = vcombine.low %v16598_v40, %v16601_v16  ;;  %12586 = vmatprep.mubr.msk.bf16.mxu0 %vm7779_vm0, %v3443_v44  ;;  %v3446_v43 = vpack.i.b16 %v3445_v11, %v3444_v25 }
 0x600   : > { %v6799_v60 = vrot.slane %v6785_v3, %v14551_v39  ;;  %v7149_v34 = vcombine.low %v16992_v5, %v17007_v51  ;;  %v6734_v63 = vcombine.high %v5789_v8, %v14542_v61  ;;  %v6741_v6 = vrot.slane %v5789_v8, %v14551_v39 }
 0x601   : > { %v7158_v36 = vrot.slane %v19522_v42, %v14551_v39  ;;  %12615 = vmatmul.mubr.msk.bf16.gmra.mrb[40].mxu1 %vm7779_vm0, %v3434_v12  ;;  %v19523_v3 = vshrl.u32 %v16764_v57, 16  ;;  %v19524_v41 = vcombine.high %v16598_v40, %v16601_v16  ;;  %v19525_v47 = vcombine.low %v16607_v26, %v16610_v32 }
 0x602   : > { %v19526_v35 = vcombine.high %v16607_v26, %v16610_v32  ;;  %v7685_v44 = vpack.i.b16 %v7149_v34, %v7099_v19  ;;  %v7688_v11 = vshrl.u32 %v7149_v34, 16  ;;  %12618 = vmatprep.mubr.msk.bf16.mxu1 %vm7779_vm0, %v3446_v43  ;;  %v6748_v57 = vrot.slane %v6734_v63, %v14551_v39 }
 0x603   : > { %v5793_v38 = vpack.i.b16 %v5792_v59, %v19523_v3  ;;  %v7166_v20 = vrot.slane %v19524_v41, %v14551_v39  ;;  %v7174_v48 = vrot.slane %v19525_v47, %v14551_v39  ;;  %v6749_v8 = vcombine.low %v6726_v21, %v6741_v6 }
 0x604   : > { %v7182_v25 = vrot.slane %v19526_v35, %v14551_v39  ;;  %v6750_v12 = vcombine.high %v6726_v21, %v6741_v6  ;;  %12626 = vmatprep.subr.bf16.mxu0 %v7685_v44  ;;  %v7689_v42 = vpack.i.b16 %v7688_v11, %v7687_v53  ;;  %v6765_v26 = vcombine.low %v6733_v7, %v6748_v57 }
 0x605   : > { %v6800_v40 = vcombine.high %v5793_v38, %v14542_v61  ;;  %v6807_v16 = vrot.slane %v5793_v38, %v14551_v39  ;;  %v7183_v59 = vcombine.low %v7158_v36, %v7166_v20  ;;  %v17040_v3 = vrot.slane %v6749_v8, %v14561_v56  ;;  %12627 = vmatpush3.bf16.msra.mxu0 %v7685_v44 }
 0x606   : > { %v6766_v32 = vcombine.high %v6733_v7, %v6748_v57  ;;  %v17043_v19 = vrot.slane %v6750_v12, %v14561_v56  ;;  %12658 = vmatprep.subr.bf16.mxu1 %v7689_v42  ;;  %v17047_v61 = vrot.slane %v6765_v26, %v14561_v56  ;;  %v7191_v63 = vcombine.low %v7174_v48, %v7182_v25  ;;  %v19530_v26 = vld [vmem:[#allocation57_spill] sm:$0xff] }
 0x607   : > { %v6814_v34 = vrot.slane %v6800_v40, %v14551_v39  ;;  %v6815_v43 = vcombine.low %v6792_v23, %v6807_v16  ;;  %v6816_v21 = vcombine.high %v6792_v23, %v6807_v16  ;;  %v17053_v53 = vrot.slane %v7183_v59, %v14561_v56  ;;  %12659 = vmatpush3.bf16.msra.mxu1 %v7689_v42  ;;  %v19529_v42 = vld [vmem:[#allocation42_spill] sm:$0xff] }
 0x608   : > { %v17050_v36 = vrot.slane %v6766_v32, %v14561_v56  ;;  %v7551_v41 = vcombine.low %v17040_v3, %v17043_v19  ;;  %v12218_v20 = vcombine.high %v17040_v3, %v17043_v19  ;;  %v17080_v11 = vrot.slane %v7191_v63, %v14561_v56 }
 0x609   : > { %v17056_v7 = vrot.slane %v6815_v43, %v14561_v56  ;;  %v17059_v6 = vrot.slane %v6816_v21, %v14561_v56  ;;  %v6831_v38 = vcombine.low %v6799_v60, %v6814_v34  ;;  %v6832_v23 = vcombine.high %v6799_v60, %v6814_v34 }
 0x60a   : > { %v7567_v47 = vcombine.low %v17047_v61, %v17050_v36  ;;  %v12219_v48 = vcombine.high %v17047_v61, %v17050_v36  ;;  %v19527_v57 = vcombine.low %v16618_v52, %v16621_v31  ;;  %v19528_v12 = vcombine.high %v16618_v52, %v16621_v31 }
 0x60b   : > { %v17070_v35 = vrot.slane %v6831_v38, %v14561_v56  ;;  %v17073_v25 = vrot.slane %v6832_v23, %v14561_v56  ;;  %v7601_v60 = vcombine.low %v17056_v7, %v17059_v6  ;;  %v12220_v44 = vcombine.high %v17056_v7, %v17059_v6  ;;  %v19550_v6 = vld [vmem:[#allocation60_spill] sm:$0xff] }
 0x60c   : > { %v7208_v8 = vrot.slane %v19527_v57, %v14551_v39  ;;  %v7216_v40 = vrot.slane %v19528_v12, %v14551_v39  ;;  %v7217_v16 = vcombine.low %v16632_v28, %v16635_v0  ;;  %v12205_v59 = vcombine.high %v16632_v28, %v16635_v0 }
 0x60d   : > { %v3312_v32 = vcombine.high %v19530_v26, %v19529_v42  ;;  %v3362_v34 = vcombine.high %v16580_v29, %v16583_v24  ;;  %v19531_v43 = vcombine.low %v16705_v4, %v16708_v62  ;;  %v7199_v52 = vcombine.low %v17053_v53, %v17080_v11 }
 0x60e   : > { %v7224_v31 = vrot.slane %v7217_v16, %v14551_v39  ;;  %v7233_v63 = vcombine.low %v7208_v8, %v7216_v40  ;;  %v19532_v28 = vcombine.high %v16705_v4, %v16708_v62  ;;  %v7232_v38 = vrot.slane %v12205_v59, %v14551_v39 }
 0x60f   : > { %v7258_v21 = vrot.slane %v19531_v43, %v14551_v39  ;;  %v3455_v23 = vpack.i.b16 %v3362_v34, %v3312_v32  ;;  %v19533_v29 = vcombine.low %v16721_v27, %v16724_v14  ;;  %v19534_v57 = vcombine.high %v16721_v27, %v16724_v14  ;;  %v19537_v14 = vld [vmem:[#allocation49_spill] sm:$0xff] }
 0x610   : > { %v7266_v0 = vrot.slane %v19532_v28, %v14551_v39  ;;  %v17119_v8 = vrot.slane %v7233_v63, %v14561_v56  ;;  %v7703_v40 = vshrl.u32 %v7199_v52, 16  ;;  %v19535_v4 = vcombine.low %v16731_v18, %v16734_v45 }
 0x611   : > { %v7274_v24 = vrot.slane %v19533_v29, %v14551_v39  ;;  %v7282_v12 = vrot.slane %v19534_v57, %v14551_v39  ;;  %v7241_v59 = vcombine.low %v7224_v31, %v7232_v38  ;;  %12587 = vmatmul.mubr.msk.bf16.gmra.mrb[60].mxu0 %vm7779_vm0, %v3455_v23  ;;  %v19536_v26 = vcombine.high %v16731_v18, %v16734_v45 }
 0x612   : > { %v7283_v16 = vcombine.low %v7258_v21, %v7266_v0  ;;  %v7308_v62 = vrot.slane %v19535_v4, %v14551_v39  ;;  %v7317_v43 = vcombine.low %v19537_v14, %v16749_v2  ;;  %v12209_v21 = vcombine.high %v19537_v14, %v16749_v2 }
 0x613   : > { %v7291_v42 = vcombine.low %v7274_v24, %v7282_v12  ;;  %v7316_v27 = vrot.slane %v19536_v26, %v14551_v39  ;;  %v3456_v28 = vshrl.u32 %v3312_v32, 16  ;;  %v3457_v0 = vshrl.u32 %v3362_v34, 16 }
 0x614   : > { %v17133_v63 = vrot.slane %v7283_v16, %v14561_v56  ;;  %v17138_v31 = vrot.slane %v7241_v59, %v14561_v56  ;;  %v7324_v18 = vrot.slane %v7317_v43, %v14551_v39  ;;  %v7332_v23 = vrot.slane %v12209_v21, %v14551_v39 }
 0x615   : > { %v17141_v38 = vrot.slane %v7291_v42, %v14561_v56  ;;  %v7333_v45 = vcombine.low %v7308_v62, %v7316_v27  ;;  %v3458_v29 = vpack.i.b16 %v3457_v0, %v3456_v28  ;;  %v19538_v24 = vcombine.low %v16803_v9, %v16806_v46 }
 0x616   : > { %v19539_v2 = vcombine.high %v16803_v9, %v16806_v46  ;;  %v7249_v34 = vcombine.low %v17119_v8, %v17138_v31  ;;  %v19540_v4 = vcombine.low %v16814_v55, %v16817_v17  ;;  %v7341_v59 = vcombine.low %v7324_v18, %v7332_v23 }
 0x617   : > { %v7358_v57 = vrot.slane %v19538_v24, %v14551_v39  ;;  %v7299_v12 = vcombine.low %v17133_v63, %v17141_v38  ;;  %v17158_v16 = vrot.slane %v7333_v45, %v14561_v56  ;;  %12619 = vmatmul.mubr.msk.bf16.gmra.mrb[44].mxu1 %vm7779_vm0, %v3458_v29  ;;  %v19541_v9 = vcombine.high %v16814_v55, %v16817_v17 }
 0x618   : > { %v7366_v32 = vrot.slane %v19539_v2, %v14551_v39  ;;  %v7374_v62 = vrot.slane %v19540_v4, %v14551_v39  ;;  %v19542_v26 = vcombine.low %v16820_v10, %v16823_v22  ;;  %v7701_v14 = vpack.i.b16 %v7249_v34, %v7199_v52 }
 0x619   : > { %v7382_v46 = vrot.slane %v19541_v9, %v14551_v39  ;;  %v7704_v43 = vshrl.u32 %v7249_v34, 16  ;;  %v7719_v21 = vshrl.u32 %v7299_v12, 16  ;;  %v19543_v28 = vcombine.high %v16820_v10, %v16823_v22 }
 0x61a   : > { %v7383_v42 = vcombine.low %v7358_v57, %v7366_v32  ;;  %v7408_v27 = vrot.slane %v19542_v26, %v14551_v39  ;;  %v17178_v18 = vrot.slane %v7341_v59, %v14561_v56  ;;  %v7417_v45 = vcombine.low %v16831_v54, %v16842_v49  ;;  %12628 = vmatprep.subr.bf16.mxu0 %v7701_v14 }
 0x61b   : > { %v7416_v0 = vrot.slane %v19543_v28, %v14551_v39  ;;  %v7391_v17 = vcombine.low %v7374_v62, %v7382_v46  ;;  %v7705_v23 = vpack.i.b16 %v7704_v43, %v7703_v40  ;;  %v12213_v52 = vcombine.high %v16831_v54, %v16842_v49  ;;  %12629 = vmatpush3.bf16.msra.mxu0 %v7701_v14 }
 0x61c   : > { %v17181_v55 = vrot.slane %v7383_v42, %v14561_v56  ;;  %v19544_v10 = vcombine.low %v16925_v15, %v16928_v1  ;;  %v7349_v24 = vcombine.low %v17158_v16, %v17178_v18  ;;  %v7424_v2 = vrot.slane %v7417_v45, %v14551_v39 }
 0x61d   : > { %v7433_v29 = vcombine.low %v7408_v27, %v7416_v0  ;;  %v17194_v57 = vrot.slane %v7391_v17, %v14561_v56  ;;  %v19545_v40 = vcombine.high %v16925_v15, %v16928_v1  ;;  %12660 = vmatprep.subr.bf16.mxu1 %v7705_v23  ;;  %v7432_v49 = vrot.slane %v12213_v52, %v14551_v39 }
 0x61e   : > { %v7458_v22 = vrot.slane %v19544_v10, %v14551_v39  ;;  %v19546_v34 = vcombine.low %v16940_v30, %v16943_v37  ;;  %v19547_v62 = vcombine.high %v16940_v30, %v16943_v37  ;;  %12661 = vmatpush3.bf16.msra.mxu1 %v7705_v23  ;;  %v7717_v9 = vpack.i.b16 %v7349_v24, %v7299_v12 }
 0x61f   : > { %v7466_v54 = vrot.slane %v19545_v40, %v14551_v39  ;;  %v17203_v32 = vrot.slane %v7433_v29, %v14561_v56  ;;  %v7720_v15 = vshrl.u32 %v7349_v24, 16  ;;  %v7399_v1 = vcombine.low %v17181_v55, %v17194_v57 }
 0x620   : > { %v7474_v4 = vrot.slane %v19546_v34, %v14551_v39  ;;  %v7482_v59 = vrot.slane %v19547_v62, %v14551_v39  ;;  %v7441_v42 = vcombine.low %v7424_v2, %v7432_v49  ;;  %v19548_v27 = vcombine.low %v16946_v58, %v16950_v13  ;;  %12630 = vmatprep.subr.bf16.mxu0 %v7717_v9 }
 0x621   : > { %v7483_v46 = vcombine.low %v7458_v22, %v7466_v54  ;;  %v19549_v43 = vcombine.high %v16946_v58, %v16950_v13  ;;  %v7721_v37 = vpack.i.b16 %v7720_v15, %v7719_v21  ;;  %v7735_v12 = vshrl.u32 %v7399_v1, 16  ;;  %12631 = vmatpush3.bf16.msra.mxu0 %v7717_v9  ;;  %v19552_v9 = vld [vmem:[#allocation43_spill] sm:$0xff]  ;;  %v19553_v15 = vld [vmem:[#allocation62_spill] sm:$0xff] }
 0x622   : > { %v7491_v26 = vcombine.low %v7474_v4, %v7482_v59  ;;  %v7508_v14 = vrot.slane %v19548_v27, %v14551_v39  ;;  %v7517_v0 = vcombine.low %v16961_v33, %v16972_v50  ;;  %v17229_v17 = vrot.slane %v7441_v42, %v14561_v56  ;;  %v19554_v42 = vld [vmem:[#allocation44_spill] sm:$0xff] }
 0x623   : > { %v7516_v30 = vrot.slane %v19549_v43, %v14551_v39  ;;  %v17224_v28 = vrot.slane %v7483_v46, %v14561_v56  ;;  %v12217_v58 = vcombine.high %v16961_v33, %v16972_v50  ;;  %12662 = vmatprep.subr.bf16.mxu1 %v7721_v37  ;;  %v7558_v23 = vrot.slane %v7551_v41, %v14551_v39 }
 0x624   : > { %v17232_v45 = vrot.slane %v7491_v26, %v14561_v56  ;;  %v7524_v21 = vrot.slane %v7517_v0, %v14551_v39  ;;  %v7566_v52 = vrot.slane %v12218_v20, %v14551_v39  ;;  %v7574_v29 = vrot.slane %v7567_v47, %v14551_v39  ;;  %12663 = vmatpush3.bf16.msra.mxu1 %v7721_v37  ;;  %v19555_v26 = vld [vmem:[#allocation50_spill] sm:$0xff] }
 0x625   : > { %v7533_v13 = vcombine.low %v7508_v14, %v7516_v30  ;;  %v7449_v33 = vcombine.low %v17203_v32, %v17229_v17  ;;  %v7532_v10 = vrot.slane %v12217_v58, %v14551_v39  ;;  %v7582_v3 = vrot.slane %v12219_v48, %v14551_v39  ;;  %v19557_v58 = vld [vmem:[#allocation47_spill] sm:$0xff] }
 0x626   : > { %v7499_v50 = vcombine.low %v17224_v28, %v17232_v45  ;;  %v7583_v19 = vcombine.low %v7558_v23, %v7566_v52  ;;  %v7608_v20 = vrot.slane %v7601_v60, %v14551_v39  ;;  %v7616_v47 = vrot.slane %v12220_v44, %v14551_v39  ;;  %v19551_v44 = vld [vmem:[#allocation61_spill] sm:$0xff]  ;;  %v19560_v52 = vld [vmem:[#allocation46_spill] sm:$0xff] }
 0x627   : > { %v17255_v41 = vrot.slane %v7533_v13, %v14561_v56  ;;  %v7733_v22 = vpack.i.b16 %v7449_v33, %v7399_v1  ;;  %v7736_v24 = vshrl.u32 %v7449_v33, 16  ;;  %v7541_v2 = vcombine.low %v7524_v21, %v7532_v10  ;;  %v19558_v13 = vld [vmem:[#allocation63_spill] sm:$0xff]  ;;  %v19559_v23 = vld [vmem:[#allocation17_spill] sm:$0xff] }
 0x628   : > { %v7751_v40 = vshrl.u32 %v7499_v50, 16  ;;  %v17270_v54 = vrot.slane %v7583_v19, %v14561_v56  ;;  %v7591_v61 = vcombine.low %v7574_v29, %v7582_v3  ;;  %v7617_v36 = vcombine.low %v17070_v35, %v17073_v25 }
 0x629   : > { %v12221_v48 = vcombine.high %v17070_v35, %v17073_v25  ;;  %12632 = vmatprep.subr.bf16.mxu0 %v7733_v22  ;;  %v7737_v60 = vpack.i.b16 %v7736_v24, %v7735_v12  ;;  %v7548_v49 = vrot.slane %v7541_v2, %v14561_v56  ;;  %v7633_v7 = vcombine.low %v7608_v20, %v7616_v47 }
 0x62a   : > { %v6900_v34 = vcombine.high %v19551_v44, %v19550_v6  ;;  %12633 = vmatpush3.bf16.msra.mxu0 %v7733_v22  ;;  %v7598_v4 = vrot.slane %v7591_v61, %v14561_v56  ;;  %v7624_v62 = vrot.slane %v7617_v36, %v14551_v39  ;;  %v6950_v1 = vcombine.high %v19553_v15, %v19552_v9 }
 0x62b   : > { %v7632_v59 = vrot.slane %v12221_v48, %v14551_v39  ;;  %12664 = vmatprep.subr.bf16.mxu1 %v7737_v60  ;;  %v7549_v35 = vcombine.low %v17255_v41, %v7548_v49  ;;  %v7640_v25 = vrot.slane %v7633_v7, %v14561_v56  ;;  %v7000_v27 = vcombine.high %v19555_v26, %v19554_v42 }
 0x62c   : > { %v7663_v46 = vshrl.u32 %v6900_v34, 16  ;;  %12665 = vmatpush3.bf16.msra.mxu1 %v7737_v60  ;;  %v7599_v14 = vcombine.low %v17270_v54, %v7598_v4  ;;  %v17289_v30 = vpack.i.b16 %v6950_v1, %v6900_v34  ;;  %v7664_v37 = vshrl.u32 %v6950_v1, 16 }
 0x62d   : > { %v7641_v43 = vcombine.low %v7624_v62, %v7632_v59  ;;  %v7749_v12 = vpack.i.b16 %v7549_v35, %v7499_v50  ;;  %v7752_v0 = vshrl.u32 %v7549_v35, 16  ;;  %v7050_v21 = vcombine.high %v19558_v13, %v19557_v58 }
 0x62e   : > { %19556 = vst [vmem:[#allocation19_spill] sm:$0xff] %v17289_v30  ;;  %v7100_v29 = vcombine.high %v19560_v52, %v19559_v23  ;;  %v7767_v10 = vshrl.u32 %v7599_v14, 16  ;;  %v17296_v3 = vpack.i.b16 %v7664_v37, %v7663_v46  ;;  %v7150_v19 = vcombine.high %v16992_v5, %v17007_v51 }
 0x62f   : > { %v7648_v33 = vrot.slane %v7641_v43, %v14561_v56  ;;  %12634 = vmatprep.subr.bf16.mxu0 %v7749_v12  ;;  %v7753_v20 = vpack.i.b16 %v7752_v0, %v7751_v40  ;;  %v17300_v47 = vpack.i.b16 %v7050_v21, %v7000_v27  ;;  %v7200_v50 = vcombine.high %v17053_v53, %v17080_v11 }
 0x630   : > { %19561 = vst [vmem:[#allocation16_spill] sm:$0xff] %v17296_v3  ;;  %v7250_v22 = vcombine.high %v17119_v8, %v17138_v31  ;;  %12635 = vmatpush3.bf16.msra.mxu0 %v7749_v12  ;;  %v17306_v2 = vpack.i.b16 %v7150_v19, %v7100_v29  ;;  %v7679_v61 = vshrl.u32 %v7000_v27, 16  ;;  %v7680_v36 = vshrl.u32 %v7050_v21, 16 }
 0x631   : > { %19562 = vst [vmem:[#allocation21_spill] sm:$0xff] %v17300_v47  ;;  %v7649_v24 = vcombine.low %v7640_v25, %v7648_v33  ;;  %12666 = vmatprep.subr.bf16.mxu1 %v7753_v20  ;;  %v7300_v5 = vcombine.high %v17133_v63, %v17141_v38  ;;  %v7350_v51 = vcombine.high %v17158_v16, %v17178_v18  ;;  %v7695_v40 = vshrl.u32 %v7100_v29, 16 }
 0x632   : > { %19563 = vst [vmem:[#allocation18_spill] sm:$0xff] %v17306_v2  ;;  %v17308_v48 = vpack.i.b16 %v7250_v22, %v7200_v50  ;;  %12667 = vmatpush3.bf16.msra.mxu1 %v7753_v20  ;;  %v17314_v8 = vpack.i.b16 %v7680_v36, %v7679_v61  ;;  %v7696_v31 = vshrl.u32 %v7150_v19, 16  ;;  %v7400_v7 = vcombine.high %v17181_v55, %v17194_v57 }
 0x633   : > { %v7765_v53 = vpack.i.b16 %v7649_v24, %v7599_v14  ;;  %v7768_v11 = vshrl.u32 %v7649_v24, 16  ;;  %v17316_v60 = vpack.i.b16 %v7350_v51, %v7300_v5  ;;  %v7450_v6 = vcombine.high %v17203_v32, %v17229_v17 }
 0x634   : > { %19564 = vst [vmem:[#allocation51_spill] sm:$0xff] %v17308_v48  ;;  %19565 = vst [vmem:[#allocation48_spill] sm:$0xff] %v17314_v8  ;;  %v7711_v44 = vshrl.u32 %v7200_v50, 16  ;;  %v17322_v38 = vpack.i.b16 %v7696_v31, %v7695_v40  ;;  %v7712_v16 = vshrl.u32 %v7250_v22, 16  ;;  %v7500_v18 = vcombine.high %v17224_v28, %v17232_v45 }
 0x635   : > { %19566 = vst [vmem:[#allocation45_spill] sm:$0xff] %v17316_v60  ;;  %12636 = vmatprep.subr.bf16.mxu0 %v7765_v53  ;;  %v7769_v63 = vpack.i.b16 %v7768_v11, %v7767_v10  ;;  %v17326_v34 = vpack.i.b16 %v7450_v6, %v7400_v7  ;;  %v7550_v62 = vcombine.high %v17255_v41, %v7548_v49  ;;  %v7727_v59 = vshrl.u32 %v7300_v5, 16 }
 0x636   : > { %19567 = vst [vmem:[#allocation26_spill] sm:$0xff] %v17322_v38  ;;  %12637 = vmatpush3.bf16.msra.mxu0 %v7765_v53  ;;  %v7728_v9 = vshrl.u32 %v7350_v51, 16  ;;  %v17330_v55 = vpack.i.b16 %v7712_v16, %v7711_v44  ;;  %v7600_v57 = vcombine.high %v17270_v54, %v7598_v4  ;;  %v7650_v32 = vcombine.high %v7640_v25, %v7648_v33  ;;  %v17346_v4 = vpop.f32.mrb[32].mxu0  ;;  %v17353_v14 = vpop.f32.mrb[16].mxu1 }
 0x637   : > { %19568 = vst [vmem:[#allocation23_spill] sm:$0xff] %v17326_v34  ;;  %12668 = vmatprep.subr.bf16.mxu1 %v7769_v63  ;;  %12686 = vmatprep.subr.bf16.mxu0 %v17289_v30  ;;  %v7743_v17 = vshrl.u32 %v7400_v7, 16  ;;  %v17333_v15 = vpack.i.b16 %v7550_v62, %v7500_v18  ;;  %v7744_v45 = vshrl.u32 %v7450_v6, 16  ;;  %v7759_v1 = vshrl.u32 %v7500_v18, 16  ;;  %v17349_v25 = vpop.f32.mrb[33].mxu0  ;;  %v17355_v43 = vpop.f32.mrb[17].mxu1 }
 0x638   : > { %19569 = vst [vmem:[#allocation58_spill] sm:$0xff] %v17330_v55  ;;  %12669 = vmatpush3.bf16.msra.mxu1 %v7769_v63  ;;  %v17335_v28 = vpack.i.b16 %v7728_v9, %v7727_v59  ;;  %v17338_v41 = vpack.i.b16 %v7650_v32, %v7600_v57  ;;  %v7760_v49 = vshrl.u32 %v7550_v62, 16  ;;  %v7775_v35 = vshrl.u32 %v7600_v57, 16  ;;  %8364 = vmax.xlane.f32.xlu0 %v17346_v4  ;;  %v17351_v27 = vpop.f32.mrb[34].mxu0  ;;  %v17360_v12 = vpop.f32.mrb[18].mxu1 }
 0x639   : > { %19570 = vst [vmem:[#allocation59_spill] sm:$0xff] %v17333_v15  ;;  %12718 = vmatprep.subr.bf16.mxu1 %v17296_v3  ;;  %v7776_v46 = vshrl.u32 %v7650_v32, 16  ;;  %v17340_v42 = vpack.i.b16 %v7744_v45, %v7743_v17  ;;  %8366 = vmax.xlane.f32.xlu1 %v17351_v27  ;;  %v17358_v37 = vpop.f32.mrb[35].mxu0  ;;  %v17362_v0 = vpop.f32.mrb[19].mxu1 }
 0x63a   : > { %19571 = vst [vmem:[#allocation20_spill] sm:$0xff] %v17335_v28  ;;  %19572 = vst [vmem:[#allocation38_spill] sm:$0xff] %v17338_v41  ;;  %v17342_v26 = vpack.i.b16 %v7760_v49, %v7759_v1 }
 0x63b   : > { %19573 = vst [vmem:[#allocation31_spill] sm:$0xff] %v17340_v42  ;;  %v17344_v54 = vpack.i.b16 %v7776_v46, %v7775_v35 }
 0x63c   : > { %19574 = vst [vmem:[#allocation28_spill] sm:$0xff] %v17342_v26  ;;  %8360 = vmax.xlane.f32.xlu0 %v17349_v25 }
 0x63d   : > { %19575 = vst [vmem:[#allocation52_spill] sm:$0xff] %v17344_v54  ;;  %8362 = vmax.xlane.f32.xlu1 %v17358_v37 }
 0x640   : > { %8396 = vmax.xlane.f32.xlu0 %v17353_v14 }
 0x641   : > { %8398 = vmax.xlane.f32.xlu1 %v17360_v12 }
 0x644   : > { %8392 = vmax.xlane.f32.xlu0 %v17355_v43 }
 0x648   : > { %8394 = vmax.xlane.f32.xlu0 %v17362_v0 }
 0x64a   : > { %v17370_v58 = vpop.f32.mrb[36].mxu0 }
 0x64b   : > { %v17372_v13 = vpop.f32.mrb[37].mxu0 }
 0x64c   : > { %8372 = vmax.xlane.f32.xlu0 %v17370_v58  ;;  %v17375_v21 = vpop.f32.mrb[38].mxu0 }
 0x64d   : > { %v17377_v23 = vpop.f32.mrb[20].mxu1  ;;  %v17379_v52 = vpop.f32.mrb[39].mxu0  ;;  %8374 = vmax.xlane.f32.xlu1 %v17375_v21 }
 0x64e   : > { %v17381_v29 = vpop.f32.mrb[21].mxu1 }
 0x64f   : > { %v17384_v33 = vpop.f32.mrb[22].mxu1 }
 0x650   : > { %v17386_v10 = vpop.f32.mrb[23].mxu1  ;;  %8368 = vmax.xlane.f32.xlu0 %v17372_v13 }
 0x651   : > { %8370 = vmax.xlane.f32.xlu1 %v17379_v52 }
 0x654   : > { %8404 = vmax.xlane.f32.xlu0 %v17377_v23 }
 0x655   : > { %8406 = vmax.xlane.f32.xlu1 %v17384_v33 }
 0x657   : > { %v17391_v19 = vpop.f32.mrb[40].mxu0 }
 0x658   : > { %v17393_v20 = vpop.f32.mrb[41].mxu0  ;;  %8400 = vmax.xlane.f32.xlu0 %v17381_v29 }
 0x659   : > { %v17396_v50 = vpop.f32.mrb[42].mxu0  ;;  %v17398_v22 = vpop.f32.mrb[24].mxu1  ;;  %8402 = vmax.xlane.f32.xlu1 %v17386_v10 }
 0x65a   : > { %v17400_v24 = vpop.f32.mrb[43].mxu0  ;;  %v17402_v61 = vpop.f32.mrb[25].mxu1 }
 0x65b   : > { %v17405_v36 = vpop.f32.mrb[26].mxu1 }
 0x65c   : > { %v17407_v5 = vpop.f32.mrb[27].mxu1  ;;  %8380 = vmax.xlane.f32.xlu0 %v17391_v19 }
 0x65d   : > { %8382 = vmax.xlane.f32.xlu1 %v17396_v50 }
 0x660   : > { %8376 = vmax.xlane.f32.xlu0 %v17393_v20 }
 0x661   : > { %8378 = vmax.xlane.f32.xlu1 %v17400_v24 }
 0x664   : > { %8412 = vmax.xlane.f32.xlu0 %v17398_v22 }
 0x665   : > { %8414 = vmax.xlane.f32.xlu1 %v17405_v36 }
 0x668   : > { %8408 = vmax.xlane.f32.xlu0 %v17402_v61 }
 0x669   : > { %8410 = vmax.xlane.f32.xlu1 %v17407_v5 }
 0x697   : > { %v17418_v51 = vpop.f32.mrb[44].mxu0 }
 0x698   : > { %8388 = vmax.xlane.f32.xlu0 %v17418_v51  ;;  %v17421_v40 = vpop.f32.mrb[45].mxu0 }
 0x699   : > { %v17423_v53 = vpop.f32.mrb[46].mxu0  ;;  %v17425_v11 = vpop.f32.mrb[28].mxu1 }
 0x69a   : > { %v17427_v31 = vpop.f32.mrb[29].mxu1  ;;  %8390 = vmax.xlane.f32.xlu1 %v17423_v53  ;;  %v17430_v7 = vpop.f32.mrb[47].mxu0 }
 0x69b   : > { %v17432_v6 = vpop.f32.mrb[30].mxu1 }
 0x69c   : > { %v17434_v44 = vpop.f32.mrb[31].mxu1  ;;  %8384 = vmax.xlane.f32.xlu0 %v17421_v40 }
 0x69e   : > { %8386 = vmax.xlane.f32.xlu1 %v17430_v7 }
 0x69f   : > { %v17439_v63 = vpop.f32.mrb[48].mxu0 }
 0x6a0   : > { %8420 = vmax.xlane.f32.xlu0 %v17425_v11  ;;  %v17441_v16 = vpop.f32.mrb[49].mxu0 }
 0x6a1   : > { %v17444_v18 = vpop.f32.mrb[50].mxu0 }
 0x6a2   : > { %8422 = vmax.xlane.f32.xlu1 %v17432_v6  ;;  %v17446_v62 = vpop.f32.mrb[51].mxu0 }
 0x6a4   : > { %8416 = vmax.xlane.f32.xlu0 %v17427_v31 }
 0x6a6   : > { %8418 = vmax.xlane.f32.xlu1 %v17434_v44 }
 0x6a8   : > { %8428 = vmax.xlane.f32.xlu0 %v17439_v63 }
 0x6aa   : > { %8430 = vmax.xlane.f32.xlu1 %v17444_v18 }
 0x6ab   : > { %v17453_v59 = vpop.f32.mrb[32].mxu1 }
 0x6ac   : > { %8424 = vmax.xlane.f32.xlu0 %v17441_v16  ;;  %v17456_v9 = vpop.f32.mrb[33].mxu1 }
 0x6ad   : > { %v17458_v57 = vpop.f32.mrb[34].mxu1 }
 0x6ae   : > { %8426 = vmax.xlane.f32.xlu1 %v17446_v62  ;;  %v17461_v32 = vpop.f32.mrb[35].mxu1 }
 0x6b0   : > { %8460 = vmax.xlane.f32.xlu0 %v17453_v59 }
 0x6b2   : > { %8462 = vmax.xlane.f32.xlu1 %v17458_v57 }
 0x6b4   : > { %8456 = vmax.xlane.f32.xlu0 %v17456_v9 }
 0x6b5   : > { %v17466_v17 = vpop.f32.mrb[52].mxu0 }
 0x6b6   : > { %8458 = vmax.xlane.f32.xlu1 %v17461_v32  ;;  %v17468_v45 = vpop.f32.mrb[53].mxu0 }
 0x6b7   : > { %v17471_v1 = vpop.f32.mrb[54].mxu0 }
 0x6b8   : > { %8436 = vmax.xlane.f32.xlu0 %v17466_v17  ;;  %v17473_v49 = vpop.f32.mrb[55].mxu0 }
 0x6b9   : > { %19576 = vst [vmem:[#allocation29_spill] sm:$0xff] %v17473_v49 }
 0x6ba   : > { %8438 = vmax.xlane.f32.xlu1 %v17471_v1 }
 0x6bc   : > { %8432 = vmax.xlane.f32.xlu0 %v17468_v45 }
 0x6be   : > { %8434 = vmax.xlane.f32.xlu1 %v17473_v49 }
 0x6bf   : > { %v17478_v35 = vpop.f32.mrb[36].mxu1 }
 0x6c0   : > { %19577 = vst [vmem:[#allocation27_spill] sm:$0xff] %v17478_v35  ;;  %v17480_v46 = vpop.f32.mrb[37].mxu1  ;;  %8468 = vmax.xlane.f32.xlu0 %v17478_v35 }
 0x6c1   : > { %19578 = vst [vmem:[#allocation33_spill] sm:$0xff] %v17480_v46  ;;  %v17483_v56 = vpop.f32.mrb[38].mxu1 }
 0x6c2   : > { %19579 = vst [vmem:[#allocation40_spill] sm:$0xff] %v17483_v56  ;;  %v17485_v39 = vpop.f32.mrb[39].mxu1  ;;  %8470 = vmax.xlane.f32.xlu1 %v17483_v56 }
 0x6c3   : > { %19580 = vst [vmem:[#allocation32_spill] sm:$0xff] %v17485_v39 }
 0x6c4   : > { %8464 = vmax.xlane.f32.xlu0 %v17480_v46 }
 0x6c5   : > { %v8365_v54 = vpop.xlane.xlu0 %8364 }
 0x6c6   : > { %8466 = vmax.xlane.f32.xlu1 %v17485_v39  ;;  %v8367_v42 = vpop.xlane.xlu1 %8366 }
 0x6c7   : > { %v8491_v39 = vsub.f32 %v17351_v27, %v8367_v42 }
 0x6c9   : > { %v8361_v26 = vpop.xlane.xlu0 %8360 }
 0x6ca   : > { %v8363_v55 = vpop.xlane.xlu1 %8362  ;;  %v8488_v35 = vsub.f32 %v17349_v25, %v8361_v26 }
 0x6cc   : > { %v8552_v27 = vmul.f32 1.442695, %v8488_v35 }
 0x6cd   : > { %v8397_v28 = vpop.xlane.xlu0 %8396 }
 0x6ce   : > { %v8399_v47 = vpop.xlane.xlu1 %8398 }
 0x6d0   : > { %v17490_v41 = vpop.f32.mrb[56].mxu0 }
 0x6d1   : > { %19581 = vst [vmem:[#allocation39_spill] sm:$0xff] %v17490_v41  ;;  %v17492_v15 = vpop.f32.mrb[57].mxu0  ;;  %8444 = vmax.xlane.f32.xlu0 %v17490_v41  ;;  %v8393_v48 = vpop.xlane.xlu0 %8392 }
 0x6d2   : > { %19582 = vst [vmem:[#allocation41_spill] sm:$0xff] %v17492_v15  ;;  %v17495_v34 = vpop.f32.mrb[58].mxu0 }
 0x6d3   : > { %19583 = vst [vmem:[#allocation34_spill] sm:$0xff] %v17495_v34  ;;  %v17497_v38 = vpop.f32.mrb[59].mxu0  ;;  %8446 = vmax.xlane.f32.xlu1 %v17495_v34 }
 0x6d4   : > { %19584 = vst [vmem:[#allocation22_spill] sm:$0xff] %v17497_v38  ;;  %v17500_v60 = vpop.f32.mrb[40].mxu1 }
 0x6d5   : > { %19585 = vst [vmem:[#allocation54_spill] sm:$0xff] %v17500_v60  ;;  %v17502_v8 = vpop.f32.mrb[41].mxu1  ;;  %8440 = vmax.xlane.f32.xlu0 %v17492_v15  ;;  %v8395_v30 = vpop.xlane.xlu0 %8394  ;;  %v8490_v15 = vsub.f32 %v17346_v4, %v8365_v54  ;;  %v8558_v54 = vmul.f32 1.442695, %v8491_v39  ;;  %v8489_v4 = vsub.f32 %v17358_v37, %v8363_v55  ;;  %v8507_v55 = vsub.f32 %v17360_v12, %v8399_v47 }
 0x6d6   : > { %19586 = vst [vmem:[#allocation53_spill] sm:$0xff] %v17502_v8  ;;  %v17505_v3 = vpop.f32.mrb[42].mxu1  ;;  %v8505_v47 = vsub.f32 %v17362_v0, %v8395_v30 }
 0x6d7   : > { %19587 = vst [vmem:[#allocation56_spill] sm:$0xff] %v17505_v3  ;;  %v17507_v2 = vpop.f32.mrb[43].mxu1  ;;  %8442 = vmax.xlane.f32.xlu1 %v17497_v38  ;;  %v8554_v39 = vmul.f32 1.442695, %v8489_v4 }
 0x6d8   : > { %19588 = vst [vmem:[#allocation55_spill] sm:$0xff] %v17507_v2 }
 0x6d9   : > { %8476 = vmax.xlane.f32.xlu0 %v17500_v60  ;;  %v8373_v46 = vpop.xlane.xlu0 %8372 }
 0x6da   : > { %v8375_v34 = vpop.xlane.xlu1 %8374 }
 0x6db   : > { %8478 = vmax.xlane.f32.xlu1 %v17505_v3  ;;  %v8556_v3 = vmul.f32 1.442695, %v8490_v15 }
 0x6dd   : > { %8472 = vmax.xlane.f32.xlu0 %v17502_v8  ;;  %13177 = vpow2.f32 %v8556_v3  ;;  %v8369_v15 = vpop.xlane.xlu0 %8368  ;;  %v8504_v3 = vsub.f32 %v17355_v43, %v8393_v48 }
 0x6de   : > { %v8371_v38 = vpop.xlane.xlu1 %8370  ;;  %13179 = vpow2.f32 %v8558_v54 }
 0x6df   : > { %8474 = vmax.xlane.f32.xlu1 %v17507_v2  ;;  %13181 = vpow2.f32 %v8552_v27  ;;  %v8584_v54 = vmul.f32 1.442695, %v8504_v3 }
 0x6e0   : > { %13183 = vpow2.f32 %v8554_v39 }
 0x6e2   : > { %v8407_v26 = vpop.xlane.xlu1 %8406 }
 0x6e3   : > { %v8511_v39 = vsub.f32 %v17384_v33, %v8407_v26 }
 0x6e4   : > { %v17515_v41 = vpop.f32.mrb[60].mxu0 }
 0x6e5   : > { %19589 = vst [vmem:[#allocation30_spill] sm:$0xff] %v17515_v41  ;;  %v17518_v56 = vpop.f32.mrb[61].mxu0  ;;  %8452 = vmax.xlane.f32.xlu0 %v17515_v41  ;;  %v8506_v41 = vsub.f32 %v17353_v14, %v8397_v28  ;;  %v8590_v28 = vmul.f32 1.442695, %v8507_v55  ;;  %v8495_v14 = vsub.f32 %v17375_v21, %v8375_v34  ;;  %v8586_v34 = vmul.f32 1.442695, %v8505_v47 }
 0x6e6   : > { %v17521_v60 = vpop.f32.mrb[62].mxu0  ;;  %v8403_v35 = vpop.xlane.xlu1 %8402  ;;  %v8494_v21 = vsub.f32 %v17370_v58, %v8373_v46  ;;  %v8492_v55 = vsub.f32 %v17372_v13, %v8369_v15  ;;  %v8598_v46 = vmul.f32 1.442695, %v8511_v39 }
 0x6e7   : > { %v17524_v8 = vpop.f32.mrb[63].mxu0  ;;  %8454 = vmax.xlane.f32.xlu1 %v17521_v60  ;;  %v8588_v37 = vmul.f32 1.442695, %v8506_v41  ;;  %v17547_v12 = vpop.eup %13177  ;;  %v8566_v48 = vmul.f32 1.442695, %v8495_v14  ;;  %v8493_v41 = vsub.f32 %v17379_v52, %v8371_v38 }
 0x6e8   : > { %19590 = vst [vmem:[#allocation36_spill] sm:$0xff] %v17524_v8  ;;  %v17551_v43 = vpop.eup %13179  ;;  %v8564_v52 = vmul.f32 1.442695, %v8494_v21  ;;  %v8560_v26 = vmul.f32 1.442695, %v8492_v55 }
 0x6e9   : > { %8448 = vmax.xlane.f32.xlu0 %v17518_v56  ;;  %13185 = vpow2.f32 %v8588_v37  ;;  %v17555_v30 = vpop.eup %13181  ;;  %v8562_v0 = vmul.f32 1.442695, %v8493_v41  ;;  %v8509_v37 = vsub.f32 %v17386_v10, %v8403_v35 }
 0x6ea   : > { %v17528_v2 = vpop.f32.mrb[44].mxu1  ;;  %13187 = vpow2.f32 %v8590_v28  ;;  %v8383_v4 = vpop.xlane.xlu1 %8382 }
 0x6eb   : > { %v17531_v42 = vpop.f32.mrb[45].mxu1  ;;  %8450 = vmax.xlane.f32.xlu1 %v17524_v8  ;;  %v8405_v8 = vpop.xlane.xlu0 %8404  ;;  %13189 = vpow2.f32 %v8584_v54  ;;  %v8594_v15 = vmul.f32 1.442695, %v8509_v37  ;;  %v8499_v54 = vsub.f32 %v17396_v50, %v8383_v4 }
 0x6ec   : > { %v17534_v49 = vpop.f32.mrb[46].mxu1  ;;  %13191 = vpow2.f32 %v8566_v48  ;;  %v17559_v38 = vpop.eup %13183  ;;  %v8510_v14 = vsub.f32 %v17377_v23, %v8405_v8 }
 0x6ed   : > { %v17537_v25 = vpop.f32.mrb[47].mxu1  ;;  %8484 = vmax.xlane.f32.xlu0 %v17528_v2  ;;  %13193 = vpow2.f32 %v8586_v34  ;;  %v8574_v23 = vmul.f32 1.442695, %v8499_v54 }
 0x6ee   : > { %13195 = vpow2.f32 %v8562_v0  ;;  %v8379_v3 = vpop.xlane.xlu1 %8378  ;;  %v8596_v35 = vmul.f32 1.442695, %v8510_v14 }
 0x6ef   : > { %8486 = vmax.xlane.f32.xlu1 %v17534_v49  ;;  %v8401_v27 = vpop.xlane.xlu0 %8400  ;;  %13197 = vpow2.f32 %v8564_v52  ;;  %v8497_v34 = vsub.f32 %v17400_v24, %v8379_v3 }
 0x6f0   : > { %13199 = vpow2.f32 %v8598_v46  ;;  %v8508_v47 = vsub.f32 %v17381_v29, %v8401_v27 }
 0x6f1   : > { %8480 = vmax.xlane.f32.xlu0 %v17531_v42  ;;  %13201 = vpow2.f32 %v8560_v26  ;;  %v8570_v27 = vmul.f32 1.442695, %v8497_v34 }
 0x6f2   : > { %v8415_v48 = vpop.xlane.xlu1 %8414  ;;  %13203 = vpow2.f32 %v8594_v15  ;;  %v8592_v21 = vmul.f32 1.442695, %v8508_v47 }
 0x6f3   : > { %8482 = vmax.xlane.f32.xlu1 %v17537_v25  ;;  %v17563_v58 = vpop.eup %13185  ;;  %v8381_v28 = vpop.xlane.xlu0 %8380  ;;  %13205 = vpow2.f32 %v8596_v35  ;;  %v8515_v0 = vsub.f32 %v17405_v36, %v8415_v48 }
 0x6f4   : > { %v17567_v33 = vpop.eup %13187  ;;  %v8498_v4 = vsub.f32 %v17391_v19, %v8381_v28  ;;  %13207 = vpow2.f32 %v8574_v23 }
 0x6f5   : > { %8684 = vadd.xlane.f32.xlu0 %v17547_v12  ;;  %v17571_v13 = vpop.eup %13189  ;;  %13209 = vpow2.f32 %v8592_v21  ;;  %v8606_v37 = vmul.f32 1.442695, %v8515_v0 }
 0x6f6   : > { %v17575_v10 = vpop.eup %13191  ;;  %v8411_v39 = vpop.xlane.xlu1 %8410  ;;  %v8572_v55 = vmul.f32 1.442695, %v8498_v4  ;;  %13211 = vpow2.f32 %v8570_v27 }
 0x6f7   : > { %8686 = vadd.xlane.f32.xlu1 %v17551_v43  ;;  %v8377_v41 = vpop.xlane.xlu0 %8376  ;;  %v17579_v8 = vpop.eup %13193  ;;  %v8513_v3 = vsub.f32 %v17407_v5, %v8411_v39 }
 0x6f8   : > { %v17583_v50 = vpop.eup %13195  ;;  %v8496_v46 = vsub.f32 %v17393_v20, %v8377_v41  ;;  %13213 = vpow2.f32 %v8572_v55 }
 0x6f9   : > { %8680 = vadd.xlane.f32.xlu0 %v17555_v30  ;;  %v17587_v29 = vpop.eup %13197  ;;  %13215 = vpow2.f32 %v8606_v37  ;;  %v8602_v15 = vmul.f32 1.442695, %v8513_v3 }
 0x6fa   : > { %v17591_v24 = vpop.eup %13199  ;;  %v8568_v28 = vmul.f32 1.442695, %v8496_v46 }
 0x6fb   : > { %8682 = vadd.xlane.f32.xlu1 %v17559_v38  ;;  %v8413_v52 = vpop.xlane.xlu0 %8412  ;;  %v17595_v19 = vpop.eup %13201 }
 0x6fc   : > { %v17599_v36 = vpop.eup %13203  ;;  %v8514_v26 = vsub.f32 %v17398_v22, %v8413_v52  ;;  %13217 = vpow2.f32 %v8568_v28 }
 0x6fd   : > { %8716 = vadd.xlane.f32.xlu0 %v17563_v58  ;;  %v17603_v20 = vpop.eup %13205  ;;  %13219 = vpow2.f32 %v8602_v15 }
 0x6fe   : > { %v17606_v54 = vpop.eup %13207  ;;  %v8604_v5 = vmul.f32 1.442695, %v8514_v26 }
 0x6ff   : > { %8718 = vadd.xlane.f32.xlu1 %v17567_v33  ;;  %v8409_v14 = vpop.xlane.xlu0 %8408  ;;  %v17610_v47 = vpop.eup %13209 }
 0x700   : > { %v8512_v35 = vsub.f32 %v17402_v61, %v8409_v14  ;;  %v17613_v22 = vpop.eup %13211  ;;  %13221 = vpow2.f32 %v8604_v5 }
 0x701   : > { %8712 = vadd.xlane.f32.xlu0 %v17571_v13 }
 0x702   : > { %v8600_v48 = vmul.f32 1.442695, %v8512_v35  ;;  %v17616_v41 = vpop.eup %13213 }
 0x703   : > { %8694 = vadd.xlane.f32.xlu1 %v17575_v10  ;;  %v17619_v23 = vpop.eup %13215 }
 0x704   : > { %13223 = vpow2.f32 %v8600_v48 }
 0x705   : > { %8714 = vadd.xlane.f32.xlu0 %v17579_v8 }
 0x706   : > { %v17622_v61 = vpop.eup %13217 }
 0x707   : > { %8690 = vadd.xlane.f32.xlu1 %v17583_v50  ;;  %v17625_v34 = vpop.eup %13219 }
 0x709   : > { %8692 = vadd.xlane.f32.xlu0 %v17587_v29 }
 0x70a   : > { %v17628_v21 = vpop.eup %13221 }
 0x70b   : > { %8726 = vadd.xlane.f32.xlu1 %v17591_v24 }
 0x70d   : > { %8688 = vadd.xlane.f32.xlu0 %v17595_v19 }
 0x70e   : > { %v17631_v4 = vpop.eup %13223 }
 0x70f   : > { %8722 = vadd.xlane.f32.xlu1 %v17599_v36 }
 0x711   : > { %8724 = vadd.xlane.f32.xlu0 %v17603_v20 }
 0x713   : > { %8702 = vadd.xlane.f32.xlu1 %v17606_v54 }
 0x715   : > { %8720 = vadd.xlane.f32.xlu0 %v17610_v47 }
 0x717   : > { %8698 = vadd.xlane.f32.xlu1 %v17613_v22 }
 0x719   : > { %8700 = vadd.xlane.f32.xlu0 %v17616_v41 }
 0x71b   : > { %8734 = vadd.xlane.f32.xlu1 %v17619_v23 }
 0x71d   : > { %8696 = vadd.xlane.f32.xlu0 %v17622_v61 }
 0x71f   : > { %8730 = vadd.xlane.f32.xlu1 %v17625_v34 }
 0x721   : > { %8732 = vadd.xlane.f32.xlu0 %v17628_v21 }
 0x725   : > { %8728 = vadd.xlane.f32.xlu0 %v17631_v4  ;;  %v8389_v27 = vpop.xlane.xlu0 %8388 }
 0x726   : > { %v8502_v0 = vsub.f32 %v17418_v51, %v8389_v27 }
 0x727   : > { %v8391_v39 = vpop.xlane.xlu1 %8390 }
 0x728   : > { %v8580_v52 = vmul.f32 1.442695, %v8502_v0  ;;  %v8503_v55 = vsub.f32 %v17423_v53, %v8391_v39 }
 0x729   : > { %v8385_v46 = vpop.xlane.xlu0 %8384 }
 0x72a   : > { %13225 = vpow2.f32 %v8580_v52  ;;  %v8582_v37 = vmul.f32 1.442695, %v8503_v55  ;;  %v8500_v3 = vsub.f32 %v17421_v40, %v8385_v46 }
 0x72b   : > { %v8387_v28 = vpop.xlane.xlu1 %8386 }
 0x72c   : > { %13227 = vpow2.f32 %v8582_v37  ;;  %v8576_v26 = vmul.f32 1.442695, %v8500_v3  ;;  %v8501_v14 = vsub.f32 %v17430_v7, %v8387_v28 }
 0x72d   : > { %v8421_v15 = vpop.xlane.xlu0 %8420 }
 0x72e   : > { %13229 = vpow2.f32 %v8576_v26  ;;  %v8578_v5 = vmul.f32 1.442695, %v8501_v14  ;;  %v8518_v35 = vsub.f32 %v17425_v11, %v8421_v15 }
 0x72f   : > { %v8423_v51 = vpop.xlane.xlu1 %8422 }
 0x730   : > { %13231 = vpow2.f32 %v8578_v5  ;;  %v8612_v48 = vmul.f32 1.442695, %v8518_v35  ;;  %v8519_v53 = vsub.f32 %v17432_v6, %v8423_v51 }
 0x731   : > { %v8417_v27 = vpop.xlane.xlu0 %8416 }
 0x732   : > { %13233 = vpow2.f32 %v8612_v48  ;;  %v8614_v0 = vmul.f32 1.442695, %v8519_v53  ;;  %v8516_v40 = vsub.f32 %v17427_v31, %v8417_v27 }
 0x733   : > { %v8419_v39 = vpop.xlane.xlu1 %8418 }
 0x734   : > { %v17641_v52 = vpop.eup %13225  ;;  %13235 = vpow2.f32 %v8614_v0  ;;  %v8608_v7 = vmul.f32 1.442695, %v8516_v40  ;;  %v8517_v55 = vsub.f32 %v17434_v44, %v8419_v39 }
 0x735   : > { %v8429_v46 = vpop.xlane.xlu0 %8428  ;;  %8708 = vadd.xlane.f32.xlu0 %v17641_v52 }
 0x736   : > { %v17645_v11 = vpop.eup %13227  ;;  %13237 = vpow2.f32 %v8608_v7  ;;  %v8610_v37 = vmul.f32 1.442695, %v8517_v55  ;;  %v8522_v6 = vsub.f32 %v17439_v63, %v8429_v46 }
 0x737   : > { %8710 = vadd.xlane.f32.xlu1 %v17645_v11  ;;  %v8431_v3 = vpop.xlane.xlu1 %8430 }
 0x738   : > { %v17649_v31 = vpop.eup %13229  ;;  %13239 = vpow2.f32 %v8610_v37  ;;  %v8620_v28 = vmul.f32 1.442695, %v8522_v6  ;;  %v8523_v26 = vsub.f32 %v17444_v18, %v8431_v3 }
 0x739   : > { %v8425_v14 = vpop.xlane.xlu0 %8424  ;;  %8704 = vadd.xlane.f32.xlu0 %v17649_v31 }
 0x73a   : > { %v17653_v44 = vpop.eup %13231  ;;  %13241 = vpow2.f32 %v8620_v28  ;;  %v8622_v15 = vmul.f32 1.442695, %v8523_v26  ;;  %v8520_v5 = vsub.f32 %v17441_v16, %v8425_v14 }
 0x73b   : > { %8706 = vadd.xlane.f32.xlu1 %v17653_v44  ;;  %v8427_v63 = vpop.xlane.xlu1 %8426 }
 0x73c   : > { %v17657_v35 = vpop.eup %13233  ;;  %13243 = vpow2.f32 %v8622_v15  ;;  %v8616_v51 = vmul.f32 1.442695, %v8520_v5  ;;  %v8521_v48 = vsub.f32 %v17446_v62, %v8427_v63 }
 0x73d   : > { %v8461_v53 = vpop.xlane.xlu0 %8460  ;;  %8740 = vadd.xlane.f32.xlu0 %v17657_v35 }
 0x73e   : > { %v17661_v18 = vpop.eup %13235  ;;  %13245 = vpow2.f32 %v8616_v51  ;;  %v8618_v27 = vmul.f32 1.442695, %v8521_v48  ;;  %v8538_v0 = vsub.f32 %v17453_v59, %v8461_v53 }
 0x73f   : > { %8742 = vadd.xlane.f32.xlu1 %v17661_v18  ;;  %v8463_v16 = vpop.xlane.xlu1 %8462 }
 0x740   : > { %v17665_v40 = vpop.eup %13237  ;;  %13247 = vpow2.f32 %v8618_v27  ;;  %v8652_v39 = vmul.f32 1.442695, %v8538_v0  ;;  %v8539_v7 = vsub.f32 %v17458_v57, %v8463_v16 }
 0x741   : > { %v8457_v55 = vpop.xlane.xlu0 %8456  ;;  %8736 = vadd.xlane.f32.xlu0 %v17665_v40 }
 0x742   : > { %v17669_v62 = vpop.eup %13239  ;;  %13249 = vpow2.f32 %v8652_v39  ;;  %v8654_v46 = vmul.f32 1.442695, %v8539_v7  ;;  %v8536_v37 = vsub.f32 %v17456_v9, %v8457_v55  ;;  %v19592_v7 = vld [vmem:[#allocation29_spill] sm:$0xff] }
 0x743   : > { %8738 = vadd.xlane.f32.xlu1 %v17669_v62  ;;  %v8459_v59 = vpop.xlane.xlu1 %8458 }
 0x744   : > { %v17673_v6 = vpop.eup %13241  ;;  %13251 = vpow2.f32 %v8654_v46  ;;  %v8648_v3 = vmul.f32 1.442695, %v8536_v37  ;;  %v8537_v28 = vsub.f32 %v17461_v32, %v8459_v59  ;;  %v19593_v59 = vld [vmem:[#allocation27_spill] sm:$0xff] }
 0x745   : > { %8748 = vadd.xlane.f32.xlu0 %v17673_v6  ;;  %v8437_v14 = vpop.xlane.xlu0 %8436 }
 0x746   : > { %v17677_v57 = vpop.eup %13243  ;;  %13253 = vpow2.f32 %v8648_v3  ;;  %v8650_v26 = vmul.f32 1.442695, %v8537_v28  ;;  %v8526_v9 = vsub.f32 %v17466_v17, %v8437_v14  ;;  %v19594_v14 = vld [vmem:[#allocation40_spill] sm:$0xff] }
 0x747   : > { %8750 = vadd.xlane.f32.xlu1 %v17677_v57  ;;  %v8439_v5 = vpop.xlane.xlu1 %8438 }
 0x748   : > { %v17680_v15 = vpop.eup %13245  ;;  %13255 = vpow2.f32 %v8650_v26  ;;  %v8628_v32 = vmul.f32 1.442695, %v8526_v9  ;;  %v8527_v51 = vsub.f32 %v17471_v1, %v8439_v5 }
 0x749   : > { %8744 = vadd.xlane.f32.xlu0 %v17680_v15  ;;  %v8433_v48 = vpop.xlane.xlu0 %8432 }
 0x74a   : > { %v17684_v63 = vpop.eup %13247  ;;  %13257 = vpow2.f32 %v8628_v32  ;;  %v8630_v27 = vmul.f32 1.442695, %v8527_v51  ;;  %v8524_v0 = vsub.f32 %v17468_v45, %v8433_v48  ;;  %v19595_v51 = vld [vmem:[#allocation33_spill] sm:$0xff] }
 0x74b   : > { %8746 = vadd.xlane.f32.xlu1 %v17684_v63  ;;  %v8435_v16 = vpop.xlane.xlu1 %8434 }
 0x74c   : > { %v17688_v53 = vpop.eup %13249  ;;  %13259 = vpow2.f32 %v8630_v27  ;;  %v8624_v39 = vmul.f32 1.442695, %v8524_v0  ;;  %v8525_v55 = vsub.f32 %v19592_v7, %v8435_v16 }
 0x74d   : > { %19591 = vst [vmem:[#allocation37_spill] sm:$0xff] %v17688_v53  ;;  %8780 = vadd.xlane.f32.xlu0 %v17688_v53  ;;  %v8469_v46 = vpop.xlane.xlu0 %8468 }
 0x74e   : > { %v17692_v17 = vpop.eup %13251  ;;  %13261 = vpow2.f32 %v8624_v39  ;;  %v8626_v37 = vmul.f32 1.442695, %v8525_v55  ;;  %v8542_v3 = vsub.f32 %v19593_v59, %v8469_v46  ;;  %v19597_v39 = vld [vmem:[#allocation32_spill] sm:$0xff] }
 0x74f   : > { %8782 = vadd.xlane.f32.xlu1 %v17692_v17  ;;  %v8471_v28 = vpop.xlane.xlu1 %8470 }
 0x750   : > { %v17696_v1 = vpop.eup %13253  ;;  %13263 = vpow2.f32 %v8626_v37  ;;  %v8660_v26 = vmul.f32 1.442695, %v8542_v3  ;;  %v8543_v9 = vsub.f32 %v19594_v14, %v8471_v28  ;;  %v19603_v14 = vld [vmem:[#allocation39_spill] sm:$0xff] }
 0x751   : > { %8776 = vadd.xlane.f32.xlu0 %v17696_v1  ;;  %v8465_v5 = vpop.xlane.xlu0 %8464 }
 0x752   : > { %v17700_v45 = vpop.eup %13255  ;;  %13265 = vpow2.f32 %v8660_v26  ;;  %v8662_v32 = vmul.f32 1.442695, %v8543_v9  ;;  %v8540_v48 = vsub.f32 %v19595_v51, %v8465_v5 }
 0x753   : > { %8778 = vadd.xlane.f32.xlu1 %v17700_v45  ;;  %v8467_v27 = vpop.xlane.xlu1 %8466 }
 0x754   : > { %v17705_v0 = vpop.eup %13257  ;;  %13267 = vpow2.f32 %v8662_v32  ;;  %v8656_v16 = vmul.f32 1.442695, %v8540_v48  ;;  %v8541_v7 = vsub.f32 %v19597_v39, %v8467_v27  ;;  %v19605_v48 = vld [vmem:[#allocation34_spill] sm:$0xff] }
 0x755   : > { %19596 = vst [vmem:[#allocation35_spill] sm:$0xff] %v17705_v0  ;;  %8756 = vadd.xlane.f32.xlu0 %v17705_v0 }
 0x756   : > { %v17709_v55 = vpop.eup %13259  ;;  %13269 = vpow2.f32 %v8656_v16  ;;  %v8658_v46 = vmul.f32 1.442695, %v8541_v7 }
 0x757   : > { %19598 = vst [vmem:[#allocation42_spill] sm:$0xff] %v17709_v55  ;;  %8758 = vadd.xlane.f32.xlu1 %v17709_v55  ;;  %v19610_v55 = vld [vmem:[#allocation56_spill] sm:$0xff] }
 0x758   : > { %v17712_v37 = vpop.eup %13261  ;;  %13271 = vpow2.f32 %v8658_v46  ;;  %v19607_v46 = vld [vmem:[#allocation41_spill] sm:$0xff] }
 0x759   : > { %19599 = vst [vmem:[#allocation57_spill] sm:$0xff] %v17712_v37  ;;  %8752 = vadd.xlane.f32.xlu0 %v17712_v37 }
 0x75a   : > { %v17715_v59 = vpop.eup %13263 }
 0x75b   : > { %19600 = vst [vmem:[#allocation49_spill] sm:$0xff] %v17715_v59  ;;  %8754 = vadd.xlane.f32.xlu1 %v17715_v59 }
 0x75c   : > { %v17718_v3 = vpop.eup %13265 }
 0x75d   : > { %19601 = vst [vmem:[#allocation60_spill] sm:$0xff] %v17718_v3  ;;  %8788 = vadd.xlane.f32.xlu0 %v17718_v3 }
 0x75e   : > { %v8445_v28 = vpop.xlane.xlu0 %8444  ;;  %v17721_v26 = vpop.eup %13267 }
 0x75f   : > { %19602 = vst [vmem:[#allocation61_spill] sm:$0xff] %v17721_v26  ;;  %v8530_v9 = vsub.f32 %v19603_v14, %v8445_v28  ;;  %8790 = vadd.xlane.f32.xlu1 %v17721_v26  ;;  %v19608_v14 = vld [vmem:[#allocation22_spill] sm:$0xff] }
 0x760   : > { %v8447_v5 = vpop.xlane.xlu1 %8446  ;;  %v17725_v32 = vpop.eup %13269 }
 0x761   : > { %19604 = vst [vmem:[#allocation43_spill] sm:$0xff] %v17725_v32  ;;  %v8636_v51 = vmul.f32 1.442695, %v8530_v9  ;;  %v8531_v27 = vsub.f32 %v19605_v48, %v8447_v5  ;;  %8784 = vadd.xlane.f32.xlu0 %v17725_v32  ;;  %v19609_v5 = vld [vmem:[#allocation54_spill] sm:$0xff] }
 0x762   : > { %v8441_v16 = vpop.xlane.xlu0 %8440  ;;  %v17729_v39 = vpop.eup %13271 }
 0x763   : > { %19606 = vst [vmem:[#allocation62_spill] sm:$0xff] %v17729_v39  ;;  %13273 = vpow2.f32 %v8636_v51  ;;  %v8638_v7 = vmul.f32 1.442695, %v8531_v27  ;;  %v8528_v3 = vsub.f32 %v19607_v46, %v8441_v16  ;;  %8786 = vadd.xlane.f32.xlu1 %v17729_v39  ;;  %v19611_v46 = vld [vmem:[#allocation53_spill] sm:$0xff] }
 0x764   : > { %v8443_v0 = vpop.xlane.xlu1 %8442 }
 0x765   : > { %13275 = vpow2.f32 %v8638_v7  ;;  %v8632_v28 = vmul.f32 1.442695, %v8528_v3  ;;  %v8529_v26 = vsub.f32 %v19608_v14, %v8443_v0  ;;  %v19612_v3 = vld [vmem:[#allocation55_spill] sm:$0xff] }
 0x766   : > { %v8477_v59 = vpop.xlane.xlu0 %8476 }
 0x767   : > { %13277 = vpow2.f32 %v8632_v28  ;;  %v8634_v9 = vmul.f32 1.442695, %v8529_v26  ;;  %v8546_v48 = vsub.f32 %v19609_v5, %v8477_v59 }
 0x768   : > { %v8479_v37 = vpop.xlane.xlu1 %8478 }
 0x769   : > { %13279 = vpow2.f32 %v8634_v9  ;;  %v8668_v32 = vmul.f32 1.442695, %v8546_v48  ;;  %v8547_v51 = vsub.f32 %v19610_v55, %v8479_v37  ;;  %v19613_v37 = vld [vmem:[#allocation30_spill] sm:$0xff] }
 0x76a   : > { %v8473_v27 = vpop.xlane.xlu0 %8472 }
 0x76b   : > { %13281 = vpow2.f32 %v8668_v32  ;;  %v8670_v16 = vmul.f32 1.442695, %v8547_v51  ;;  %v8544_v53 = vsub.f32 %v19611_v46, %v8473_v27 }
 0x76c   : > { %v8475_v39 = vpop.xlane.xlu1 %8474 }
 0x76d   : > { %v17737_v7 = vpop.eup %13273  ;;  %13283 = vpow2.f32 %v8670_v16  ;;  %v8664_v0 = vmul.f32 1.442695, %v8544_v53  ;;  %v8545_v28 = vsub.f32 %v19612_v3, %v8475_v39 }
 0x76e   : > { %8764 = vadd.xlane.f32.xlu0 %v17737_v7 }
 0x76f   : > { %v17741_v59 = vpop.eup %13275  ;;  %13285 = vpow2.f32 %v8664_v0  ;;  %v8666_v26 = vmul.f32 1.442695, %v8545_v28  ;;  %v19614_v28 = vld [vmem:[#allocation36_spill] sm:$0xff] }
 0x770   : > { %8766 = vadd.xlane.f32.xlu1 %v17741_v59 }
 0x771   : > { %v17744_v55 = vpop.eup %13277  ;;  %13287 = vpow2.f32 %v8666_v26 }
 0x772   : > { %v8453_v14 = vpop.xlane.xlu0 %8452  ;;  %8760 = vadd.xlane.f32.xlu0 %v17744_v55 }
 0x773   : > { %v8534_v32 = vsub.f32 %v19613_v37, %v8453_v14  ;;  %v17748_v53 = vpop.eup %13279 }
 0x774   : > { %v8455_v9 = vpop.xlane.xlu1 %8454  ;;  %8762 = vadd.xlane.f32.xlu1 %v17748_v53 }
 0x775   : > { %v8644_v39 = vmul.f32 1.442695, %v8534_v32  ;;  %v8535_v5 = vsub.f32 %v17521_v60, %v8455_v9  ;;  %v17752_v51 = vpop.eup %13281 }
 0x776   : > { %v8449_v48 = vpop.xlane.xlu0 %8448  ;;  %8796 = vadd.xlane.f32.xlu0 %v17752_v51 }
 0x777   : > { %13289 = vpow2.f32 %v8644_v39  ;;  %v8646_v27 = vmul.f32 1.442695, %v8535_v5  ;;  %v8532_v16 = vsub.f32 %v17518_v56, %v8449_v48  ;;  %v17756_v0 = vpop.eup %13283 }
 0x778   : > { %v8451_v46 = vpop.xlane.xlu1 %8450  ;;  %8798 = vadd.xlane.f32.xlu1 %v17756_v0 }
 0x779   : > { %13291 = vpow2.f32 %v8646_v27  ;;  %v8640_v3 = vmul.f32 1.442695, %v8532_v16  ;;  %v8533_v26 = vsub.f32 %v19614_v28, %v8451_v46  ;;  %v17760_v60 = vpop.eup %13285 }
 0x77a   : > { %v8485_v14 = vpop.xlane.xlu0 %8484  ;;  %8792 = vadd.xlane.f32.xlu0 %v17760_v60 }
 0x77b   : > { %13293 = vpow2.f32 %v8640_v3  ;;  %v8642_v37 = vmul.f32 1.442695, %v8533_v26  ;;  %v8550_v32 = vsub.f32 %v17528_v2, %v8485_v14  ;;  %v17764_v56 = vpop.eup %13287 }
 0x77c   : > { %v8487_v9 = vpop.xlane.xlu1 %8486  ;;  %8794 = vadd.xlane.f32.xlu1 %v17764_v56 }
 0x77d   : > { %13295 = vpow2.f32 %v8642_v37  ;;  %v8551_v39 = vsub.f32 %v17534_v49, %v8487_v9  ;;  %v8676_v5 = vmul.f32 1.442695, %v8550_v32 }
 0x77e   : > { %v8481_v48 = vpop.xlane.xlu0 %8480 }
 0x77f   : > { %v8548_v27 = vsub.f32 %v17531_v42, %v8481_v48  ;;  %v8678_v16 = vmul.f32 1.442695, %v8551_v39  ;;  %13297 = vpow2.f32 %v8676_v5 }
 0x780   : > { %v8483_v46 = vpop.xlane.xlu1 %8482 }
 0x781   : > { %v17769_v3 = vpop.eup %13289  ;;  %v8672_v28 = vmul.f32 1.442695, %v8548_v27  ;;  %v8549_v2 = vsub.f32 %v17537_v25, %v8483_v46 }
 0x782   : > { %19615 = vst [vmem:[#allocation44_spill] sm:$0xff] %v17769_v3  ;;  %8772 = vadd.xlane.f32.xlu0 %v17769_v3  ;;  %v8685_v26 = vpop.xlane.xlu0 %8684 }
 0x783   : > { %v17773_v14 = vpop.eup %13291  ;;  %13299 = vpow2.f32 %v8672_v28  ;;  %v8674_v49 = vmul.f32 1.442695, %v8549_v2 }
 0x784   : > { %19616 = vst [vmem:[#allocation50_spill] sm:$0xff] %v17773_v14  ;;  %13301 = vpow2.f32 %v8678_v16  ;;  %8774 = vadd.xlane.f32.xlu1 %v17773_v14  ;;  %v8687_v37 = vpop.xlane.xlu1 %8686 }
 0x785   : > { %v17776_v42 = vpop.eup %13293  ;;  %13303 = vpow2.f32 %v8674_v49 }
 0x786   : > { %19617 = vst [vmem:[#allocation47_spill] sm:$0xff] %v17776_v42  ;;  %13305 = vrcp.f32 %v8687_v37  ;;  %8768 = vadd.xlane.f32.xlu0 %v17776_v42  ;;  %v8681_v32 = vpop.xlane.xlu0 %8680 }
 0x787   : > { %v17779_v25 = vpop.eup %13295  ;;  %13307 = vrcp.f32 %v8681_v32 }
 0x788   : > { %19618 = vst [vmem:[#allocation63_spill] sm:$0xff] %v17779_v25  ;;  %13309 = vrcp.f32 %v8685_v26  ;;  %8770 = vadd.xlane.f32.xlu1 %v17779_v25  ;;  %v8683_v9 = vpop.xlane.xlu1 %8682 }
 0x789   : > { %13311 = vrcp.f32 %v8683_v9  ;;  %v17782_v5 = vpop.eup %13297 }
 0x78a   : > { %v8717_v39 = vpop.xlane.xlu0 %8716  ;;  %19619 = vst [vmem:[#allocation17_spill] sm:$0xff] %v17782_v5 }
 0x78c   : > { %v8719_v48 = vpop.xlane.xlu1 %8718 }
 0x78d   : > { %v17784_v27 = vpop.eup %13299  ;;  %13313 = vrcp.f32 %v8719_v48 }
 0x78e   : > { %19620 = vst [vmem:[#allocation46_spill] sm:$0xff] %v17784_v27  ;;  %v17786_v16 = vpop.eup %13301  ;;  %8800 = vadd.xlane.f32.xlu0 %v17784_v27  ;;  %v8713_v46 = vpop.xlane.xlu0 %8712 }
 0x78f   : > { %v17789_v28 = vpop.eup %13303  ;;  %13315 = vrcp.f32 %v8713_v46 }
 0x790   : > { %19621 = vst [vmem:[#allocation29_spill] sm:$0xff] %v17789_v28  ;;  %v13306_v2 = vpop.eup %13305  ;;  %8802 = vadd.xlane.f32.xlu1 %v17789_v28  ;;  %v8695_v26 = vpop.xlane.xlu1 %8694  ;;  %13317 = vrcp.f32 %v8717_v39 }
 0x791   : > { %v13308_v49 = vpop.eup %13307  ;;  %v8875_v3 = vmul.f32 %v13306_v2, %v17551_v43  ;;  %v19622_v43 = vld [vmem:[#allocation19_spill] sm:$0xff] }
 0x792   : > { %v13310_v37 = vpop.eup %13309  ;;  %8804 = vadd.xlane.f32.xlu0 %v17782_v5  ;;  %v8715_v32 = vpop.xlane.xlu0 %8714  ;;  %v8872_v25 = vmul.f32 %v13308_v49, %v17555_v30  ;;  %v19623_v30 = vld [vmem:[#allocation21_spill] sm:$0xff] }
 0x793   : > { %v13312_v9 = vpop.eup %13311  ;;  %13319 = vrcp.f32 %v8715_v32  ;;  %v8874_v28 = vmul.f32 %v13310_v37, %v17547_v12 }
 0x794   : > { %8806 = vadd.xlane.f32.xlu1 %v17786_v16  ;;  %v8691_v27 = vpop.xlane.xlu1 %8690  ;;  %v8873_v48 = vmul.f32 %v13312_v9, %v17559_v38 }
 0x795   : > { %v8937_v14 = vpack.c.bf16 %v8875_v3, %v8874_v28  ;;  %v19624_v28 = vld [vmem:[#allocation18_spill] sm:$0xff] }
 0x796   : > { %v8693_v42 = vpop.xlane.xlu0 %8692  ;;  %v8936_v46 = vpack.c.bf16 %v8873_v48, %v8872_v25 }
 0x797   : > { %13321 = vrcp.f32 %v8693_v42  ;;  %v13314_v5 = vpop.eup %13313 }
 0x798   : > { %12638 = vmatprep.mubr.bf16.mxu0 %v8936_v46  ;;  %v8727_v39 = vpop.xlane.xlu1 %8726  ;;  %13323 = vrcp.f32 %v8691_v27  ;;  %v8891_v25 = vmul.f32 %v13314_v5, %v17567_v33 }
 0x799   : > { %12639 = vmatmul.mubr.bf16.vlgmr.msra.gmra.mrb[64].mxu0 %v8937_v14  ;;  %13325 = vrcp.f32 %v8695_v26  ;;  %v13316_v32 = vpop.eup %13315 }
 0x79a   : > { %12687 = vmatpush3.bf16.msra.mxu0 %v19622_v43  ;;  %v8689_v2 = vpop.xlane.xlu0 %8688  ;;  %v13318_v38 = vpop.eup %13317  ;;  %v8888_v42 = vmul.f32 %v13316_v32, %v17571_v13  ;;  %v19625_v13 = vld [vmem:[#allocation51_spill] sm:$0xff] }
 0x79b   : > { %13327 = vrcp.f32 %v8689_v2  ;;  %12688 = vmatprep.subr.bf16.mxu0 %v19623_v30  ;;  %v8890_v27 = vmul.f32 %v13318_v38, %v17563_v58  ;;  %v19626_v58 = vld [vmem:[#allocation16_spill] sm:$0xff] }
 0x79c   : > { %v8723_v49 = vpop.xlane.xlu1 %8722  ;;  %v19627_v2 = vld [vmem:[#allocation48_spill] sm:$0xff] }
 0x79d   : > { %v13320_v12 = vpop.eup %13319  ;;  %v8945_v9 = vpack.c.bf16 %v8891_v25, %v8890_v27  ;;  %v19630_v27 = vld [vmem:[#allocation23_spill] sm:$0xff] }
 0x79e   : > { %12689 = vmatpush3.bf16.msra.mxu0 %v19623_v30  ;;  %v8725_v3 = vpop.xlane.xlu0 %8724  ;;  %v8889_v14 = vmul.f32 %v13320_v12, %v17579_v8 }
 0x79f   : > { %12690 = vmatprep.subr.bf16.mxu0 %v19624_v28  ;;  %13329 = vrcp.f32 %v8725_v3 }
 0x7a0   : > { %v8703_v26 = vpop.xlane.xlu1 %8702  ;;  %v8944_v37 = vpack.c.bf16 %v8889_v14, %v8888_v42  ;;  %13331 = vrcp.f32 %v8723_v49  ;;  %v19628_v49 = vld [vmem:[#allocation45_spill] sm:$0xff]  ;;  %v19629_v42 = vld [vmem:[#allocation26_spill] sm:$0xff] }
 0x7a1   : > { %v13322_v48 = vpop.eup %13321  ;;  %13333 = vrcp.f32 %v8727_v39 }
 0x7a2   : > { %12691 = vmatpush3.bf16.msra.mxu0 %v19624_v28  ;;  %12670 = vmatprep.mubr.bf16.mxu1 %v8944_v37  ;;  %v8721_v33 = vpop.xlane.xlu0 %8720  ;;  %v13324_v5 = vpop.eup %13323  ;;  %v8878_v32 = vmul.f32 %v13322_v48, %v17587_v29  ;;  %v19631_v37 = vld [vmem:[#allocation58_spill] sm:$0xff] }
 0x7a3   : > { %13335 = vrcp.f32 %v8721_v33  ;;  %12692 = vmatprep.subr.bf16.mxu0 %v19625_v13  ;;  %12671 = vmatmul.mubr.bf16.vlgmr.msra.gmra.mrb[48].mxu1 %v8945_v9  ;;  %v13326_v8 = vpop.eup %13325  ;;  %v8877_v38 = vmul.f32 %v13324_v5, %v17583_v50 }
 0x7a4   : > { %12719 = vmatpush3.bf16.msra.mxu1 %v19626_v58  ;;  %v8699_v46 = vpop.xlane.xlu1 %8698  ;;  %v8879_v12 = vmul.f32 %v13326_v8, %v17575_v10 }
 0x7a5   : > { %v13328_v43 = vpop.eup %13327  ;;  %12720 = vmatprep.subr.bf16.mxu1 %v19627_v2 }
 0x7a6   : > { %12693 = vmatpush3.bf16.msra.mxu0 %v19625_v13  ;;  %v8701_v39 = vpop.xlane.xlu0 %8700  ;;  %v8876_v30 = vmul.f32 %v13328_v43, %v17595_v19  ;;  %v8939_v29 = vpack.c.bf16 %v8879_v12, %v8878_v32  ;;  %v19632_v13 = vld [vmem:[#allocation59_spill] sm:$0xff] }
 0x7a7   : > { %12694 = vmatprep.subr.bf16.mxu0 %v19628_v49  ;;  %13337 = vrcp.f32 %v8701_v39  ;;  %v19635_v39 = vld [vmem:[#allocation31_spill] sm:$0xff] }
 0x7a8   : > { %12721 = vmatpush3.bf16.msra.mxu1 %v19627_v2  ;;  %v8735_v25 = vpop.xlane.xlu1 %8734  ;;  %v8938_v3 = vpack.c.bf16 %v8877_v38, %v8876_v30  ;;  %13339 = vrcp.f32 %v8699_v46  ;;  %v19633_v46 = vld [vmem:[#allocation20_spill] sm:$0xff] }
 0x7a9   : > { %12722 = vmatprep.subr.bf16.mxu1 %v19629_v42  ;;  %v13330_v14 = vpop.eup %13329  ;;  %13341 = vrcp.f32 %v8703_v26 }
 0x7aa   : > { %12695 = vmatpush3.bf16.msra.mxu0 %v19628_v49  ;;  %v8697_v19 = vpop.xlane.xlu0 %8696  ;;  %12642 = vmatprep.mubr.bf16.mxu0 %v8938_v3  ;;  %v13332_v50 = vpop.eup %13331  ;;  %v8894_v9 = vmul.f32 %v13330_v14, %v17603_v20  ;;  %v19636_v3 = vld [vmem:[#allocation28_spill] sm:$0xff] }
 0x7ab   : > { %13343 = vrcp.f32 %v8697_v19  ;;  %12696 = vmatprep.subr.bf16.mxu0 %v19630_v27  ;;  %12643 = vmatmul.mubr.bf16.gmra.mrb[68].mxu0 %v8939_v29  ;;  %v13334_v10 = vpop.eup %13333  ;;  %v8893_v5 = vmul.f32 %v13332_v50, %v17599_v36  ;;  %v19634_v36 = vld [vmem:[#allocation38_spill] sm:$0xff]  ;;  %v19637_v50 = vld [vmem:[#allocation52_spill] sm:$0xff] }
 0x7ac   : > { %12723 = vmatpush3.bf16.msra.mxu1 %v19629_v42  ;;  %v8731_v48 = vpop.xlane.xlu1 %8730  ;;  %v8895_v8 = vmul.f32 %v13334_v10, %v17591_v24 }
 0x7ad   : > { %v13336_v28 = vpop.eup %13335  ;;  %12724 = vmatprep.subr.bf16.mxu1 %v19631_v37 }
 0x7ae   : > { %12697 = vmatpush3.bf16.msra.mxu0 %v19630_v27  ;;  %v8733_v26 = vpop.xlane.xlu0 %8732  ;;  %v8892_v33 = vmul.f32 %v13336_v28, %v17610_v47  ;;  %v8947_v20 = vpack.c.bf16 %v8895_v8, %v8894_v9 }
 0x7af   : > { %12698 = vmatprep.subr.bf16.mxu0 %v19632_v13  ;;  %13345 = vrcp.f32 %v8733_v26 }
 0x7b0   : > { %12725 = vmatpush3.bf16.msra.mxu1 %v19631_v37  ;;  %v8946_v58 = vpack.c.bf16 %v8893_v5, %v8892_v33  ;;  %13347 = vrcp.f32 %v8731_v48 }
 0x7b1   : > { %12726 = vmatprep.subr.bf16.mxu1 %v19633_v46  ;;  %v13338_v43 = vpop.eup %13337  ;;  %13349 = vrcp.f32 %v8735_v25 }
 0x7b2   : > { %12699 = vmatpush3.bf16.msra.mxu0 %v19632_v13  ;;  %v8729_v2 = vpop.xlane.xlu0 %8728  ;;  %12674 = vmatprep.mubr.bf16.mxu1 %v8946_v58  ;;  %v13340_v47 = vpop.eup %13339  ;;  %v8882_v30 = vmul.f32 %v13338_v43, %v17616_v41 }
 0x7b3   : > { %13351 = vrcp.f32 %v8729_v2  ;;  %12700 = vmatprep.subr.bf16.mxu0 %v19634_v36  ;;  %12675 = vmatmul.mubr.bf16.gmra.mrb[52].mxu1 %v8947_v20  ;;  %v13342_v24 = vpop.eup %13341  ;;  %v8881_v49 = vmul.f32 %v13340_v47, %v17613_v22 }
 0x7b4   : > { %12727 = vmatpush3.bf16.msra.mxu1 %v19633_v46  ;;  %v8883_v12 = vmul.f32 %v13342_v24, %v17606_v54 }
 0x7b5   : > { %v13344_v32 = vpop.eup %13343  ;;  %12728 = vmatprep.subr.bf16.mxu1 %v19635_v39 }
 0x7b6   : > { %12701 = vmatpush3.bf16.msra.mxu0 %v19634_v36  ;;  %v8880_v38 = vmul.f32 %v13344_v32, %v17622_v61  ;;  %v8941_v42 = vpack.c.bf16 %v8883_v12, %v8882_v30 }
 0x7b8   : > { %12729 = vmatpush3.bf16.msra.mxu1 %v19635_v39  ;;  %v8940_v25 = vpack.c.bf16 %v8881_v49, %v8880_v38 }
 0x7b9   : > { %12730 = vmatprep.subr.bf16.mxu1 %v19636_v3  ;;  %v13346_v29 = vpop.eup %13345 }
 0x7ba   : > { %12646 = vmatprep.mubr.bf16.mxu0 %v8940_v25  ;;  %v13348_v14 = vpop.eup %13347  ;;  %v8898_v22 = vmul.f32 %v13346_v29, %v17628_v21 }
 0x7bb   : > { %12647 = vmatmul.mubr.bf16.gmra.mrb[72].mxu0 %v8941_v42  ;;  %v13350_v19 = vpop.eup %13349  ;;  %v8897_v61 = vmul.f32 %v13348_v14, %v17625_v34 }
 0x7bc   : > { %12731 = vmatpush3.bf16.msra.mxu1 %v19636_v3  ;;  %v8899_v27 = vmul.f32 %v13350_v19, %v17619_v23 }
 0x7bd   : > { %v13352_v41 = vpop.eup %13351  ;;  %12732 = vmatprep.subr.bf16.mxu1 %v19637_v50 }
 0x7be   : > { %v8896_v54 = vmul.f32 %v13352_v41, %v17631_v4  ;;  %v8949_v28 = vpack.c.bf16 %v8899_v27, %v8898_v22 }
 0x7c0   : > { %12733 = vmatpush3.bf16.msra.mxu1 %v19637_v50  ;;  %v8948_v10 = vpack.c.bf16 %v8897_v61, %v8896_v54 }
 0x7c2   : > { %12678 = vmatprep.mubr.bf16.mxu1 %v8948_v10  ;;  %v8709_v37 = vpop.xlane.xlu0 %8708 }
 0x7c3   : > { %12679 = vmatmul.mubr.bf16.gmra.mrb[56].mxu1 %v8949_v28 }
 0x7c4   : > { %v8711_v9 = vpop.xlane.xlu1 %8710 }
 0x7c5   : > { %13353 = vrcp.f32 %v8711_v9 }
 0x7c6   : > { %v8705_v48 = vpop.xlane.xlu0 %8704 }
 0x7c7   : > { %13355 = vrcp.f32 %v8705_v48 }
 0x7c8   : > { %13357 = vrcp.f32 %v8709_v37  ;;  %v8707_v26 = vpop.xlane.xlu1 %8706 }
 0x7c9   : > { %13359 = vrcp.f32 %v8707_v26 }
 0x7ca   : > { %v8741_v21 = vpop.xlane.xlu0 %8740 }
 0x7cc   : > { %v8743_v4 = vpop.xlane.xlu1 %8742 }
 0x7cd   : > { %13361 = vrcp.f32 %v8743_v4 }
 0x7ce   : > { %v8737_v34 = vpop.xlane.xlu0 %8736 }
 0x7cf   : > { %13363 = vrcp.f32 %v8737_v34  ;;  %v13354_v23 = vpop.eup %13353  ;;  %v19638_v34 = vld [vmem:[#allocation37_spill] sm:$0xff] }
 0x7d0   : > { %13365 = vrcp.f32 %v8741_v21  ;;  %v8739_v33 = vpop.xlane.xlu1 %8738  ;;  %v8887_v46 = vmul.f32 %v13354_v23, %v17645_v11 }
 0x7d1   : > { %v13356_v5 = vpop.eup %13355  ;;  %13367 = vrcp.f32 %v8739_v33 }
 0x7d2   : > { %v13358_v13 = vpop.eup %13357  ;;  %v8749_v8 = vpop.xlane.xlu0 %8748  ;;  %v8884_v43 = vmul.f32 %v13356_v5, %v17649_v31 }
 0x7d3   : > { %v13360_v58 = vpop.eup %13359  ;;  %v8886_v47 = vmul.f32 %v13358_v13, %v17641_v52 }
 0x7d4   : > { %v8751_v20 = vpop.xlane.xlu1 %8750  ;;  %v8885_v2 = vmul.f32 %v13360_v58, %v17653_v44 }
 0x7d5   : > { %13369 = vrcp.f32 %v8751_v20  ;;  %v8943_v32 = vpack.c.bf16 %v8887_v46, %v8886_v47 }
 0x7d6   : > { %v8745_v36 = vpop.xlane.xlu0 %8744  ;;  %v8942_v24 = vpack.c.bf16 %v8885_v2, %v8884_v43 }
 0x7d7   : > { %13371 = vrcp.f32 %v8745_v36  ;;  %v13362_v39 = vpop.eup %13361  ;;  %v19641_v36 = vld [vmem:[#allocation49_spill] sm:$0xff] }
 0x7d8   : > { %13373 = vrcp.f32 %v8749_v8  ;;  %12650 = vmatprep.mubr.bf16.mxu0 %v8942_v24  ;;  %v8747_v30 = vpop.xlane.xlu1 %8746  ;;  %v8903_v31 = vmul.f32 %v13362_v39, %v17661_v18 }
 0x7d9   : > { %v13364_v38 = vpop.eup %13363  ;;  %13375 = vrcp.f32 %v8747_v30  ;;  %12651 = vmatmul.mubr.bf16.gmra.mrb[76].mxu0 %v8943_v32  ;;  %v19642_v32 = vld [vmem:[#allocation35_spill] sm:$0xff] }
 0x7da   : > { %v13366_v11 = vpop.eup %13365  ;;  %v8781_v49 = vpop.xlane.xlu0 %8780  ;;  %v8900_v52 = vmul.f32 %v13364_v38, %v17665_v40 }
 0x7db   : > { %v13368_v12 = vpop.eup %13367  ;;  %v8902_v3 = vmul.f32 %v13366_v11, %v17657_v35 }
 0x7dc   : > { %v8783_v44 = vpop.xlane.xlu1 %8782  ;;  %v8901_v25 = vmul.f32 %v13368_v12, %v17669_v62 }
 0x7dd   : > { %13377 = vrcp.f32 %v8783_v44  ;;  %v8951_v14 = vpack.c.bf16 %v8903_v31, %v8902_v3 }
 0x7de   : > { %v8777_v42 = vpop.xlane.xlu0 %8776  ;;  %v8950_v29 = vpack.c.bf16 %v8901_v25, %v8900_v52  ;;  %v19643_v52 = vld [vmem:[#allocation61_spill] sm:$0xff] }
 0x7df   : > { %13379 = vrcp.f32 %v8777_v42  ;;  %v13370_v19 = vpop.eup %13369  ;;  %v19644_v42 = vld [vmem:[#allocation43_spill] sm:$0xff] }
 0x7e0   : > { %13381 = vrcp.f32 %v8781_v49  ;;  %12682 = vmatprep.mubr.bf16.mxu1 %v8950_v29  ;;  %v8779_v41 = vpop.xlane.xlu1 %8778  ;;  %v8907_v40 = vmul.f32 %v13370_v19, %v17677_v57 }
 0x7e1   : > { %v13372_v50 = vpop.eup %13371  ;;  %13383 = vrcp.f32 %v8779_v41  ;;  %12683 = vmatmul.mubr.bf16.gmra.mrb[60].mxu1 %v8951_v14  ;;  %v19645_v14 = vld [vmem:[#allocation62_spill] sm:$0xff]  ;;  %v19646_v41 = vld [vmem:[#allocation60_spill] sm:$0xff] }
 0x7e2   : > { %v13374_v18 = vpop.eup %13373  ;;  %v8757_v54 = vpop.xlane.xlu0 %8756  ;;  %v8904_v62 = vmul.f32 %v13372_v50, %v17680_v15 }
 0x7e3   : > { %v13376_v22 = vpop.eup %13375  ;;  %v8906_v61 = vmul.f32 %v13374_v18, %v17673_v6 }
 0x7e4   : > { %v8905_v35 = vmul.f32 %v13376_v22, %v17684_v63  ;;  %v8759_v27 = vpop.xlane.xlu1 %8758 }
 0x7e5   : > { %v8953_v28 = vpack.c.bf16 %v8907_v40, %v8906_v61  ;;  %13385 = vrcp.f32 %v8759_v27 }
 0x7e6   : > { %v8952_v10 = vpack.c.bf16 %v8905_v35, %v8904_v62  ;;  %v8753_v9 = vpop.xlane.xlu0 %8752 }
 0x7e7   : > { %v13378_v37 = vpop.eup %13377  ;;  %13387 = vrcp.f32 %v8753_v9 }
 0x7e8   : > { %12702 = vmatprep.mubr.bf16.mxu0 %v8952_v10  ;;  %13389 = vrcp.f32 %v8757_v54  ;;  %v8755_v57 = vpop.xlane.xlu1 %8754  ;;  %v8923_v15 = vmul.f32 %v13378_v37, %v17692_v17 }
 0x7e9   : > { %v13380_v48 = vpop.eup %13379  ;;  %12703 = vmatmul.mubr.bf16.vlgmr.msra.gmra.mrb[80].mxu0 %v8953_v28  ;;  %13391 = vrcp.f32 %v8755_v57 }
 0x7ea   : > { %v13382_v26 = vpop.eup %13381  ;;  %v8789_v63 = vpop.xlane.xlu0 %8788  ;;  %v8920_v6 = vmul.f32 %v13380_v48, %v17696_v1  ;;  %v19639_v1 = vld [vmem:[#allocation42_spill] sm:$0xff] }
 0x7eb   : > { %v13384_v21 = vpop.eup %13383  ;;  %v8922_v23 = vmul.f32 %v13382_v26, %v19638_v34 }
 0x7ec   : > { %v8921_v4 = vmul.f32 %v13384_v21, %v17700_v45  ;;  %v8791_v33 = vpop.xlane.xlu1 %8790  ;;  %v19640_v45 = vld [vmem:[#allocation57_spill] sm:$0xff] }
 0x7ed   : > { %v8961_v13 = vpack.c.bf16 %v8923_v15, %v8922_v23  ;;  %13393 = vrcp.f32 %v8791_v33 }
 0x7ee   : > { %v8960_v5 = vpack.c.bf16 %v8921_v4, %v8920_v6  ;;  %v8785_v8 = vpop.xlane.xlu0 %8784 }
 0x7ef   : > { %13395 = vrcp.f32 %v8785_v8  ;;  %v13386_v58 = vpop.eup %13385 }
 0x7f0   : > { %12734 = vmatprep.mubr.bf16.mxu1 %v8960_v5  ;;  %13397 = vrcp.f32 %v8789_v63  ;;  %v8787_v46 = vpop.xlane.xlu1 %8786  ;;  %v8911_v2 = vmul.f32 %v13386_v58, %v19639_v1 }
 0x7f1   : > { %12735 = vmatmul.mubr.bf16.vlgmr.msra.gmra.mrb[64].mxu1 %v8961_v13  ;;  %v13388_v17 = vpop.eup %13387  ;;  %13399 = vrcp.f32 %v8787_v46 }
 0x7f2   : > { %v13390_v20 = vpop.eup %13389  ;;  %v8908_v47 = vmul.f32 %v13388_v17, %v19640_v45 }
 0x7f3   : > { %v13392_v43 = vpop.eup %13391  ;;  %v8910_v39 = vmul.f32 %v13390_v20, %v19642_v32 }
 0x7f4   : > { %v8909_v24 = vmul.f32 %v13392_v43, %v19641_v36 }
 0x7f5   : > { %v8955_v38 = vpack.c.bf16 %v8911_v2, %v8910_v39  ;;  %v19650_v39 = vld [vmem:[#allocation44_spill] sm:$0xff] }
 0x7f6   : > { %v8954_v30 = vpack.c.bf16 %v8909_v24, %v8908_v47 }
 0x7f7   : > { %v13394_v11 = vpop.eup %13393 }
 0x7f8   : > { %12706 = vmatprep.mubr.bf16.mxu0 %v8954_v30  ;;  %v8927_v25 = vmul.f32 %v13394_v11, %v19643_v52  ;;  %v19652_v52 = vld [vmem:[#allocation29_spill] sm:$0xff] }
 0x7f9   : > { %v13396_v49 = vpop.eup %13395  ;;  %12707 = vmatmul.mubr.bf16.gmra.mrb[84].mxu0 %v8955_v38 }
 0x7fa   : > { %v13398_v12 = vpop.eup %13397  ;;  %v8924_v29 = vmul.f32 %v13396_v49, %v19644_v42 }
 0x7fb   : > { %v8765_v31 = vpop.xlane.xlu0 %8764  ;;  %v13400_v44 = vpop.eup %13399  ;;  %v8926_v50 = vmul.f32 %v13398_v12, %v19646_v41 }
 0x7fc   : > { %v8925_v19 = vmul.f32 %v13400_v44, %v19645_v14  ;;  %v19653_v14 = vld [vmem:[#allocation17_spill] sm:$0xff] }
 0x7fd   : > { %v8767_v3 = vpop.xlane.xlu1 %8766  ;;  %v8963_v40 = vpack.c.bf16 %v8927_v25, %v8926_v50 }
 0x7fe   : > { %13401 = vrcp.f32 %v8767_v3  ;;  %v8962_v22 = vpack.c.bf16 %v8925_v19, %v8924_v29 }
 0x7ff   : > { %v8761_v18 = vpop.xlane.xlu0 %8760 }
 0x800   : > { %13403 = vrcp.f32 %v8761_v18  ;;  %12738 = vmatprep.mubr.bf16.mxu1 %v8962_v22 }
 0x801   : > { %13405 = vrcp.f32 %v8765_v31  ;;  %v8763_v54 = vpop.xlane.xlu1 %8762  ;;  %12739 = vmatmul.mubr.bf16.gmra.mrb[68].mxu1 %v8963_v40  ;;  %v19651_v31 = vld [vmem:[#allocation46_spill] sm:$0xff] }
 0x802   : > { %13407 = vrcp.f32 %v8763_v54 }
 0x803   : > { %v8797_v62 = vpop.xlane.xlu0 %8796 }
 0x805   : > { %v8799_v35 = vpop.xlane.xlu1 %8798 }
 0x806   : > { %13409 = vrcp.f32 %v8799_v35 }
 0x807   : > { %v8793_v61 = vpop.xlane.xlu0 %8792 }
 0x808   : > { %13411 = vrcp.f32 %v8793_v61  ;;  %v13402_v27 = vpop.eup %13401 }
 0x809   : > { %13413 = vrcp.f32 %v8797_v62  ;;  %v8795_v10 = vpop.xlane.xlu1 %8794  ;;  %v8915_v48 = vmul.f32 %v13402_v27, %v17741_v59 }
 0x80a   : > { %v13404_v28 = vpop.eup %13403  ;;  %13415 = vrcp.f32 %v8795_v10 }
 0x80b   : > { %v13406_v37 = vpop.eup %13405  ;;  %v8912_v57 = vmul.f32 %v13404_v28, %v17744_v55 }
 0x80c   : > { %v13408_v9 = vpop.eup %13407  ;;  %v8914_v15 = vmul.f32 %v13406_v37, %v17737_v7 }
 0x80d   : > { %v8913_v21 = vmul.f32 %v13408_v9, %v17748_v53 }
 0x80e   : > { %v8957_v4 = vpack.c.bf16 %v8915_v48, %v8914_v15 }
 0x80f   : > { %v8773_v26 = vpop.xlane.xlu0 %8772  ;;  %v8956_v6 = vpack.c.bf16 %v8913_v21, %v8912_v57 }
 0x810   : > { %v13410_v34 = vpop.eup %13409 }
 0x811   : > { %v8775_v63 = vpop.xlane.xlu1 %8774  ;;  %12710 = vmatprep.mubr.bf16.mxu0 %v8956_v6  ;;  %v8931_v55 = vmul.f32 %v13410_v34, %v17756_v0  ;;  %v19647_v0 = vld [vmem:[#allocation50_spill] sm:$0xff] }
 0x812   : > { %13417 = vrcp.f32 %v8775_v63  ;;  %v13412_v33 = vpop.eup %13411  ;;  %12711 = vmatmul.mubr.bf16.gmra.mrb[88].mxu0 %v8957_v4 }
 0x813   : > { %v8769_v23 = vpop.xlane.xlu0 %8768  ;;  %v13414_v5 = vpop.eup %13413  ;;  %v8928_v53 = vmul.f32 %v13412_v33, %v17760_v60 }
 0x814   : > { %13419 = vrcp.f32 %v8769_v23  ;;  %v13416_v13 = vpop.eup %13415  ;;  %v8930_v8 = vmul.f32 %v13414_v5, %v17752_v51  ;;  %v19649_v51 = vld [vmem:[#allocation63_spill] sm:$0xff] }
 0x815   : > { %13421 = vrcp.f32 %v8773_v26  ;;  %v8771_v59 = vpop.xlane.xlu1 %8770  ;;  %v8929_v7 = vmul.f32 %v13416_v13, %v17764_v56  ;;  %v19648_v56 = vld [vmem:[#allocation47_spill] sm:$0xff] }
 0x816   : > { %13423 = vrcp.f32 %v8771_v59  ;;  %v8965_v46 = vpack.c.bf16 %v8931_v55, %v8930_v8 }
 0x817   : > { %v8964_v58 = vpack.c.bf16 %v8929_v7, %v8928_v53 }
 0x819   : > { %12742 = vmatprep.mubr.bf16.mxu1 %v8964_v58 }
 0x81a   : > { %12743 = vmatmul.mubr.bf16.gmra.mrb[72].mxu1 %v8965_v46 }
 0x81b   : > { %v8801_v17 = vpop.xlane.xlu0 %8800 }
 0x81c   : > { %13425 = vrcp.f32 %v8801_v17  ;;  %v13418_v20 = vpop.eup %13417 }
 0x81d   : > { %v8803_v43 = vpop.xlane.xlu1 %8802  ;;  %v8919_v60 = vmul.f32 %v13418_v20, %v19647_v0 }
 0x81e   : > { %v13420_v1 = vpop.eup %13419  ;;  %13427 = vrcp.f32 %v8803_v43 }
 0x81f   : > { %v13422_v2 = vpop.eup %13421  ;;  %v8805_v45 = vpop.xlane.xlu0 %8804  ;;  %v8916_v24 = vmul.f32 %v13420_v1, %v19648_v56 }
 0x820   : > { %v13424_v47 = vpop.eup %13423  ;;  %13429 = vrcp.f32 %v8805_v45  ;;  %v8918_v30 = vmul.f32 %v13422_v2, %v19650_v39 }
 0x821   : > { %v8807_v36 = vpop.xlane.xlu1 %8806  ;;  %v8917_v32 = vmul.f32 %v13424_v47, %v19649_v51 }
 0x822   : > { %13431 = vrcp.f32 %v8807_v36  ;;  %v8959_v11 = vpack.c.bf16 %v8919_v60, %v8918_v30 }
 0x823   : > { %v8958_v38 = vpack.c.bf16 %v8917_v32, %v8916_v24  ;;  %v19659_v24 = vld [vmem:[#allocation24_spill] sm:$0xff] }
 0x825   : > { %12714 = vmatprep.mubr.bf16.mxu0 %v8958_v38 }
 0x826   : > { %v13426_v49 = vpop.eup %13425  ;;  %12715 = vmatmul.mubr.bf16.gmra.mrb[92].mxu0 %v8959_v11 }
 0x827   : > { %v8932_v44 = vmul.f32 %v13426_v49, %v19651_v31 }
 0x828   : > { %v13428_v12 = vpop.eup %13427 }
 0x829   : > { %v8933_v25 = vmul.f32 %v13428_v12, %v19652_v52 }
 0x82a   : > { %v13430_v3 = vpop.eup %13429 }
 0x82b   : > { %v8966_v42 = vpack.c.bf16 %v8933_v25, %v8932_v44  ;;  %v8934_v19 = vmul.f32 %v13430_v3, %v19653_v14 }
 0x82c   : > { %v13432_v29 = vpop.eup %13431 }
 0x82d   : > { %12746 = vmatprep.mubr.bf16.mxu1 %v8966_v42  ;;  %v8935_v41 = vmul.f32 %v13432_v29, %v17786_v16 }
 0x82f   : > { %v8967_v50 = vpack.c.bf16 %v8935_v41, %v8934_v19 }
 0x831   : > { %12747 = vmatmul.mubr.bf16.gmra.mrb[76].mxu1 %v8967_v50 }
 0x86c   : > { %v12640_v18 = vpop.f32.mrb[64].mxu0 }
 0x86d   : > { %v9002_v22 = vpop.f32.mrb[65].mxu0 }
 0x86e   : > { %v12641_v40 = vpop.f32.mrb[66].mxu0 }
 0x86f   : > { %v9005_v54 = vpop.f32.mrb[67].mxu0 }
 0x876   : > { %v12672_v62 = vpop.f32.mrb[48].mxu1 }
 0x877   : > { %v9099_v35 = vpop.f32.mrb[49].mxu1 }
 0x878   : > { %v17888_v61 = vpop.f32.mrb[50].mxu1 }
 0x879   : > { %v17890_v27 = vpop.f32.mrb[51].mxu1 }
 0x87e   : > { %v17892_v10 = vpop.f32.mrb[68].mxu0 }
 0x87f   : > { %v17894_v28 = vpop.f32.mrb[69].mxu0 }
 0x880   : > { %v17896_v37 = vpop.f32.mrb[70].mxu0 }
 0x881   : > { %v17898_v9 = vpop.f32.mrb[71].mxu0 }
 0x886   : > { %v17900_v16 = vpop.f32.mrb[52].mxu1 }
 0x887   : > { %v17902_v48 = vpop.f32.mrb[53].mxu1 }
 0x888   : > { %v17904_v26 = vpop.f32.mrb[54].mxu1 }
 0x889   : > { %v17906_v57 = vpop.f32.mrb[55].mxu1 }
 0x88e   : > { %v17908_v21 = vpop.f32.mrb[72].mxu0 }
 0x88f   : > { %v17910_v15 = vpop.f32.mrb[73].mxu0 }
 0x890   : > { %v17912_v63 = vpop.f32.mrb[74].mxu0 }
 0x891   : > { %v17914_v6 = vpop.f32.mrb[75].mxu0 }
 0x896   : > { %v17916_v4 = vpop.f32.mrb[56].mxu1 }
 0x897   : > { %v17918_v34 = vpop.f32.mrb[57].mxu1 }
 0x898   : > { %v17920_v23 = vpop.f32.mrb[58].mxu1 }
 0x899   : > { %v17922_v33 = vpop.f32.mrb[59].mxu1 }
 0x8ac   : > { %v17924_v5 = vpop.f32.mrb[76].mxu0 }
 0x8ad   : > { %v17926_v59 = vpop.f32.mrb[77].mxu0 }
 0x8ae   : > { %v17928_v13 = vpop.f32.mrb[78].mxu0 }
 0x8af   : > { %v17930_v55 = vpop.f32.mrb[79].mxu0 }
 0x8b0   : > { %19654 = vst [vmem:[#allocation27_spill] sm:$0xff] %v17930_v55 }
 0x8b4   : > { %v17932_v53 = vpop.f32.mrb[60].mxu1 }
 0x8b5   : > { %19655 = vst [vmem:[#allocation40_spill] sm:$0xff] %v17932_v53  ;;  %v17934_v7 = vpop.f32.mrb[61].mxu1 }
 0x8b6   : > { %19656 = vst [vmem:[#allocation33_spill] sm:$0xff] %v17934_v7  ;;  %v17936_v8 = vpop.f32.mrb[62].mxu1 }
 0x8b7   : > { %19657 = vst [vmem:[#allocation32_spill] sm:$0xff] %v17936_v8  ;;  %v17938_v58 = vpop.f32.mrb[63].mxu1 }
 0x8b8   : > { %19658 = vst [vmem:[#allocation39_spill] sm:$0xff] %v17938_v58 }
 0x8bc   : > { %v12704_v46 = vpop.f32.mrb[80].mxu0 }
 0x8bd   : > { %v9492_v17 = vcombine.low %v12640_v18, %v12704_v46  ;;  %v9493_v20 = vcombine.high %v12640_v18, %v12704_v46  ;;  %v9196_v43 = vpop.f32.mrb[81].mxu0 }
 0x8be   : > { %v9356_v1 = vcombine.low %v9002_v22, %v9196_v43  ;;  %v9357_v2 = vcombine.high %v9002_v22, %v9196_v43  ;;  %v12705_v45 = vpop.f32.mrb[82].mxu0 }
 0x8bf   : > { %v9560_v47 = vcombine.low %v12641_v40, %v12705_v45  ;;  %v9561_v0 = vcombine.high %v12641_v40, %v12705_v45  ;;  %v9199_v60 = vpop.f32.mrb[83].mxu0  ;;  %v9500_v51 = vrot.slane %v9492_v17, %v19659_v24  ;;  %v9507_v32 = vrot.slane %v9493_v20, %v19659_v24 }
 0x8c0   : > { %v9424_v36 = vcombine.low %v9005_v54, %v9199_v60  ;;  %v9425_v56 = vcombine.high %v9005_v54, %v9199_v60  ;;  %v9364_v39 = vrot.slane %v9356_v1, %v19659_v24  ;;  %v9371_v30 = vrot.slane %v9357_v2, %v19659_v24 }
 0x8c1   : > { %v17945_v11 = vrot.slane %v9560_v47, %v19659_v24  ;;  %v17948_v49 = vrot.slane %v9561_v0, %v19659_v24  ;;  %v19660_v47 = vld [vmem:[#allocation25_spill] sm:$0xff] }
 0x8c2   : > { %v17951_v52 = vrot.slane %v9424_v36, %v19659_v24  ;;  %v17954_v25 = vrot.slane %v9425_v56, %v19659_v24 }
 0x8c4   : > { %v12736_v38 = vpop.f32.mrb[64].mxu1 }
 0x8c5   : > { %v9508_v12 = vcombine.low %v12672_v62, %v12736_v38  ;;  %v9509_v31 = vcombine.high %v12672_v62, %v12736_v38  ;;  %v9293_v44 = vpop.f32.mrb[65].mxu1 }
 0x8c6   : > { %v9372_v3 = vcombine.low %v9099_v35, %v9293_v44  ;;  %v9373_v42 = vcombine.high %v9099_v35, %v9293_v44  ;;  %v12737_v29 = vpop.f32.mrb[66].mxu1 }
 0x8c7   : > { %v9516_v14 = vrot.slane %v9508_v12, %v19659_v24  ;;  %v9523_v19 = vrot.slane %v9509_v31, %v19659_v24  ;;  %v9576_v41 = vcombine.low %v17888_v61, %v12737_v29  ;;  %v9577_v50 = vcombine.high %v17888_v61, %v12737_v29  ;;  %v9296_v18 = vpop.f32.mrb[67].mxu1 }
 0x8c8   : > { %v9380_v22 = vrot.slane %v9372_v3, %v19659_v24  ;;  %v9387_v40 = vrot.slane %v9373_v42, %v19659_v24  ;;  %v9440_v54 = vcombine.low %v17890_v27, %v9296_v18  ;;  %v9441_v62 = vcombine.high %v17890_v27, %v9296_v18 }
 0x8c9   : > { %v9524_v46 = vcombine.low %v9500_v51, %v9516_v14  ;;  %v9525_v35 = vcombine.high %v9500_v51, %v9516_v14  ;;  %v9540_v17 = vcombine.low %v9507_v32, %v9523_v19  ;;  %v9541_v20 = vcombine.high %v9507_v32, %v9523_v19 }
 0x8ca   : > { %v9388_v43 = vcombine.low %v9364_v39, %v9380_v22  ;;  %v9389_v1 = vcombine.high %v9364_v39, %v9380_v22  ;;  %v9404_v2 = vcombine.low %v9371_v30, %v9387_v40  ;;  %v9405_v45 = vcombine.high %v9371_v30, %v9387_v40 }
 0x8cb   : > { %v9532_v0 = vrot.slane %v9524_v46, %v19660_v47  ;;  %v9539_v61 = vrot.slane %v9525_v35, %v19660_v47  ;;  %v9548_v60 = vrot.slane %v9540_v17, %v19660_v47  ;;  %v9555_v36 = vrot.slane %v9541_v20, %v19660_v47 }
 0x8cc   : > { %v9396_v56 = vrot.slane %v9388_v43, %v19660_v47  ;;  %v9403_v27 = vrot.slane %v9389_v1, %v19660_v47  ;;  %v9412_v51 = vrot.slane %v9404_v2, %v19660_v47  ;;  %v9419_v32 = vrot.slane %v9405_v45, %v19660_v47  ;;  %v12708_v29 = vpop.f32.mrb[84].mxu0 }
 0x8cd   : > { %v10580_v38 = vcombine.low %v9532_v0, %v9539_v61  ;;  %v12258_v39 = vcombine.high %v9532_v0, %v9539_v61  ;;  %v10596_v12 = vcombine.low %v9548_v60, %v9555_v36  ;;  %v12259_v30 = vcombine.high %v9548_v60, %v9555_v36  ;;  %v9212_v40 = vpop.f32.mrb[85].mxu0 }
 0x8ce   : > { %v10444_v31 = vcombine.low %v9396_v56, %v9403_v27  ;;  %v12254_v44 = vcombine.high %v9396_v56, %v9403_v27  ;;  %v10460_v3 = vcombine.low %v9412_v51, %v9419_v32  ;;  %v12255_v42 = vcombine.high %v9412_v51, %v9419_v32  ;;  %v12709_v43 = vpop.f32.mrb[86].mxu0 }
 0x8cf   : > { %v17973_v14 = vrot.slane %v10580_v38, %v19659_v24  ;;  %v17976_v19 = vrot.slane %v12258_v39, %v19659_v24  ;;  %v17979_v18 = vrot.slane %v10596_v12, %v19659_v24  ;;  %v17982_v22 = vrot.slane %v12259_v30, %v19659_v24  ;;  %v9215_v61 = vpop.f32.mrb[87].mxu0 }
 0x8d0   : > { %v17985_v46 = vrot.slane %v10444_v31, %v19659_v24  ;;  %v17988_v35 = vrot.slane %v12254_v44, %v19659_v24  ;;  %v17991_v17 = vrot.slane %v10460_v3, %v19659_v24  ;;  %v17994_v20 = vrot.slane %v12255_v42, %v19659_v24 }
 0x8d1   : > { %v9584_v1 = vrot.slane %v9576_v41, %v19659_v24  ;;  %v9591_v2 = vrot.slane %v9577_v50, %v19659_v24  ;;  %v9448_v45 = vrot.slane %v9440_v54, %v19659_v24  ;;  %v9455_v0 = vrot.slane %v9441_v62, %v19659_v24 }
 0x8d2   : > { %v9764_v60 = vcombine.low %v17892_v10, %v12708_v29  ;;  %v9765_v36 = vcombine.high %v17892_v10, %v12708_v29  ;;  %v9628_v56 = vcombine.low %v17894_v28, %v9212_v40  ;;  %v9629_v27 = vcombine.high %v17894_v28, %v9212_v40 }
 0x8d3   : > { %v9592_v51 = vcombine.low %v17945_v11, %v9584_v1  ;;  %v9593_v32 = vcombine.high %v17945_v11, %v9584_v1  ;;  %v9608_v41 = vcombine.low %v17948_v49, %v9591_v2  ;;  %v9609_v50 = vcombine.high %v17948_v49, %v9591_v2 }
 0x8d4   : > { %v9456_v54 = vcombine.low %v17951_v52, %v9448_v45  ;;  %v9457_v62 = vcombine.high %v17951_v52, %v9448_v45  ;;  %v9472_v38 = vcombine.low %v17954_v25, %v9455_v0  ;;  %v9473_v10 = vcombine.high %v17954_v25, %v9455_v0  ;;  %v12740_v44 = vpop.f32.mrb[68].mxu1 }
 0x8d5   : > { %v9600_v39 = vrot.slane %v9592_v51, %v19660_v47  ;;  %v9607_v28 = vrot.slane %v9593_v32, %v19660_v47  ;;  %v9616_v12 = vrot.slane %v9608_v41, %v19660_v47  ;;  %v9623_v11 = vrot.slane %v9609_v50, %v19660_v47  ;;  %v9309_v40 = vpop.f32.mrb[69].mxu1 }
 0x8d6   : > { %v9464_v30 = vrot.slane %v9456_v54, %v19660_v47  ;;  %v9471_v49 = vrot.slane %v9457_v62, %v19660_v47  ;;  %v9480_v31 = vrot.slane %v9472_v38, %v19660_v47  ;;  %v9487_v52 = vrot.slane %v9473_v10, %v19660_v47  ;;  %v18020_v51 = vpop.f32.mrb[70].mxu1 }
 0x8d7   : > { %v10648_v3 = vcombine.low %v9600_v39, %v9607_v28  ;;  %v12260_v42 = vcombine.high %v9600_v39, %v9607_v28  ;;  %v10664_v25 = vcombine.low %v9616_v12, %v9623_v11  ;;  %v12261_v29 = vcombine.high %v9616_v12, %v9623_v11  ;;  %v18034_v62 = vpop.f32.mrb[71].mxu1 }
 0x8d8   : > { %v10512_v1 = vcombine.low %v9464_v30, %v9471_v49  ;;  %v12256_v2 = vcombine.high %v9464_v30, %v9471_v49  ;;  %v10528_v45 = vcombine.low %v9480_v31, %v9487_v52  ;;  %v12257_v0 = vcombine.high %v9480_v31, %v9487_v52 }
 0x8d9   : > { %v18023_v32 = vrot.slane %v10648_v3, %v19659_v24  ;;  %v18026_v41 = vrot.slane %v12260_v42, %v19659_v24  ;;  %v18029_v50 = vrot.slane %v10664_v25, %v19659_v24  ;;  %v18032_v54 = vrot.slane %v12261_v29, %v19659_v24 }
 0x8da   : > { %v18037_v38 = vrot.slane %v10512_v1, %v19659_v24  ;;  %v18040_v10 = vrot.slane %v12256_v2, %v19659_v24  ;;  %v18043_v39 = vrot.slane %v10528_v45, %v19659_v24  ;;  %v18046_v28 = vrot.slane %v12257_v0, %v19659_v24 }
 0x8db   : > { %v9772_v12 = vrot.slane %v9764_v60, %v19659_v24  ;;  %v9779_v11 = vrot.slane %v9765_v36, %v19659_v24  ;;  %v9636_v30 = vrot.slane %v9628_v56, %v19659_v24  ;;  %v9643_v49 = vrot.slane %v9629_v27, %v19659_v24 }
 0x8dc   : > { %v9832_v31 = vcombine.low %v17896_v37, %v12709_v43  ;;  %v9833_v52 = vcombine.high %v17896_v37, %v12709_v43  ;;  %v9696_v3 = vcombine.low %v17898_v9, %v9215_v61  ;;  %v9697_v42 = vcombine.high %v17898_v9, %v9215_v61 }
 0x8dd   : > { %v9780_v25 = vcombine.low %v17900_v16, %v12740_v44  ;;  %v9781_v29 = vcombine.high %v17900_v16, %v12740_v44  ;;  %v9644_v60 = vcombine.low %v17902_v48, %v9309_v40  ;;  %v9645_v36 = vcombine.high %v17902_v48, %v9309_v40 }
 0x8de   : > { %v18061_v56 = vrot.slane %v9832_v31, %v19659_v24  ;;  %v18064_v27 = vrot.slane %v9833_v52, %v19659_v24  ;;  %v18067_v37 = vrot.slane %v9696_v3, %v19659_v24  ;;  %v18070_v43 = vrot.slane %v9697_v42, %v19659_v24 }
 0x8df   : > { %v9788_v9 = vrot.slane %v9780_v25, %v19659_v24  ;;  %v9795_v16 = vrot.slane %v9781_v29, %v19659_v24  ;;  %v9652_v61 = vrot.slane %v9644_v60, %v19659_v24  ;;  %v9659_v48 = vrot.slane %v9645_v36, %v19659_v24 }
 0x8e0   : > { %v9848_v44 = vcombine.low %v17904_v26, %v18020_v51  ;;  %v9849_v40 = vcombine.high %v17904_v26, %v18020_v51  ;;  %v9712_v1 = vcombine.low %v17906_v57, %v18034_v62  ;;  %v9713_v2 = vcombine.high %v17906_v57, %v18034_v62 }
 0x8e1   : > { %v9796_v45 = vcombine.low %v9772_v12, %v9788_v9  ;;  %v9797_v0 = vcombine.high %v9772_v12, %v9788_v9  ;;  %v9812_v31 = vcombine.low %v9779_v11, %v9795_v16  ;;  %v9813_v52 = vcombine.high %v9779_v11, %v9795_v16 }
 0x8e2   : > { %v9660_v3 = vcombine.low %v9636_v30, %v9652_v61  ;;  %v9661_v42 = vcombine.high %v9636_v30, %v9652_v61  ;;  %v9676_v25 = vcombine.low %v9643_v49, %v9659_v48  ;;  %v9677_v29 = vcombine.high %v9643_v49, %v9659_v48 }
 0x8e3   : > { %v9804_v60 = vrot.slane %v9796_v45, %v19660_v47  ;;  %v9811_v36 = vrot.slane %v9797_v0, %v19660_v47  ;;  %v9820_v26 = vrot.slane %v9812_v31, %v19660_v47  ;;  %v9827_v51 = vrot.slane %v9813_v52, %v19660_v47 }
 0x8e4   : > { %v9668_v58 = vrot.slane %v9660_v3, %v19660_v47  ;;  %v9675_v57 = vrot.slane %v9661_v42, %v19660_v47  ;;  %v9684_v62 = vrot.slane %v9676_v25, %v19660_v47  ;;  %v9691_v12 = vrot.slane %v9677_v29, %v19660_v47 }
 0x8e5   : > { %v10852_v11 = vcombine.low %v9804_v60, %v9811_v36  ;;  %v12266_v30 = vcombine.high %v9804_v60, %v9811_v36  ;;  %v10868_v9 = vcombine.low %v9820_v26, %v9827_v51  ;;  %v12267_v49 = vcombine.high %v9820_v26, %v9827_v51  ;;  %v18092_v0 = vpop.f32.mrb[88].mxu0 }
 0x8e6   : > { %v10716_v16 = vcombine.low %v9668_v58, %v9675_v57  ;;  %v12262_v61 = vcombine.high %v9668_v58, %v9675_v57  ;;  %v10732_v48 = vcombine.low %v9684_v62, %v9691_v12  ;;  %v12263_v45 = vcombine.high %v9684_v62, %v9691_v12  ;;  %v18106_v25 = vpop.f32.mrb[89].mxu0 }
 0x8e7   : > { %v18095_v31 = vrot.slane %v10852_v11, %v19659_v24  ;;  %v18098_v52 = vrot.slane %v12266_v30, %v19659_v24  ;;  %v18101_v3 = vrot.slane %v10868_v9, %v19659_v24  ;;  %v18104_v42 = vrot.slane %v12267_v49, %v19659_v24  ;;  %v18120_v26 = vpop.f32.mrb[90].mxu0 }
 0x8e8   : > { %v18109_v58 = vrot.slane %v10716_v16, %v19659_v24  ;;  %v18112_v29 = vrot.slane %v12262_v61, %v19659_v24  ;;  %v18115_v60 = vrot.slane %v10732_v48, %v19659_v24  ;;  %v18118_v36 = vrot.slane %v12263_v45, %v19659_v24  ;;  %v18126_v11 = vpop.f32.mrb[91].mxu0 }
 0x8e9   : > { %19661 = vst [vmem:[#allocation34_spill] sm:$0xff] %v18101_v3  ;;  %v9856_v51 = vrot.slane %v9848_v44, %v19659_v24  ;;  %v9863_v57 = vrot.slane %v9849_v40, %v19659_v24  ;;  %v9720_v62 = vrot.slane %v9712_v1, %v19659_v24  ;;  %v9727_v12 = vrot.slane %v9713_v2, %v19659_v24 }
 0x8ea   : > { %19662 = vst [vmem:[#allocation41_spill] sm:$0xff] %v18109_v58  ;;  %19663 = vst [vmem:[#allocation22_spill] sm:$0xff] %v18112_v29  ;;  %v10613_v30 = vcombine.high %v17973_v14, %v17976_v19  ;;  %v10629_v9 = vcombine.high %v17979_v18, %v17982_v22  ;;  %v10681_v49 = vcombine.high %v18023_v32, %v18026_v41 }
 0x8eb   : > { %19664 = vst [vmem:[#allocation54_spill] sm:$0xff] %v18115_v60  ;;  %19665 = vst [vmem:[#allocation56_spill] sm:$0xff] %v18118_v36  ;;  %v10697_v44 = vcombine.high %v18029_v50, %v18032_v54  ;;  %v9864_v40 = vcombine.low %v18061_v56, %v9856_v51  ;;  %v9865_v1 = vcombine.high %v18061_v56, %v9856_v51  ;;  %v13073_v36 = vld [vmem:[#allocation8] sm:$0xff]  }
 0x8ec   : > { %v9880_v2 = vcombine.low %v18064_v27, %v9863_v57  ;;  %v9881_v16 = vcombine.high %v18064_v27, %v9863_v57  ;;  %v9728_v61 = vcombine.low %v18067_v37, %v9720_v62  ;;  %v9729_v48 = vcombine.high %v18067_v37, %v9720_v62  ;;  %12750 = vmatprep.subr.bf16.mxu0 %v13073_v36 }
 0x8ed   : > { %v9744_v45 = vcombine.low %v18070_v43, %v9727_v12  ;;  %v9745_v8 = vcombine.high %v18070_v43, %v9727_v12  ;;  %v9872_v7 = vrot.slane %v9864_v40, %v19660_v47  ;;  %v9879_v53 = vrot.slane %v9865_v1, %v19660_v47  ;;  %v18152_v62 = vpop.f32.mrb[72].mxu1  ;;  %v13074_v43 = vld [vmem:[#allocation8 + $0x8] sm:$0xff]   ;;  %12751 = vmatpush3.bf16.msra.mxu0 %v13073_v36 }
 0x8ee   : > { %v9888_v60 = vrot.slane %v9880_v2, %v19660_v47  ;;  %v9895_v56 = vrot.slane %v9881_v16, %v19660_v47  ;;  %v9736_v51 = vrot.slane %v9728_v61, %v19660_v47  ;;  %v9743_v27 = vrot.slane %v9729_v48, %v19660_v47  ;;  %v18154_v29 = vpop.f32.mrb[73].mxu1  ;;  %12752 = vmatprep.subr.bf16.mxu0 %v13074_v43 }
 0x8ef   : > { %v9752_v57 = vrot.slane %v9744_v45, %v19660_v47  ;;  %v9759_v37 = vrot.slane %v9745_v8, %v19660_v47  ;;  %v10920_v12 = vcombine.low %v9872_v7, %v9879_v53  ;;  %v12268_v40 = vcombine.high %v9872_v7, %v9879_v53  ;;  %v18156_v3 = vpop.f32.mrb[74].mxu1  ;;  %12782 = vmatprep.subr.bf16.mxu1 %v13073_v36 }
 0x8f0   : > { %v10936_v58 = vcombine.low %v9888_v60, %v9895_v56  ;;  %v12269_v1 = vcombine.high %v9888_v60, %v9895_v56  ;;  %v10784_v2 = vcombine.low %v9736_v51, %v9743_v27  ;;  %v12264_v16 = vcombine.high %v9736_v51, %v9743_v27  ;;  %v18170_v7 = vpop.f32.mrb[75].mxu1  ;;  %12790 = vmatpush3.bf16.msra.mxu1 %v13073_v36 }
 0x8f1   : > { %v10800_v55 = vcombine.low %v9752_v57, %v9759_v37  ;;  %v12265_v61 = vcombine.high %v9752_v57, %v9759_v37  ;;  %v18159_v48 = vrot.slane %v10920_v12, %v19659_v24  ;;  %v18162_v8 = vrot.slane %v12268_v40, %v19659_v24  ;;  %12753 = vmatpush3.bf16.msra.mxu0 %v13074_v43 }
 0x8f2   : > { %v18165_v45 = vrot.slane %v10936_v58, %v19659_v24  ;;  %v18168_v53 = vrot.slane %v12269_v1, %v19659_v24  ;;  %v18173_v60 = vrot.slane %v10784_v2, %v19659_v24  ;;  %v18176_v56 = vrot.slane %v12264_v16, %v19659_v24  ;;  %v18184_v58 = vld [vmem:[#allocation8 + $0x10] sm:$0xff]   ;;  %12783 = vmatprep.subr.bf16.mxu1 %v13074_v43 }
 0x8f3   : > { %v18179_v51 = vrot.slane %v10800_v55, %v19659_v24  ;;  %v18182_v27 = vrot.slane %v12265_v61, %v19659_v24  ;;  %v10627_v57 = vrot.slane %v10613_v30, %v19660_v47  ;;  %v10643_v37 = vrot.slane %v10629_v9, %v19660_v47  ;;  %12754 = vmatprep.subr.bf16.mxu0 %v18184_v58 }
 0x8f4   : > { %v10695_v12 = vrot.slane %v10681_v49, %v19660_v47  ;;  %v10711_v40 = vrot.slane %v10697_v44, %v19660_v47  ;;  %v10612_v1 = vcombine.low %v17973_v14, %v17976_v19  ;;  %v10628_v55 = vcombine.low %v17979_v18, %v17982_v22  ;;  %12791 = vmatpush3.bf16.msra.mxu1 %v13074_v43 }
 0x8f5   : > { %v10680_v2 = vcombine.low %v18023_v32, %v18026_v41  ;;  %v10696_v16 = vcombine.low %v18029_v50, %v18032_v54  ;;  %v10646_v30 = vcombine.low %v10627_v57, %v10643_v37  ;;  %v10036_v49 = vcombine.low %v17908_v21, %v18092_v0  ;;  %v18223_v54 = vld [vmem:[#allocation8 + $0x18] sm:$0xff]   ;;  %12755 = vmatpush3.bf16.msra.mxu0 %v18184_v58 }
 0x8f6   : > { %v10714_v9 = vcombine.low %v10695_v12, %v10711_v40  ;;  %v10037_v44 = vcombine.high %v17908_v21, %v18092_v0  ;;  %v18203_v14 = vrot.slane %v10612_v1, %v19660_v47  ;;  %v18206_v19 = vrot.slane %v10628_v55, %v19660_v47  ;;  %12756 = vmatprep.subr.bf16.mxu0 %v18223_v54 }
 0x8f7   : > { %v18209_v18 = vrot.slane %v10680_v2, %v19660_v47  ;;  %v18212_v22 = vrot.slane %v10696_v16, %v19660_v47  ;;  %v18216_v41 = vrot.slane %v10036_v49, %v19659_v24  ;;  %v9900_v50 = vcombine.low %v17910_v15, %v18106_v25  ;;  %12784 = vmatprep.subr.bf16.mxu1 %v18184_v58 }
 0x8f8   : > { %19666 = vst [vmem:[#allocation53_spill] sm:$0xff] %v18203_v14  ;;  %19667 = vst [vmem:[#allocation55_spill] sm:$0xff] %v18206_v19  ;;  %v12926_v32 = vpack.i.bf16 %v10714_v9, %v10646_v30  ;;  %v18219_v21 = vrot.slane %v10037_v44, %v19659_v24  ;;  %v10645_v0 = vcombine.high %v18203_v14, %v18206_v19  ;;  %12792 = vmatpush3.bf16.msra.mxu1 %v18184_v58 }
 0x8f9   : > { %19668 = vst [vmem:[#allocation30_spill] sm:$0xff] %v18209_v18  ;;  %19669 = vst [vmem:[#allocation36_spill] sm:$0xff] %v18212_v22  ;;  %v10713_v36 = vcombine.high %v18209_v18, %v18212_v22  ;;  %v9901_v61 = vcombine.high %v17910_v15, %v18106_v25  ;;  %v10104_v1 = vcombine.low %v17912_v63, %v18120_v26  ;;  %v18233_v55 = vpop.f32.mrb[92].mxu0  ;;  %12757 = vmatpush3.bf16.msra.mxu0 %v18223_v54 }
 0x8fa   : > { %12927 = vrot.lane.b32.xlu0 %v12926_v32, %s13640_s26  ;;  %v18237_v2 = vrot.slane %v9900_v50, %v19659_v24  ;;  %v10105_v16 = vcombine.high %v17912_v63, %v18120_v26  ;;  %v10647_v30 = vcombine.high %v10627_v57, %v10643_v37  ;;  %v10715_v9 = vcombine.high %v10695_v12, %v10711_v40  ;;  %v18241_v49 = vpop.f32.mrb[93].mxu0  ;;  %v18264_v40 = vld [vmem:[#allocation8 + $0x20] sm:$0xff]  }
 0x8fb   : > { %v12921_v44 = vpack.i.bf16 %v10713_v36, %v10645_v0  ;;  %v18244_v15 = vrot.slane %v9901_v61, %v19659_v24  ;;  %v18247_v25 = vrot.slane %v10104_v1, %v19659_v24  ;;  %v9968_v43 = vcombine.low %v17914_v6, %v18126_v11  ;;  %v18251_v32 = vpop.f32.mrb[94].mxu0  ;;  %12758 = vmatprep.subr.bf16.mxu0 %v18264_v40 }
 0x8fc   : > { %v18255_v63 = vrot.slane %v10105_v16, %v19659_v24  ;;  %v12931_v26 = vpack.i.bf16 %v10715_v9, %v10647_v30  ;;  %v9969_v57 = vcombine.high %v17914_v6, %v18126_v11  ;;  %v10476_v37 = vcombine.low %v17985_v46, %v17988_v35  ;;  %v18261_v12 = vpop.f32.mrb[95].mxu0  ;;  %12785 = vmatprep.subr.bf16.mxu1 %v18223_v54 }
 0x8fd   : > { %12922 = vrot.lane.b32.xlu1 %v12921_v44, %s13642_s25  ;;  %v18268_v50 = vrot.slane %v9968_v43, %v19659_v24  ;;  %v10492_v0 = vcombine.low %v17991_v17, %v17994_v20  ;;  %v10544_v6 = vcombine.low %v18037_v38, %v18040_v10  ;;  %v10560_v11 = vcombine.low %v18043_v39, %v18046_v28 }
 0x8fe   : > { %12932 = vrot.lane.b32.xlu0 %v12931_v26, %s13641_s29  ;;  %v18278_v36 = vrot.slane %v9969_v57, %v19659_v24  ;;  %v18281_v61 = vrot.slane %v10476_v37, %v19660_v47  ;;  %v10052_v1 = vcombine.low %v17916_v4, %v18152_v62  ;;  %v10053_v16 = vcombine.high %v17916_v4, %v18152_v62  ;;  %v18306_v37 = vld [vmem:[#allocation8 + $0x28] sm:$0xff]  }
 0x8ff   : > { %v18288_v30 = vrot.slane %v10492_v0, %v19660_v47  ;;  %v18291_v9 = vrot.slane %v10544_v6, %v19660_v47  ;;  %v18294_v44 = vrot.slane %v10560_v11, %v19660_v47  ;;  %v9916_v43 = vcombine.low %v17918_v34, %v18154_v29  ;;  %12759 = vmatpush3.bf16.msra.mxu0 %v18264_v40 }
 0x900   : > { %19670 = vst [vmem:[#allocation19_spill] sm:$0xff] %v18281_v61  ;;  %v10060_v26 = vrot.slane %v10052_v1, %v19659_v24  ;;  %v10067_v57 = vrot.slane %v10053_v16, %v19659_v24  ;;  %v9917_v4 = vcombine.high %v17918_v34, %v18154_v29  ;;  %v10120_v62 = vcombine.low %v17920_v23, %v18156_v3 }
 0x901   : > { %19671 = vst [vmem:[#allocation21_spill] sm:$0xff] %v18288_v30  ;;  %19672 = vst [vmem:[#allocation18_spill] sm:$0xff] %v18291_v9  ;;  %v10509_v0 = vcombine.high %v18281_v61, %v18288_v30  ;;  %v10577_v6 = vcombine.high %v18291_v9, %v18294_v44  ;;  %v9924_v11 = vrot.slane %v9916_v43, %v19659_v24  ;;  %12760 = vmatprep.subr.bf16.mxu0 %v18306_v37 }
 0x902   : > { %19673 = vst [vmem:[#allocation51_spill] sm:$0xff] %v18294_v44  ;;  %v10121_v1 = vcombine.high %v17920_v23, %v18156_v3  ;;  %v10068_v34 = vcombine.low %v18216_v41, %v10060_v26  ;;  %v10069_v29 = vcombine.high %v18216_v41, %v10060_v26  ;;  %v10084_v16 = vcombine.low %v18219_v21, %v10067_v57 }
 0x903   : > { %v10085_v18 = vcombine.high %v18219_v21, %v10067_v57  ;;  %v12936_v61 = vpack.i.bf16 %v10577_v6, %v10509_v0  ;;  %v9931_v9 = vrot.slane %v9917_v4, %v19659_v24  ;;  %v9932_v43 = vcombine.low %v18237_v2, %v9924_v11  ;;  %12761 = vmatpush3.bf16.msra.mxu0 %v18306_v37 }
 0x904   : > { %v9933_v44 = vcombine.high %v18237_v2, %v9924_v11  ;;  %v10076_v23 = vrot.slane %v10068_v34, %v19660_v47  ;;  %v10083_v3 = vrot.slane %v10069_v29, %v19660_v47  ;;  %v10092_v41 = vrot.slane %v10084_v16, %v19660_v47  ;;  %v18329_v21 = vpop.f32.mrb[76].mxu1  ;;  %12793 = vmatpush3.bf16.msra.mxu1 %v18223_v54 }
 0x905   : > { %v10099_v26 = vrot.slane %v10085_v18, %v19660_v47  ;;  %12937 = vrot.lane.b32.xlu0 %v12936_v61, %s13642_s25  ;;  %v9940_v58 = vrot.slane %v9932_v43, %v19660_v47  ;;  %v9948_v57 = vcombine.low %v18244_v15, %v9931_v9  ;;  %v9949_v4 = vcombine.high %v18244_v15, %v9931_v9  ;;  %v18337_v0 = vpop.f32.mrb[77].mxu1 }
 0x906   : > { %v9947_v2 = vrot.slane %v9933_v44, %v19660_v47  ;;  %v11124_v6 = vcombine.low %v10076_v23, %v10083_v3  ;;  %v12274_v11 = vcombine.high %v10076_v23, %v10083_v3  ;;  %v18339_v29 = vpop.f32.mrb[78].mxu1  ;;  %12786 = vmatprep.subr.bf16.mxu1 %v18264_v40  ;;  %v10493_v54 = vcombine.high %v17991_v17, %v17994_v20 }
 0x907   : > { %v11140_v34 = vcombine.low %v10092_v41, %v10099_v26  ;;  %v12275_v18 = vcombine.high %v10092_v41, %v10099_v26  ;;  %v9956_v61 = vrot.slane %v9948_v57, %v19660_v47  ;;  %v9963_v16 = vrot.slane %v9949_v4, %v19660_v47  ;;  %v18344_v30 = vpop.f32.mrb[79].mxu1  ;;  %v13079_v41 = vld [vmem:[#allocation8 + $0x30] sm:$0xff]  }
 0x908   : > { %v10988_v43 = vcombine.low %v9940_v58, %v9947_v2  ;;  %v12270_v44 = vcombine.high %v9940_v58, %v9947_v2  ;;  %v18348_v15 = vrot.slane %v11124_v6, %v19659_v24  ;;  %v18351_v9 = vrot.slane %v12274_v11, %v19659_v24  ;;  %12762 = vmatprep.subr.bf16.mxu0 %v13079_v41 }
 0x909   : > { %v18354_v23 = vrot.slane %v11140_v34, %v19659_v24  ;;  %v18357_v3 = vrot.slane %v12275_v18, %v19659_v24  ;;  %v11004_v2 = vcombine.low %v9956_v61, %v9963_v16  ;;  %v12271_v57 = vcombine.high %v9956_v61, %v9963_v16  ;;  %12763 = vmatpush3.bf16.msra.mxu0 %v13079_v41 }
 0x90a   : > { %v18361_v26 = vrot.slane %v10988_v43, %v19659_v24  ;;  %v18364_v58 = vrot.slane %v12270_v44, %v19659_v24  ;;  %v10128_v4 = vrot.slane %v10120_v62, %v19659_v24  ;;  %v10135_v6 = vrot.slane %v10121_v1, %v19659_v24  ;;  %v18383_v1 = vld [vmem:[#allocation8 + $0x38] sm:$0xff]   ;;  %12794 = vmatpush3.bf16.msra.mxu1 %v18264_v40 }
 0x90b   : > { %v10477_v11 = vcombine.high %v17985_v46, %v17988_v35  ;;  %v18374_v34 = vrot.slane %v11004_v2, %v19659_v24  ;;  %v18377_v18 = vrot.slane %v12271_v57, %v19659_v24  ;;  %v10545_v61 = vcombine.high %v18037_v38, %v18040_v10  ;;  %12764 = vmatprep.subr.bf16.mxu0 %v18383_v1 }
 0x90c   : > { %v10561_v62 = vcombine.high %v18043_v39, %v18046_v28  ;;  %v10136_v46 = vcombine.low %v18247_v25, %v10128_v4  ;;  %v10137_v35 = vcombine.high %v18247_v25, %v10128_v4  ;;  %v10152_v17 = vcombine.low %v18255_v63, %v10135_v6  ;;  %12787 = vmatprep.subr.bf16.mxu1 %v18306_v37 }
 0x90d   : > { %v10153_v20 = vcombine.high %v18255_v63, %v10135_v6  ;;  %v10491_v16 = vrot.slane %v10477_v11, %v19660_v47  ;;  %v10507_v38 = vrot.slane %v10493_v54, %v19660_v47  ;;  %v10559_v10 = vrot.slane %v10545_v61, %v19660_v47  ;;  %12765 = vmatpush3.bf16.msra.mxu0 %v18383_v1 }
 0x90e   : > { %v10575_v39 = vrot.slane %v10561_v62, %v19660_v47  ;;  %v10144_v28 = vrot.slane %v10136_v46, %v19660_v47  ;;  %v10151_v25 = vrot.slane %v10137_v35, %v19660_v47  ;;  %v10160_v43 = vrot.slane %v10152_v17, %v19660_v47  ;;  %12795 = vmatpush3.bf16.msra.mxu1 %v18306_v37 }
 0x90f   : > { %v10167_v63 = vrot.slane %v10153_v20, %v19660_v47  ;;  %v10510_v40 = vcombine.low %v10491_v16, %v10507_v38  ;;  %v9984_v2 = vcombine.low %v17922_v33, %v18170_v7  ;;  %v9985_v57 = vcombine.high %v17922_v33, %v18170_v7  ;;  %12788 = vmatprep.subr.bf16.mxu1 %v13079_v41 }
 0x910   : > { %v10578_v44 = vcombine.low %v10559_v10, %v10575_v39  ;;  %v11192_v4 = vcombine.low %v10144_v28, %v10151_v25  ;;  %v12276_v6 = vcombine.high %v10144_v28, %v10151_v25  ;;  %v10511_v35 = vcombine.high %v10491_v16, %v10507_v38 }
 0x911   : > { %v11208_v11 = vcombine.low %v10160_v43, %v10167_v63  ;;  %v12277_v54 = vcombine.high %v10160_v43, %v10167_v63  ;;  %v9992_v62 = vrot.slane %v9984_v2, %v19659_v24  ;;  %v9999_v46 = vrot.slane %v9985_v57, %v19659_v24 }
 0x912   : > { %v12941_v61 = vpack.i.bf16 %v10578_v44, %v10510_v40  ;;  %v18409_v17 = vrot.slane %v11192_v4, %v19659_v24  ;;  %v18412_v33 = vrot.slane %v12276_v6, %v19659_v24  ;;  %v10579_v25 = vcombine.high %v10559_v10, %v10575_v39  ;;  %12796 = vmatpush3.bf16.msra.mxu1 %v13079_v41 }
 0x913   : > { %v18415_v7 = vrot.slane %v11208_v11, %v19659_v24  ;;  %v18418_v20 = vrot.slane %v12277_v54, %v19659_v24  ;;  %v10000_v37 = vcombine.low %v18268_v50, %v9992_v62  ;;  %v10001_v28 = vcombine.high %v18268_v50, %v9992_v62  ;;  %12789 = vmatprep.subr.bf16.mxu1 %v18383_v1 }
 0x914   : > { %12942 = vrot.lane.b32.xlu0 %v12941_v61, %s13640_s26  ;;  %v10016_v16 = vcombine.low %v18278_v36, %v9999_v46  ;;  %v10017_v38 = vcombine.high %v18278_v36, %v9999_v46  ;;  %v10308_v43 = vcombine.low %v17924_v5, %v18233_v55  ;;  %v10309_v63 = vcombine.high %v17924_v5, %v18233_v55 }
 0x915   : > { %v10172_v40 = vcombine.low %v17926_v59, %v18241_v49  ;;  %v10008_v44 = vrot.slane %v10000_v37, %v19660_v47  ;;  %v10015_v2 = vrot.slane %v10001_v28, %v19660_v47  ;;  %v12946_v36 = vpack.i.bf16 %v10579_v25, %v10511_v35 }
 0x916   : > { %v10024_v50 = vrot.slane %v10016_v16, %v19660_v47  ;;  %v10031_v57 = vrot.slane %v10017_v38, %v19660_v47  ;;  %v18437_v10 = vrot.slane %v10308_v43, %v19659_v24  ;;  %v18440_v5 = vrot.slane %v10309_v63, %v19659_v24  ;;  %12797 = vmatpush3.bf16.msra.mxu1 %v18383_v1  ;;  %v19675_v1 = vld [vmem:[#allocation27_spill] sm:$0xff] }
 0x917   : > { %v10173_v55 = vcombine.high %v17926_v59, %v18241_v49  ;;  %v11056_v41 = vcombine.low %v10008_v44, %v10015_v2  ;;  %v12272_v39 = vcombine.high %v10008_v44, %v10015_v2  ;;  %v18446_v11 = vrot.slane %v10172_v40, %v19659_v24 }
 0x918   : > { %v11072_v4 = vcombine.low %v10024_v50, %v10031_v57  ;;  %v12273_v6 = vcombine.high %v10024_v50, %v10031_v57  ;;  %12947 = vrot.lane.b32.xlu0 %v12946_v36, %s13641_s29  ;;  %v10376_v61 = vcombine.low %v17928_v13, %v18251_v32  ;;  %v10377_v62 = vcombine.high %v17928_v13, %v18251_v32  ;;  %v19674_v32 = vld [vmem:[#allocation34_spill] sm:$0xff] }
 0x919   : > { %v18449_v54 = vrot.slane %v10173_v55, %v19659_v24  ;;  %v18456_v59 = vrot.slane %v11056_v41, %v19659_v24  ;;  %v18459_v49 = vrot.slane %v12272_v39, %v19659_v24  ;;  %v10884_v13 = vcombine.low %v18095_v31, %v18098_v52 }
 0x91a   : > { %v18462_v46 = vrot.slane %v11072_v4, %v19659_v24  ;;  %v18465_v35 = vrot.slane %v12273_v6, %v19659_v24  ;;  %v18469_v37 = vrot.slane %v10376_v61, %v19659_v24  ;;  %v18472_v28 = vrot.slane %v10377_v62, %v19659_v24  ;;  %v19677_v6 = vld [vmem:[#allocation22_spill] sm:$0xff]  ;;  %v19678_v61 = vld [vmem:[#allocation41_spill] sm:$0xff] }
 0x91b   : > { %v10900_v16 = vcombine.low %v19674_v32, %v18104_v42  ;;  %v10952_v38 = vcombine.low %v18159_v48, %v18162_v8  ;;  %v10968_v25 = vcombine.low %v18165_v45, %v18168_v53  ;;  %v10240_v43 = vcombine.low %v19675_v1, %v18261_v12 }
 0x91c   : > { %v10241_v63 = vcombine.high %v19675_v1, %v18261_v12  ;;  %v18487_v40 = vrot.slane %v10884_v13, %v19660_v47  ;;  %v10885_v2 = vcombine.high %v18095_v31, %v18098_v52  ;;  %v10901_v50 = vcombine.high %v19674_v32, %v18104_v42  ;;  %v19679_v13 = vld [vmem:[#allocation56_spill] sm:$0xff]  ;;  %v19680_v32 = vld [vmem:[#allocation54_spill] sm:$0xff] }
 0x91d   : > { %v18490_v44 = vrot.slane %v10900_v16, %v19660_v47  ;;  %v18497_v57 = vrot.slane %v10952_v38, %v19660_v47  ;;  %v18500_v36 = vrot.slane %v10968_v25, %v19660_v47  ;;  %v18503_v12 = vrot.slane %v10240_v43, %v19659_v24 }
 0x91e   : > { %v18506_v55 = vrot.slane %v10241_v63, %v19659_v24  ;;  %v18511_v31 = vrot.slane %v10885_v2, %v19660_v47  ;;  %v18514_v52 = vrot.slane %v10901_v50, %v19660_v47  ;;  %v10953_v42 = vcombine.high %v18159_v48, %v18162_v8  ;;  %v19683_v50 = vld [vmem:[#allocation40_spill] sm:$0xff] }
 0x91f   : > { %19676 = vst [vmem:[#allocation16_spill] sm:$0xff] %v18497_v57  ;;  %v10917_v41 = vcombine.high %v18487_v40, %v18490_v44  ;;  %v10985_v39 = vcombine.high %v18497_v57, %v18500_v36  ;;  %v10969_v4 = vcombine.high %v18165_v45, %v18168_v53  ;;  %v10748_v62 = vcombine.low %v19678_v61, %v19677_v6 }
 0x920   : > { %v10764_v16 = vcombine.low %v19680_v32, %v19679_v13  ;;  %v10918_v38 = vcombine.low %v18511_v31, %v18514_v52  ;;  %v18529_v25 = vrot.slane %v10953_v42, %v19660_v47  ;;  %v10816_v48 = vcombine.low %v18173_v60, %v18176_v56 }
 0x921   : > { %v10832_v8 = vcombine.low %v18179_v51, %v18182_v27  ;;  %v12951_v1 = vpack.i.bf16 %v10985_v39, %v10917_v41  ;;  %v18536_v45 = vrot.slane %v10969_v4, %v19660_v47  ;;  %v18539_v53 = vrot.slane %v10748_v62, %v19660_v47  ;;  %v19684_v62 = vld [vmem:[#allocation33_spill] sm:$0xff] }
 0x922   : > { %v18542_v43 = vrot.slane %v10764_v16, %v19660_v47  ;;  %v18545_v63 = vrot.slane %v10816_v48, %v19660_v47  ;;  %v10324_v42 = vcombine.low %v19683_v50, %v18329_v21  ;;  %v10325_v41 = vcombine.high %v19683_v50, %v18329_v21 }
 0x923   : > { %19681 = vst [vmem:[#allocation48_spill] sm:$0xff] %v18539_v53  ;;  %v18548_v2 = vrot.slane %v10832_v8, %v19660_v47  ;;  %12952 = vrot.lane.b32.xlu0 %v12951_v1, %s13642_s25  ;;  %v10986_v39 = vcombine.low %v18529_v25, %v18536_v45  ;;  %v10188_v16 = vcombine.low %v19684_v62, %v18337_v0  ;;  %v19685_v1 = vld [vmem:[#allocation32_spill] sm:$0xff] }
 0x924   : > { %19682 = vst [vmem:[#allocation45_spill] sm:$0xff] %v18542_v43  ;;  %v10781_v4 = vcombine.high %v18539_v53, %v18542_v43  ;;  %v10189_v48 = vcombine.high %v19684_v62, %v18337_v0  ;;  %v10332_v22 = vrot.slane %v10324_v42, %v19659_v24  ;;  %v10339_v21 = vrot.slane %v10325_v41, %v19659_v24 }
 0x925   : > { %v10849_v8 = vcombine.high %v18545_v63, %v18548_v2  ;;  %v10392_v50 = vcombine.low %v19685_v1, %v18339_v29  ;;  %v12956_v14 = vpack.i.bf16 %v10986_v39, %v10918_v38  ;;  %v10196_v19 = vrot.slane %v10188_v16, %v19659_v24 }
 0x926   : > { %v10203_v53 = vrot.slane %v10189_v48, %v19659_v24  ;;  %v10393_v43 = vcombine.high %v19685_v1, %v18339_v29  ;;  %v10340_v0 = vcombine.low %v18437_v10, %v10332_v22  ;;  %v10341_v62 = vcombine.high %v18437_v10, %v10332_v22 }
 0x927   : > { %v12961_v57 = vpack.i.bf16 %v10849_v8, %v10781_v4  ;;  %v10356_v42 = vcombine.low %v18440_v5, %v10339_v21  ;;  %12957 = vrot.lane.b32.xlu0 %v12956_v14, %s13640_s26  ;;  %v10357_v41 = vcombine.high %v18440_v5, %v10339_v21  ;;  %v10204_v38 = vcombine.low %v18446_v11, %v10196_v19 }
 0x928   : > { %v10205_v39 = vcombine.high %v18446_v11, %v10196_v19  ;;  %v10220_v16 = vcombine.low %v18449_v54, %v10203_v53  ;;  %v10348_v48 = vrot.slane %v10340_v0, %v19660_v47  ;;  %v10355_v29 = vrot.slane %v10341_v62, %v19660_v47 }
 0x929   : > { %v10364_v4 = vrot.slane %v10356_v42, %v19660_v47  ;;  %v10221_v22 = vcombine.high %v18449_v54, %v10203_v53  ;;  %v10371_v10 = vrot.slane %v10357_v41, %v19660_v47  ;;  %v10212_v14 = vrot.slane %v10204_v38, %v19660_v47 }
 0x92a   : > { %v10219_v5 = vrot.slane %v10205_v39, %v19660_v47  ;;  %v10228_v8 = vrot.slane %v10220_v16, %v19660_v47  ;;  %v11396_v21 = vcombine.low %v10348_v48, %v10355_v29  ;;  %v12282_v19 = vcombine.high %v10348_v48, %v10355_v29 }
 0x92b   : > { %v10235_v11 = vrot.slane %v10221_v22, %v19660_v47  ;;  %v10400_v1 = vrot.slane %v10392_v50, %v19659_v24  ;;  %12962 = vrot.lane.b32.xlu0 %v12961_v57, %s13642_s25  ;;  %v11412_v0 = vcombine.low %v10364_v4, %v10371_v10  ;;  %v12283_v62 = vcombine.high %v10364_v4, %v10371_v10 }
 0x92c   : > { %v11260_v42 = vcombine.low %v10212_v14, %v10219_v5  ;;  %v12278_v54 = vcombine.high %v10212_v14, %v10219_v5  ;;  %v18593_v53 = vrot.slane %v11396_v21, %v19659_v24  ;;  %v18596_v41 = vrot.slane %v12282_v19, %v19659_v24  ;;  %v19686_v5 = vld [vmem:[#allocation39_spill] sm:$0xff] }
 0x92d   : > { %v11276_v38 = vcombine.low %v10228_v8, %v10235_v11  ;;  %v12279_v39 = vcombine.high %v10228_v8, %v10235_v11  ;;  %v18599_v16 = vrot.slane %v11412_v0, %v19659_v24  ;;  %v18602_v48 = vrot.slane %v12283_v62, %v19659_v24 }
 0x92e   : > { %v18605_v57 = vrot.slane %v11260_v42, %v19659_v24  ;;  %v18608_v50 = vrot.slane %v12278_v54, %v19659_v24  ;;  %v10407_v22 = vrot.slane %v10393_v43, %v19659_v24  ;;  %v10408_v10 = vcombine.low %v18469_v37, %v10400_v1 }
 0x92f   : > { %v18611_v29 = vrot.slane %v11276_v38, %v19659_v24  ;;  %v18614_v4 = vrot.slane %v12279_v39, %v19659_v24  ;;  %v10409_v14 = vcombine.high %v18469_v37, %v10400_v1  ;;  %v10256_v8 = vcombine.low %v19686_v5, %v18344_v30 }
 0x930   : > { %v10257_v21 = vcombine.high %v19686_v5, %v18344_v30  ;;  %v10749_v19 = vcombine.high %v19678_v61, %v19677_v6  ;;  %v10416_v11 = vrot.slane %v10408_v10, %v19660_v47  ;;  %v10424_v0 = vcombine.low %v18472_v28, %v10407_v22 }
 0x931   : > { %v10425_v62 = vcombine.high %v18472_v28, %v10407_v22  ;;  %v10765_v43 = vcombine.high %v19680_v32, %v19679_v13  ;;  %v10423_v37 = vrot.slane %v10409_v14, %v19660_v47  ;;  %v10264_v1 = vrot.slane %v10256_v8, %v19659_v24 }
 0x932   : > { %v10271_v42 = vrot.slane %v10257_v21, %v19659_v24  ;;  %v10763_v30 = vrot.slane %v10749_v19, %v19660_v47  ;;  %v10432_v54 = vrot.slane %v10424_v0, %v19660_v47  ;;  %v10817_v28 = vcombine.high %v18173_v60, %v18176_v56 }
 0x933   : > { %v10439_v6 = vrot.slane %v10425_v62, %v19660_v47  ;;  %v10779_v61 = vrot.slane %v10765_v43, %v19660_v47  ;;  %v11464_v38 = vcombine.low %v10416_v11, %v10423_v37  ;;  %v12284_v39 = vcombine.high %v10416_v11, %v10423_v37 }
 0x934   : > { %v10272_v13 = vcombine.low %v18503_v12, %v10264_v1  ;;  %v10273_v32 = vcombine.high %v18503_v12, %v10264_v1  ;;  %v10288_v14 = vcombine.low %v18506_v55, %v10271_v42  ;;  %v10289_v5 = vcombine.high %v18506_v55, %v10271_v42 }
 0x935   : > { %v11480_v22 = vcombine.low %v10432_v54, %v10439_v6  ;;  %v12285_v10 = vcombine.high %v10432_v54, %v10439_v6  ;;  %v18644_v8 = vrot.slane %v11464_v38, %v19659_v24  ;;  %v18647_v21 = vrot.slane %v12284_v39, %v19659_v24 }
 0x936   : > { %v10280_v60 = vrot.slane %v10272_v13, %v19660_v47  ;;  %v10287_v56 = vrot.slane %v10273_v32, %v19660_v47  ;;  %v10296_v11 = vrot.slane %v10288_v14, %v19660_v47  ;;  %v10303_v55 = vrot.slane %v10289_v5, %v19660_v47 }
 0x937   : > { %v18652_v19 = vrot.slane %v11480_v22, %v19659_v24  ;;  %v18655_v12 = vrot.slane %v12285_v10, %v19659_v24  ;;  %v10782_v43 = vcombine.low %v10763_v30, %v10779_v61  ;;  %v10831_v37 = vrot.slane %v10817_v28, %v19660_v47 }
 0x938   : > { %v11328_v0 = vcombine.low %v10280_v60, %v10287_v56  ;;  %v12280_v62 = vcombine.high %v10280_v60, %v10287_v56  ;;  %v11344_v1 = vcombine.low %v10296_v11, %v10303_v55  ;;  %v12281_v42 = vcombine.high %v10296_v11, %v10303_v55 }
 0x939   : > { %v10833_v54 = vcombine.high %v18179_v51, %v18182_v27  ;;  %v11156_v6 = vcombine.low %v18348_v15, %v18351_v9  ;;  %v11172_v13 = vcombine.low %v18354_v23, %v18357_v3  ;;  %v11224_v28 = vcombine.low %v18409_v17, %v18412_v33 }
 0x93a   : > { %v18665_v38 = vrot.slane %v11328_v0, %v19659_v24  ;;  %v18668_v39 = vrot.slane %v12280_v62, %v19659_v24  ;;  %v18675_v32 = vrot.slane %v11344_v1, %v19659_v24  ;;  %v18678_v51 = vrot.slane %v12281_v42, %v19659_v24 }
 0x93b   : > { %v10847_v27 = vrot.slane %v10833_v54, %v19660_v47  ;;  %v18682_v22 = vrot.slane %v11156_v6, %v19660_v47  ;;  %v18685_v10 = vrot.slane %v11172_v13, %v19660_v47  ;;  %v18688_v14 = vrot.slane %v11224_v28, %v19660_v47 }
 0x93c   : > { %v11240_v5 = vcombine.low %v18415_v7, %v18418_v20  ;;  %v10783_v60 = vcombine.high %v10763_v30, %v10779_v61  ;;  %v11157_v24 = vcombine.high %v18348_v15, %v18351_v9  ;;  %v11173_v55 = vcombine.high %v18354_v23, %v18357_v3 }
 0x93d   : > { %v10850_v56 = vcombine.low %v10831_v37, %v10847_v27  ;;  %v10851_v11 = vcombine.high %v10831_v37, %v10847_v27  ;;  %v11189_v0 = vcombine.high %v18682_v22, %v18685_v10  ;;  %v11225_v1 = vcombine.high %v18409_v17, %v18412_v33 }
 0x93e   : > { %v18699_v62 = vrot.slane %v11240_v5, %v19660_v47  ;;  %v11241_v30 = vcombine.high %v18415_v7, %v18418_v20  ;;  %v11171_v42 = vrot.slane %v11157_v24, %v19660_v47  ;;  %v11187_v15 = vrot.slane %v11173_v55, %v19660_v47 }
 0x93f   : > { %v12966_v61 = vpack.i.bf16 %v10850_v56, %v10782_v43  ;;  %v12971_v37 = vpack.i.bf16 %v10851_v11, %v10783_v60  ;;  %v11239_v23 = vrot.slane %v11225_v1, %v19660_v47  ;;  %v10919_v54 = vcombine.high %v18511_v31, %v18514_v52 }
 0x940   : > { %v11257_v9 = vcombine.high %v18688_v14, %v18699_v62  ;;  %v11255_v3 = vrot.slane %v11241_v30, %v19660_v47  ;;  %v11190_v17 = vcombine.low %v11171_v42, %v11187_v15  ;;  %v10987_v33 = vcombine.high %v18529_v25, %v18536_v45 }
 0x941   : > { %12967 = vrot.lane.b32.xlu0 %v12966_v61, %s13640_s26  ;;  %v11191_v7 = vcombine.high %v11171_v42, %v11187_v15  ;;  %v11020_v20 = vcombine.low %v18361_v26, %v18364_v58  ;;  %v11036_v28 = vcombine.low %v18374_v34, %v18377_v18  ;;  %v11088_v31 = vcombine.low %v18456_v59, %v18459_v49 }
 0x942   : > { %v12976_v43 = vpack.i.bf16 %v11257_v9, %v11189_v0  ;;  %v11258_v6 = vcombine.low %v11239_v23, %v11255_v3  ;;  %v11259_v13 = vcombine.high %v11239_v23, %v11255_v3  ;;  %v13031_v27 = vpack.i.bf16 %v10987_v33, %v10919_v54 }
 0x943   : > { %v18721_v5 = vrot.slane %v11020_v20, %v19660_v47  ;;  %v11104_v52 = vcombine.low %v18462_v46, %v18465_v35  ;;  %v18729_v60 = vrot.slane %v11036_v28, %v19660_v47  ;;  %v11021_v56 = vcombine.high %v18361_v26, %v18364_v58 }
 0x944   : > { %12977 = vrot.lane.b32.xlu1 %v12976_v43, %s13642_s25  ;;  %v12981_v25 = vpack.i.bf16 %v11258_v6, %v11190_v17  ;;  %v12986_v45 = vpack.i.bf16 %v11259_v13, %v11191_v7  ;;  %v18735_v11 = vrot.slane %v11088_v31, %v19660_v47  ;;  %v11037_v55 = vcombine.high %v18374_v34, %v18377_v18 }
 0x945   : > { %12972 = vrot.lane.b32.xlu0 %v12971_v37, %s13641_s29  ;;  %v18738_v24 = vrot.slane %v11104_v52, %v19660_v47  ;;  %v11089_v0 = vcombine.high %v18456_v59, %v18459_v49  ;;  %v11053_v1 = vcombine.high %v18721_v5, %v18729_v60  ;;  %v11035_v30 = vrot.slane %v11021_v56, %v19660_v47 }
 0x946   : > { %v11105_v26 = vcombine.high %v18462_v46, %v18465_v35  ;;  %v11428_v58 = vcombine.low %v18593_v53, %v18596_v41  ;;  %v11051_v37 = vrot.slane %v11037_v55, %v19660_v47  ;;  %v11444_v18 = vcombine.low %v18599_v16, %v18602_v48 }
 0x947   : > { %v11121_v61 = vcombine.high %v18735_v11, %v18738_v24  ;;  %v11103_v34 = vrot.slane %v11089_v0, %v19660_v47  ;;  %v11496_v46 = vcombine.low %v18644_v8, %v18647_v21  ;;  %v11512_v35 = vcombine.low %v18652_v19, %v18655_v12 }
 0x948   : > { %12982 = vrot.lane.b32.xlu1 %v12981_v25, %s13640_s26  ;;  %v11119_v59 = vrot.slane %v11105_v26, %v19660_v47  ;;  %v18760_v49 = vrot.slane %v11428_v58, %v19660_v47  ;;  %v11054_v15 = vcombine.low %v11035_v30, %v11051_v37  ;;  %v11055_v9 = vcombine.high %v11035_v30, %v11051_v37 }
 0x949   : > { %13032 = vrot.lane.b32.xlu0 %v13031_v27, %s13641_s29  ;;  %v12991_v42 = vpack.i.bf16 %v11121_v61, %v11053_v1  ;;  %v18768_v23 = vrot.slane %v11444_v18, %v19660_v47  ;;  %v18771_v17 = vrot.slane %v11496_v46, %v19660_v47  ;;  %v18774_v33 = vrot.slane %v11512_v35, %v19660_v47 }
 0x94a   : > { %v11122_v3 = vcombine.low %v11103_v34, %v11119_v59  ;;  %v11123_v54 = vcombine.high %v11103_v34, %v11119_v59  ;;  %v11429_v20 = vcombine.high %v18593_v53, %v18596_v41  ;;  %v11445_v43 = vcombine.high %v18599_v16, %v18602_v48 }
 0x94b   : > { %v11461_v7 = vcombine.high %v18760_v49, %v18768_v23  ;;  %v11497_v6 = vcombine.high %v18644_v8, %v18647_v21  ;;  %v11529_v27 = vcombine.high %v18771_v17, %v18774_v33  ;;  %v11513_v31 = vcombine.high %v18652_v19, %v18655_v12 }
 0x94c   : > { %12987 = vrot.lane.b32.xlu1 %v12986_v45, %s13641_s29  ;;  %v12996_v13 = vpack.i.bf16 %v11122_v3, %v11054_v15  ;;  %v13001_v28 = vpack.i.bf16 %v11123_v54, %v11055_v9  ;;  %v11443_v52 = vrot.slane %v11429_v20, %v19660_v47  ;;  %v11459_v53 = vrot.slane %v11445_v43, %v19660_v47  ;;  %v19687_v54 = vld [vmem:[#allocation16_spill] sm:$0xff] }
 0x94d   : > { %v11511_v41 = vrot.slane %v11497_v6, %v19660_v47  ;;  %v11292_v16 = vcombine.low %v18605_v57, %v18608_v50  ;;  %v13006_v48 = vpack.i.bf16 %v11529_v27, %v11461_v7  ;;  %v11527_v8 = vrot.slane %v11513_v31, %v19660_v47  ;;  %v19689_v20 = vld [vmem:[#allocation48_spill] sm:$0xff] }
 0x94e   : > { %v11308_v21 = vcombine.low %v18611_v29, %v18614_v4  ;;  %v11360_v25 = vcombine.low %v18665_v38, %v18668_v39  ;;  %v11462_v45 = vcombine.low %v11443_v52, %v11459_v53  ;;  %v11376_v12 = vcombine.low %v18675_v32, %v18678_v51 }
 0x94f   : > { %v18800_v19 = vrot.slane %v11292_v16, %v19660_v47  ;;  %v11293_v56 = vcombine.high %v18605_v57, %v18608_v50  ;;  %v11530_v55 = vcombine.low %v11511_v41, %v11527_v8  ;;  %v11309_v30 = vcombine.high %v18611_v29, %v18614_v4 }
 0x950   : > { %12992 = vrot.lane.b32.xlu1 %v12991_v42, %s13642_s25  ;;  %v18808_v0 = vrot.slane %v11308_v21, %v19660_v47  ;;  %v18811_v1 = vrot.slane %v11360_v25, %v19660_v47  ;;  %v18816_v26 = vrot.slane %v11376_v12, %v19660_v47  ;;  %v11361_v57 = vcombine.high %v18665_v38, %v18668_v39 }
 0x951   : > { %v11307_v58 = vrot.slane %v11293_v56, %v19660_v47  ;;  %v11377_v50 = vcombine.high %v18675_v32, %v18678_v51  ;;  %v13011_v61 = vpack.i.bf16 %v11530_v55, %v11462_v45  ;;  %v11323_v34 = vrot.slane %v11309_v30, %v19660_v47  ;;  %v19690_v55 = vld [vmem:[#allocation55_spill] sm:$0xff]  ;;  %v19691_v30 = vld [vmem:[#allocation53_spill] sm:$0xff] }
 0x952   : > { %v11325_v37 = vcombine.high %v18800_v19, %v18808_v0  ;;  %v11463_v18 = vcombine.high %v11443_v52, %v11459_v53  ;;  %v11393_v29 = vcombine.high %v18811_v1, %v18816_v26  ;;  %v11375_v4 = vrot.slane %v11361_v57, %v19660_v47  ;;  %v19693_v57 = vld [vmem:[#allocation30_spill] sm:$0xff] }
 0x953   : > { %v11391_v59 = vrot.slane %v11377_v50, %v19660_v47  ;;  %v11531_v46 = vcombine.high %v11511_v41, %v11527_v8  ;;  %v11326_v38 = vcombine.low %v11307_v58, %v11323_v34  ;;  %v11327_v39 = vcombine.high %v11307_v58, %v11323_v34  ;;  %v19688_v47 = vld [vmem:[#allocation45_spill] sm:$0xff] }
 0x954   : > { %12997 = vrot.lane.b32.xlu1 %v12996_v13, %s13640_s26  ;;  %v13016_v32 = vpack.i.bf16 %v11393_v29, %v11325_v37  ;;  %v10916_v3 = vcombine.low %v18487_v40, %v18490_v44  ;;  %v10984_v7 = vcombine.low %v19687_v54, %v18500_v36  ;;  %v10780_v43 = vcombine.low %v19689_v20, %v19688_v47 }
 0x955   : > { %v11394_v51 = vcombine.low %v11375_v4, %v11391_v59  ;;  %v11395_v35 = vcombine.high %v11375_v4, %v11391_v59  ;;  %v13036_v42 = vpack.i.bf16 %v11531_v46, %v11463_v18  ;;  %v10848_v6 = vcombine.low %v18545_v63, %v18548_v2 }
 0x956   : > { %v11188_v13 = vcombine.low %v18682_v22, %v18685_v10  ;;  %v11256_v27 = vcombine.low %v18688_v14, %v18699_v62  ;;  %v11052_v31 = vcombine.low %v18721_v5, %v18729_v60  ;;  %v11120_v52 = vcombine.low %v18735_v11, %v18738_v24 }
 0x957   : > { %v13021_v15 = vpack.i.bf16 %v11394_v51, %v11326_v38  ;;  %v13026_v9 = vpack.i.bf16 %v11395_v35, %v11327_v39  ;;  %v11528_v53 = vcombine.low %v18771_v17, %v18774_v33  ;;  %v11324_v41 = vcombine.low %v18800_v19, %v18808_v0  ;;  %v19694_v51 = vld [vmem:[#allocation21_spill] sm:$0xff]  ;;  %v19695_v35 = vld [vmem:[#allocation19_spill] sm:$0xff] }
 0x958   : > { %13002 = vrot.lane.b32.xlu1 %v13001_v28, %s13641_s29  ;;  %v11460_v28 = vcombine.low %v18760_v49, %v18768_v23  ;;  %v11392_v16 = vcombine.low %v18811_v1, %v18816_v26  ;;  %v10644_v58 = vcombine.low %v19691_v30, %v19690_v55  ;;  %v12286_v33 = vld [vmem:[#allocation2 + $0x6] ss:$0 sm:$0xff] }
 0x95c   : > { %13007 = vrot.lane.b32.xlu1 %v13006_v48, %s13642_s25  ;;  %v19692_v48 = vld [vmem:[#allocation36_spill] sm:$0xff] }
 0x95d   : > { %v10712_v50 = vcombine.low %v19693_v57, %v19692_v48 }
 0x960   : > { %13012 = vrot.lane.b32.xlu1 %v13011_v61, %s13640_s26 }
 0x964   : > { %13017 = vrot.lane.b32.xlu1 %v13016_v32, %s13642_s25 }
 0x968   : > { %13022 = vrot.lane.b32.xlu1 %v13021_v15, %s13640_s26  ;;  %v19696_v15 = vld [vmem:[#allocation51_spill] sm:$0xff] }
 0x96c   : > { %13027 = vrot.lane.b32.xlu1 %v13026_v9, %s13641_s29  ;;  %v12928_v8 = vpop.permute.xlu0 %12927  ;;  %v19697_v9 = vld [vmem:[#allocation18_spill] sm:$0xff] }
 0x96d   : > { %v12930_v37 = vunpack.i.h.bf16 %v12928_v8  ;;  %v12929_v34 = vunpack.i.l.bf16 %v12928_v8 }
 0x96f   : > { %v12923_v45 = vpop.permute.xlu1 %12922 }
 0x970   : > { %13037 = vrot.lane.b32.xlu1 %v13036_v42, %s13641_s29  ;;  %v12933_v21 = vpop.permute.xlu0 %12932  ;;  %v12925_v12 = vunpack.i.h.bf16 %v12923_v45  ;;  %v12924_v56 = vunpack.i.l.bf16 %v12923_v45  ;;  %v10508_v42 = vcombine.low %v19695_v35, %v19694_v51  ;;  %v10576_v45 = vcombine.low %v19697_v9, %v19696_v15 }
 0x971   : > { %v12935_v46 = vunpack.i.h.bf16 %v12933_v21  ;;  %v12934_v38 = vunpack.i.l.bf16 %v12933_v21 }
 0x972   : > { %v11727_v18 = vsel %vm7779_vm0, %v10712_v50, %v12925_v12  ;;  %v11726_v29 = vsel %vm7779_vm0, %v10644_v58, %v12924_v56 }
 0x973   : > { %v11743_v8 = vsel %vm11740_vm1, %v11726_v29, %v12929_v34  ;;  %v11744_v55 = vsel %vm11740_vm1, %v11727_v18, %v12930_v37 }
 0x974   : > { %v11760_v58 = vsel %vm11757_vm2, %v11743_v8, %v12934_v38  ;;  %v11761_v48 = vsel %vm11757_vm2, %v11744_v55, %v12935_v46 }
 0x975   : > { %v11775_v18 = vpack.c.bf16 %v11761_v48, %v11760_v58 }
 0x977   : > { %v12938_v25 = vpop.permute.xlu0 %12937 }
 0x978   : > { %v12940_v4 = vunpack.i.h.bf16 %v12938_v25  ;;  %v12939_v59 = vunpack.i.l.bf16 %v12938_v25 }
 0x97a   : > { %v11724_v56 = vsel %vm7779_vm0, %v10508_v42, %v12939_v59  ;;  %v11725_v25 = vsel %vm7779_vm0, %v10576_v45, %v12940_v4 }
 0x986   : > { %v12943_v61 = vpop.permute.xlu0 %12942 }
 0x987   : > { %v12945_v39 = vunpack.i.h.bf16 %v12943_v61  ;;  %v12944_v32 = vunpack.i.l.bf16 %v12943_v61 }
 0x989   : > { %v11741_v57 = vsel %vm11740_vm1, %v11724_v56, %v12944_v32  ;;  %v11742_v50 = vsel %vm11740_vm1, %v11725_v25, %v12945_v39 }
 0x98a   : > { %v12948_v12 = vpop.permute.xlu0 %12947 }
 0x98b   : > { %v12950_v30 = vunpack.i.h.bf16 %v12948_v12  ;;  %v12949_v21 = vunpack.i.l.bf16 %v12948_v12 }
 0x98d   : > { %v11758_v61 = vsel %vm11757_vm2, %v11741_v57, %v12949_v21  ;;  %v11759_v34 = vsel %vm11757_vm2, %v11742_v50, %v12950_v30 }
 0x98e   : > { %v11774_v37 = vpack.c.bf16 %v11759_v34, %v11758_v61 }
 0x990   : > { %12766 = vmatprep.mubr.bf16.mxu0 %v11774_v37 }
 0x991   : > { %12767 = vmatmul.mubr.bf16.vlgmr.msra.gmra.mrb[96].mxu0 %v11775_v18 }
 0x995   : > { %v12953_v29 = vpop.permute.xlu0 %12952 }
 0x996   : > { %v12955_v32 = vunpack.i.h.bf16 %v12953_v29  ;;  %v12954_v9 = vunpack.i.l.bf16 %v12953_v29 }
 0x998   : > { %v11730_v63 = vsel %vm7779_vm0, %v10916_v3, %v12954_v9  ;;  %v11731_v2 = vsel %vm7779_vm0, %v10984_v7, %v12955_v32 }
 0x999   : > { %v12958_v4 = vpop.permute.xlu0 %12957 }
 0x99a   : > { %v12960_v56 = vunpack.i.h.bf16 %v12958_v4  ;;  %v12959_v25 = vunpack.i.l.bf16 %v12958_v4 }
 0x99c   : > { %v11747_v18 = vsel %vm11740_vm1, %v11730_v63, %v12959_v25  ;;  %v11748_v29 = vsel %vm11740_vm1, %v11731_v2, %v12960_v56 }
 0x99d   : > { %v12963_v59 = vpop.permute.xlu0 %12962 }
 0x99e   : > { %v12965_v35 = vunpack.i.h.bf16 %v12963_v59  ;;  %v12964_v38 = vunpack.i.l.bf16 %v12963_v59 }
 0x9a0   : > { %v11728_v45 = vsel %vm7779_vm0, %v10780_v43, %v12964_v38  ;;  %v11729_v8 = vsel %vm7779_vm0, %v10848_v6, %v12965_v35 }
 0x9b3   : > { %v12968_v51 = vpop.permute.xlu0 %12967 }
 0x9b4   : > { %v12970_v42 = vunpack.i.h.bf16 %v12968_v51  ;;  %v12969_v46 = vunpack.i.l.bf16 %v12968_v51 }
 0x9b6   : > { %v12978_v15 = vpop.permute.xlu1 %12977  ;;  %v11745_v30 = vsel %vm11740_vm1, %v11728_v45, %v12969_v46  ;;  %v11746_v21 = vsel %vm11740_vm1, %v11729_v8, %v12970_v42 }
 0x9b7   : > { %v12973_v39 = vpop.permute.xlu0 %12972  ;;  %v12980_v58 = vunpack.i.h.bf16 %v12978_v15  ;;  %v12979_v20 = vunpack.i.l.bf16 %v12978_v15 }
 0x9b8   : > { %v12975_v55 = vunpack.i.h.bf16 %v12973_v39  ;;  %v12974_v12 = vunpack.i.l.bf16 %v12973_v39 }
 0x9b9   : > { %v11735_v40 = vsel %vm7779_vm0, %v11256_v27, %v12980_v58  ;;  %v11734_v54 = vsel %vm7779_vm0, %v11188_v13, %v12979_v20 }
 0x9ba   : > { %v12983_v48 = vpop.permute.xlu1 %12982  ;;  %v11762_v57 = vsel %vm11757_vm2, %v11745_v30, %v12974_v12  ;;  %v11763_v47 = vsel %vm11757_vm2, %v11746_v21, %v12975_v55 }
 0x9bb   : > { %v13033_v43 = vpop.permute.xlu0 %13032  ;;  %v11776_v6 = vpack.c.bf16 %v11763_v47, %v11762_v57  ;;  %v12985_v50 = vunpack.i.h.bf16 %v12983_v48  ;;  %v12984_v61 = vunpack.i.l.bf16 %v12983_v48 }
 0x9bc   : > { %v13035_v34 = vunpack.i.h.bf16 %v13033_v43  ;;  %v13034_v37 = vunpack.i.l.bf16 %v13033_v43 }
 0x9bd   : > { %12770 = vmatprep.mubr.bf16.mxu0 %v11776_v6  ;;  %v11751_v51 = vsel %vm11740_vm1, %v11734_v54, %v12984_v61  ;;  %v11752_v35 = vsel %vm11740_vm1, %v11735_v40, %v12985_v50 }
 0x9be   : > { %v12988_v44 = vpop.permute.xlu1 %12987  ;;  %v11764_v36 = vsel %vm11757_vm2, %v11747_v18, %v13034_v37  ;;  %v11765_v3 = vsel %vm11757_vm2, %v11748_v29, %v13035_v34 }
 0x9bf   : > { %v12990_v7 = vunpack.i.h.bf16 %v12988_v44  ;;  %v12989_v4 = vunpack.i.l.bf16 %v12988_v44  ;;  %v11777_v59 = vpack.c.bf16 %v11765_v3, %v11764_v36 }
 0x9c1   : > { %v11768_v14 = vsel %vm11757_vm2, %v11751_v51, %v12989_v4  ;;  %v11769_v62 = vsel %vm11757_vm2, %v11752_v35, %v12990_v7  ;;  %12771 = vmatmul.mubr.bf16.gmra.mrb[100].mxu0 %v11777_v59 }
 0x9c2   : > { %v11779_v27 = vpack.c.bf16 %v11769_v62, %v11768_v14  ;;  %v12993_v38 = vpop.permute.xlu1 %12992 }
 0x9c3   : > { %v12995_v46 = vunpack.i.h.bf16 %v12993_v38  ;;  %v12994_v15 = vunpack.i.l.bf16 %v12993_v38 }
 0x9c5   : > { %v11733_v32 = vsel %vm7779_vm0, %v11120_v52, %v12995_v46  ;;  %v11732_v9 = vsel %vm7779_vm0, %v11052_v31, %v12994_v15 }
 0x9c6   : > { %v12998_v42 = vpop.permute.xlu1 %12997 }
 0x9c7   : > { %v13000_v22 = vunpack.i.h.bf16 %v12998_v42  ;;  %v12999_v10 = vunpack.i.l.bf16 %v12998_v42 }
 0x9c9   : > { %v11749_v8 = vsel %vm11740_vm1, %v11732_v9, %v12999_v10  ;;  %v11750_v55 = vsel %vm11740_vm1, %v11733_v32, %v13000_v22 }
 0x9ca   : > { %v13003_v13 = vpop.permute.xlu1 %13002 }
 0x9cb   : > { %v13005_v39 = vunpack.i.h.bf16 %v13003_v13  ;;  %v13004_v45 = vunpack.i.l.bf16 %v13003_v13 }
 0x9cd   : > { %v11766_v12 = vsel %vm11757_vm2, %v11749_v8, %v13004_v45  ;;  %v11767_v56 = vsel %vm11757_vm2, %v11750_v55, %v13005_v39 }
 0x9ce   : > { %v13008_v25 = vpop.permute.xlu1 %13007  ;;  %v11778_v30 = vpack.c.bf16 %v11767_v56, %v11766_v12 }
 0x9cf   : > { %v13010_v58 = vunpack.i.h.bf16 %v13008_v25  ;;  %v13009_v48 = vunpack.i.l.bf16 %v13008_v25 }
 0x9d0   : > { %12774 = vmatprep.mubr.bf16.mxu1 %v11778_v30 }
 0x9d1   : > { %12775 = vmatmul.mubr.bf16.vlgmr.msra.gmra.mrb[80].mxu1 %v11779_v27  ;;  %v11739_v19 = vsel %vm7779_vm0, %v11528_v53, %v13010_v58  ;;  %v11738_v0 = vsel %vm7779_vm0, %v11460_v28, %v13009_v48 }
 0x9d2   : > { %v13013_v11 = vpop.permute.xlu1 %13012 }
 0x9d3   : > { %v13015_v43 = vunpack.i.h.bf16 %v13013_v11  ;;  %v13014_v6 = vunpack.i.l.bf16 %v13013_v11 }
 0x9d5   : > { %v11755_v18 = vsel %vm11740_vm1, %v11738_v0, %v13014_v6  ;;  %v11756_v29 = vsel %vm11740_vm1, %v11739_v19, %v13015_v43 }
 0x9d6   : > { %v13018_v24 = vpop.permute.xlu1 %13017 }
 0x9d7   : > { %v13020_v5 = vunpack.i.h.bf16 %v13018_v24  ;;  %v13019_v60 = vunpack.i.l.bf16 %v13018_v24 }
 0x9d9   : > { %v11737_v47 = vsel %vm7779_vm0, %v11392_v16, %v13020_v5  ;;  %v11736_v63 = vsel %vm7779_vm0, %v11324_v41, %v13019_v60 }
 0x9da   : > { %v13023_v52 = vpop.permute.xlu1 %13022 }
 0x9db   : > { %v13025_v31 = vunpack.i.h.bf16 %v13023_v52  ;;  %v13024_v21 = vunpack.i.l.bf16 %v13023_v52 }
 0x9dd   : > { %v11753_v50 = vsel %vm11740_vm1, %v11736_v63, %v13024_v21  ;;  %v11754_v61 = vsel %vm11740_vm1, %v11737_v47, %v13025_v31 }
 0x9de   : > { %v13028_v57 = vpop.permute.xlu1 %13027 }
 0x9df   : > { %v13030_v2 = vunpack.i.h.bf16 %v13028_v57  ;;  %v13029_v20 = vunpack.i.l.bf16 %v13028_v57 }
 0x9e1   : > { %v11770_v34 = vsel %vm11757_vm2, %v11753_v50, %v13029_v20  ;;  %v11771_v37 = vsel %vm11757_vm2, %v11754_v61, %v13030_v2 }
 0x9e2   : > { %v13038_v1 = vpop.permute.xlu1 %13037  ;;  %v11780_v26 = vpack.c.bf16 %v11771_v37, %v11770_v34 }
 0x9e3   : > { %v13040_v41 = vunpack.i.h.bf16 %v13038_v1  ;;  %v13039_v16 = vunpack.i.l.bf16 %v13038_v1 }
 0x9e4   : > { %12778 = vmatprep.mubr.bf16.mxu1 %v11780_v26 }
 0x9e5   : > { %v11772_v40 = vsel %vm11757_vm2, %v11755_v18, %v13039_v16  ;;  %v11773_v44 = vsel %vm11757_vm2, %v11756_v29, %v13040_v41 }
 0x9e6   : > { %v11781_v17 = vpack.c.bf16 %v11773_v44, %v11772_v40 }
 0x9e8   : > { %12779 = vmatmul.mubr.bf16.gmra.mrb[84].mxu1 %v11781_v17 }
 0xa64   : > { %v12768_v53 = vpop.f32.mrb[96].mxu0 }
 0xa65   : > { %v11893_v36 = vadd.f32 %v12768_v53, %v12286_v33  ;;  %v11884_v49 = vpop.f32.mrb[97].mxu0 }
 0xa66   : > { %v11885_v23 = vadd.f32 %v12286_v33, %v11884_v49  ;;  %v12769_v28 = vpop.f32.mrb[98].mxu0 }
 0xa67   : > { %11949 = vst [vmem:[%s18955_s6 + $0x10] sm:$0xff] %v11893_v36  ;;  %v11896_v3 = vadd.f32 %v12769_v28, %v12286_v33  ;;  %v11887_v54 = vpop.f32.mrb[99].mxu0 }
 0xa68   : > { %11947 = vst [vmem:[%s18955_s6] sm:$0xff] %v11885_v23  ;;  %v11888_v7 = vadd.f32 %v12286_v33, %v11887_v54 }
 0xa69   : > { %11950 = vst [vmem:[%s18955_s6 + $0x18] sm:$0xff] %v11896_v3 }
 0xa6a   : > { %11948 = vst [vmem:[%s18955_s6 + $0x8] sm:$0xff] %v11888_v7 }
 0xa94   : > { %v12772_v4 = vpop.f32.mrb[100].mxu0 }
 0xa95   : > { %v11909_v59 = vadd.f32 %v12772_v4, %v12286_v33  ;;  %v11900_v51 = vpop.f32.mrb[101].mxu0 }
 0xa96   : > { %v11901_v35 = vadd.f32 %v12286_v33, %v11900_v51  ;;  %v12773_v14 = vpop.f32.mrb[102].mxu0 }
 0xa97   : > { %11953 = vst [vmem:[%s18955_s6 + $0x30] sm:$0xff] %v11909_v59  ;;  %v11912_v62 = vadd.f32 %v12773_v14, %v12286_v33  ;;  %v11903_v27 = vpop.f32.mrb[103].mxu0 }
 0xa98   : > { %11951 = vst [vmem:[%s18955_s6 + $0x20] sm:$0xff] %v11901_v35  ;;  %v11904_v38 = vadd.f32 %v12286_v33, %v11903_v27 }
 0xa99   : > { %11954 = vst [vmem:[%s18955_s6 + $0x38] sm:$0xff] %v11912_v62 }
 0xa9a   : > { %11952 = vst [vmem:[%s18955_s6 + $0x28] sm:$0xff] %v11904_v38 }
 0xaa4   : > { %v12776_v42 = vpop.f32.mrb[80].mxu1 }
 0xaa5   : > { %v11925_v46 = vadd.f32 %v12776_v42, %v12286_v33  ;;  %v11916_v15 = vpop.f32.mrb[81].mxu1 }
 0xaa6   : > { %v11917_v22 = vadd.f32 %v12286_v33, %v11916_v15  ;;  %v12777_v10 = vpop.f32.mrb[82].mxu1 }
 0xaa7   : > { %11957 = vst [vmem:[%s18955_s6 + $0x50] sm:$0xff] %v11925_v46  ;;  %v11928_v13 = vadd.f32 %v12777_v10, %v12286_v33  ;;  %v11919_v32 = vpop.f32.mrb[83].mxu1 }
 0xaa8   : > { %11955 = vst [vmem:[%s18955_s6 + $0x40] sm:$0xff] %v11917_v22  ;;  %v11920_v9 = vadd.f32 %v12286_v33, %v11919_v32 }
 0xaa9   : > { %11958 = vst [vmem:[%s18955_s6 + $0x58] sm:$0xff] %v11928_v13 }
 0xaaa   : > { %11956 = vst [vmem:[%s18955_s6 + $0x48] sm:$0xff] %v11920_v9 }
 0xabb   : > { %v12780_v39 = vpop.f32.mrb[84].mxu1 }
 0xabc   : > { %v11941_v45 = vadd.f32 %v12780_v39, %v12286_v33  ;;  %v11932_v8 = vpop.f32.mrb[85].mxu1 }
 0xabd   : > { %v11933_v55 = vadd.f32 %v12286_v33, %v11932_v8  ;;  %v12781_v12 = vpop.f32.mrb[86].mxu1 }
 0xabe   : > { %11961 = vst [vmem:[%s18955_s6 + $0x70] sm:$0xff] %v11941_v45  ;;  %v11944_v56 = vadd.f32 %v12781_v12, %v12286_v33  ;;  %v11935_v25 = vpop.f32.mrb[87].mxu1 }
 0xabf   : > { %11959 = vst [vmem:[%s18955_s6 + $0x60] sm:$0xff] %v11933_v55  ;;  %v11936_v30 = vadd.f32 %v12286_v33, %v11935_v25 }
 0xac0   : > { %11962 = vst [vmem:[%s18955_s6 + $0x78] sm:$0xff] %v11944_v56 }
 0xac1   : > { %11960 = vst [vmem:[%s18955_s6 + $0x68] sm:$0xff] %v11936_v30 }
 0xac2   : > { %13562 = shalt.err (!%p13559_p6)
}
 0xac3   : > { %s13563_s12 = scalar_lea.hbm %s18975_s22, 2048  ;;  %s13567_s0 = scalar_lea.hbm %s19030_s4, 4096 }
 0xac4   : > { %p13564_p13 = scmp.ne.s32.totalorder %s18975_s22, %s13563_s12  ;;  %p13568_p9 = scmp.lt.u32.totalorder %s18975_s22, %s19030_s4 }
 0xac5   : > { %p13569_p10 = scmp.lt.u32.totalorder %s13567_s0, %s13563_s12  ;;  %p13571_p0 = scmp.lt.u32.totalorder %s13563_s12, %s18975_s22 }
 0xac6   : > { %p13565_p8 = pnand %p13564_p13, %p19698_p7 }
 0xac7   : > { %p13570_p1 = por %p13569_p10, %p13568_p9 }
 0xac8   : > { %p13566_p3 = pneg %p13565_p8 }
 0xac9   : > { %p13572_p2 = por %p13571_p0, %p13570_p1 }
 0xacb   : > { %p13573_p4 = pnand %p13572_p2, %p13566_p3 }
 0xacd   : > { %13576 = shalt.err (!%p13573_p4)
}
 0xace   : > { %s13646_s29 = smov 128   ;;  %s13647_s25 = smov 8  }
 0xacf   : > { %12844 = dma.vmem_to_hbm [thread:$0]  (%p19698_p7), %s18977_s13, 2048, %s18975_s22, %s18984_s19, %s13646_s29, %s13646_s29, %s13647_s25  }
 0xad0 PF: > { %s11992_s6 = sand.u32 1, %s13615_s15   ;;  %p19699_p11 = scmp.ne.s32.totalorder %s19218_s28, 0 }
 0xad1   : > { %p19700_p12 = scmp.ge.s32.totalorder %s13627_s18, 2  ;;  %s11993_s10 = scalar_lea.sflag [#allocation4], %s11992_s6 }
 0xad3   : > { %p12861_p5 = pnand %p19700_p12, %p19699_p11 }
 0xad5   : > { %13610 = dma.done.wait (!%p12861_p5), %s11993_s10, 2048  }
 0xad6   : > { %13612 = vsyncadd (!%p12861_p5), %s11993_s10, 4294965248  ;;  %p19_p6 = scmp.ge.s32.totalorder %s13698_s21, 4   ;;  %s19701_s15 = smov %s13619_s16 }
 0xad7   : > { %s19702_s16 = smov %s13623_s17  ;;  %s19703_s17 = smov %s13710_s24 }
 0xad8   : > { %s19704_s18 = smov %s13698_s21  ;;  %21 = sbr.rel (!%p19_p6) target bundleno = 9 (0x9), region = 94 }
 0xadf   :  { %11998 = vsyncpa [#allocation3], 1 }
 0xae0   :  { %12000 = vsyncpa [#allocation3 + $0x1], 1 }
 0xae1   :  { %12001 = vsyncpa [#allocation6], 1 }
 0xae2   :  { %12003 = vsyncpa [#allocation6 + $0x1], 1 }
 0xae3   :  { %12004 = vsyncpa [#allocation9], 1 }
 0xae4   :  { %12005 = vsyncpa [#allocation4], 1 }
 0xae5   :  { %12007 = vsyncpa [#allocation4 + $0x1], 1 }

</bundles_post_ra>
